<compile_context>
chip_gen: v7x
topology: tpu7x:2x2x1
jax: 0.10.0
libtpu: 0.0.40
codegen_flags: <defaults>
</compile_context>

<pallas_src>
import functools

import jax
import jax.numpy as jnp
from jax.experimental import pallas as pl
from jax.experimental.pallas import tpu as pltpu

_NEG_SLOPE = 0.2      # GATConv default leaky_relu negative_slope
_MASK_VAL = -1e30     # finite "minus infinity" for masked logits


def _fused_gat_kernel(x_ref, adj_ref,
                      w1_ref, al1_ref, ar1_ref,
                      w2_ref, al2_ref, ar2_ref,
                      h_out_ref, attn1_ref, attn2_ref,
                      h1_ref,
                      *, heads1, feats1, heads2, feats2):
    """Two fused GAT layers; everything VMEM-resident (node axis padded to 128)."""
    adj = adj_ref[...]                 # (Np, Np) float 1.0/0.0
    adj_mask = adj > 0.0               # shared by both layers

    def gat_layer(feat, w_ref, al_ref, ar_ref, attn_ref, out_ref, H, D):
        # fc: h = feat @ W (no bias). bf16 MXU operands, f32 accumulation.
        h = jnp.dot(feat.astype(jnp.bfloat16),
                    w_ref[...].astype(jnp.bfloat16),
                    preferred_element_type=jnp.float32)          # (Np, H*D) f32

        # Per-head attention scores for all heads at once (hoisted out of the
        # head loop): AL/AR are (H*D, 128) block projections so column h of
        # (h @ AL) is el for head h.  Scores stay in f32.
        el = jnp.dot(h, al_ref[...], preferred_element_type=jnp.float32)  # (Np,128)
        er = jnp.dot(h, ar_ref[...], preferred_element_type=jnp.float32)  # (Np,128)
        # Single tile-aligned transpose so el is lane-major (per-src row).
        el_t = el.T                                               # (128, Np)

        h_bf16 = h.astype(jnp.bfloat16)

        for hd in range(H):            # small static head loop (unrolled)
            # e[t, s] = leaky_relu(er[t] + el[s])    (u_add_v + leaky_relu)
            e = er[:, hd:hd + 1] + el_t[hd:hd + 1, :]             # (Np, Np) f32
            e = jnp.where(e > 0, e, _NEG_SLOPE * e)

            # edge_softmax over incoming edges (src axis), masked by adjacency.
            logits = jnp.where(adj_mask, e, _MASK_VAL)
            m = jnp.max(logits, axis=1, keepdims=True)
            p = jnp.exp(logits - m) * adj                         # EUP exp, f32
            s = jnp.sum(p, axis=1, keepdims=True)
            inv_s = pl.reciprocal(s, approx=True)                 # EUP slot
            a = p * jnp.where(s > 0.0, inv_s, 0.0)                # 0-in-degree safe

            attn_ref[hd, :, :] = a                                # lane-dense store

            # update_all(u_mul_e, sum): rst_head = a @ h_head
            out_ref[:, hd * D:(hd + 1) * D] = jnp.dot(
                a.astype(jnp.bfloat16),
                h_bf16[:, hd * D:(hd + 1) * D],
                preferred_element_type=jnp.float32)

    # Layer 1 -> VMEM scratch (no HBM round trip), layer 2 -> output ref.
    gat_layer(x_ref[...], w1_ref, al1_ref, ar1_ref, attn1_ref, h1_ref,
              heads1, feats1)
    gat_layer(h1_ref[...], w2_ref, al2_ref, ar2_ref, attn2_ref, h_out_ref,
              heads2, feats2)


def _score_projection(attn_vec):
    """(H, D) per-head attention vector -> (H*D, 128) block projection.

    (h @ proj)[:, k] == sum_d h[:, k*D + d] * attn_vec[k, d]   for k < H.
    Lane dim padded to 128 so the in-kernel transpose is tile-aligned.
    """
    H, D = attn_vec.shape
    h_pad = max(128, ((H + 127) // 128) * 128)
    eye = jnp.eye(H, h_pad, dtype=attn_vec.dtype)                # (H, 128)
    return (attn_vec[:, :, None] * eye[:, None, :]).reshape(H * D, h_pad)


def standard_gat_forward(h, adj, src_idx, dst_idx, params):
    """StandardGAT.forward. Returns (h2, attn1, attn2) with DGL shapes."""
    (w1, al1, ar1, w2, al2, ar2) = params
    N, F_in = h.shape
    H1, D1 = al1.shape
    H2, D2 = al2.shape
    n_pad = max(128, ((N + 127) // 128) * 128)   # lane-dense node axis

    # Zero padding keeps results exact: padded src cols are adj-masked, padded
    # dst rows have zero in-degree -> attention 0 -> zero output rows.
    x_p = jnp.zeros((n_pad, F_in), h.dtype).at[:N, :].set(h)
    adj_p = jnp.zeros((n_pad, n_pad), jnp.float32).at[:N, :N].set(
        adj.astype(jnp.float32))

    al1_p, ar1_p = _score_projection(al1), _score_projection(ar1)
    al2_p, ar2_p = _score_projection(al2), _score_projection(ar2)

    kernel = functools.partial(_fused_gat_kernel,
                               heads1=H1, feats1=D1, heads2=H2, feats2=D2)

    # Advisory cost estimate for XLA scheduling around the custom call.
    flops = int(2 * n_pad * F_in * H1 * D1
                + 2 * n_pad * (H1 * D1) * (H2 * D2)
                + 2 * H1 * n_pad * n_pad * D1
                + 2 * H2 * n_pad * n_pad * D2
                + 8 * (H1 + H2) * n_pad * n_pad)
    transcendentals = int((H1 + H2 + 2) * n_pad * n_pad)
    bytes_accessed = int(4 * (x_p.size + adj_p.size + w1.size + w2.size
                              + n_pad * H2 * D2
                              + (H1 + H2) * n_pad * n_pad))

    h2_p, attn1_d, attn2_d = pl.pallas_call(
        kernel,
        out_shape=(
            jax.ShapeDtypeStruct((n_pad, H2 * D2), jnp.float32),   # rst.view(N,-1)
            jax.ShapeDtypeStruct((H1, n_pad, n_pad), jnp.float32),  # dense attn L1
            jax.ShapeDtypeStruct((H2, n_pad, n_pad), jnp.float32),  # dense attn L2
        ),
        in_specs=[pl.BlockSpec(memory_space=pltpu.MemorySpace.VMEM)] * 8,
        out_specs=(
            pl.BlockSpec(memory_space=pltpu.MemorySpace.VMEM),
            pl.BlockSpec(memory_space=pltpu.MemorySpace.VMEM),
            pl.BlockSpec(memory_space=pltpu.MemorySpace.VMEM),
        ),
        scratch_shapes=[pltpu.VMEM((n_pad, H1 * D1), jnp.float32)],  # h1 stays on chip
        compiler_params=pltpu.CompilerParams(vmem_limit_bytes=32 * 1024 * 1024),
        cost_estimate=pl.CostEstimate(flops=flops,
                                      transcendentals=transcendentals,
                                      bytes_accessed=bytes_accessed),
    )(x_p, adj_p, w1, al1_p, ar1_p, w2, al2_p, ar2_p)

    # Glue: unpad node features, gather DGL-style per-edge attention (E, H, 1).
    h_out = h2_p[:N]
    attn1 = jnp.transpose(attn1_d[:, dst_idx, src_idx], (1, 0))[..., None]
    attn2 = jnp.transpose(attn2_d[:, dst_idx, src_idx], (1, 0))[..., None]
    return h_out, attn1, attn2


# ----------------------- pure-JAX reference (f32) ---------------------------
def _reference_layer(x, w, attn_l, attn_r, adj):
    H, D = attn_l.shape
    N = x.shape[0]
    hh = (x @ w).reshape(N, H, D)
    el = jnp.einsum('nhd,hd->nh', hh, attn_l)
    er = jnp.einsum('nhd,hd->nh', hh, attn_r)
    e = er[:, None, :] + el[None, :, :]                    # (dst, src, H)
    e = jnp.where(e > 0, e, _NEG_SLOPE * e)
    mask = (adj > 0)[:, :, None]
    logits = jnp.where(mask, e, _MASK_VAL)
    p = jnp.exp(logits - logits.max(axis=1, keepdims=True)) * adj[:, :, None]
    s = p.sum(axis=1, keepdims=True)
    a = p / jnp.where(s > 0, s, 1.0)
    out = jnp.einsum('tsh,shd->thd', a, hh).reshape(N, H * D)
    return out, a


def _reference_forward(h, adj, src_idx, dst_idx, params):
    (w1, al1, ar1, w2, al2, ar2) = params
    h1, a1 = _reference_layer(h, w1, al1, ar1, adj)
    h2, a2 = _reference_layer(h1, w2, al2, ar2, adj)
    return h2, a1[dst_idx, src_idx, :][..., None], a2[dst_idx, src_idx, :][..., None]


if __name__ == "__main__":
    # Small deterministic problem.
    N = 8
    in_dim = 8
    hidden_dim = 8
    out_dim = 8
    num_heads = 4      # layer1 heads; layer2 uses 4 heads as in StandardGAT

    # Deterministic graph: each node receives edges from (i-1)%N, i, (i+1)%N.
    src_list, dst_list = [], []
    for t in range(N):
        for s in ((t - 1) % N, t, (t + 1) % N):
            src_list.append(s)
            dst_list.append(t)
    src_idx = jnp.array(src_list, dtype=jnp.int32)
    dst_idx = jnp.array(dst_list, dtype=jnp.int32)
    adj = jnp.zeros((N, N), dtype=jnp.float32).at[dst_idx, src_idx].set(1.0)

    key = jax.random.PRNGKey(0)
    k_x, k_w1, k_al1, k_ar1, k_w2, k_al2, k_ar2 = jax.random.split(key, 7)

    x = jax.random.normal(k_x, (N, in_dim), dtype=jnp.float32)

    # Layer 1 params: fc (in_dim -> H*hidden_dim), attn (H, hidden_dim)
    w1 = jax.random.normal(k_w1, (in_dim, num_heads * hidden_dim),
                           dtype=jnp.float32) * 0.1
    al1 = jax.random.normal(k_al1, (num_heads, hidden_dim), dtype=jnp.float32) * 0.1
    ar1 = jax.random.normal(k_ar1, (num_heads, hidden_dim), dtype=jnp.float32) * 0.1

    # Layer 2 params: fc (H*hidden_dim -> 4*out_dim), attn (4, out_dim)
    w2 = jax.random.normal(k_w2, (hidden_dim * num_heads, 4 * out_dim),
                           dtype=jnp.float32) * 0.1
    al2 = jax.random.normal(k_al2, (4, out_dim), dtype=jnp.float32) * 0.1
    ar2 = jax.random.normal(k_ar2, (4, out_dim), dtype=jnp.float32) * 0.1

    params = (w1, al1, ar1, w2, al2, ar2)

    h_out, attn1, attn2 = standard_gat_forward(x, adj, src_idx, dst_idx, params)
    jax.block_until_ready((h_out, attn1, attn2))

    assert h_out.shape == (N, 4 * out_dim)
    assert attn1.shape == (src_idx.shape[0], num_heads, 1)
    assert attn2.shape == (src_idx.shape[0], 4, 1)
    assert bool(jnp.all(jnp.isfinite(h_out)))
    assert bool(jnp.all(jnp.isfinite(attn1))) and bool(jnp.all(jnp.isfinite(attn2)))

    # Loose check against a pure-JAX f32 reference (kernel uses bf16 MXU
    # operands and an approximate reciprocal, so tolerances are generous).
    h_ref, a1_ref, a2_ref = _reference_forward(x, adj, src_idx, dst_idx, params)
    assert bool(jnp.allclose(attn1, a1_ref, rtol=5e-2, atol=1e-2))
    assert bool(jnp.allclose(attn2, a2_ref, rtol=5e-2, atol=1e-2))
    assert bool(jnp.allclose(h_out, h_ref, rtol=1e-1, atol=2e-2))

    print("KERNEL_OK")
</pallas_src>

<mosaic_0001>
module attributes {stable_mosaic.version = 11 : i64} {
  func.func @_fused_gat_kernel(%arg0: memref<128x8xf32, #tpu.memory_space<vmem>>, %arg1: memref<128x128xf32, #tpu.memory_space<vmem>>, %arg2: memref<8x32xf32, #tpu.memory_space<vmem>>, %arg3: memref<32x128xf32, #tpu.memory_space<vmem>>, %arg4: memref<32x128xf32, #tpu.memory_space<vmem>>, %arg5: memref<32x32xf32, #tpu.memory_space<vmem>>, %arg6: memref<32x128xf32, #tpu.memory_space<vmem>>, %arg7: memref<32x128xf32, #tpu.memory_space<vmem>>, %arg8: memref<128x32xf32, #tpu.memory_space<vmem>>, %arg9: memref<4x128x128xf32, #tpu.memory_space<vmem>>, %arg10: memref<4x128x128xf32, #tpu.memory_space<vmem>>, %arg11: memref<128x32xf32, #tpu.memory_space<vmem>>) attributes {dimension_semantics = [], scalar_prefetch = 0 : i64, scratch_operands = 1 : i64, tpu.core_type = #tpu.core_type<tc>} {
    %c0 = arith.constant 0 : index
    %c0_0 = arith.constant 0 : index
    %0 = vector.load %arg1[%c0, %c0_0] : memref<128x128xf32, #tpu.memory_space<vmem>>, vector<128x128xf32>
    %cst = arith.constant 0.000000e+00 : f32
    %1 = vector.broadcast %cst : f32 to vector<128x128xf32>
    %2 = arith.cmpf ogt, %0, %1 : vector<128x128xf32>
    %c0_1 = arith.constant 0 : index
    %c0_2 = arith.constant 0 : index
    %3 = vector.load %arg0[%c0_1, %c0_2] : memref<128x8xf32, #tpu.memory_space<vmem>>, vector<128x8xf32>
    %4 = arith.truncf %3 : vector<128x8xf32> to vector<128x8xbf16>
    %c0_3 = arith.constant 0 : index
    %c0_4 = arith.constant 0 : index
    %5 = vector.load %arg2[%c0_3, %c0_4] : memref<8x32xf32, #tpu.memory_space<vmem>>, vector<8x32xf32>
    %6 = arith.truncf %5 : vector<8x32xf32> to vector<8x32xbf16>
    %cst_5 = arith.constant dense<0.000000e+00> : vector<128x32xf32>
    %7 = tpu.matmul %4, %6, %cst_5 {dimension_numbers = #tpu.dot_dimension_numbers<[1], [0], [0], [1], [0, 0, 1, 1], [], []>} : vector<128x8xbf16>, vector<8x32xbf16>, vector<128x32xf32> -> vector<128x32xf32>
    %c0_6 = arith.constant 0 : index
    %c0_7 = arith.constant 0 : index
    %8 = vector.load %arg3[%c0_6, %c0_7] : memref<32x128xf32, #tpu.memory_space<vmem>>, vector<32x128xf32>
    %cst_8 = arith.constant dense<0.000000e+00> : vector<128x128xf32>
    %9 = tpu.matmul %7, %8, %cst_8 {dimension_numbers = #tpu.dot_dimension_numbers<[1], [0], [0], [1], [0, 0, 1, 1], [], []>} : vector<128x32xf32>, vector<32x128xf32>, vector<128x128xf32> -> vector<128x128xf32>
    %c0_9 = arith.constant 0 : index
    %c0_10 = arith.constant 0 : index
    %10 = vector.load %arg4[%c0_9, %c0_10] : memref<32x128xf32, #tpu.memory_space<vmem>>, vector<32x128xf32>
    %cst_11 = arith.constant dense<0.000000e+00> : vector<128x128xf32>
    %11 = tpu.matmul %7, %10, %cst_11 {dimension_numbers = #tpu.dot_dimension_numbers<[1], [0], [0], [1], [0, 0, 1, 1], [], []>} : vector<128x32xf32>, vector<32x128xf32>, vector<128x128xf32> -> vector<128x128xf32>
    %12 = tpu.transpose %9, [1, 0] : vector<128x128xf32> -> vector<128x128xf32>
    %13 = arith.truncf %7 : vector<128x32xf32> to vector<128x32xbf16>
    %14 = vector.extract_strided_slice %11 {offsets = [0, 0], sizes = [128, 1], strides = [1, 1]} : vector<128x128xf32> to vector<128x1xf32>
    %15 = vector.extract_strided_slice %12 {offsets = [0, 0], sizes = [1, 128], strides = [1, 1]} : vector<128x128xf32> to vector<1x128xf32>
    %16 = vector.broadcast %14 : vector<128x1xf32> to vector<128x128xf32>
    %17 = vector.broadcast %15 : vector<1x128xf32> to vector<128x128xf32>
    %18 = arith.addf %16, %17 : vector<128x128xf32>
    %cst_12 = arith.constant 0.000000e+00 : f32
    %19 = vector.broadcast %cst_12 : f32 to vector<128x128xf32>
    %20 = arith.cmpf ogt, %18, %19 : vector<128x128xf32>
    %cst_13 = arith.constant 2.000000e-01 : f32
    %21 = vector.broadcast %cst_13 : f32 to vector<128x128xf32>
    %22 = arith.mulf %21, %18 : vector<128x128xf32>
    %23 = arith.select %20, %18, %22 : vector<128x128xi1>, vector<128x128xf32>
    %cst_14 = arith.constant -1.000000e+30 : f32
    %24 = vector.broadcast %cst_14 : f32 to vector<128x128xf32>
    %25 = arith.select %2, %23, %24 : vector<128x128xi1>, vector<128x128xf32>
    %cst_15 = arith.constant dense<0xFF800000> : vector<128xf32>
    %26 = vector.multi_reduction <maximumf>, %25, %cst_15 [1] : vector<128x128xf32> to vector<128xf32>
    %27 = vector.shape_cast %26 : vector<128xf32> to vector<128x1xf32>
    %28 = vector.broadcast %27 : vector<128x1xf32> to vector<128x128xf32>
    %29 = arith.subf %25, %28 : vector<128x128xf32>
    %30 = math.exp %29 : vector<128x128xf32>
    %31 = arith.mulf %30, %0 : vector<128x128xf32>
    %cst_16 = arith.constant dense<0.000000e+00> : vector<128xf32>
    %32 = vector.multi_reduction <add>, %31, %cst_16 [1] : vector<128x128xf32> to vector<128xf32>
    %33 = vector.shape_cast %32 : vector<128xf32> to vector<128x1xf32>
    %34 = tpu.reciprocal %33 {approx = true} : vector<128x1xf32> -> vector<128x1xf32>
    %cst_17 = arith.constant 0.000000e+00 : f32
    %35 = vector.broadcast %cst_17 : f32 to vector<128x1xf32>
    %36 = arith.cmpf ogt, %33, %35 : vector<128x1xf32>
    %cst_18 = arith.constant 0.000000e+00 : f32
    %37 = vector.broadcast %cst_18 : f32 to vector<128x1xf32>
    %38 = arith.select %36, %34, %37 : vector<128x1xi1>, vector<128x1xf32>
    %39 = vector.broadcast %38 : vector<128x1xf32> to vector<128x128xf32>
    %40 = arith.mulf %31, %39 : vector<128x128xf32>
    %c0_19 = arith.constant 0 : index
    %c0_20 = arith.constant 0 : index
    %c0_21 = arith.constant 0 : index
    %41 = vector.load %arg9[%c0_19, %c0_20, %c0_21] : memref<4x128x128xf32, #tpu.memory_space<vmem>>, vector<1x128x128xf32>
    %42 = vector.shape_cast %41 : vector<1x128x128xf32> to vector<128x128xf32>
    %43 = vector.shape_cast %40 : vector<128x128xf32> to vector<1x128x128xf32>
    tpu.vector_store %arg9[%c0_19, %c0_20, %c0_21], %43 {strides = array<i32>} : memref<4x128x128xf32, #tpu.memory_space<vmem>>, vector<1x128x128xf32>,
    %44 = arith.truncf %40 : vector<128x128xf32> to vector<128x128xbf16>
    %45 = vector.extract_strided_slice %13 {offsets = [0, 0], sizes = [128, 8], strides = [1, 1]} : vector<128x32xbf16> to vector<128x8xbf16>
    %cst_22 = arith.constant dense<0.000000e+00> : vector<128x8xf32>
    %46 = tpu.matmul %44, %45, %cst_22 {dimension_numbers = #tpu.dot_dimension_numbers<[1], [0], [0], [1], [0, 0, 1, 1], [], []>} : vector<128x128xbf16>, vector<128x8xbf16>, vector<128x8xf32> -> vector<128x8xf32>
    %c0_23 = arith.constant 0 : index
    %c0_24 = arith.constant 0 : index
    %47 = vector.load %arg11[%c0_23, %c0_24] : memref<128x32xf32, #tpu.memory_space<vmem>>, vector<128x8xf32>
    tpu.vector_store %arg11[%c0_23, %c0_24], %46 {strides = array<i32>} : memref<128x32xf32, #tpu.memory_space<vmem>>, vector<128x8xf32>,
    %48 = vector.extract_strided_slice %11 {offsets = [0, 1], sizes = [128, 1], strides = [1, 1]} : vector<128x128xf32> to vector<128x1xf32>
    %49 = vector.extract_strided_slice %12 {offsets = [1, 0], sizes = [1, 128], strides = [1, 1]} : vector<128x128xf32> to vector<1x128xf32>
    %50 = vector.broadcast %48 : vector<128x1xf32> to vector<128x128xf32>
    %51 = vector.broadcast %49 : vector<1x128xf32> to vector<128x128xf32>
    %52 = arith.addf %50, %51 : vector<128x128xf32>
    %cst_25 = arith.constant 0.000000e+00 : f32
    %53 = vector.broadcast %cst_25 : f32 to vector<128x128xf32>
    %54 = arith.cmpf ogt, %52, %53 : vector<128x128xf32>
    %cst_26 = arith.constant 2.000000e-01 : f32
    %55 = vector.broadcast %cst_26 : f32 to vector<128x128xf32>
    %56 = arith.mulf %55, %52 : vector<128x128xf32>
    %57 = arith.select %54, %52, %56 : vector<128x128xi1>, vector<128x128xf32>
    %cst_27 = arith.constant -1.000000e+30 : f32
    %58 = vector.broadcast %cst_27 : f32 to vector<128x128xf32>
    %59 = arith.select %2, %57, %58 : vector<128x128xi1>, vector<128x128xf32>
    %cst_28 = arith.constant dense<0xFF800000> : vector<128xf32>
    %60 = vector.multi_reduction <maximumf>, %59, %cst_28 [1] : vector<128x128xf32> to vector<128xf32>
    %61 = vector.shape_cast %60 : vector<128xf32> to vector<128x1xf32>
    %62 = vector.broadcast %61 : vector<128x1xf32> to vector<128x128xf32>
    %63 = arith.subf %59, %62 : vector<128x128xf32>
    %64 = math.exp %63 : vector<128x128xf32>
    %65 = arith.mulf %64, %0 : vector<128x128xf32>
    %cst_29 = arith.constant dense<0.000000e+00> : vector<128xf32>
    %66 = vector.multi_reduction <add>, %65, %cst_29 [1] : vector<128x128xf32> to vector<128xf32>
    %67 = vector.shape_cast %66 : vector<128xf32> to vector<128x1xf32>
    %68 = tpu.reciprocal %67 {approx = true} : vector<128x1xf32> -> vector<128x1xf32>
    %cst_30 = arith.constant 0.000000e+00 : f32
    %69 = vector.broadcast %cst_30 : f32 to vector<128x1xf32>
    %70 = arith.cmpf ogt, %67, %69 : vector<128x1xf32>
    %cst_31 = arith.constant 0.000000e+00 : f32
    %71 = vector.broadcast %cst_31 : f32 to vector<128x1xf32>
    %72 = arith.select %70, %68, %71 : vector<128x1xi1>, vector<128x1xf32>
    %73 = vector.broadcast %72 : vector<128x1xf32> to vector<128x128xf32>
    %74 = arith.mulf %65, %73 : vector<128x128xf32>
    %c1 = arith.constant 1 : index
    %c0_32 = arith.constant 0 : index
    %c0_33 = arith.constant 0 : index
    %75 = vector.load %arg9[%c1, %c0_32, %c0_33] : memref<4x128x128xf32, #tpu.memory_space<vmem>>, vector<1x128x128xf32>
    %76 = vector.shape_cast %75 : vector<1x128x128xf32> to vector<128x128xf32>
    %77 = vector.shape_cast %74 : vector<128x128xf32> to vector<1x128x128xf32>
    tpu.vector_store %arg9[%c1, %c0_32, %c0_33], %77 {strides = array<i32>} : memref<4x128x128xf32, #tpu.memory_space<vmem>>, vector<1x128x128xf32>,
    %78 = arith.truncf %74 : vector<128x128xf32> to vector<128x128xbf16>
    %79 = vector.extract_strided_slice %13 {offsets = [0, 8], sizes = [128, 8], strides = [1, 1]} : vector<128x32xbf16> to vector<128x8xbf16>
    %cst_34 = arith.constant dense<0.000000e+00> : vector<128x8xf32>
    %80 = tpu.matmul %78, %79, %cst_34 {dimension_numbers = #tpu.dot_dimension_numbers<[1], [0], [0], [1], [0, 0, 1, 1], [], []>} : vector<128x128xbf16>, vector<128x8xbf16>, vector<128x8xf32> -> vector<128x8xf32>
    %c0_35 = arith.constant 0 : index
    %c8 = arith.constant 8 : index
    %81 = vector.load %arg11[%c0_35, %c8] : memref<128x32xf32, #tpu.memory_space<vmem>>, vector<128x8xf32>
    tpu.vector_store %arg11[%c0_35, %c8], %80 {strides = array<i32>} : memref<128x32xf32, #tpu.memory_space<vmem>>, vector<128x8xf32>,
    %82 = vector.extract_strided_slice %11 {offsets = [0, 2], sizes = [128, 1], strides = [1, 1]} : vector<128x128xf32> to vector<128x1xf32>
    %83 = vector.extract_strided_slice %12 {offsets = [2, 0], sizes = [1, 128], strides = [1, 1]} : vector<128x128xf32> to vector<1x128xf32>
    %84 = vector.broadcast %82 : vector<128x1xf32> to vector<128x128xf32>
    %85 = vector.broadcast %83 : vector<1x128xf32> to vector<128x128xf32>
    %86 = arith.addf %84, %85 : vector<128x128xf32>
    %cst_36 = arith.constant 0.000000e+00 : f32
    %87 = vector.broadcast %cst_36 : f32 to vector<128x128xf32>
    %88 = arith.cmpf ogt, %86, %87 : vector<128x128xf32>
    %cst_37 = arith.constant 2.000000e-01 : f32
    %89 = vector.broadcast %cst_37 : f32 to vector<128x128xf32>
    %90 = arith.mulf %89, %86 : vector<128x128xf32>
    %91 = arith.select %88, %86, %90 : vector<128x128xi1>, vector<128x128xf32>
    %cst_38 = arith.constant -1.000000e+30 : f32
    %92 = vector.broadcast %cst_38 : f32 to vector<128x128xf32>
    %93 = arith.select %2, %91, %92 : vector<128x128xi1>, vector<128x128xf32>
    %cst_39 = arith.constant dense<0xFF800000> : vector<128xf32>
    %94 = vector.multi_reduction <maximumf>, %93, %cst_39 [1] : vector<128x128xf32> to vector<128xf32>
    %95 = vector.shape_cast %94 : vector<128xf32> to vector<128x1xf32>
    %96 = vector.broadcast %95 : vector<128x1xf32> to vector<128x128xf32>
    %97 = arith.subf %93, %96 : vector<128x128xf32>
    %98 = math.exp %97 : vector<128x128xf32>
    %99 = arith.mulf %98, %0 : vector<128x128xf32>
    %cst_40 = arith.constant dense<0.000000e+00> : vector<128xf32>
    %100 = vector.multi_reduction <add>, %99, %cst_40 [1] : vector<128x128xf32> to vector<128xf32>
    %101 = vector.shape_cast %100 : vector<128xf32> to vector<128x1xf32>
    %102 = tpu.reciprocal %101 {approx = true} : vector<128x1xf32> -> vector<128x1xf32>
    %cst_41 = arith.constant 0.000000e+00 : f32
    %103 = vector.broadcast %cst_41 : f32 to vector<128x1xf32>
    %104 = arith.cmpf ogt, %101, %103 : vector<128x1xf32>
    %cst_42 = arith.constant 0.000000e+00 : f32
    %105 = vector.broadcast %cst_42 : f32 to vector<128x1xf32>
    %106 = arith.select %104, %102, %105 : vector<128x1xi1>, vector<128x1xf32>
    %107 = vector.broadcast %106 : vector<128x1xf32> to vector<128x128xf32>
    %108 = arith.mulf %99, %107 : vector<128x128xf32>
    %c2 = arith.constant 2 : index
    %c0_43 = arith.constant 0 : index
    %c0_44 = arith.constant 0 : index
    %109 = vector.load %arg9[%c2, %c0_43, %c0_44] : memref<4x128x128xf32, #tpu.memory_space<vmem>>, vector<1x128x128xf32>
    %110 = vector.shape_cast %109 : vector<1x128x128xf32> to vector<128x128xf32>
    %111 = vector.shape_cast %108 : vector<128x128xf32> to vector<1x128x128xf32>
    tpu.vector_store %arg9[%c2, %c0_43, %c0_44], %111 {strides = array<i32>} : memref<4x128x128xf32, #tpu.memory_space<vmem>>, vector<1x128x128xf32>,
    %112 = arith.truncf %108 : vector<128x128xf32> to vector<128x128xbf16>
    %113 = vector.extract_strided_slice %13 {offsets = [0, 16], sizes = [128, 8], strides = [1, 1]} : vector<128x32xbf16> to vector<128x8xbf16>
    %cst_45 = arith.constant dense<0.000000e+00> : vector<128x8xf32>
    %114 = tpu.matmul %112, %113, %cst_45 {dimension_numbers = #tpu.dot_dimension_numbers<[1], [0], [0], [1], [0, 0, 1, 1], [], []>} : vector<128x128xbf16>, vector<128x8xbf16>, vector<128x8xf32> -> vector<128x8xf32>
    %c0_46 = arith.constant 0 : index
    %c16 = arith.constant 16 : index
    %115 = vector.load %arg11[%c0_46, %c16] : memref<128x32xf32, #tpu.memory_space<vmem>>, vector<128x8xf32>
    tpu.vector_store %arg11[%c0_46, %c16], %114 {strides = array<i32>} : memref<128x32xf32, #tpu.memory_space<vmem>>, vector<128x8xf32>,
    %116 = vector.extract_strided_slice %11 {offsets = [0, 3], sizes = [128, 1], strides = [1, 1]} : vector<128x128xf32> to vector<128x1xf32>
    %117 = vector.extract_strided_slice %12 {offsets = [3, 0], sizes = [1, 128], strides = [1, 1]} : vector<128x128xf32> to vector<1x128xf32>
    %118 = vector.broadcast %116 : vector<128x1xf32> to vector<128x128xf32>
    %119 = vector.broadcast %117 : vector<1x128xf32> to vector<128x128xf32>
    %120 = arith.addf %118, %119 : vector<128x128xf32>
    %cst_47 = arith.constant 0.000000e+00 : f32
    %121 = vector.broadcast %cst_47 : f32 to vector<128x128xf32>
    %122 = arith.cmpf ogt, %120, %121 : vector<128x128xf32>
    %cst_48 = arith.constant 2.000000e-01 : f32
    %123 = vector.broadcast %cst_48 : f32 to vector<128x128xf32>
    %124 = arith.mulf %123, %120 : vector<128x128xf32>
    %125 = arith.select %122, %120, %124 : vector<128x128xi1>, vector<128x128xf32>
    %cst_49 = arith.constant -1.000000e+30 : f32
    %126 = vector.broadcast %cst_49 : f32 to vector<128x128xf32>
    %127 = arith.select %2, %125, %126 : vector<128x128xi1>, vector<128x128xf32>
    %cst_50 = arith.constant dense<0xFF800000> : vector<128xf32>
    %128 = vector.multi_reduction <maximumf>, %127, %cst_50 [1] : vector<128x128xf32> to vector<128xf32>
    %129 = vector.shape_cast %128 : vector<128xf32> to vector<128x1xf32>
    %130 = vector.broadcast %129 : vector<128x1xf32> to vector<128x128xf32>
    %131 = arith.subf %127, %130 : vector<128x128xf32>
    %132 = math.exp %131 : vector<128x128xf32>
    %133 = arith.mulf %132, %0 : vector<128x128xf32>
    %cst_51 = arith.constant dense<0.000000e+00> : vector<128xf32>
    %134 = vector.multi_reduction <add>, %133, %cst_51 [1] : vector<128x128xf32> to vector<128xf32>
    %135 = vector.shape_cast %134 : vector<128xf32> to vector<128x1xf32>
    %136 = tpu.reciprocal %135 {approx = true} : vector<128x1xf32> -> vector<128x1xf32>
    %cst_52 = arith.constant 0.000000e+00 : f32
    %137 = vector.broadcast %cst_52 : f32 to vector<128x1xf32>
    %138 = arith.cmpf ogt, %135, %137 : vector<128x1xf32>
    %cst_53 = arith.constant 0.000000e+00 : f32
    %139 = vector.broadcast %cst_53 : f32 to vector<128x1xf32>
    %140 = arith.select %138, %136, %139 : vector<128x1xi1>, vector<128x1xf32>
    %141 = vector.broadcast %140 : vector<128x1xf32> to vector<128x128xf32>
    %142 = arith.mulf %133, %141 : vector<128x128xf32>
    %c3 = arith.constant 3 : index
    %c0_54 = arith.constant 0 : index
    %c0_55 = arith.constant 0 : index
    %143 = vector.load %arg9[%c3, %c0_54, %c0_55] : memref<4x128x128xf32, #tpu.memory_space<vmem>>, vector<1x128x128xf32>
    %144 = vector.shape_cast %143 : vector<1x128x128xf32> to vector<128x128xf32>
    %145 = vector.shape_cast %142 : vector<128x128xf32> to vector<1x128x128xf32>
    tpu.vector_store %arg9[%c3, %c0_54, %c0_55], %145 {strides = array<i32>} : memref<4x128x128xf32, #tpu.memory_space<vmem>>, vector<1x128x128xf32>,
    %146 = arith.truncf %142 : vector<128x128xf32> to vector<128x128xbf16>
    %147 = vector.extract_strided_slice %13 {offsets = [0, 24], sizes = [128, 8], strides = [1, 1]} : vector<128x32xbf16> to vector<128x8xbf16>
    %cst_56 = arith.constant dense<0.000000e+00> : vector<128x8xf32>
    %148 = tpu.matmul %146, %147, %cst_56 {dimension_numbers = #tpu.dot_dimension_numbers<[1], [0], [0], [1], [0, 0, 1, 1], [], []>} : vector<128x128xbf16>, vector<128x8xbf16>, vector<128x8xf32> -> vector<128x8xf32>
    %c0_57 = arith.constant 0 : index
    %c24 = arith.constant 24 : index
    %149 = vector.load %arg11[%c0_57, %c24] : memref<128x32xf32, #tpu.memory_space<vmem>>, vector<128x8xf32>
    tpu.vector_store %arg11[%c0_57, %c24], %148 {strides = array<i32>} : memref<128x32xf32, #tpu.memory_space<vmem>>, vector<128x8xf32>,
    %c0_58 = arith.constant 0 : index
    %c0_59 = arith.constant 0 : index
    %150 = vector.load %arg11[%c0_58, %c0_59] : memref<128x32xf32, #tpu.memory_space<vmem>>, vector<128x32xf32>
    %151 = arith.truncf %150 : vector<128x32xf32> to vector<128x32xbf16>
    %c0_60 = arith.constant 0 : index
    %c0_61 = arith.constant 0 : index
    %152 = vector.load %arg5[%c0_60, %c0_61] : memref<32x32xf32, #tpu.memory_space<vmem>>, vector<32x32xf32>
    %153 = arith.truncf %152 : vector<32x32xf32> to vector<32x32xbf16>
    %cst_62 = arith.constant dense<0.000000e+00> : vector<128x32xf32>
    %154 = tpu.matmul %151, %153, %cst_62 {dimension_numbers = #tpu.dot_dimension_numbers<[1], [0], [0], [1], [0, 0, 1, 1], [], []>} : vector<128x32xbf16>, vector<32x32xbf16>, vector<128x32xf32> -> vector<128x32xf32>
    %c0_63 = arith.constant 0 : index
    %c0_64 = arith.constant 0 : index
    %155 = vector.load %arg6[%c0_63, %c0_64] : memref<32x128xf32, #tpu.memory_space<vmem>>, vector<32x128xf32>
    %cst_65 = arith.constant dense<0.000000e+00> : vector<128x128xf32>
    %156 = tpu.matmul %154, %155, %cst_65 {dimension_numbers = #tpu.dot_dimension_numbers<[1], [0], [0], [1], [0, 0, 1, 1], [], []>} : vector<128x32xf32>, vector<32x128xf32>, vector<128x128xf32> -> vector<128x128xf32>
    %c0_66 = arith.constant 0 : index
    %c0_67 = arith.constant 0 : index
    %157 = vector.load %arg7[%c0_66, %c0_67] : memref<32x128xf32, #tpu.memory_space<vmem>>, vector<32x128xf32>
    %cst_68 = arith.constant dense<0.000000e+00> : vector<128x128xf32>
    %158 = tpu.matmul %154, %157, %cst_68 {dimension_numbers = #tpu.dot_dimension_numbers<[1], [0], [0], [1], [0, 0, 1, 1], [], []>} : vector<128x32xf32>, vector<32x128xf32>, vector<128x128xf32> -> vector<128x128xf32>
    %159 = tpu.transpose %156, [1, 0] : vector<128x128xf32> -> vector<128x128xf32>
    %160 = arith.truncf %154 : vector<128x32xf32> to vector<128x32xbf16>
    %161 = vector.extract_strided_slice %158 {offsets = [0, 0], sizes = [128, 1], strides = [1, 1]} : vector<128x128xf32> to vector<128x1xf32>
    %162 = vector.extract_strided_slice %159 {offsets = [0, 0], sizes = [1, 128], strides = [1, 1]} : vector<128x128xf32> to vector<1x128xf32>
    %163 = vector.broadcast %161 : vector<128x1xf32> to vector<128x128xf32>
    %164 = vector.broadcast %162 : vector<1x128xf32> to vector<128x128xf32>
    %165 = arith.addf %163, %164 : vector<128x128xf32>
    %cst_69 = arith.constant 0.000000e+00 : f32
    %166 = vector.broadcast %cst_69 : f32 to vector<128x128xf32>
    %167 = arith.cmpf ogt, %165, %166 : vector<128x128xf32>
    %cst_70 = arith.constant 2.000000e-01 : f32
    %168 = vector.broadcast %cst_70 : f32 to vector<128x128xf32>
    %169 = arith.mulf %168, %165 : vector<128x128xf32>
    %170 = arith.select %167, %165, %169 : vector<128x128xi1>, vector<128x128xf32>
    %cst_71 = arith.constant -1.000000e+30 : f32
    %171 = vector.broadcast %cst_71 : f32 to vector<128x128xf32>
    %172 = arith.select %2, %170, %171 : vector<128x128xi1>, vector<128x128xf32>
    %cst_72 = arith.constant dense<0xFF800000> : vector<128xf32>
    %173 = vector.multi_reduction <maximumf>, %172, %cst_72 [1] : vector<128x128xf32> to vector<128xf32>
    %174 = vector.shape_cast %173 : vector<128xf32> to vector<128x1xf32>
    %175 = vector.broadcast %174 : vector<128x1xf32> to vector<128x128xf32>
    %176 = arith.subf %172, %175 : vector<128x128xf32>
    %177 = math.exp %176 : vector<128x128xf32>
    %178 = arith.mulf %177, %0 : vector<128x128xf32>
    %cst_73 = arith.constant dense<0.000000e+00> : vector<128xf32>
    %179 = vector.multi_reduction <add>, %178, %cst_73 [1] : vector<128x128xf32> to vector<128xf32>
    %180 = vector.shape_cast %179 : vector<128xf32> to vector<128x1xf32>
    %181 = tpu.reciprocal %180 {approx = true} : vector<128x1xf32> -> vector<128x1xf32>
    %cst_74 = arith.constant 0.000000e+00 : f32
    %182 = vector.broadcast %cst_74 : f32 to vector<128x1xf32>
    %183 = arith.cmpf ogt, %180, %182 : vector<128x1xf32>
    %cst_75 = arith.constant 0.000000e+00 : f32
    %184 = vector.broadcast %cst_75 : f32 to vector<128x1xf32>
    %185 = arith.select %183, %181, %184 : vector<128x1xi1>, vector<128x1xf32>
    %186 = vector.broadcast %185 : vector<128x1xf32> to vector<128x128xf32>
    %187 = arith.mulf %178, %186 : vector<128x128xf32>
    %c0_76 = arith.constant 0 : index
    %c0_77 = arith.constant 0 : index
    %c0_78 = arith.constant 0 : index
    %188 = vector.load %arg10[%c0_76, %c0_77, %c0_78] : memref<4x128x128xf32, #tpu.memory_space<vmem>>, vector<1x128x128xf32>
    %189 = vector.shape_cast %188 : vector<1x128x128xf32> to vector<128x128xf32>
    %190 = vector.shape_cast %187 : vector<128x128xf32> to vector<1x128x128xf32>
    tpu.vector_store %arg10[%c0_76, %c0_77, %c0_78], %190 {strides = array<i32>} : memref<4x128x128xf32, #tpu.memory_space<vmem>>, vector<1x128x128xf32>,
    %191 = arith.truncf %187 : vector<128x128xf32> to vector<128x128xbf16>
    %192 = vector.extract_strided_slice %160 {offsets = [0, 0], sizes = [128, 8], strides = [1, 1]} : vector<128x32xbf16> to vector<128x8xbf16>
    %cst_79 = arith.constant dense<0.000000e+00> : vector<128x8xf32>
    %193 = tpu.matmul %191, %192, %cst_79 {dimension_numbers = #tpu.dot_dimension_numbers<[1], [0], [0], [1], [0, 0, 1, 1], [], []>} : vector<128x128xbf16>, vector<128x8xbf16>, vector<128x8xf32> -> vector<128x8xf32>
    %c0_80 = arith.constant 0 : index
    %c0_81 = arith.constant 0 : index
    %194 = vector.load %arg8[%c0_80, %c0_81] : memref<128x32xf32, #tpu.memory_space<vmem>>, vector<128x8xf32>
    tpu.vector_store %arg8[%c0_80, %c0_81], %193 {strides = array<i32>} : memref<128x32xf32, #tpu.memory_space<vmem>>, vector<128x8xf32>,
    %195 = vector.extract_strided_slice %158 {offsets = [0, 1], sizes = [128, 1], strides = [1, 1]} : vector<128x128xf32> to vector<128x1xf32>
    %196 = vector.extract_strided_slice %159 {offsets = [1, 0], sizes = [1, 128], strides = [1, 1]} : vector<128x128xf32> to vector<1x128xf32>
    %197 = vector.broadcast %195 : vector<128x1xf32> to vector<128x128xf32>
    %198 = vector.broadcast %196 : vector<1x128xf32> to vector<128x128xf32>
    %199 = arith.addf %197, %198 : vector<128x128xf32>
    %cst_82 = arith.constant 0.000000e+00 : f32
    %200 = vector.broadcast %cst_82 : f32 to vector<128x128xf32>
    %201 = arith.cmpf ogt, %199, %200 : vector<128x128xf32>
    %cst_83 = arith.constant 2.000000e-01 : f32
    %202 = vector.broadcast %cst_83 : f32 to vector<128x128xf32>
    %203 = arith.mulf %202, %199 : vector<128x128xf32>
    %204 = arith.select %201, %199, %203 : vector<128x128xi1>, vector<128x128xf32>
    %cst_84 = arith.constant -1.000000e+30 : f32
    %205 = vector.broadcast %cst_84 : f32 to vector<128x128xf32>
    %206 = arith.select %2, %204, %205 : vector<128x128xi1>, vector<128x128xf32>
    %cst_85 = arith.constant dense<0xFF800000> : vector<128xf32>
    %207 = vector.multi_reduction <maximumf>, %206, %cst_85 [1] : vector<128x128xf32> to vector<128xf32>
    %208 = vector.shape_cast %207 : vector<128xf32> to vector<128x1xf32>
    %209 = vector.broadcast %208 : vector<128x1xf32> to vector<128x128xf32>
    %210 = arith.subf %206, %209 : vector<128x128xf32>
    %211 = math.exp %210 : vector<128x128xf32>
    %212 = arith.mulf %211, %0 : vector<128x128xf32>
    %cst_86 = arith.constant dense<0.000000e+00> : vector<128xf32>
    %213 = vector.multi_reduction <add>, %212, %cst_86 [1] : vector<128x128xf32> to vector<128xf32>
    %214 = vector.shape_cast %213 : vector<128xf32> to vector<128x1xf32>
    %215 = tpu.reciprocal %214 {approx = true} : vector<128x1xf32> -> vector<128x1xf32>
    %cst_87 = arith.constant 0.000000e+00 : f32
    %216 = vector.broadcast %cst_87 : f32 to vector<128x1xf32>
    %217 = arith.cmpf ogt, %214, %216 : vector<128x1xf32>
    %cst_88 = arith.constant 0.000000e+00 : f32
    %218 = vector.broadcast %cst_88 : f32 to vector<128x1xf32>
    %219 = arith.select %217, %215, %218 : vector<128x1xi1>, vector<128x1xf32>
    %220 = vector.broadcast %219 : vector<128x1xf32> to vector<128x128xf32>
    %221 = arith.mulf %212, %220 : vector<128x128xf32>
    %c1_89 = arith.constant 1 : index
    %c0_90 = arith.constant 0 : index
    %c0_91 = arith.constant 0 : index
    %222 = vector.load %arg10[%c1_89, %c0_90, %c0_91] : memref<4x128x128xf32, #tpu.memory_space<vmem>>, vector<1x128x128xf32>
    %223 = vector.shape_cast %222 : vector<1x128x128xf32> to vector<128x128xf32>
    %224 = vector.shape_cast %221 : vector<128x128xf32> to vector<1x128x128xf32>
    tpu.vector_store %arg10[%c1_89, %c0_90, %c0_91], %224 {strides = array<i32>} : memref<4x128x128xf32, #tpu.memory_space<vmem>>, vector<1x128x128xf32>,
    %225 = arith.truncf %221 : vector<128x128xf32> to vector<128x128xbf16>
    %226 = vector.extract_strided_slice %160 {offsets = [0, 8], sizes = [128, 8], strides = [1, 1]} : vector<128x32xbf16> to vector<128x8xbf16>
    %cst_92 = arith.constant dense<0.000000e+00> : vector<128x8xf32>
    %227 = tpu.matmul %225, %226, %cst_92 {dimension_numbers = #tpu.dot_dimension_numbers<[1], [0], [0], [1], [0, 0, 1, 1], [], []>} : vector<128x128xbf16>, vector<128x8xbf16>, vector<128x8xf32> -> vector<128x8xf32>
    %c0_93 = arith.constant 0 : index
    %c8_94 = arith.constant 8 : index
    %228 = vector.load %arg8[%c0_93, %c8_94] : memref<128x32xf32, #tpu.memory_space<vmem>>, vector<128x8xf32>
    tpu.vector_store %arg8[%c0_93, %c8_94], %227 {strides = array<i32>} : memref<128x32xf32, #tpu.memory_space<vmem>>, vector<128x8xf32>,
    %229 = vector.extract_strided_slice %158 {offsets = [0, 2], sizes = [128, 1], strides = [1, 1]} : vector<128x128xf32> to vector<128x1xf32>
    %230 = vector.extract_strided_slice %159 {offsets = [2, 0], sizes = [1, 128], strides = [1, 1]} : vector<128x128xf32> to vector<1x128xf32>
    %231 = vector.broadcast %229 : vector<128x1xf32> to vector<128x128xf32>
    %232 = vector.broadcast %230 : vector<1x128xf32> to vector<128x128xf32>
    %233 = arith.addf %231, %232 : vector<128x128xf32>
    %cst_95 = arith.constant 0.000000e+00 : f32
    %234 = vector.broadcast %cst_95 : f32 to vector<128x128xf32>
    %235 = arith.cmpf ogt, %233, %234 : vector<128x128xf32>
    %cst_96 = arith.constant 2.000000e-01 : f32
    %236 = vector.broadcast %cst_96 : f32 to vector<128x128xf32>
    %237 = arith.mulf %236, %233 : vector<128x128xf32>
    %238 = arith.select %235, %233, %237 : vector<128x128xi1>, vector<128x128xf32>
    %cst_97 = arith.constant -1.000000e+30 : f32
    %239 = vector.broadcast %cst_97 : f32 to vector<128x128xf32>
    %240 = arith.select %2, %238, %239 : vector<128x128xi1>, vector<128x128xf32>
    %cst_98 = arith.constant dense<0xFF800000> : vector<128xf32>
    %241 = vector.multi_reduction <maximumf>, %240, %cst_98 [1] : vector<128x128xf32> to vector<128xf32>
    %242 = vector.shape_cast %241 : vector<128xf32> to vector<128x1xf32>
    %243 = vector.broadcast %242 : vector<128x1xf32> to vector<128x128xf32>
    %244 = arith.subf %240, %243 : vector<128x128xf32>
    %245 = math.exp %244 : vector<128x128xf32>
    %246 = arith.mulf %245, %0 : vector<128x128xf32>
    %cst_99 = arith.constant dense<0.000000e+00> : vector<128xf32>
    %247 = vector.multi_reduction <add>, %246, %cst_99 [1] : vector<128x128xf32> to vector<128xf32>
    %248 = vector.shape_cast %247 : vector<128xf32> to vector<128x1xf32>
    %249 = tpu.reciprocal %248 {approx = true} : vector<128x1xf32> -> vector<128x1xf32>
    %cst_100 = arith.constant 0.000000e+00 : f32
    %250 = vector.broadcast %cst_100 : f32 to vector<128x1xf32>
    %251 = arith.cmpf ogt, %248, %250 : vector<128x1xf32>
    %cst_101 = arith.constant 0.000000e+00 : f32
    %252 = vector.broadcast %cst_101 : f32 to vector<128x1xf32>
    %253 = arith.select %251, %249, %252 : vector<128x1xi1>, vector<128x1xf32>
    %254 = vector.broadcast %253 : vector<128x1xf32> to vector<128x128xf32>
    %255 = arith.mulf %246, %254 : vector<128x128xf32>
    %c2_102 = arith.constant 2 : index
    %c0_103 = arith.constant 0 : index
    %c0_104 = arith.constant 0 : index
    %256 = vector.load %arg10[%c2_102, %c0_103, %c0_104] : memref<4x128x128xf32, #tpu.memory_space<vmem>>, vector<1x128x128xf32>
    %257 = vector.shape_cast %256 : vector<1x128x128xf32> to vector<128x128xf32>
    %258 = vector.shape_cast %255 : vector<128x128xf32> to vector<1x128x128xf32>
    tpu.vector_store %arg10[%c2_102, %c0_103, %c0_104], %258 {strides = array<i32>} : memref<4x128x128xf32, #tpu.memory_space<vmem>>, vector<1x128x128xf32>,
    %259 = arith.truncf %255 : vector<128x128xf32> to vector<128x128xbf16>
    %260 = vector.extract_strided_slice %160 {offsets = [0, 16], sizes = [128, 8], strides = [1, 1]} : vector<128x32xbf16> to vector<128x8xbf16>
    %cst_105 = arith.constant dense<0.000000e+00> : vector<128x8xf32>
    %261 = tpu.matmul %259, %260, %cst_105 {dimension_numbers = #tpu.dot_dimension_numbers<[1], [0], [0], [1], [0, 0, 1, 1], [], []>} : vector<128x128xbf16>, vector<128x8xbf16>, vector<128x8xf32> -> vector<128x8xf32>
    %c0_106 = arith.constant 0 : index
    %c16_107 = arith.constant 16 : index
    %262 = vector.load %arg8[%c0_106, %c16_107] : memref<128x32xf32, #tpu.memory_space<vmem>>, vector<128x8xf32>
    tpu.vector_store %arg8[%c0_106, %c16_107], %261 {strides = array<i32>} : memref<128x32xf32, #tpu.memory_space<vmem>>, vector<128x8xf32>,
    %263 = vector.extract_strided_slice %158 {offsets = [0, 3], sizes = [128, 1], strides = [1, 1]} : vector<128x128xf32> to vector<128x1xf32>
    %264 = vector.extract_strided_slice %159 {offsets = [3, 0], sizes = [1, 128], strides = [1, 1]} : vector<128x128xf32> to vector<1x128xf32>
    %265 = vector.broadcast %263 : vector<128x1xf32> to vector<128x128xf32>
    %266 = vector.broadcast %264 : vector<1x128xf32> to vector<128x128xf32>
    %267 = arith.addf %265, %266 : vector<128x128xf32>
    %cst_108 = arith.constant 0.000000e+00 : f32
    %268 = vector.broadcast %cst_108 : f32 to vector<128x128xf32>
    %269 = arith.cmpf ogt, %267, %268 : vector<128x128xf32>
    %cst_109 = arith.constant 2.000000e-01 : f32
    %270 = vector.broadcast %cst_109 : f32 to vector<128x128xf32>
    %271 = arith.mulf %270, %267 : vector<128x128xf32>
    %272 = arith.select %269, %267, %271 : vector<128x128xi1>, vector<128x128xf32>
    %cst_110 = arith.constant -1.000000e+30 : f32
    %273 = vector.broadcast %cst_110 : f32 to vector<128x128xf32>
    %274 = arith.select %2, %272, %273 : vector<128x128xi1>, vector<128x128xf32>
    %cst_111 = arith.constant dense<0xFF800000> : vector<128xf32>
    %275 = vector.multi_reduction <maximumf>, %274, %cst_111 [1] : vector<128x128xf32> to vector<128xf32>
    %276 = vector.shape_cast %275 : vector<128xf32> to vector<128x1xf32>
    %277 = vector.broadcast %276 : vector<128x1xf32> to vector<128x128xf32>
    %278 = arith.subf %274, %277 : vector<128x128xf32>
    %279 = math.exp %278 : vector<128x128xf32>
    %280 = arith.mulf %279, %0 : vector<128x128xf32>
    %cst_112 = arith.constant dense<0.000000e+00> : vector<128xf32>
    %281 = vector.multi_reduction <add>, %280, %cst_112 [1] : vector<128x128xf32> to vector<128xf32>
    %282 = vector.shape_cast %281 : vector<128xf32> to vector<128x1xf32>
    %283 = tpu.reciprocal %282 {approx = true} : vector<128x1xf32> -> vector<128x1xf32>
    %cst_113 = arith.constant 0.000000e+00 : f32
    %284 = vector.broadcast %cst_113 : f32 to vector<128x1xf32>
    %285 = arith.cmpf ogt, %282, %284 : vector<128x1xf32>
    %cst_114 = arith.constant 0.000000e+00 : f32
    %286 = vector.broadcast %cst_114 : f32 to vector<128x1xf32>
    %287 = arith.select %285, %283, %286 : vector<128x1xi1>, vector<128x1xf32>
    %288 = vector.broadcast %287 : vector<128x1xf32> to vector<128x128xf32>
    %289 = arith.mulf %280, %288 : vector<128x128xf32>
    %c3_115 = arith.constant 3 : index
    %c0_116 = arith.constant 0 : index
    %c0_117 = arith.constant 0 : index
    %290 = vector.load %arg10[%c3_115, %c0_116, %c0_117] : memref<4x128x128xf32, #tpu.memory_space<vmem>>, vector<1x128x128xf32>
    %291 = vector.shape_cast %290 : vector<1x128x128xf32> to vector<128x128xf32>
    %292 = vector.shape_cast %289 : vector<128x128xf32> to vector<1x128x128xf32>
    tpu.vector_store %arg10[%c3_115, %c0_116, %c0_117], %292 {strides = array<i32>} : memref<4x128x128xf32, #tpu.memory_space<vmem>>, vector<1x128x128xf32>,
    %293 = arith.truncf %289 : vector<128x128xf32> to vector<128x128xbf16>
    %294 = vector.extract_strided_slice %160 {offsets = [0, 24], sizes = [128, 8], strides = [1, 1]} : vector<128x32xbf16> to vector<128x8xbf16>
    %cst_118 = arith.constant dense<0.000000e+00> : vector<128x8xf32>
    %295 = tpu.matmul %293, %294, %cst_118 {dimension_numbers = #tpu.dot_dimension_numbers<[1], [0], [0], [1], [0, 0, 1, 1], [], []>} : vector<128x128xbf16>, vector<128x8xbf16>, vector<128x8xf32> -> vector<128x8xf32>
    %c0_119 = arith.constant 0 : index
    %c24_120 = arith.constant 24 : index
    %296 = vector.load %arg8[%c0_119, %c24_120] : memref<128x32xf32, #tpu.memory_space<vmem>>, vector<128x8xf32>
    tpu.vector_store %arg8[%c0_119, %c24_120], %295 {strides = array<i32>} : memref<128x32xf32, #tpu.memory_space<vmem>>, vector<128x8xf32>,
    return
  }
}

</mosaic_0001>

<bundles_post_ra>
// kernel: tpu_custom_call.1
= control target key start
LH: loop header
LB: loop body
LE: loop exit
PB: predicated region body
PF: predicated region fallthrough
CT: control target
= control target key end

     0   :  { %16 = vsyncpa [#allocation4], 0  ;;  %s11012_s0 = inlined_call_operand.vmem [shape: f32[128,8], index: 0, kind: input, shape index: {}]   ;;  %s11013_s1 = inlined_call_operand.vmem [shape: f32[128,128], index: 1, kind: input, shape index: {}]   ;;  %s11014_s2 = inlined_call_operand.hbm [shape: f32[8,32], index: 2, kind: input, shape index: {}]   ;;  %s11015_s3 = inlined_call_operand.hbm [shape: f32[32,128], index: 3, kind: input, shape index: {}]   ;;  %s11016_s4 = inlined_call_operand.hbm [shape: f32[32,128], index: 4, kind: input, shape index: {}]   ;;  %s11017_s5 = inlined_call_operand.hbm [shape: f32[32,32], index: 5, kind: input, shape index: {}]   ;;  %s11018_s6 = inlined_call_operand.hbm [shape: f32[32,128], index: 6, kind: input, shape index: {}]   ;;  %s11019_s7 = inlined_call_operand.vmem [shape: f32[32,128], index: 7, kind: input, shape index: {}]   ;;  %s11020_s8 = inlined_call_operand.vmem [shape: f32[128,32], index: 8, kind: output, shape index: {0}]   ;;  %s11021_s9 = inlined_call_operand.hbm [shape: f32[4,128,128], index: 9, kind: output, shape index: {1}]   ;;  %s11022_s10 = inlined_call_operand.hbm [shape: f32[4,128,128], index: 10, kind: output, shape index: {2}]  }
   0x1   :  { %17 = vsyncpa [#allocation7], 0 }
   0x2   :  { %18 = vsyncpa [#allocation10], 0 }
   0x3   :  { %19 = vsyncpa [#allocation5], 0 }
   0x4   :  { %20 = vsyncpa [#allocation14], 0  ;;  %s7252_s13 = smov [#allocation6]   ;;  %s7088_s17 = scalar_lea.hbm %s11015_s3, 512 }
   0x5   :  { %s40_s14 = sshll.u32 %s7252_s13, 4  ;;  %p7089_p0 = scmp.ne.s32.totalorder %s11015_s3, %s7088_s17  ;;  %s41_s14 = int_to_ptr.vmem [resolvable:$true] %s40_s14 }
   0x6   :  { %p7092_p1 = scmp.lt.u32.totalorder %s7088_s17, %s11015_s3 }
   0x8   :  { %p7094_p2 = pnand %p7092_p1, %p7089_p0 }
   0xa   :  { %7097 = shalt.err (!%p7094_p2)
}
   0xb   :  { %s7098_s22 = scalar_lea.vmem %s41_s14, 512  ;;  %p7103_p4 = scmp.lt.s32.totalorder %s41_s14, %s41_s14 }
   0xc   :  { %p7099_p3 = scmp.ne.s32.totalorder %s41_s14, %s7098_s22  ;;  %p7104_p5 = scmp.lt.s32.totalorder %s7098_s22, %s7098_s22 }
   0xe   :  { %p7105_p6 = por %p7104_p5, %p7103_p4 }
  0x10   :  { %p7106_p7 = pnand %p7105_p6, %p7099_p3 }
  0x12   :  { %7109 = shalt.err (!%p7106_p7)
}
  0x13   :  { %s7253_s23 = smov 128   ;;  %s7254_s24 = smov 8  }
  0x14   :  { %46 = dma.hbm_to_vmem [thread:$0]  %s11015_s3, 512, %s41_s14, [#allocation7], %s7253_s23, %s7253_s23, %s7254_s24  }
  0x15   :  { %s7255_s27 = smov [#allocation9]   ;;  %s7256_s29 = smov [#allocation3]  }
  0x16   :  { %s64_s28 = sshll.u32 %s7255_s27, 4  ;;  %s31_s30 = sshll.u32 %s7256_s29, 4  ;;  %s65_s28 = int_to_ptr.vmem [resolvable:$true] %s64_s28  ;;  %s32_s30 = int_to_ptr.vmem [resolvable:$true] %s31_s30 }
  0x17   :  { %s7110_s13 = scalar_lea.hbm %s11017_s5, 512 }
  0x18   :  { %p7111_p8 = scmp.ne.s32.totalorder %s11017_s5, %s7110_s13  ;;  %p7114_p9 = scmp.lt.u32.totalorder %s7110_s13, %s11017_s5 }
  0x1a   :  { %p7116_p10 = pnand %p7114_p9, %p7111_p8 }
  0x1c   :  { %7119 = shalt.err (!%p7116_p10)
}
  0x1d   :  { %s7120_s3 = scalar_lea.vmem %s65_s28, 512  ;;  %p7125_p12 = scmp.lt.s32.totalorder %s65_s28, %s65_s28 }
  0x1e   :  { %p7121_p11 = scmp.ne.s32.totalorder %s65_s28, %s7120_s3  ;;  %p7126_p13 = scmp.lt.s32.totalorder %s7120_s3, %s7120_s3 }
  0x20   :  { %p7127_p0 = por %p7126_p13, %p7125_p12 }
  0x22   :  { %p7128_p1 = pnand %p7127_p0, %p7121_p11 }
  0x24   :  { %7131 = shalt.err (!%p7128_p1)
}
  0x25   :  { %70 = dma.hbm_to_vmem [thread:$0]  %s11017_s5, 512, %s65_s28, [#allocation10], %s7253_s23, %s7253_s23, %s7254_s24  }
  0x26   :  { %s7132_s22 = scalar_lea.hbm %s11014_s2, 128 }
  0x27   :  { %p7133_p2 = scmp.ne.s32.totalorder %s11014_s2, %s7132_s22  ;;  %p7136_p3 = scmp.lt.u32.totalorder %s7132_s22, %s11014_s2 }
  0x29   :  { %p7138_p4 = pnand %p7136_p3, %p7133_p2 }
  0x2b   :  { %7141 = shalt.err (!%p7138_p4)
}
  0x2c   :  { %s7142_s11 = scalar_lea.vmem %s32_s30, 128  ;;  %p7147_p6 = scmp.lt.s32.totalorder %s32_s30, %s32_s30 }
  0x2d   :  { %p7143_p5 = scmp.ne.s32.totalorder %s32_s30, %s7142_s11  ;;  %p7148_p7 = scmp.lt.s32.totalorder %s7142_s11, %s7142_s11 }
  0x2f   :  { %p7149_p8 = por %p7148_p7, %p7147_p6 }
  0x31   :  { %p7150_p9 = pnand %p7149_p8, %p7143_p5 }
  0x33   :  { %7153 = shalt.err (!%p7150_p9)
}
  0x34   :  { %34 = dma.hbm_to_vmem [thread:$0]  %s11014_s2, 128, %s32_s30, [#allocation4]  }
  0x35   :  { %s7257_s12 = smov [#allocation8]   ;;  %s7258_s15 = smov [#allocation11]  }
  0x36   :  { %s52_s13 = sshll.u32 %s7257_s12, 4  ;;  %s76_s16 = sshll.u32 %s7258_s15, 4  ;;  %s53_s13 = int_to_ptr.vmem [resolvable:$true] %s52_s13  ;;  %s77_s16 = int_to_ptr.vmem [resolvable:$true] %s76_s16 }
  0x37   :  { %s7154_s3 = scalar_lea.hbm %s11016_s4, 512 }
  0x38   :  { %p7155_p10 = scmp.ne.s32.totalorder %s11016_s4, %s7154_s3  ;;  %p7158_p11 = scmp.lt.u32.totalorder %s7154_s3, %s11016_s4 }
  0x3a   :  { %p7160_p12 = pnand %p7158_p11, %p7155_p10 }
  0x3c   :  { %7163 = shalt.err (!%p7160_p12)
}
  0x3d   :  { %s7164_s2 = scalar_lea.vmem %s53_s13, 512  ;;  %p7169_p0 = scmp.lt.s32.totalorder %s53_s13, %s53_s13 }
  0x3e   :  { %p7165_p13 = scmp.ne.s32.totalorder %s53_s13, %s7164_s2  ;;  %p7170_p1 = scmp.lt.s32.totalorder %s7164_s2, %s7164_s2 }
  0x40   :  { %p7171_p2 = por %p7170_p1, %p7169_p0 }
  0x42   :  { %p7172_p3 = pnand %p7171_p2, %p7165_p13 }
  0x44   :  { %7175 = shalt.err (!%p7172_p3)
}
  0x45   :  { %58 = dma.hbm_to_vmem [thread:$0]  %s11016_s4, 512, %s53_s13, [#allocation7], %s7253_s23, %s7253_s23, %s7254_s24  }
  0x46   :  { %s7176_s27 = scalar_lea.hbm %s11018_s6, 512 }
  0x47   :  { %p7177_p4 = scmp.ne.s32.totalorder %s11018_s6, %s7176_s27  ;;  %p7180_p5 = scmp.lt.u32.totalorder %s7176_s27, %s11018_s6 }
  0x49   :  { %p7182_p6 = pnand %p7180_p5, %p7177_p4 }
  0x4b   :  { %7185 = shalt.err (!%p7182_p6)
}
  0x4c   :  { %s7186_s12 = scalar_lea.vmem %s77_s16, 512  ;;  %p7191_p8 = scmp.lt.s32.totalorder %s77_s16, %s77_s16 }
  0x4d   :  { %p7187_p7 = scmp.ne.s32.totalorder %s77_s16, %s7186_s12  ;;  %p7192_p9 = scmp.lt.s32.totalorder %s7186_s12, %s7186_s12 }
  0x4f   :  { %p7193_p10 = por %p7192_p9, %p7191_p8 }
  0x51   :  { %p7194_p11 = pnand %p7193_p10, %p7187_p7 }
  0x53   :  { %7197 = shalt.err (!%p7194_p11)
}
  0x54   :  { %82 = dma.hbm_to_vmem [thread:$0]  %s11018_s6, 512, %s77_s16, [#allocation10], %s7253_s23, %s7253_s23, %s7254_s24  }
  0x55   :  { %7242 = dma.done.wait [#allocation4], 128  }
  0x56   :  { %7243 = vsyncadd [#allocation4], 4294967168 }
  0x57   :  { %7244 = dma.done.wait [#allocation7], 1024  }
  0x58   :  { %7245 = vsyncadd [#allocation7], 4294966272 }
  0x59   :  { %7246 = dma.done.wait [#allocation10], 1024  }
  0x5a   :  { %7247 = vsyncadd [#allocation10], 4294966272  ;;  %v157_v0 = vld [vmem:[#allocation3] sm:$0xff]  ;;  %vm184_vm0 = vcmask 1043456   ;;  %v134_v2 = vld [vmem:[%s11012_s0 + $0x8] sm:$0xff]  ;;  %vm159_vm1 = vcmask 64512  }
  0x5b   :  { %v133_v1 = vld [vmem:[%s11012_s0] sm:$0xff]  ;;  %v158_v3 = vpack.c.bf16 %v157_v0, %v157_v0  ;;  %v135_v5 = vld [vmem:[%s11012_s0 + $0x10] sm:$0xff]  ;;  %v136_v6 = vld [vmem:[%s11012_s0 + $0x18] sm:$0xff]  ;;  %vm289_vm2 = vcmask 261120   ;;  %s7260_s21 = smov 112   ;;  %s7261_s2 = smov 104  }
  0x5c   :  { %v149_v4 = vpack.c.bf16 %v134_v2, %v133_v1  ;;  %v137_v7 = vld [vmem:[%s11012_s0 + $0x20] sm:$0xff]  ;;  %v138_v8 = vld [vmem:[%s11012_s0 + $0x28] sm:$0xff]  ;;  %v150_v10 = vpack.c.bf16 %v136_v6, %v135_v5  ;;  %v484_v13 = vld [vmem:[#allocation8 + $0x8] sm:$0xff]  ;;  %v11035_v63 = vmov 2   ;;  %v11025_v0 = vmov 0   ;;  %s7266_s6 = smov 16  }
  0x5d   :  { %6410 = vmatprep.subr.msk.bf16.mxu0 %vm184_vm0, %v158_v3  ;;  %v186_v9 = vsel %vm184_vm0, %v158_v3, 0  ;;  %v151_v11 = vpack.c.bf16 %v138_v8, %v137_v7  ;;  %v483_v12 = vld [vmem:[#allocation8] sm:$0xff]  ;;  %v485_v14 = vld [vmem:[#allocation8 + $0x10] sm:$0xff]  ;;  %v486_v15 = vld [vmem:[#allocation8 + $0x18] sm:$0xff]  ;;  %6431 = vset.pattern.permute.xlu0 %v11035_v63  ;;  %s7267_s16 = smov 24   ;;  %s7268_s4 = smov [#allocation12]  }
  0x5e   :  { %5958 = vmatprep.mubr.msk.bf16.mxu0 %vm159_vm1, %v149_v4  ;;  %5957 = vmatpush3.bf16.msra.mxu0 %v186_v9  ;;  %v6386_v16 = vpack.c.bf16 %v484_v13, %v483_v12  ;;  %v6390_v17 = vpack.c.bf16 %v486_v15, %v485_v14  ;;  %v285_v18 = vld [vmem:[#allocation6] sm:$0xff]  ;;  %v286_v19 = vld [vmem:[#allocation6 + $0x8] sm:$0xff]  ;;  %v140_v21 = vld [vmem:[%s11012_s0 + $0x38] sm:$0xff]  ;;  %s5617_s13 = sshll.u32 %s7268_s4, 4  ;;  %s7269_s15 = smov [#allocation13]   ;;  %s5618_s13 = int_to_ptr.vmem [resolvable:$true] %s5617_s13 }
  0x5f   :  { %v139_v20 = vld [vmem:[%s11012_s0 + $0x30] sm:$0xff]  ;;  %v6378_v22 = vpack.c.bf16 %v286_v19, %v285_v18  ;;  %v141_v23 = vld [vmem:[%s11012_s0 + $0x40] sm:$0xff]  ;;  %v142_v24 = vld [vmem:[%s11012_s0 + $0x48] sm:$0xff]  ;;  %6429 = vset.pattern.permute.xlu1 %v11025_v0  ;;  %s5629_s17 = sshll.u32 %s7269_s15, 4  ;;  %p7203_p13 = scmp.lt.s32.totalorder %s5618_s13, %s5618_s13  ;;  %s10802_s17 = int_to_ptr.vmem [resolvable:$true] %s5629_s17 }
  0x60   :  { %6387 = vmatprep.subr.bf16.mxu0 %v6386_v16  ;;  %v152_v25 = vpack.c.bf16 %v140_v21, %v139_v20  ;;  %v153_v26 = vpack.c.bf16 %v142_v24, %v141_v23  ;;  %v143_v27 = vld [vmem:[%s11012_s0 + $0x50] sm:$0xff]  ;;  %v144_v28 = vld [vmem:[%s11012_s0 + $0x58] sm:$0xff]  ;;  %v145_v29 = vld [vmem:[%s11012_s0 + $0x60] sm:$0xff]  ;;  %v11027_v23 = vmov 1  }
  0x61   :  { %5959 = vmatmul.mubr.msk.bf16.vlgmr.msra.gmra.mrb[0].mxu0 %vm159_vm1, %v150_v10  ;;  %6379 = vmatprep.subr.bf16.mxu1 %v6378_v22  ;;  %v146_v30 = vld [vmem:[%s11012_s0 + $0x68] sm:$0xff]  ;;  %v154_v31 = vpack.c.bf16 %v144_v28, %v143_v27  ;;  %v147_v33 = vld [vmem:[%s11012_s0 + $0x70] sm:$0xff]  ;;  %v148_v34 = vld [vmem:[%s11012_s0 + $0x78] sm:$0xff]  ;;  %s7259_s0 = smov 120  }
  0x62   :  { %5962 = vmatprep.mubr.msk.bf16.mxu0 %vm159_vm1, %v151_v11  ;;  %6389 = vmatpush3.bf16.msra.mxu0 %v6386_v16  ;;  %v155_v32 = vpack.c.bf16 %v146_v30, %v145_v29  ;;  %v156_v35 = vpack.c.bf16 %v148_v34, %v147_v33  ;;  %v287_v36 = vld [vmem:[#allocation6 + $0x10] sm:$0xff]  ;;  %v288_v37 = vld [vmem:[#allocation6 + $0x18] sm:$0xff] }
  0x63   :  { %6391 = vmatprep.subr.bf16.mxu0 %v6390_v17  ;;  %6381 = vmatpush3.bf16.msra.mxu1 %v6378_v22  ;;  %v6382_v38 = vpack.c.bf16 %v288_v37, %v287_v36  ;;  %v11029_v22 = vmov 3  }
  0x65   :  { %6383 = vmatprep.subr.bf16.mxu1 %v6382_v38 }
  0x66   :  { %6393 = vmatpush3.bf16.msra.mxu0 %v6390_v17 }
  0x67   :  { %6385 = vmatpush3.bf16.msra.mxu1 %v6382_v38 }
  0x69   :  { %5963 = vmatmul.mubr.msk.bf16.gmra.mrb[4].mxu0 %vm159_vm1, %v152_v25 }
  0x6a   :  { %5966 = vmatprep.mubr.msk.bf16.mxu0 %vm159_vm1, %v153_v26 }
  0x71   :  { %5967 = vmatmul.mubr.msk.bf16.gmra.mrb[8].mxu0 %vm159_vm1, %v154_v31 }
  0x72   :  { %5970 = vmatprep.mubr.msk.bf16.mxu0 %vm159_vm1, %v155_v32 }
  0x79   :  { %5971 = vmatmul.mubr.msk.bf16.gmra.mrb[12].mxu0 %vm159_vm1, %v156_v35 }
 0x134   :  { %v5960_v39 = vpop.f32.mrb[0].mxu0 }
 0x135   :  { %v222_v40 = vpop.f32.mrb[1].mxu0 }
 0x136   :  { %v5961_v41 = vpop.f32.mrb[2].mxu0  ;;  %5982 = vmatprep.mubr.msk.f32.mxu1 %vm289_vm2, %v222_v40  ;;  %6014 = vmatprep.mubr.msk.f32.mxu0 %vm289_vm2, %v222_v40 }
 0x137   :  { %v665_v42 = vpack.c.bf16 %v5961_v41, %v5960_v39  ;;  %v225_v43 = vpop.f32.mrb[3].mxu0 }
 0x138   :  { %v664_v44 = vpack.c.bf16 %v225_v43, %v222_v40  ;;  %5983 = vmatmul.mubr.msk.f32.vlgmr.msra.gmra.mrb[0].mxu1 %vm289_vm2, %v225_v43  ;;  %6015 = vmatmul.mubr.msk.f32.vlgmr.msra.gmra.mrb[16].mxu0 %vm289_vm2, %v225_v43 }
 0x139   :  { %1540 = vrot.lane.b32.xlu0 %v665_v42, %s7259_s0  ;;  %5985 = vmatprep.mubr.msk.f32.mxu1 %vm289_vm2, %v5960_v39 }
 0x13a   :  { %6017 = vmatprep.mubr.msk.f32.mxu0 %vm289_vm2, %v5960_v39  ;;  %1538 = vrot.lane.b32.xlu1 %v664_v44, %s7259_s0 }
 0x13b   :  { %6038 = vmatprep.subr.bf16.mxu1 %v664_v44 }
 0x13c   :  { %6039 = vmatpush3.bf16.msra.mxu1 %v664_v44  ;;  %6018 = vmatmul.mubr.msk.f32.gmra.mrb[18].mxu0 %vm289_vm2, %v5961_v41  ;;  %v5964_v45 = vpop.f32.mrb[4].mxu0 }
 0x13d   :  { %5986 = vmatmul.mubr.msk.f32.gmra.mrb[2].mxu1 %vm289_vm2, %v5961_v41  ;;  %6040 = vmatprep.subr.bf16.mxu1 %v665_v42  ;;  %v238_v46 = vpop.f32.mrb[5].mxu0 }
 0x13e   :  { %2107 = vrot.lane.b32.xlu0 %v665_v42, %s7260_s21  ;;  %2672 = vrot.lane.b32.xlu1 %v664_v44, %s7261_s2  ;;  %v5965_v47 = vpop.f32.mrb[6].mxu0 }
 0x13f   :  { %v7465_v48 = vpack.c.bf16 %v5965_v47, %v5964_v45  ;;  %v241_v49 = vpop.f32.mrb[7].mxu0  ;;  %6020 = vmatprep.mubr.msk.f32.mxu0 %vm289_vm2, %v238_v46  ;;  %5988 = vmatprep.mubr.msk.f32.mxu1 %vm289_vm2, %v238_v46 }
 0x140   :  { %6041 = vmatpush3.bf16.msra.mxu1 %v665_v42  ;;  %v666_v50 = vpack.c.bf16 %v241_v49, %v238_v46  ;;  %6021 = vmatmul.mubr.msk.f32.gmra.mrb[20].mxu0 %vm289_vm2, %v241_v49 }
 0x141   :  { %11187 = vst [vmem:[#allocation20_spill] sm:$0xff] %v7465_v48  ;;  %6023 = vmatprep.mubr.msk.f32.mxu0 %vm289_vm2, %v5964_v45  ;;  %5989 = vmatmul.mubr.msk.f32.gmra.mrb[4].mxu1 %vm289_vm2, %v241_v49 }
 0x142   :  { %2674 = vrot.lane.b32.xlu0 %v665_v42, %s7261_s2  ;;  %1542 = vrot.lane.b32.xlu1 %v666_v50, %s7259_s0 }
 0x143   :  { %6042 = vmatprep.subr.bf16.mxu1 %v666_v50  ;;  %5991 = vmatprep.mubr.msk.f32.mxu1 %vm289_vm2, %v5964_v45 }
 0x144   :  { %v5968_v51 = vpop.f32.mrb[8].mxu0  ;;  %6024 = vmatmul.mubr.msk.f32.gmra.mrb[22].mxu0 %vm289_vm2, %v5965_v47  ;;  %6043 = vmatpush3.bf16.msra.mxu1 %v666_v50 }
 0x145   :  { %v254_v52 = vpop.f32.mrb[9].mxu0  ;;  %5992 = vmatmul.mubr.msk.f32.gmra.mrb[6].mxu1 %vm289_vm2, %v5965_v47  ;;  %6044 = vmatprep.subr.bf16.mxu1 %v7465_v48 }
 0x146   :  { %2105 = vrot.lane.b32.xlu0 %v664_v44, %s7260_s21  ;;  %2676 = vrot.lane.b32.xlu1 %v666_v50, %s7261_s2  ;;  %v5969_v53 = vpop.f32.mrb[10].mxu0 }
 0x147   :  { %v7480_v54 = vpack.c.bf16 %v5969_v53, %v5968_v51  ;;  %v257_v55 = vpop.f32.mrb[11].mxu0  ;;  %6026 = vmatprep.mubr.msk.f32.mxu0 %vm289_vm2, %v254_v52  ;;  %5994 = vmatprep.mubr.msk.f32.mxu1 %vm289_vm2, %v254_v52 }
 0x148   :  { %v7484_v56 = vpack.c.bf16 %v257_v55, %v254_v52  ;;  %6027 = vmatmul.mubr.msk.f32.gmra.mrb[24].mxu0 %vm289_vm2, %v257_v55  ;;  %6045 = vmatpush3.bf16.msra.mxu1 %v7465_v48 }
 0x149   :  { %11188 = vst [vmem:[#allocation21_spill] sm:$0xff] %v7480_v54  ;;  %6029 = vmatprep.mubr.msk.f32.mxu0 %vm289_vm2, %v5968_v51  ;;  %5995 = vmatmul.mubr.msk.f32.gmra.mrb[8].mxu1 %vm289_vm2, %v257_v55 }
 0x14a   :  { %11189 = vst [vmem:[#allocation22_spill] sm:$0xff] %v7484_v56  ;;  %1544 = vrot.lane.b32.xlu0 %v7465_v48, %s7259_s0  ;;  %1546 = vrot.lane.b32.xlu1 %v7484_v56, %s7259_s0 }
 0x14b   :  { %6046 = vmatprep.subr.bf16.mxu1 %v7484_v56  ;;  %5997 = vmatprep.mubr.msk.f32.mxu1 %vm289_vm2, %v5968_v51 }
 0x14c   :  { %v5972_v57 = vpop.f32.mrb[12].mxu0  ;;  %6030 = vmatmul.mubr.msk.f32.gmra.mrb[26].mxu0 %vm289_vm2, %v5969_v53  ;;  %6047 = vmatpush3.bf16.msra.mxu1 %v7484_v56 }
 0x14d   :  { %v270_v58 = vpop.f32.mrb[13].mxu0  ;;  %5998 = vmatmul.mubr.msk.f32.gmra.mrb[10].mxu1 %vm289_vm2, %v5969_v53  ;;  %6048 = vmatprep.subr.bf16.mxu1 %v7480_v54 }
 0x14e   :  { %2111 = vrot.lane.b32.xlu0 %v7465_v48, %s7260_s21  ;;  %v5973_v59 = vpop.f32.mrb[14].mxu0  ;;  %6032 = vmatprep.mubr.msk.f32.mxu0 %vm289_vm2, %v270_v58 }
 0x14f   :  { %v7503_v60 = vpack.c.bf16 %v5973_v59, %v5972_v57  ;;  %v273_v61 = vpop.f32.mrb[15].mxu0  ;;  %6000 = vmatprep.mubr.msk.f32.mxu1 %vm289_vm2, %v270_v58 }
 0x150   :  { %v7506_v62 = vpack.c.bf16 %v273_v61, %v270_v58  ;;  %6033 = vmatmul.mubr.msk.f32.gmra.mrb[28].mxu0 %vm289_vm2, %v273_v61  ;;  %6049 = vmatpush3.bf16.msra.mxu1 %v7480_v54 }
 0x151   :  { %11190 = vst [vmem:[#allocation23_spill] sm:$0xff] %v7503_v60  ;;  %1552 = vrot.lane.b32.xlu1 %v7503_v60, %s7259_s0  ;;  %6035 = vmatprep.mubr.msk.f32.mxu0 %vm289_vm2, %v5972_v57 }
 0x152   :  { %11191 = vst [vmem:[#allocation24_spill] sm:$0xff] %v7506_v62  ;;  %2109 = vrot.lane.b32.xlu0 %v666_v50, %s7260_s21  ;;  %6001 = vmatmul.mubr.msk.f32.gmra.mrb[12].mxu1 %vm289_vm2, %v273_v61 }
 0x153   :  { %6050 = vmatprep.subr.bf16.mxu1 %v7506_v62  ;;  %6003 = vmatprep.mubr.msk.f32.mxu1 %vm289_vm2, %v5972_v57 }
 0x154   :  { %6036 = vmatmul.mubr.msk.f32.gmra.mrb[30].mxu0 %vm289_vm2, %v5973_v59  ;;  %6051 = vmatpush3.bf16.msra.mxu1 %v7506_v62 }
 0x155   :  { %1550 = vrot.lane.b32.xlu1 %v7506_v62, %s7259_s0  ;;  %6052 = vmatprep.subr.bf16.mxu1 %v7503_v60 }
 0x156   :  { %1548 = vrot.lane.b32.xlu0 %v7480_v54, %s7259_s0  ;;  %6004 = vmatmul.mubr.msk.f32.gmra.mrb[14].mxu1 %vm289_vm2, %v5973_v59 }
 0x158   :  { %6053 = vmatpush3.bf16.msra.mxu1 %v7503_v60 }
 0x1ab   :  { %v1541_v1 = vpop.permute.xlu0 %1540 }
 0x1ac   :  { %v1539_v2 = vpop.permute.xlu1 %1538 }
 0x1ad   :  { %6070 = vmatprep.subr.bf16.mxu0 %v1539_v2 }
 0x1ae   :  { %6071 = vmatpush3.bf16.msra.mxu0 %v1539_v2 }
 0x1af   :  { %6072 = vmatprep.subr.bf16.mxu0 %v1541_v1 }
 0x1b0   :  { %v7528_v3 = vpop.permute.xlu0 %2107  ;;  %v7530_v4 = vpop.permute.xlu1 %2672 }
 0x1b1   :  { %11192 = vst [vmem:[#allocation25_spill] sm:$0xff] %v7528_v3  ;;  %11193 = vst [vmem:[#allocation26_spill] sm:$0xff] %v7530_v4 }
 0x1b2   :  { %6073 = vmatpush3.bf16.msra.mxu0 %v1541_v1 }
 0x1b4   :  { %v7532_v5 = vpop.permute.xlu0 %2674  ;;  %v1543_v6 = vpop.permute.xlu1 %1542 }
 0x1b5   :  { %11194 = vst [vmem:[#allocation27_spill] sm:$0xff] %v7532_v5  ;;  %6074 = vmatprep.subr.bf16.mxu0 %v1543_v6 }
 0x1b6   :  { %6075 = vmatpush3.bf16.msra.mxu0 %v1543_v6 }
 0x1b8   :  { %v7534_v7 = vpop.permute.xlu0 %2105  ;;  %v7536_v8 = vpop.permute.xlu1 %2676 }
 0x1b9   :  { %11195 = vst [vmem:[#allocation28_spill] sm:$0xff] %v7534_v7  ;;  %11196 = vst [vmem:[#allocation29_spill] sm:$0xff] %v7536_v8  ;;  %6102 = vmatprep.subr.bf16.mxu1 %v7534_v7  ;;  %v7945_v8 = vld [vmem:[%s11013_s1] sm:$0xff] }
 0x1ba   :  { %11206 = vst [vmem:[#allocation37_spill] sm:$0xff] %v7945_v8 }
 0x1bc   :  { %v1545_v9 = vpop.permute.xlu0 %1544  ;;  %v1547_v10 = vpop.permute.xlu1 %1546 }
 0x1bd   :  { %6076 = vmatprep.subr.bf16.mxu0 %v1545_v9 }
 0x1be   :  { %6077 = vmatpush3.bf16.msra.mxu0 %v1545_v9 }
 0x1bf   :  { %6078 = vmatprep.subr.bf16.mxu0 %v1547_v10 }
 0x1c0   :  { %v7539_v11 = vpop.permute.xlu0 %2111 }
 0x1c1   :  { %11197 = vst [vmem:[#allocation30_spill] sm:$0xff] %v7539_v11 }
 0x1c2   :  { %6079 = vmatpush3.bf16.msra.mxu0 %v1547_v10 }
 0x1c3   :  { %v1553_v12 = vpop.permute.xlu1 %1552 }
 0x1c4   :  { %v7541_v13 = vpop.permute.xlu0 %2109 }
 0x1c5   :  { %11198 = vst [vmem:[#allocation31_spill] sm:$0xff] %v7541_v13 }
 0x1c7   :  { %v1551_v15 = vpop.permute.xlu1 %1550 }
 0x1c8   :  { %v1549_v14 = vpop.permute.xlu0 %1548 }
 0x1c9   :  { %6080 = vmatprep.subr.bf16.mxu0 %v1549_v14 }
 0x1ca   :  { %6081 = vmatpush3.bf16.msra.mxu0 %v1549_v14 }
 0x1cb   :  { %6082 = vmatprep.subr.bf16.mxu0 %v1551_v15 }
 0x1ce   :  { %6083 = vmatpush3.bf16.msra.mxu0 %v1551_v15 }
 0x1cf   :  { %6084 = vmatprep.subr.bf16.mxu0 %v1553_v12 }
 0x1d2   :  { %6085 = vmatpush3.bf16.msra.mxu0 %v1553_v12 }
 0x1d3   :  { %6134 = vmatprep.subr.bf16.mxu0 %v7530_v4 }
 0x20b   :  { %v7544_v16 = vpop.f32.mrb[0].mxu1  ;;  %v6016_v17 = vpop.f32.mrb[16].mxu0 }
 0x20c   :  { %v7546_v18 = vpop.f32.mrb[1].mxu1  ;;  %1745 = vperm.xlu0 %6431, %v6016_v17   ;;  %679 = vperm.xlu1 %6429, %v6016_v17   ;;  %v553_v19 = vpop.f32.mrb[17].mxu0 }
 0x20f   :  { %v6019_v20 = vpop.f32.mrb[18].mxu0 }
 0x210   :  { %v7548_v21 = vpop.f32.mrb[2].mxu1  ;;  %6436 = vset.pattern.permute.xlu0 %v11029_v22  ;;  %6430 = vset.pattern.permute.xlu1 %v11027_v23  ;;  %v7552_v24 = vpop.f32.mrb[19].mxu0 }
 0x211   :  { %v7554_v25 = vpop.f32.mrb[3].mxu1  ;;  %1170 = vperm.xlu1 %6430, %v6016_v17   ;;  %2308 = vperm.xlu0 %6436, %v553_v19  }
 0x213   :  { %v7556_v26 = vpop.f32.mrb[20].mxu0 }
 0x214   :  { %v7558_v27 = vpop.f32.mrb[21].mxu0  ;;  %v7560_v28 = vpop.f32.mrb[4].mxu1 }
 0x215   :  { %6432 = vset.pattern.permute.xlu1 %v11029_v22  ;;  %2320 = vperm.xlu0 %6436, %v6019_v20   ;;  %v7563_v29 = vpop.f32.mrb[5].mxu1 }
 0x216   :  { %2312 = vperm.xlu1 %6432, %v6016_v17  }
 0x217   :  { %v7565_v30 = vpop.f32.mrb[22].mxu0 }
 0x218   :  { %v7567_v31 = vpop.f32.mrb[23].mxu0  ;;  %v7569_v32 = vpop.f32.mrb[6].mxu1 }
 0x219   :  { %6446 = vset.pattern.permute.xlu0 %v11035_v63  ;;  %v7572_v33 = vpop.f32.mrb[7].mxu1 }
 0x21a   :  { %6433 = vset.pattern.permute.xlu1 %v11025_v0  ;;  %1761 = vperm.xlu0 %6446, %v7556_v26  }
 0x21b   :  { %674 = vperm.xlu1 %6433, %v553_v19   ;;  %v7576_v34 = vpop.f32.mrb[24].mxu0 }
 0x21c   :  { %v7578_v35 = vpop.f32.mrb[25].mxu0  ;;  %v7580_v36 = vpop.f32.mrb[8].mxu1 }
 0x21d   :  { %v7582_v37 = vpop.f32.mrb[9].mxu1 }
 0x21e   :  { %6451 = vset.pattern.permute.xlu0 %v11029_v22 }
 0x21f   :  { %6434 = vset.pattern.permute.xlu1 %v11027_v23  ;;  %2324 = vperm.xlu0 %6451, %v7558_v27   ;;  %v7587_v38 = vpop.f32.mrb[26].mxu0 }
 0x220   :  { %1166 = vperm.xlu1 %6434, %v553_v19   ;;  %v7589_v39 = vpop.f32.mrb[27].mxu0  ;;  %v7591_v40 = vpop.f32.mrb[10].mxu1 }
 0x221   :  { %v7593_v41 = vpop.f32.mrb[11].mxu1 }
 0x223   :  { %2336 = vperm.xlu0 %6451, %v7565_v30   ;;  %v7596_v42 = vpop.f32.mrb[28].mxu0 }
 0x224   :  { %6435 = vset.pattern.permute.xlu1 %v11035_v63  ;;  %v7599_v43 = vpop.f32.mrb[29].mxu0 }
 0x225   :  { %1741 = vperm.xlu1 %6435, %v553_v19   ;;  %v7601_v44 = vpop.f32.mrb[12].mxu1 }
 0x226   :  { %v7603_v45 = vpop.f32.mrb[13].mxu1 }
 0x227   :  { %6461 = vset.pattern.permute.xlu0 %v11035_v63  ;;  %v7606_v46 = vpop.f32.mrb[30].mxu0 }
 0x228   :  { %1777 = vperm.xlu0 %6461, %v7576_v34   ;;  %v7609_v47 = vpop.f32.mrb[31].mxu0 }
 0x229   :  { %6437 = vset.pattern.permute.xlu1 %v11025_v0  ;;  %v7612_v49 = vpop.f32.mrb[14].mxu1 }
 0x22a   :  { %689 = vperm.xlu1 %6437, %v6019_v20   ;;  %v7614_v50 = vpop.f32.mrb[15].mxu1 }
 0x22c   :  { %6463 = vset.pattern.permute.xlu0 %v11025_v0 }
 0x22d   :  { %714 = vperm.xlu0 %6463, %v7578_v35  }
 0x22e   :  { %6438 = vset.pattern.permute.xlu1 %v11027_v23 }
 0x22f   :  { %1178 = vperm.xlu1 %6438, %v6019_v20  }
 0x231   :  { %6466 = vset.pattern.permute.xlu0 %v11029_v22 }
 0x232   :  { %2340 = vperm.xlu0 %6466, %v7578_v35  }
 0x233   :  { %6439 = vset.pattern.permute.xlu1 %v11035_v63 }
 0x234   :  { %1753 = vperm.xlu1 %6439, %v6019_v20  }
 0x236   :  { %2352 = vperm.xlu0 %6466, %v7587_v38  }
 0x238   :  { %6440 = vset.pattern.permute.xlu1 %v11025_v0 }
 0x239   :  { %684 = vperm.xlu1 %6440, %v7552_v24  }
 0x23a   :  { %6476 = vset.pattern.permute.xlu0 %v11035_v63 }
 0x23b   :  { %1793 = vperm.xlu0 %6476, %v7596_v42  }
 0x23d   :  { %6441 = vset.pattern.permute.xlu1 %v11027_v23 }
 0x23e   :  { %1174 = vperm.xlu1 %6441, %v7552_v24  }
 0x23f   :  { %6479 = vset.pattern.permute.xlu0 %v11027_v23 }
 0x240   :  { %1214 = vperm.xlu0 %6479, %v7599_v43  }
 0x242   :  { %6442 = vset.pattern.permute.xlu1 %v11035_v63 }
 0x243   :  { %1749 = vperm.xlu1 %6442, %v7552_v24  }
 0x244   :  { %6481 = vset.pattern.permute.xlu0 %v11029_v22 }
 0x245   :  { %2356 = vperm.xlu0 %6481, %v7599_v43  }
 0x247   :  { %6443 = vset.pattern.permute.xlu1 %v11029_v22 }
 0x248   :  { %2316 = vperm.xlu1 %6443, %v7552_v24  }
 0x249   :  { %6483 = vset.pattern.permute.xlu0 %v11027_v23 }
 0x24a   :  { %1226 = vperm.xlu0 %6483, %v7606_v46  }
 0x24c   :  { %6444 = vset.pattern.permute.xlu1 %v11025_v0 }
 0x24d   :  { %699 = vperm.xlu1 %6444, %v7556_v26  }
 0x24e   :  { %6485 = vset.pattern.permute.xlu0 %v11029_v22 }
 0x24f   :  { %2368 = vperm.xlu0 %6485, %v7606_v46  }
 0x251   :  { %6445 = vset.pattern.permute.xlu1 %v11027_v23 }
 0x252   :  { %1186 = vperm.xlu1 %6445, %v7556_v26  }
 0x256   :  { %6447 = vset.pattern.permute.xlu1 %v11029_v22 }
 0x257   :  { %2328 = vperm.xlu1 %6447, %v7556_v26  }
 0x25b   :  { %6448 = vset.pattern.permute.xlu1 %v11025_v0 }
 0x25c   :  { %694 = vperm.xlu1 %6448, %v7558_v27  }
 0x260   :  { %6449 = vset.pattern.permute.xlu1 %v11027_v23 }
 0x261   :  { %1182 = vperm.xlu1 %6449, %v7558_v27  }
 0x265   :  { %6450 = vset.pattern.permute.xlu1 %v11035_v63 }
 0x266   :  { %1757 = vperm.xlu1 %6450, %v7558_v27  }
 0x26a   :  { %6452 = vset.pattern.permute.xlu1 %v11025_v0 }
 0x26b   :  { %709 = vperm.xlu1 %6452, %v7565_v30  }
 0x26d   :  { %632 = vxpose.xlu0.b32.start [1/16] (narrow) %v7546_v18, 8 }
 0x26f   :  { %6453 = vset.pattern.permute.xlu1 %v11027_v23 }
 0x270   :  { %1194 = vperm.xlu1 %6453, %v7565_v30  }
 0x271   :  { %633 = vxpose.xlu0.b32.cont [2/16] (narrow) %v7544_v16, 8 }
 0x274   :  { %6454 = vset.pattern.permute.xlu1 %v11035_v63 }
 0x275   :  { %1769 = vperm.xlu1 %6454, %v7565_v30   ;;  %634 = vxpose.xlu0.b32.cont [3/16] (narrow) %v7554_v25, 8 }
 0x279   :  { %6455 = vset.pattern.permute.xlu1 %v11025_v0  ;;  %635 = vxpose.xlu0.b32.cont [4/16] (narrow) %v7548_v21, 8 }
 0x27a   :  { %704 = vperm.xlu1 %6455, %v7567_v31  }
 0x27d   :  { %636 = vxpose.xlu0.b32.cont [5/16] (narrow) %v7563_v29, 8 }
 0x27e   :  { %6456 = vset.pattern.permute.xlu1 %v11027_v23 }
 0x27f   :  { %1190 = vperm.xlu1 %6456, %v7567_v31  }
 0x281   :  { %637 = vxpose.xlu0.b32.cont [6/16] (narrow) %v7560_v28, 8 }
 0x283   :  { %6457 = vset.pattern.permute.xlu1 %v11035_v63 }
 0x284   :  { %1765 = vperm.xlu1 %6457, %v7567_v31  }
 0x285   :  { %638 = vxpose.xlu0.b32.cont [7/16] (narrow) %v7572_v33, 8  ;;  %v752_v33 = vlaneseq }
 0x288   :  { %6458 = vset.pattern.permute.xlu1 %v11029_v22 }
 0x289   :  { %2332 = vperm.xlu1 %6458, %v7567_v31   ;;  %639 = vxpose.xlu0.b32.cont [8/16] (narrow) %v7569_v32, 8 }
 0x28b   :  { %v7675_v51 = vpop.permute.xlu1 %679  ;;  %v7688_v55 = vpop.permute.xlu0 %1745 }
 0x28d   :  { %6459 = vset.pattern.permute.xlu1 %v11025_v0  ;;  %640 = vxpose.xlu0.b32.cont [9/16] (narrow) %v7582_v37, 8 }
 0x28e   :  { %719 = vperm.xlu1 %6459, %v7576_v34  }
 0x290   :  { %v7680_v52 = vpop.permute.xlu1 %1170  ;;  %v7696_v58 = vpop.permute.xlu0 %2308 }
 0x291   :  { %641 = vxpose.xlu0.b32.cont [10/16] (narrow) %v7580_v36, 8  ;;  %v7786_v36 = vshrl.u32 %v752_v33, 7 }
 0x292   :  { %6460 = vset.pattern.permute.xlu1 %v11027_v23 }
 0x293   :  { %1202 = vperm.xlu1 %6460, %v7576_v34   ;;  %11199 = vst [vmem:[#allocation32_spill] sm:$0xff] %v7786_v36 }
 0x294   :  { %v7705_v61 = vpop.permute.xlu0 %2320 }
 0x295   :  { %v7685_v53 = vpop.permute.xlu1 %2312  ;;  %642 = vxpose.xlu0.b32.cont [11/16] (narrow) %v7593_v41, 8 }
 0x297   :  { %6462 = vset.pattern.permute.xlu1 %v11029_v22 }
 0x298   :  { %2344 = vperm.xlu1 %6462, %v7576_v34  }
 0x299   :  { %643 = vxpose.xlu0.b32.cont [12/16] (narrow) %v7591_v40, 8  ;;  %v7712_v2 = vpop.permute.xlu0 %1761  ;;  %v11023_v40 = vsub.s32 1, %v7786_v36 }
 0x29a   :  { %v7693_v57 = vpop.permute.xlu1 %674 }
 0x29c   :  { %6464 = vset.pattern.permute.xlu1 %v11027_v23 }
 0x29d   :  { %1198 = vperm.xlu1 %6464, %v7578_v35   ;;  %644 = vxpose.xlu0.b32.cont [13/16] (narrow) %v7603_v45, 8 }
 0x29e   :  { %v7719_v9 = vpop.permute.xlu0 %2324 }
 0x29f   :  { %v7700_v59 = vpop.permute.xlu1 %1166 }
 0x2a1   :  { %6465 = vset.pattern.permute.xlu1 %v11035_v63  ;;  %645 = vxpose.xlu0.b32.cont [14/16] (narrow) %v7601_v44, 8  ;;  %v7809_v44 = vld [vmem:[%s11013_s1 + $0x8] sm:$0xff] }
 0x2a2   :  { %1773 = vperm.xlu1 %6465, %v7578_v35   ;;  %v7727_v14 = vpop.permute.xlu0 %2336  ;;  %11200 = vst [vmem:[#allocation33_spill] sm:$0xff] %v7809_v44  ;;  %vm118_vm3 = vcmp.gt.f32.partialorder %v7809_v44, 0.0 }
 0x2a4   :  { %v7707_v1 = vpop.permute.xlu1 %1741 }
 0x2a5   :  { %646 = vxpose.xlu0.b32.cont [15/16] (narrow) %v7614_v50, 8  ;;  %v11034_v50 = vsub.s32 2, %v7786_v36 }
 0x2a6   :  { %6467 = vset.pattern.permute.xlu1 %v11025_v0 }
 0x2a7   :  { %729 = vperm.xlu1 %6467, %v7587_v38   ;;  %v7733_v16 = vpop.permute.xlu0 %1777 }
 0x2a9   :  { %v7714_v6 = vpop.permute.xlu1 %689  ;;  %647 = vxpose.xlu0.b32.end [16/16] (narrow) %v7612_v49, 8 }
 0x2ab   :  { %6468 = vset.pattern.permute.xlu1 %v11027_v23 }
 0x2ac   :  { %1210 = vperm.xlu1 %6468, %v7587_v38   ;;  %v7740_v18 = vpop.permute.xlu0 %714 }
 0x2ae   :  { %v7721_v10 = vpop.permute.xlu1 %1178 }
 0x2b0   :  { %6469 = vset.pattern.permute.xlu1 %v11035_v63 }
 0x2b1   :  { %1785 = vperm.xlu1 %6469, %v7587_v38   ;;  %v7746_v20 = vpop.permute.xlu0 %2340 }
 0x2b3   :  { %v7725_v12 = vpop.permute.xlu1 %1753 }
 0x2b5   :  { %6470 = vset.pattern.permute.xlu1 %v11025_v0  ;;  %v7753_v24 = vpop.permute.xlu0 %2352 }
 0x2b6   :  { %724 = vperm.xlu1 %6470, %v7589_v39  }
 0x2b8   :  { %v7731_v15 = vpop.permute.xlu1 %684 }
 0x2ba   :  { %6471 = vset.pattern.permute.xlu1 %v11027_v23  ;;  %v7759_v26 = vpop.permute.xlu0 %1793 }
 0x2bb   :  { %1206 = vperm.xlu1 %6471, %v7589_v39  }
 0x2bd   :  { %v7737_v17 = vpop.permute.xlu1 %1174 }
 0x2bf   :  { %6472 = vset.pattern.permute.xlu1 %v11035_v63  ;;  %v7768_v29 = vpop.permute.xlu0 %1214 }
 0x2c0   :  { %1781 = vperm.xlu1 %6472, %v7589_v39  }
 0x2c2   :  { %v7743_v19 = vpop.permute.xlu1 %1749 }
 0x2c4   :  { %6473 = vset.pattern.permute.xlu1 %v11029_v22  ;;  %v7774_v31 = vpop.permute.xlu0 %2356 }
 0x2c5   :  { %2348 = vperm.xlu1 %6473, %v7589_v39   ;;  %v11024_v39 = vsub.s32 0, %v7786_v36 }
 0x2c7   :  { %v7749_v21 = vpop.permute.xlu1 %2316 }
 0x2c9   :  { %6474 = vset.pattern.permute.xlu1 %v11025_v0  ;;  %v7781_v34 = vpop.permute.xlu0 %1226 }
 0x2ca   :  { %739 = vperm.xlu1 %6474, %v7596_v42  }
 0x2cc   :  { %v7755_v25 = vpop.permute.xlu1 %699 }
 0x2ce   :  { %6475 = vset.pattern.permute.xlu1 %v11027_v23  ;;  %v7790_v37 = vpop.permute.xlu0 %2368 }
 0x2cf   :  { %1218 = vperm.xlu1 %6475, %v7596_v42  }
 0x2d1   :  { %v7761_v27 = vpop.permute.xlu1 %1186 }
 0x2d2   :  { %6490 = vset.pattern.permute.xlu0 %v11025_v0 }
 0x2d3   :  { %6477 = vset.pattern.permute.xlu1 %v11029_v22 }
 0x2d4   :  { %2360 = vperm.xlu1 %6477, %v7596_v42  }
 0x2d6   :  { %v7766_v28 = vpop.permute.xlu1 %2328 }
 0x2d8   :  { %6478 = vset.pattern.permute.xlu1 %v11025_v0 }
 0x2d9   :  { %734 = vperm.xlu1 %6478, %v7599_v43  }
 0x2db   :  { %v7772_v30 = vpop.permute.xlu1 %694 }
 0x2dd   :  { %6480 = vset.pattern.permute.xlu1 %v11035_v63 }
 0x2de   :  { %1789 = vperm.xlu1 %6480, %v7599_v43  }
 0x2e0   :  { %v7778_v32 = vpop.permute.xlu1 %1182 }
 0x2e2   :  { %6482 = vset.pattern.permute.xlu1 %v11025_v0 }
 0x2e3   :  { %749 = vperm.xlu1 %6482, %v7606_v46  }
 0x2e5   :  { %v7784_v35 = vpop.permute.xlu1 %1757 }
 0x2e7   :  { %6484 = vset.pattern.permute.xlu1 %v11035_v63 }
 0x2e8   :  { %1801 = vperm.xlu1 %6484, %v7606_v46  }
 0x2ea   :  { %v7792_v38 = vpop.permute.xlu1 %709 }
 0x2ec   :  { %6486 = vset.pattern.permute.xlu1 %v11025_v0 }
 0x2ed   :  { %744 = vperm.xlu1 %6486, %v7609_v47   ;;  %v648_v41 = vpop.trf.xlu0 }
 0x2ee   :  { %v7800_v42 = vrot.slane %v648_v41, %v11024_v39  ;;  %v7804_v43 = vrot.slane %v648_v41, %v11023_v40  ;;  %v7824_v40 = vld [vmem:[%s11013_s1 + $0x18] sm:$0xff]  ;;  %v7837_v22 = vrot.slane %v648_v41, %v11034_v50 }
 0x2ef   :  { %v7811_v45 = vpop.permute.xlu1 %1194  ;;  %11201 = vst [vmem:[#allocation34_spill] sm:$0xff] %v7824_v40  ;;  %vm120_vm6 = vcmp.gt.f32.partialorder %v7824_v40, 0.0 }
 0x2f0   :  { %v757_v46 = vadd.f32 %v7800_v42, %v7675_v51  ;;  %v759_v49 = vadd.f32 %v7800_v42, %v7714_v6  ;;  %v1234_v51 = vadd.f32 %v7804_v43, %v7680_v52  ;;  %v1236_v11 = vadd.f32 %v7804_v43, %v7721_v10 }
 0x2f1   :  { %6487 = vset.pattern.permute.xlu1 %v11027_v23  ;;  %v1808_v4 = vadd.f32 %v7837_v22, %v7707_v1 }
 0x2f2   :  { %1222 = vperm.xlu1 %6487, %v7609_v47   ;;  %vm773_vm4 = vcmp.gt.f32.partialorder %v757_v46, 0.0  ;;  %v789_v33 = vmul.f32 0.2, %v757_v46  ;;  %v791_v39 = vmul.f32 0.2, %v759_v49  ;;  %vm775_vm5 = vcmp.gt.f32.partialorder %v759_v49, 0.0 }
 0x2f3   :  { %v1266_v52 = vmul.f32 0.2, %v1234_v51  ;;  %vm1250_vm7 = vcmp.gt.f32.partialorder %v1234_v51, 0.0  ;;  %vm1252_vm8 = vcmp.gt.f32.partialorder %v1236_v11, 0.0  ;;  %v1840_v1 = vmul.f32 0.2, %v1808_v4 }
 0x2f4   :  { %v7828_v6 = vpop.permute.xlu1 %1769  ;;  %v805_v0 = vsel %vm773_vm4, %v757_v46, %v789_v33  ;;  %v807_v60 = vsel %vm775_vm5, %v759_v49, %v791_v39  ;;  %v11038_v33 = vsub.s32 3, %v7786_v36  ;;  %v1809_v39 = vadd.f32 %v7837_v22, %v7688_v55 }
 0x2f5   :  { %v7832_v23 = vsel %vm118_vm3, %v805_v0, -1e+30  ;;  %v7848_v46 = vsel %vm120_vm6, %v807_v60, -1e+30  ;;  %v1282_v50 = vsel %vm1250_vm7, %v1234_v51, %v1266_v52  ;;  %v11202_v49 = vmov 3  }
 0x2f6   :  { %6488 = vset.pattern.permute.xlu1 %v11035_v63  ;;  %838 = vmax.xlane.f32.xlu0 %v7832_v23  ;;  %v1268_v63 = vmul.f32 0.2, %v1236_v11  ;;  %v7858_v10 = vsel %vm118_vm3, %v1282_v50, -1e+30  ;;  %v7862_v60 = vrot.slane %v648_v41, %v11038_v33  ;;  %v1841_v52 = vmul.f32 0.2, %v1809_v39 }
 0x2f7   :  { %1797 = vperm.xlu1 %6488, %v7609_v47   ;;  %v1811_v55 = vadd.f32 %v7837_v22, %v7725_v12  ;;  %vm1825_vm9 = vcmp.gt.f32.partialorder %v1809_v39, 0.0 }
 0x2f8   :  { %v1284_v51 = vsel %vm1252_vm8, %v1236_v11, %v1268_v63  ;;  %v1857_v41 = vsel %vm1825_vm9, %v1809_v39, %v1841_v52  ;;  %v2376_v33 = vadd.f32 %v7862_v60, %v7685_v53  ;;  %vm117_vm8 = vcmp.gt.f32.partialorder %v7945_v8, 0.0 }
 0x2f9   :  { %v7844_v0 = vpop.permute.xlu1 %704  ;;  %v1843_v50 = vmul.f32 0.2, %v1811_v55  ;;  %vm1827_vm10 = vcmp.gt.f32.partialorder %v1811_v55, 0.0  ;;  %v7881_v63 = vsel %vm118_vm3, %v1857_v41, -1e+30  ;;  %v758_v41 = vadd.f32 %v7800_v42, %v7731_v15 }
 0x2fa   :  { %842 = vmax.xlane.f32.xlu0 %v7848_v46  ;;  %v2408_v12 = vmul.f32 0.2, %v2376_v33  ;;  %vm2392_vm11 = vcmp.gt.f32.partialorder %v2376_v33, 0.0 }
 0x2fb   :  { %6489 = vset.pattern.permute.xlu1 %v11202_v49  ;;  %v11203_v49 = vmov 1   ;;  %v1859_v11 = vsel %vm1827_vm10, %v1811_v55, %v1843_v50  ;;  %v790_v3 = vmul.f32 0.2, %v758_v41  ;;  %vm774_vm13 = vcmp.gt.f32.partialorder %v758_v41, 0.0 }
 0x2fc   :  { %2364 = vperm.xlu1 %6489, %v7609_v47   ;;  %v7872_v47 = vsel %vm120_vm6, %v1284_v51, -1e+30  ;;  %v2378_v51 = vadd.f32 %v7862_v60, %v7705_v61  ;;  %v7890_v53 = vsel %vm120_vm6, %v1859_v11, -1e+30  ;;  %v2424_v52 = vsel %vm2392_vm11, %v2376_v33, %v2408_v12  ;;  %v7907_v33 = vld [vmem:[%s11013_s1 + $0x10] sm:$0xff] }
 0x2fd   :  { %v7899_v61 = vsel %vm118_vm3, %v2424_v52, -1e+30  ;;  %v761_v11 = vadd.f32 %v7800_v42, %v7755_v25  ;;  %11204 = vst [vmem:[#allocation35_spill] sm:$0xff] %v7907_v33  ;;  %vm119_vm14 = vcmp.gt.f32.partialorder %v7907_v33, 0.0  ;;  %v1238_v25 = vadd.f32 %v7804_v43, %v7761_v27  ;;  %v7922_v52 = vld [vmem:[%s11013_s1 + $0x28] sm:$0xff] }
 0x2fe   :  { %v7864_v13 = vpop.permute.xlu1 %1190  ;;  %1315 = vmax.xlane.f32.xlu0 %v7858_v10  ;;  %vm2394_vm12 = vcmp.gt.f32.partialorder %v2378_v51, 0.0  ;;  %11205 = vst [vmem:[#allocation36_spill] sm:$0xff] %v7922_v52  ;;  %vm122_vm0 = vcmp.gt.f32.partialorder %v7922_v52, 0.0  ;;  %v1813_v27 = vadd.f32 %v7837_v22, %v7712_v2  ;;  %vm1824_vm11 = vcmp.gt.f32.partialorder %v1808_v4, 0.0 }
 0x2ff   :  { %vm777_vm15 = vcmp.gt.f32.partialorder %v761_v11, 0.0  ;;  %vm1254_vm4 = vcmp.gt.f32.partialorder %v1238_v25, 0.0 }
 0x300   :  { %6491 = vset.pattern.permute.xlu1 %v11203_v49  ;;  %v2410_v49 = vmul.f32 0.2, %v2378_v51  ;;  %vm1829_vm7 = vcmp.gt.f32.partialorder %v1813_v27, 0.0 }
 0x302   :  { %1319 = vmax.xlane.f32.xlu0 %v7872_v47  ;;  %v2426_v50 = vsel %vm2394_vm12, %v2378_v51, %v2410_v49  ;;  %v806_v49 = vsel %vm774_vm13, %v758_v41, %v790_v3  ;;  %v793_v51 = vmul.f32 0.2, %v761_v11  ;;  %v1270_v41 = vmul.f32 0.2, %v1238_v25 }
 0x303   :  { %v7877_v36 = vpop.permute.xlu1 %1765  ;;  %v7911_v15 = vsel %vm120_vm6, %v2426_v50, -1e+30  ;;  %v756_v50 = vadd.f32 %v7800_v42, %v7693_v57  ;;  %v7928_v7 = vsel %vm119_vm14, %v806_v49, -1e+30  ;;  %v1233_v57 = vadd.f32 %v7804_v43, %v7700_v59 }
 0x304   :  { %v809_v3 = vsel %vm777_vm15, %v761_v11, %v793_v51  ;;  %v1286_v2 = vsel %vm1254_vm4, %v1238_v25, %v1270_v41  ;;  %v1845_v11 = vmul.f32 0.2, %v1813_v27  ;;  %v2380_v51 = vadd.f32 %v7862_v60, %v7766_v28 }
 0x305   :  { %v788_v54 = vmul.f32 0.2, %v756_v50  ;;  %v7940_v49 = vsel %vm122_vm0, %v809_v3, -1e+30  ;;  %vm772_vm5 = vcmp.gt.f32.partialorder %v756_v50, 0.0  ;;  %vm1249_vm9 = vcmp.gt.f32.partialorder %v1233_v57, 0.0 }
 0x306   :  { %1890 = vmax.xlane.f32.xlu0 %v7881_v63  ;;  %v1265_v3 = vmul.f32 0.2, %v1233_v57  ;;  %v7957_v56 = vsel %vm122_vm0, %v1286_v2, -1e+30  ;;  %v1861_v25 = vsel %vm1829_vm7, %v1813_v27, %v1845_v11  ;;  %v2412_v41 = vmul.f32 0.2, %v2380_v51 }
 0x307   :  { %v804_v59 = vsel %vm772_vm5, %v756_v50, %v788_v54  ;;  %11207 = vst [vmem:[#allocation38_spill] sm:$0xff] %v7957_v56  ;;  %v763_v28 = vadd.f32 %v7800_v42, %v7792_v38  ;;  %vm2396_vm10 = vcmp.gt.f32.partialorder %v2380_v51, 0.0  ;;  %v2375_v50 = vadd.f32 %v7862_v60, %v7696_v58  ;;  %v7985_v58 = vld [vmem:[%s11013_s1 + $0x38] sm:$0xff] }
 0x308   :  { %v7886_v39 = vpop.permute.xlu1 %2332  ;;  %v7964_v48 = vsel %vm117_vm8, %v804_v59, -1e+30  ;;  %v1281_v54 = vsel %vm1249_vm9, %v1233_v57, %v1265_v3  ;;  %v7973_v27 = vsel %vm122_vm0, %v1861_v25, -1e+30  ;;  %v1240_v38 = vadd.f32 %v7804_v43, %v7811_v45  ;;  %11208 = vst [vmem:[#allocation39_spill] sm:$0xff] %v7985_v58 }
 0x309   :  { %v2428_v11 = vsel %vm2396_vm10, %v2380_v51, %v2412_v41  ;;  %v795_v59 = vmul.f32 0.2, %v763_v28  ;;  %v7980_v57 = vsel %vm117_vm8, %v1281_v54, -1e+30  ;;  %vm779_vm12 = vcmp.gt.f32.partialorder %v763_v28, 0.0 }
 0x30a   :  { %1894 = vmax.xlane.f32.xlu0 %v7890_v53  ;;  %v1856_v3 = vsel %vm1824_vm11, %v1808_v4, %v1840_v1  ;;  %v2407_v25 = vmul.f32 0.2, %v2375_v50  ;;  %v1235_v45 = vadd.f32 %v7804_v43, %v7737_v17  ;;  %v7992_v51 = vsel %vm122_vm0, %v2428_v11, -1e+30 }
 0x30b   :  { %11209 = vst [vmem:[#allocation40_spill] sm:$0xff] %v7992_v51  ;;  %vm2391_vm13 = vcmp.gt.f32.partialorder %v2375_v50, 0.0  ;;  %v1815_v41 = vadd.f32 %v7837_v22, %v7828_v6  ;;  %vm124_vm15 = vcmp.gt.f32.partialorder %v7985_v58, 0.0  ;;  %v1272_v4 = vmul.f32 0.2, %v1240_v38 }
 0x30c   :  { %v8002_v1 = vsel %vm117_vm8, %v1856_v3, -1e+30  ;;  %vm1256_vm4 = vcmp.gt.f32.partialorder %v1240_v38, 0.0  ;;  %v2423_v17 = vsel %vm2391_vm13, %v2375_v50, %v2407_v25  ;;  %v1267_v11 = vmul.f32 0.2, %v1235_v45 }
 0x30d   :  { %v7895_v55 = vpop.permute.xlu1 %719  ;;  %v1810_v6 = vadd.f32 %v7837_v22, %v7743_v19  ;;  %vm1251_vm5 = vcmp.gt.f32.partialorder %v1235_v45, 0.0  ;;  %v2382_v3 = vadd.f32 %v7862_v60, %v7727_v14  ;;  %v8018_v50 = vsel %vm117_vm8, %v2423_v17, -1e+30 }
 0x30e   :  { %2457 = vmax.xlane.f32.xlu0 %v7899_v61  ;;  %vm1831_vm7 = vcmp.gt.f32.partialorder %v1815_v41, 0.0  ;;  %v1283_v19 = vsel %vm1251_vm5, %v1235_v45, %v1267_v11  ;;  %v2377_v25 = vadd.f32 %v7862_v60, %v7749_v21  ;;  %v765_v14 = vadd.f32 %v7800_v42, %v7895_v55 }
 0x30f   :  { %vm1826_vm9 = vcmp.gt.f32.partialorder %v1810_v6, 0.0  ;;  %v2414_v17 = vmul.f32 0.2, %v2382_v3  ;;  %vm2398_vm10 = vcmp.gt.f32.partialorder %v2382_v3, 0.0 }
 0x310   :  { %v2409_v11 = vmul.f32 0.2, %v2377_v25  ;;  %vm2393_vm11 = vcmp.gt.f32.partialorder %v2377_v25, 0.0 }
 0x312   :  { %v7913_v12 = vpop.permute.xlu1 %1202  ;;  %2461 = vmax.xlane.f32.xlu0 %v7911_v15 }
 0x316   :  { %840 = vmax.xlane.f32.xlu0 %v7928_v7 }
 0x317   :  { %v7934_v62 = vpop.permute.xlu1 %2344 }
 0x31a   :  { %846 = vmax.xlane.f32.xlu0 %v7940_v49 }
 0x31c   :  { %v7950_v5 = vpop.permute.xlu1 %1198 }
 0x31e   :  { %1323 = vmax.xlane.f32.xlu0 %v7957_v56  ;;  %v811_v56 = vsel %vm779_vm12, %v763_v28, %v795_v59  ;;  %v1288_v28 = vsel %vm1256_vm4, %v1240_v38, %v1272_v4  ;;  %v1847_v59 = vmul.f32 0.2, %v1815_v41  ;;  %vm781_vm12 = vcmp.gt.f32.partialorder %v765_v14, 0.0 }
 0x31f   :  { %v8009_v52 = vsel %vm124_vm15, %v811_v56, -1e+30  ;;  %v1842_v56 = vmul.f32 0.2, %v1810_v6  ;;  %v8025_v38 = vsel %vm124_vm15, %v1288_v28, -1e+30  ;;  %v760_v28 = vadd.f32 %v7800_v42, %v7772_v30 }
 0x320   :  { %836 = vmax.xlane.f32.xlu1 %v7964_v48  ;;  %11210 = vst [vmem:[#allocation41_spill] sm:$0xff] %v8009_v52  ;;  %11211 = vst [vmem:[#allocation42_spill] sm:$0xff] %v8025_v38  ;;  %v1863_v4 = vsel %vm1831_vm7, %v1815_v41, %v1847_v59  ;;  %v1242_v41 = vadd.f32 %v7804_v43, %v7913_v12  ;;  %v2430_v59 = vsel %vm2398_vm10, %v2382_v3, %v2414_v17  ;;  %v8067_v17 = vld [vmem:[%s11013_s1 + $0x20] sm:$0xff] }
 0x321   :  { %v7969_v2 = vpop.permute.xlu1 %1773  ;;  %v1858_v21 = vsel %vm1826_vm9, %v1810_v6, %v1842_v56  ;;  %v8041_v55 = vsel %vm124_vm15, %v1863_v4, -1e+30  ;;  %v2425_v30 = vsel %vm2393_vm11, %v2377_v25, %v2409_v11  ;;  %v8054_v6 = vld [vmem:[%s11013_s1 + $0x48] sm:$0xff]  ;;  %v792_v56 = vmul.f32 0.2, %v760_v28  ;;  %11215 = vst [vmem:[#allocation46_spill] sm:$0xff] %v8067_v17 }
 0x322   :  { %1898 = vmax.xlane.f32.xlu0 %v7973_v27  ;;  %11212 = vst [vmem:[#allocation43_spill] sm:$0xff] %v8041_v55  ;;  %11213 = vst [vmem:[#allocation44_spill] sm:$0xff] %v8054_v6  ;;  %v1237_v12 = vadd.f32 %v7804_v43, %v7778_v32  ;;  %v8062_v3 = vsel %vm124_vm15, %v2430_v59, -1e+30  ;;  %vm776_vm13 = vcmp.gt.f32.partialorder %v760_v28, 0.0  ;;  %v1817_v11 = vadd.f32 %v7837_v22, %v7733_v16 }
 0x323   :  { %11214 = vst [vmem:[#allocation45_spill] sm:$0xff] %v8062_v3  ;;  %v8074_v32 = vsel %vm119_vm14, %v2425_v30, -1e+30  ;;  %vm11076_vm4 = vcmp.gt.f32.partialorder %v8054_v6, 0.0  ;;  %vm1258_vm5 = vcmp.gt.f32.partialorder %v1242_v41, 0.0  ;;  %vm121_vm7 = vcmp.gt.f32.partialorder %v8067_v17, 0.0 }
 0x324   :  { %1313 = vmax.xlane.f32.xlu1 %v7980_v57  ;;  %v808_v59 = vsel %vm776_vm13, %v760_v28, %v792_v56  ;;  %v1269_v58 = vmul.f32 0.2, %v1237_v12  ;;  %vm1253_vm9 = vcmp.gt.f32.partialorder %v1237_v12, 0.0  ;;  %v2384_v16 = vadd.f32 %v7862_v60, %v7934_v62 }
 0x325   :  { %v8092_v28 = vsel %vm121_vm7, %v808_v59, -1e+30  ;;  %vm1833_vm10 = vcmp.gt.f32.partialorder %v1817_v11, 0.0 }
 0x326   :  { %v7996_v54 = vpop.permute.xlu1 %729  ;;  %2465 = vmax.xlane.f32.xlu0 %v7992_v51  ;;  %v2416_v59 = vmul.f32 0.2, %v2384_v16 }
 0x328   :  { %1888 = vmax.xlane.f32.xlu1 %v8002_v1 }
 0x32a   :  { %850 = vmax.xlane.f32.xlu0 %v8009_v52  ;;  %v8032_v52 = vsel %vm119_vm14, %v1283_v19, -1e+30  ;;  %v797_v19 = vmul.f32 0.2, %v765_v14 }
 0x32b   :  { %v8014_v51 = vpop.permute.xlu1 %1210 }
 0x32c   :  { %2455 = vmax.xlane.f32.xlu1 %v8018_v50  ;;  %v813_v25 = vsel %vm781_vm12, %v765_v14, %v797_v19  ;;  %v1812_v14 = vadd.f32 %v7837_v22, %v7784_v35  ;;  %v1285_v35 = vsel %vm1253_vm9, %v1237_v12, %v1269_v58  ;;  %vm2400_vm12 = vcmp.gt.f32.partialorder %v2384_v16, 0.0 }
 0x32d   :  { %v8083_v19 = vsel %vm11076_vm4, %v813_v25, -1e+30  ;;  %v2379_v25 = vadd.f32 %v7862_v60, %v7719_v9  ;;  %v8108_v58 = vsel %vm121_vm7, %v1285_v35, -1e+30  ;;  %v762_v9 = vadd.f32 %v7800_v42, %v7844_v0 }
 0x32e   :  { %1327 = vmax.xlane.f32.xlu0 %v8025_v38  ;;  %v8048_v38 = vsel %vm119_vm14, %v1858_v21, -1e+30  ;;  %v1274_v21 = vmul.f32 0.2, %v1242_v41  ;;  %11216 = vst [vmem:[#allocation47_spill] sm:$0xff] %v8083_v19  ;;  %vm1828_vm11 = vcmp.gt.f32.partialorder %v1812_v14, 0.0 }
 0x32f   :  { %v1844_v56 = vmul.f32 0.2, %v1812_v14  ;;  %vm2395_vm13 = vcmp.gt.f32.partialorder %v2379_v25, 0.0  ;;  %v794_v0 = vmul.f32 0.2, %v762_v9  ;;  %vm778_vm9 = vcmp.gt.f32.partialorder %v762_v9, 0.0 }
 0x330   :  { %v8034_v45 = vpop.permute.xlu1 %1785  ;;  %1317 = vmax.xlane.f32.xlu1 %v8032_v52 }
 0x331   :  { %v1860_v12 = vsel %vm1828_vm11, %v1812_v14, %v1844_v56  ;;  %v1239_v14 = vadd.f32 %v7804_v43, %v7864_v13  ;;  %v1819_v13 = vadd.f32 %v7837_v22, %v8034_v45  ;;  %v810_v45 = vsel %vm778_vm9, %v762_v9, %v794_v0 }
 0x332   :  { %1902 = vmax.xlane.f32.xlu0 %v8041_v55  ;;  %v1849_v55 = vmul.f32 0.2, %v1817_v11  ;;  %v2381_v9 = vadd.f32 %v7862_v60, %v7886_v39 }
 0x334   :  { %1892 = vmax.xlane.f32.xlu1 %v8048_v38  ;;  %v2413_v39 = vmul.f32 0.2, %v2381_v9 }
 0x335   :  { %v8058_v4 = vpop.permute.xlu1 %724 }
 0x336   :  { %2469 = vmax.xlane.f32.xlu0 %v8062_v3  ;;  %v1290_v3 = vsel %vm1258_vm5, %v1242_v41, %v1274_v21  ;;  %v767_v41 = vadd.f32 %v7800_v42, %v7996_v54  ;;  %v1865_v21 = vsel %vm1833_vm10, %v1817_v11, %v1849_v55  ;;  %v1244_v55 = vadd.f32 %v7804_v43, %v8014_v51  ;;  %v8132_v51 = vld [vmem:[%s11013_s1 + $0x58] sm:$0xff] }
 0x337   :  { %v8099_v62 = vsel %vm11076_vm4, %v1290_v3, -1e+30  ;;  %v2411_v3 = vmul.f32 0.2, %v2379_v25  ;;  %v8115_v54 = vsel %vm11076_vm4, %v1865_v21, -1e+30  ;;  %v2432_v11 = vsel %vm2400_vm12, %v2384_v16, %v2416_v59 }
 0x338   :  { %2459 = vmax.xlane.f32.xlu1 %v8074_v32  ;;  %11217 = vst [vmem:[#allocation48_spill] sm:$0xff] %v8099_v62  ;;  %11218 = vst [vmem:[#allocation49_spill] sm:$0xff] %v8115_v54  ;;  %v799_v35 = vmul.f32 0.2, %v767_v41  ;;  %vm783_vm5 = vcmp.gt.f32.partialorder %v767_v41, 0.0  ;;  %v8141_v59 = vld [vmem:[%s11013_s1 + $0x30] sm:$0xff] }
 0x339   :  { %v2427_v21 = vsel %vm2395_vm13, %v2379_v25, %v2411_v3  ;;  %11219 = vst [vmem:[#allocation50_spill] sm:$0xff] %v8132_v51  ;;  %v8136_v16 = vsel %vm11076_vm4, %v2432_v11, -1e+30  ;;  %11221 = vst [vmem:[#allocation52_spill] sm:$0xff] %v8141_v59  ;;  %vm11074_vm10 = vcmp.gt.f32.partialorder %v8132_v51, 0.0  ;;  %vm1260_vm11 = vcmp.gt.f32.partialorder %v1244_v55, 0.0 }
 0x33a   :  { %v8087_v30 = vpop.permute.xlu1 %1206  ;;  %854 = vmax.xlane.f32.xlu0 %v8083_v19  ;;  %11220 = vst [vmem:[#allocation51_spill] sm:$0xff] %v8136_v16  ;;  %v815_v25 = vsel %vm783_vm5, %v767_v41, %v799_v35  ;;  %v8148_v3 = vsel %vm121_vm7, %v2427_v21, -1e+30  ;;  %v1271_v11 = vmul.f32 0.2, %v1239_v14  ;;  %vm11081_vm12 = vcmp.gt.f32.partialorder %v8141_v59, 0.0 }
 0x33b   :  { %v8157_v41 = vsel %vm11074_vm10, %v815_v25, -1e+30  ;;  %vm1255_vm13 = vcmp.gt.f32.partialorder %v1239_v14, 0.0  ;;  %v1851_v21 = vmul.f32 0.2, %v1819_v13  ;;  %vm1835_vm5 = vcmp.gt.f32.partialorder %v1819_v13, 0.0 }
 0x33c   :  { %844 = vmax.xlane.f32.xlu1 %v8092_v28  ;;  %11222 = vst [vmem:[#allocation53_spill] sm:$0xff] %v8157_v41  ;;  %v1287_v0 = vsel %vm1255_vm13, %v1239_v14, %v1271_v11  ;;  %v764_v11 = vadd.f32 %v7800_v42, %v7740_v18  ;;  %vm2397_vm13 = vcmp.gt.f32.partialorder %v2381_v9, 0.0  ;;  %v1241_v18 = vadd.f32 %v7804_v43, %v7950_v5 }
 0x33e   :  { %1331 = vmax.xlane.f32.xlu0 %v8099_v62  ;;  %v8122_v62 = vsel %vm121_vm7, %v1860_v12, -1e+30  ;;  %v1276_v12 = vmul.f32 0.2, %v1244_v55 }
 0x33f   :  { %v8104_v19 = vpop.permute.xlu1 %1781 }
 0x340   :  { %1321 = vmax.xlane.f32.xlu1 %v8108_v58  ;;  %v1292_v35 = vsel %vm1260_vm11, %v1244_v55, %v1276_v12  ;;  %v1867_v12 = vsel %vm1835_vm5, %v1819_v13, %v1851_v21 }
 0x341   :  { %v8171_v25 = vsel %vm11074_vm10, %v1292_v35, -1e+30 }
 0x342   :  { %1906 = vmax.xlane.f32.xlu0 %v8115_v54  ;;  %v1814_v54 = vadd.f32 %v7837_v22, %v7877_v36  ;;  %v8164_v36 = vsel %vm11081_vm12, %v810_v45, -1e+30  ;;  %11223 = vst [vmem:[#allocation54_spill] sm:$0xff] %v8171_v25 }
 0x344   :  { %v8126_v56 = vpop.permute.xlu1 %2348  ;;  %1896 = vmax.xlane.f32.xlu1 %v8122_v62  ;;  %v1846_v17 = vmul.f32 0.2, %v1814_v54  ;;  %vm1830_vm9 = vcmp.gt.f32.partialorder %v1814_v54, 0.0 }
 0x346   :  { %2473 = vmax.xlane.f32.xlu0 %v8136_v16  ;;  %v2386_v16 = vadd.f32 %v7862_v60, %v7753_v24  ;;  %v1862_v14 = vsel %vm1830_vm9, %v1814_v54, %v1846_v17  ;;  %v2429_v17 = vsel %vm2397_vm13, %v2381_v9, %v2413_v39  ;;  %v8198_v54 = vld [vmem:[%s11013_s1 + $0x68] sm:$0xff]  ;;  %vm780_vm9 = vcmp.gt.f32.partialorder %v764_v11, 0.0 }
 0x347   :  { %11225 = vst [vmem:[#allocation56_spill] sm:$0xff] %v8198_v54  ;;  %v8214_v39 = vsel %vm11081_vm12, %v2429_v17, -1e+30 }
 0x348   :  { %2463 = vmax.xlane.f32.xlu1 %v8148_v3  ;;  %v2418_v45 = vmul.f32 0.2, %v2386_v16  ;;  %vm2402_vm11 = vcmp.gt.f32.partialorder %v2386_v16, 0.0  ;;  %11228 = vst [vmem:[#allocation59_spill] sm:$0xff] %v8214_v39 }
 0x349   :  { %v740_v6 = vpop.permute.xlu1 %739 }
 0x34a   :  { %858 = vmax.xlane.f32.xlu0 %v8157_v41  ;;  %v769_v55 = vadd.f32 %v7800_v42, %v740_v6  ;;  %v8177_v41 = vsel %vm11081_vm12, %v1287_v0, -1e+30  ;;  %v8184_v6 = vsel %vm11074_vm10, %v1867_v12, -1e+30  ;;  %v2434_v21 = vsel %vm2402_vm11, %v2386_v16, %v2418_v45  ;;  %v8207_v12 = vld [vmem:[%s11013_s1 + $0x40] sm:$0xff] }
 0x34b   :  { %11224 = vst [vmem:[#allocation55_spill] sm:$0xff] %v8184_v6  ;;  %v8202_v16 = vsel %vm11074_vm10, %v2434_v21, -1e+30  ;;  %11227 = vst [vmem:[#allocation58_spill] sm:$0xff] %v8207_v12  ;;  %v1821_v45 = vadd.f32 %v7837_v22, %v7759_v26  ;;  %vm11085_vm11 = vcmp.gt.f32.partialorder %v8198_v54, 0.0  ;;  %v1816_v21 = vadd.f32 %v7837_v22, %v7969_v2 }
 0x34c   :  { %848 = vmax.xlane.f32.xlu1 %v8164_v36  ;;  %v801_v35 = vmul.f32 0.2, %v769_v55  ;;  %vm785_vm5 = vcmp.gt.f32.partialorder %v769_v55, 0.0  ;;  %11226 = vst [vmem:[#allocation57_spill] sm:$0xff] %v8202_v16  ;;  %vm1257_vm10 = vcmp.gt.f32.partialorder %v1241_v18, 0.0 }
 0x34d   :  { %vm1837_vm4 = vcmp.gt.f32.partialorder %v1821_v45, 0.0 }
 0x34e   :  { %v1219_v24 = vpop.permute.xlu1 %1218  ;;  %1335 = vmax.xlane.f32.xlu0 %v8171_v25  ;;  %v8190_v25 = vsel %vm11081_vm12, %v1862_v14, -1e+30  ;;  %v817_v9 = vsel %vm785_vm5, %v769_v55, %v801_v35  ;;  %v1273_v14 = vmul.f32 0.2, %v1241_v18  ;;  %vm125_vm5 = vcmp.gt.f32.partialorder %v8207_v12, 0.0 }
 0x34f   :  { %v1246_v13 = vadd.f32 %v7804_v43, %v1219_v24  ;;  %v796_v24 = vmul.f32 0.2, %v764_v11  ;;  %v8225_v26 = vsel %vm11085_vm11, %v817_v9, -1e+30 }
 0x350   :  { %1325 = vmax.xlane.f32.xlu1 %v8177_v41 }
 0x351   :  { %v1278_v5 = vmul.f32 0.2, %v1246_v13  ;;  %vm1262_vm13 = vcmp.gt.f32.partialorder %v1246_v13, 0.0  ;;  %v812_v55 = vsel %vm780_vm9, %v764_v11, %v796_v24  ;;  %v1289_v11 = vsel %vm1257_vm10, %v1241_v18, %v1273_v14 }
 0x352   :  { %1910 = vmax.xlane.f32.xlu0 %v8184_v6  ;;  %v8231_v2 = vsel %vm125_vm5, %v812_v55, -1e+30  ;;  %v2383_v24 = vadd.f32 %v7862_v60, %v7746_v20  ;;  %vm1832_vm9 = vcmp.gt.f32.partialorder %v1816_v21, 0.0  ;;  %v766_v55 = vadd.f32 %v7800_v42, %v8058_v4 }
 0x353   :  { %v2361_v0 = vpop.permute.xlu1 %2360  ;;  %v1294_v17 = vsel %vm1262_vm13, %v1246_v13, %v1278_v5  ;;  %v8247_v18 = vsel %vm125_vm5, %v1289_v11, -1e+30  ;;  %v1248_v4 = vadd.f32 %v7804_v43, %v7781_v34  ;;  %v1243_v34 = vadd.f32 %v7804_v43, %v8087_v30 }
 0x354   :  { %1900 = vmax.xlane.f32.xlu1 %v8190_v25  ;;  %v2388_v35 = vadd.f32 %v7862_v60, %v2361_v0  ;;  %v8240_v0 = vsel %vm11085_vm11, %v1294_v17, -1e+30  ;;  %11230 = vst [vmem:[#allocation61_spill] sm:$0xff] %v8247_v18  ;;  %v2415_v14 = vmul.f32 0.2, %v2383_v24  ;;  %vm2399_vm13 = vcmp.gt.f32.partialorder %v2383_v24, 0.0 }
 0x355   :  { %11229 = vst [vmem:[#allocation60_spill] sm:$0xff] %v8240_v0 }
 0x356   :  { %2477 = vmax.xlane.f32.xlu0 %v8202_v16  ;;  %v1853_v16 = vmul.f32 0.2, %v1821_v45  ;;  %v2420_v13 = vmul.f32 0.2, %v2388_v35  ;;  %vm2404_vm10 = vcmp.gt.f32.partialorder %v2388_v35, 0.0 }
 0x358   :  { %v8219_v6 = vpop.permute.xlu1 %734  ;;  %2467 = vmax.xlane.f32.xlu1 %v8214_v39  ;;  %v1848_v39 = vmul.f32 0.2, %v1816_v21  ;;  %v1869_v5 = vsel %vm1837_vm4, %v1821_v45, %v1853_v16  ;;  %v2436_v16 = vsel %vm2404_vm10, %v2388_v35, %v2420_v13  ;;  %v798_v45 = vmul.f32 0.2, %v766_v55 }
 0x359   :  { %v8252_v17 = vsel %vm11085_vm11, %v1869_v5, -1e+30  ;;  %vm782_vm4 = vcmp.gt.f32.partialorder %v766_v55, 0.0  ;;  %v8277_v13 = vsel %vm11085_vm11, %v2436_v16, -1e+30  ;;  %v1818_v16 = vadd.f32 %v7837_v22, %v8104_v19 }
 0x35a   :  { %862 = vmax.xlane.f32.xlu0 %v8225_v26  ;;  %v1864_v20 = vsel %vm1832_vm9, %v1816_v21, %v1848_v39  ;;  %11231 = vst [vmem:[#allocation62_spill] sm:$0xff] %v8252_v17  ;;  %v8265_v39 = vld [vmem:[%s11013_s1 + $0x78] sm:$0xff]  ;;  %v8270_v21 = vld [vmem:[%s11013_s1 + $0x50] sm:$0xff]  ;;  %11235 = vst [vmem:[#allocation66_spill] sm:$0xff] %v8277_v13  ;;  %v1280_v5 = vmul.f32 0.2, %v1248_v4 }
 0x35b   :  { %11233 = vst [vmem:[#allocation64_spill] sm:$0xff] %v8265_v39  ;;  %11234 = vst [vmem:[#allocation65_spill] sm:$0xff] %v8270_v21  ;;  %vm11091_vm10 = vcmp.gt.f32.partialorder %v8265_v39, 0.0  ;;  %vm127_vm12 = vcmp.gt.f32.partialorder %v8270_v21, 0.0  ;;  %vm1259_vm11 = vcmp.gt.f32.partialorder %v1243_v34, 0.0 }
 0x35c   :  { %852 = vmax.xlane.f32.xlu1 %v8231_v2  ;;  %v1850_v19 = vmul.f32 0.2, %v1818_v16 }
 0x35d   :  { %v8236_v9 = vpop.permute.xlu1 %1789 }
 0x35e   :  { %1339 = vmax.xlane.f32.xlu0 %v8240_v0  ;;  %v8260_v0 = vsel %vm125_vm5, %v1864_v20, -1e+30 }
 0x35f   :  { %11232 = vst [vmem:[#allocation63_spill] sm:$0xff] %v8260_v0 }
 0x360   :  { %1329 = vmax.xlane.f32.xlu1 %v8247_v18 }
 0x362   :  { %v750_v51 = vpop.permute.xlu1 %749  ;;  %1914 = vmax.xlane.f32.xlu0 %v8252_v17  ;;  %v1275_v17 = vmul.f32 0.2, %v1243_v34 }
 0x363   :  { %v771_v11 = vadd.f32 %v7800_v42, %v750_v51  ;;  %v2431_v51 = vsel %vm2399_vm13, %v2383_v24, %v2415_v14  ;;  %v814_v14 = vsel %vm782_vm4, %v766_v55, %v798_v45  ;;  %vm1264_vm13 = vcmp.gt.f32.partialorder %v1248_v4, 0.0 }
 0x364   :  { %1904 = vmax.xlane.f32.xlu1 %v8260_v0  ;;  %v8284_v30 = vsel %vm125_vm5, %v2431_v51, -1e+30  ;;  %v1296_v51 = vsel %vm1264_vm13, %v1248_v4, %v1280_v5  ;;  %v2390_v55 = vadd.f32 %v7862_v60, %v7790_v37  ;;  %v8299_v45 = vsel %vm127_vm12, %v814_v14, -1e+30 }
 0x365   :  { %v803_v35 = vmul.f32 0.2, %v771_v11  ;;  %vm787_vm9 = vcmp.gt.f32.partialorder %v771_v11, 0.0  ;;  %11236 = vst [vmem:[#allocation67_spill] sm:$0xff] %v8284_v30 }
 0x366   :  { %2481 = vmax.xlane.f32.xlu0 %v8277_v13  ;;  %v2422_v4 = vmul.f32 0.2, %v2390_v55  ;;  %vm2406_vm13 = vcmp.gt.f32.partialorder %v2390_v55, 0.0 }
 0x367   :  { %v1802_v20 = vpop.permute.xlu1 %1801  ;;  %v819_v24 = vsel %vm787_vm9, %v771_v11, %v803_v35  ;;  %v2385_v11 = vadd.f32 %v7862_v60, %v8126_v56  ;;  %v1291_v35 = vsel %vm1259_vm11, %v1243_v34, %v1275_v17  ;;  %vm1834_vm9 = vcmp.gt.f32.partialorder %v1818_v16, 0.0 }
 0x368   :  { %v1823_v0 = vadd.f32 %v7837_v22, %v1802_v20  ;;  %2471 = vmax.xlane.f32.xlu1 %v8284_v30  ;;  %v8292_v13 = vsel %vm11091_vm10, %v819_v24, -1e+30  ;;  %v8306_v20 = vsel %vm11091_vm10, %v1296_v51, -1e+30  ;;  %v8311_v5 = vsel %vm127_vm12, %v1291_v35, -1e+30 }
 0x369   :  { %v2417_v24 = vmul.f32 0.2, %v2385_v11  ;;  %v768_v56 = vadd.f32 %v7800_v42, %v8219_v6  ;;  %v1866_v17 = vsel %vm1834_vm9, %v1818_v16, %v1850_v19  ;;  %vm2401_vm11 = vcmp.gt.f32.partialorder %v2385_v11, 0.0  ;;  %v8340_v35 = vld [vmem:[%s11013_s1 + $0x60] sm:$0xff] }
 0x36a   :  { %v1855_v18 = vmul.f32 0.2, %v1823_v0  ;;  %866 = vmax.xlane.f32.xlu0 %v8292_v13  ;;  %vm1839_vm4 = vcmp.gt.f32.partialorder %v1823_v0, 0.0  ;;  %v1245_v6 = vadd.f32 %v7804_v43, %v7768_v29  ;;  %11241 = vst [vmem:[#allocation72_spill] sm:$0xff] %v8340_v35  ;;  %v1820_v29 = vadd.f32 %v7837_v22, %v8236_v9 }
 0x36b   :  { %v800_v14 = vmul.f32 0.2, %v768_v56  ;;  %v2433_v51 = vsel %vm2401_vm11, %v2385_v11, %v2417_v24 }
 0x36c   :  { %856 = vmax.xlane.f32.xlu1 %v8299_v45  ;;  %v1871_v37 = vsel %vm1839_vm4, %v1823_v0, %v1855_v18  ;;  %v2438_v0 = vsel %vm2406_vm13, %v2390_v55, %v2422_v4  ;;  %v8323_v18 = vsel %vm127_vm12, %v1866_v17, -1e+30  ;;  %vm784_vm4 = vcmp.gt.f32.partialorder %v768_v56, 0.0  ;;  %v745_v19 = vpop.permute.xlu1 %744 }
 0x36d   :  { %v8318_v34 = vsel %vm11091_vm10, %v1871_v37, -1e+30  ;;  %11238 = vst [vmem:[#allocation69_spill] sm:$0xff] %v8323_v18  ;;  %v8330_v16 = vsel %vm11091_vm10, %v2438_v0, -1e+30  ;;  %v816_v11 = vsel %vm784_vm4, %v768_v56, %v800_v14  ;;  %vm1261_vm9 = vcmp.gt.f32.partialorder %v1245_v6, 0.0 }
 0x36e   :  { %1343 = vmax.xlane.f32.xlu0 %v8306_v20  ;;  %11237 = vst [vmem:[#allocation68_spill] sm:$0xff] %v8318_v34  ;;  %11239 = vst [vmem:[#allocation70_spill] sm:$0xff] %v8330_v16  ;;  %v8335_v55 = vsel %vm127_vm12, %v2433_v51, -1e+30  ;;  %v1277_v37 = vmul.f32 0.2, %v1245_v6  ;;  %v2387_v0 = vadd.f32 %v7862_v60, %v7774_v31  ;;  %v770_v9 = vadd.f32 %v7800_v42, %v745_v19 }
 0x36f   :  { %11240 = vst [vmem:[#allocation71_spill] sm:$0xff] %v8335_v55  ;;  %vm129_vm13 = vcmp.gt.f32.partialorder %v8340_v35, 0.0  ;;  %v1852_v24 = vmul.f32 0.2, %v1820_v29  ;;  %vm1836_vm11 = vcmp.gt.f32.partialorder %v1820_v29, 0.0 }
 0x370   :  { %1333 = vmax.xlane.f32.xlu1 %v8311_v5  ;;  %v8348_v4 = vsel %vm129_vm13, %v816_v11, -1e+30  ;;  %v1293_v17 = vsel %vm1261_vm9, %v1245_v6, %v1277_v37  ;;  %v2419_v11 = vmul.f32 0.2, %v2387_v0  ;;  %vm2403_vm4 = vcmp.gt.f32.partialorder %v2387_v0, 0.0 }
 0x371   :  { %v1223_v51 = vpop.permute.xlu1 %1222  ;;  %v8356_v56 = vsel %vm129_vm13, %v1293_v17, -1e+30  ;;  %v1868_v14 = vsel %vm1836_vm11, %v1820_v29, %v1852_v24  ;;  %v8369_v29 = vld [vmem:[%s11013_s1 + $0x70] sm:$0xff]  ;;  %vm786_vm9 = vcmp.gt.f32.partialorder %v770_v9, 0.0 }
 0x372   :  { %1918 = vmax.xlane.f32.xlu0 %v8318_v34  ;;  %v8361_v6 = vsel %vm129_vm13, %v1868_v14, -1e+30  ;;  %v1247_v31 = vadd.f32 %v7804_v43, %v1223_v51  ;;  %v2435_v19 = vsel %vm2403_vm4, %v2387_v0, %v2419_v11  ;;  %11243 = vst [vmem:[#allocation74_spill] sm:$0xff] %v8369_v29  ;;  %vm131_vm11 = vcmp.gt.f32.partialorder %v8369_v29, 0.0 }
 0x373   :  { %11242 = vst [vmem:[#allocation73_spill] sm:$0xff] %v8361_v6  ;;  %v8373_v17 = vsel %vm129_vm13, %v2435_v19, -1e+30 }
 0x374   :  { %1908 = vmax.xlane.f32.xlu1 %v8323_v18  ;;  %11244 = vst [vmem:[#allocation75_spill] sm:$0xff] %v8373_v17  ;;  %v1279_v51 = vmul.f32 0.2, %v1247_v31  ;;  %vm1263_vm4 = vcmp.gt.f32.partialorder %v1247_v31, 0.0 }
 0x376   :  { %2485 = vmax.xlane.f32.xlu0 %v8330_v16  ;;  %v802_v16 = vmul.f32 0.2, %v770_v9  ;;  %v1798_v34 = vpop.permute.xlu1 %1797 }
 0x378   :  { %2475 = vmax.xlane.f32.xlu1 %v8335_v55  ;;  %v818_v43 = vsel %vm786_vm9, %v770_v9, %v802_v16 }
 0x37b   :  { %v2365_v0 = vpop.permute.xlu1 %2364 }
 0x37c   :  { %860 = vmax.xlane.f32.xlu1 %v8348_v4 }
 0x380   :  { %1337 = vmax.xlane.f32.xlu1 %v8356_v56 }
 0x383   :  { %v839_v55 = vpop.xlane.xlu0 %838 }
 0x384   :  { %v869_v42 = vsub.f32 %v7832_v23, %v839_v55  ;;  %1912 = vmax.xlane.f32.xlu1 %v8361_v6  ;;  %v1822_v23 = vadd.f32 %v7837_v22, %v1798_v34  ;;  %v2389_v6 = vadd.f32 %v7862_v60, %v2365_v0  ;;  %v1295_v22 = vsel %vm1263_vm4, %v1247_v31, %v1279_v51 }
 0x386   :  { %v886_v37 = vmul.f32 1.442695, %v869_v42  ;;  %v8381_v42 = vsel %vm131_vm11, %v818_v43, -1e+30  ;;  %v1854_v19 = vmul.f32 0.2, %v1822_v23 }
 0x387   :  { %v843_v24 = vpop.xlane.xlu0 %842  ;;  %vm1838_vm9 = vcmp.gt.f32.partialorder %v1822_v23, 0.0  ;;  %v2421_v16 = vmul.f32 0.2, %v2389_v6  ;;  %vm2405_vm10 = vcmp.gt.f32.partialorder %v2389_v6, 0.0 }
 0x388   :  { %6547 = vpow2.f32 %v886_v37  ;;  %v871_v55 = vsub.f32 %v7848_v46, %v843_v24  ;;  %2479 = vmax.xlane.f32.xlu1 %v8373_v17  ;;  %v8387_v46 = vsel %vm131_vm11, %v1295_v22, -1e+30  ;;  %v1870_v9 = vsel %vm1838_vm9, %v1822_v23, %v1854_v19 }
 0x389   :  { %v8392_v60 = vsel %vm131_vm11, %v1870_v9, -1e+30  ;;  %v2437_v31 = vsel %vm2405_vm10, %v2389_v6, %v2421_v16 }
 0x38a   :  { %v890_v14 = vmul.f32 1.442695, %v871_v55  ;;  %11245 = vst [vmem:[#allocation76_spill] sm:$0xff] %v8392_v60  ;;  %v8401_v23 = vsel %vm131_vm11, %v2437_v31, -1e+30 }
 0x38b   :  { %v1316_v11 = vpop.xlane.xlu0 %1315  ;;  %11246 = vst [vmem:[#allocation77_spill] sm:$0xff] %v8401_v23 }
 0x38c   :  { %6549 = vpow2.f32 %v890_v14  ;;  %864 = vmax.xlane.f32.xlu1 %v8381_v42 }
 0x38f   :  { %v1320_v34 = vpop.xlane.xlu0 %1319 }
 0x390   :  { %1341 = vmax.xlane.f32.xlu1 %v8387_v46  ;;  %v1348_v30 = vsub.f32 %v7872_v47, %v1320_v34 }
 0x392   :  { %v6548_v37 = vpop.eup %6547 }
 0x393   :  { %v1891_v24 = vpop.xlane.xlu0 %1890  ;;  %v8395_v43 = vmul.f32 %v6548_v37, %v7809_v44 }
 0x394   :  { %1916 = vmax.xlane.f32.xlu1 %v8392_v60 }
 0x395   :  { %934 = vadd.xlane.f32.xlu0 %v8395_v43 }
 0x396   :  { %v6550_v51 = vpop.eup %6549 }
 0x397   :  { %v1895_v55 = vpop.xlane.xlu0 %1894  ;;  %v8404_v0 = vmul.f32 %v6550_v51, %v7824_v40  ;;  %v1346_v51 = vsub.f32 %v7858_v10, %v1316_v11  ;;  %v1921_v10 = vsub.f32 %v7881_v63, %v1891_v24 }
 0x398   :  { %2483 = vmax.xlane.f32.xlu1 %v8401_v23  ;;  %v1923_v47 = vsub.f32 %v7890_v53, %v1895_v55 }
 0x399   :  { %11247 = vst [vmem:[#allocation78_spill] sm:$0xff] %v8404_v0  ;;  %938 = vadd.xlane.f32.xlu0 %v8404_v0  ;;  %v1363_v17 = vmul.f32 1.442695, %v1346_v51 }
 0x39b   :  { %v2458_v14 = vpop.xlane.xlu0 %2457 }
 0x39c   :  { %v2488_v55 = vsub.f32 %v7899_v61, %v2458_v14 }
 0x39f   :  { %v8408_v19 = vpop.xlane.xlu0 %2461 }
 0x3a3   :  { %v8410_v22 = vpop.xlane.xlu0 %840 }
 0x3a7   :  { %v847_v6 = vpop.xlane.xlu0 %846 }
 0x3ab   :  { %v8412_v16 = vpop.xlane.xlu0 %1323 }
 0x3ad   :  { %v837_v9 = vpop.xlane.xlu1 %836 }
 0x3ae   :  { %v868_v37 = vsub.f32 %v7964_v48, %v837_v9  ;;  %v1367_v9 = vmul.f32 1.442695, %v1348_v30  ;;  %v1942_v30 = vmul.f32 1.442695, %v1923_v47  ;;  %v2490_v47 = vsub.f32 %v7911_v15, %v8408_v19 }
 0x3af   :  { %v8415_v31 = vpop.xlane.xlu0 %1898 }
 0x3b0   :  { %v884_v40 = vmul.f32 1.442695, %v868_v37  ;;  %v1938_v37 = vmul.f32 1.442695, %v1921_v10  ;;  %v2509_v19 = vmul.f32 1.442695, %v2490_v47 }
 0x3b1   :  { %v1314_v44 = vpop.xlane.xlu1 %1313 }
 0x3b2   :  { %6551 = vpow2.f32 %v884_v40  ;;  %v1345_v60 = vsub.f32 %v7980_v57, %v1314_v44 }
 0x3b3   :  { %v8419_v23 = vpop.xlane.xlu0 %2465 }
 0x3b4   :  { %v1361_v18 = vmul.f32 1.442695, %v1345_v60 }
 0x3b5   :  { %v1889_v29 = vpop.xlane.xlu1 %1888 }
 0x3b6   :  { %6553 = vpow2.f32 %v1361_v18  ;;  %v1920_v0 = vsub.f32 %v8002_v1, %v1889_v29 }
 0x3b7   :  { %v8423_v48 = vpop.xlane.xlu0 %850  ;;  %6555 = vpow2.f32 %v1363_v17 }
 0x3b8   :  { %v1936_v11 = vmul.f32 1.442695, %v1920_v0 }
 0x3b9   :  { %v2456_v40 = vpop.xlane.xlu1 %2455 }
 0x3ba   :  { %6557 = vpow2.f32 %v1936_v11  ;;  %v2487_v17 = vsub.f32 %v8018_v50, %v2456_v40  ;;  %v7059_v50 = vld [vmem:[%s11013_s1 + $0x8] sm:$0xff] }
 0x3bb   :  { %v8426_v44 = vpop.xlane.xlu0 %1327  ;;  %6559 = vpow2.f32 %v1367_v9  ;;  %v873_v9 = vsub.f32 %v7940_v49, %v847_v6  ;;  %v1925_v6 = vsub.f32 %v7973_v27, %v8415_v31  ;;  %v870_v27 = vsub.f32 %v7928_v7, %v8410_v22 }
 0x3bc   :  { %v6552_v57 = vpop.eup %6551  ;;  %6561 = vpow2.f32 %v1938_v37  ;;  %v2503_v10 = vmul.f32 1.442695, %v2487_v17  ;;  %v2505_v37 = vmul.f32 1.442695, %v2488_v55 }
 0x3bd   :  { %v1318_v34 = vpop.xlane.xlu1 %1317  ;;  %v8430_v18 = vmul.f32 %v6552_v57, %v7945_v8  ;;  %v894_v49 = vmul.f32 1.442695, %v873_v9  ;;  %v1946_v31 = vmul.f32 1.442695, %v1925_v6 }
 0x3be   :  { %v1347_v1 = vsub.f32 %v8032_v52, %v1318_v34 }
 0x3bf   :  { %v8433_v29 = vpop.xlane.xlu0 %1902  ;;  %932 = vadd.xlane.f32.xlu1 %v8430_v18 }
 0x3c0   :  { %v6554_v63 = vpop.eup %6553  ;;  %v1365_v24 = vmul.f32 1.442695, %v1347_v1 }
 0x3c1   :  { %v1893_v60 = vpop.xlane.xlu1 %1892  ;;  %v8438_v0 = vmul.f32 %v6554_v63, %v7945_v8  ;;  %v6556_v53 = vpop.eup %6555 }
 0x3c2   :  { %6563 = vpow2.f32 %v1365_v24  ;;  %v8448_v40 = vmul.f32 %v7059_v50, %v6556_v53  ;;  %v1922_v7 = vsub.f32 %v8048_v38, %v1893_v60 }
 0x3c3   :  { %v8441_v51 = vpop.xlane.xlu0 %2469  ;;  %1409 = vadd.xlane.f32.xlu0 %v8438_v0  ;;  %6565 = vpow2.f32 %v1942_v30 }
 0x3c4   :  { %v6558_v52 = vpop.eup %6557  ;;  %6567 = vpow2.f32 %v2503_v10 }
 0x3c5   :  { %v2460_v11 = vpop.xlane.xlu1 %2459  ;;  %v8451_v57 = vmul.f32 %v6558_v52, %v7945_v8  ;;  %v6560_v61 = vpop.eup %6559 }
 0x3c6   :  { %v2489_v14 = vsub.f32 %v8074_v32, %v2460_v11  ;;  %v7060_v32 = vld [vmem:[%s11013_s1 + $0x18] sm:$0xff]  ;;  %v6562_v15 = vpop.eup %6561  ;;  %v888_v11 = vmul.f32 1.442695, %v870_v27 }
 0x3c7   :  { %v8456_v34 = vpop.xlane.xlu0 %854  ;;  %1411 = vadd.xlane.f32.xlu0 %v8448_v40  ;;  %1984 = vadd.xlane.f32.xlu1 %v8451_v57  ;;  %v8467_v30 = vmul.f32 %v7060_v32, %v6560_v61  ;;  %v8476_v55 = vmul.f32 %v7059_v50, %v6562_v15 }
 0x3c8   :  { %v2507_v1 = vmul.f32 1.442695, %v2489_v14 }
 0x3c9   :  { %v8462_v63 = vpop.xlane.xlu1 %844 }
 0x3ca   :  { %6569 = vpow2.f32 %v2507_v1  ;;  %v1940_v1 = vmul.f32 1.442695, %v1922_v7 }
 0x3cb   :  { %6571 = vpow2.f32 %v2505_v37  ;;  %v8469_v17 = vpop.xlane.xlu0 %1331  ;;  %1415 = vadd.xlane.f32.xlu0 %v8467_v30 }
 0x3cc   :  { %v6564_v24 = vpop.eup %6563  ;;  %6573 = vpow2.f32 %v894_v49  ;;  %v11249_v49 = vld [vmem:[#allocation38_spill] sm:$0xff] }
 0x3cd   :  { %v8474_v53 = vpop.xlane.xlu1 %1321  ;;  %v8479_v52 = vmul.f32 %v6564_v24, %v7907_v33  ;;  %v6566_v9 = vpop.eup %6565  ;;  %6575 = vpow2.f32 %v2509_v19  ;;  %v1350_v6 = vsub.f32 %v11249_v49, %v8412_v16  ;;  %v11250_v16 = vld [vmem:[#allocation40_spill] sm:$0xff] }
 0x3ce   :  { %6577 = vpow2.f32 %v1946_v31  ;;  %v8488_v61 = vmul.f32 %v7060_v32, %v6566_v9  ;;  %v6568_v14 = vpop.eup %6567  ;;  %v2492_v9 = vsub.f32 %v11250_v16, %v8419_v23  ;;  %v872_v23 = vsub.f32 %v8092_v28, %v8462_v63 }
 0x3cf   :  { %v8481_v10 = vpop.xlane.xlu0 %1906  ;;  %1986 = vadd.xlane.f32.xlu0 %v8476_v55  ;;  %1413 = vadd.xlane.f32.xlu1 %v8479_v52  ;;  %6579 = vpow2.f32 %v888_v11  ;;  %v8498_v38 = vmul.f32 %v6568_v14, %v7945_v8  ;;  %v1371_v31 = vmul.f32 1.442695, %v1350_v6  ;;  %v11251_v14 = vld [vmem:[#allocation36_spill] sm:$0xff]  ;;  %v1349_v28 = vsub.f32 %v8108_v58, %v8474_v53 }
 0x3d0   :  { %11248 = vst [vmem:[#allocation79_spill] sm:$0xff] %v8488_v61  ;;  %6581 = vpow2.f32 %v1940_v1  ;;  %v2513_v6 = vmul.f32 1.442695, %v2492_v9 }
 0x3d1   :  { %v8486_v22 = vpop.xlane.xlu1 %1896  ;;  %6583 = vpow2.f32 %v1371_v31 }
 0x3d2   :  { %v1924_v58 = vsub.f32 %v8122_v62, %v8486_v22 }
 0x3d3   :  { %v8490_v37 = vpop.xlane.xlu0 %2473  ;;  %1990 = vadd.xlane.f32.xlu0 %v8488_v61 }
 0x3d4   :  { %v6570_v47 = vpop.eup %6569 }
 0x3d5   :  { %v6572_v15 = vpop.eup %6571  ;;  %v8495_v19 = vpop.xlane.xlu1 %2463  ;;  %v8501_v60 = vmul.f32 %v6570_v47, %v7907_v33 }
 0x3d6   :  { %v6574_v24 = vpop.eup %6573  ;;  %v8509_v49 = vmul.f32 %v7059_v50, %v6572_v15 }
 0x3d7   :  { %v8503_v27 = vpop.xlane.xlu0 %858  ;;  %2551 = vadd.xlane.f32.xlu0 %v8498_v38  ;;  %2555 = vadd.xlane.f32.xlu1 %v8501_v60  ;;  %v6576_v11 = vpop.eup %6575  ;;  %v8512_v8 = vmul.f32 %v6574_v24, %v11251_v14 }
 0x3d8   :  { %v6578_v47 = vpop.eup %6577  ;;  %v8523_v15 = vmul.f32 %v7060_v32, %v6576_v11  ;;  %v7062_v32 = vld [vmem:[%s11013_s1 + $0x10] sm:$0xff] }
 0x3d9   :  { %v849_v7 = vpop.xlane.xlu1 %848  ;;  %v6580_v16 = vpop.eup %6579 }
 0x3da   :  { %v874_v33 = vsub.f32 %v8164_v36, %v849_v7  ;;  %v7061_v36 = vld [vmem:[%s11013_s1 + $0x28] sm:$0xff]  ;;  %v11252_v7 = vld [vmem:[#allocation47_spill] sm:$0xff]  ;;  %v8541_v11 = vmul.f32 %v7062_v32, %v6580_v16 }
 0x3db   :  { %v8515_v61 = vpop.xlane.xlu0 %1335  ;;  %2553 = vadd.xlane.f32.xlu0 %v8509_v49  ;;  %942 = vadd.xlane.f32.xlu1 %v8512_v8  ;;  %v8528_v24 = vmul.f32 %v7061_v36, %v6578_v47  ;;  %v877_v31 = vsub.f32 %v11252_v7, %v8456_v34  ;;  %v6582_v47 = vpop.eup %6581 }
 0x3dc   :  { %v896_v1 = vmul.f32 1.442695, %v874_v33  ;;  %v892_v33 = vmul.f32 1.442695, %v872_v23  ;;  %v8551_v14 = vmul.f32 %v7062_v32, %v6582_v47  ;;  %v6584_v16 = vpop.eup %6583 }
 0x3dd   :  { %v8521_v50 = vpop.xlane.xlu1 %1325 }
 0x3de   :  { %6585 = vpow2.f32 %v896_v1  ;;  %v902_v1 = vmul.f32 1.442695, %v877_v31 }
 0x3df   :  { %v8532_v9 = vpop.xlane.xlu0 %1910  ;;  %2557 = vadd.xlane.f32.xlu0 %v8523_v15  ;;  %1994 = vadd.xlane.f32.xlu1 %v8528_v24  ;;  %6587 = vpow2.f32 %v2513_v6  ;;  %v1369_v6 = vmul.f32 1.442695, %v1349_v28  ;;  %v11254_v28 = vld [vmem:[#allocation53_spill] sm:$0xff] }
 0x3e0   :  { %6589 = vpow2.f32 %v892_v33  ;;  %v1944_v33 = vmul.f32 1.442695, %v1924_v58 }
 0x3e1   :  { %v1901_v63 = vpop.xlane.xlu1 %1900 }
 0x3e2   :  { %v1926_v34 = vsub.f32 %v8190_v25, %v1901_v63  ;;  %v2491_v25 = vsub.f32 %v8148_v3, %v8495_v19  ;;  %v879_v63 = vsub.f32 %v11254_v28, %v8503_v27  ;;  %v11255_v3 = vld [vmem:[#allocation41_spill] sm:$0xff] }
 0x3e3   :  { %v8544_v7 = vpop.xlane.xlu0 %2477  ;;  %936 = vadd.xlane.f32.xlu0 %v8541_v11  ;;  %v875_v19 = vsub.f32 %v11255_v3, %v8423_v48 }
 0x3e4   :  { %11253 = vst [vmem:[#allocation38_spill] sm:$0xff] %v8544_v7  ;;  %v1948_v53 = vmul.f32 1.442695, %v1926_v34  ;;  %v8558_v34 = vmul.f32 %v7061_v36, %v6584_v16  ;;  %v906_v27 = vmul.f32 1.442695, %v879_v63 }
 0x3e5   :  { %v8549_v23 = vpop.xlane.xlu1 %2467 }
 0x3e6   :  { %6591 = vpow2.f32 %v1948_v53  ;;  %v2511_v53 = vmul.f32 1.442695, %v2491_v25  ;;  %v11256_v25 = vld [vmem:[#allocation42_spill] sm:$0xff] }
 0x3e7   :  { %6593 = vpow2.f32 %v902_v1  ;;  %1988 = vadd.xlane.f32.xlu0 %v8551_v14  ;;  %v863_v62 = vpop.xlane.xlu0 %862 }
 0x3e8   :  { %v6586_v31 = vpop.eup %6585  ;;  %6595 = vpow2.f32 %v1369_v6  ;;  %v881_v6 = vsub.f32 %v8225_v26, %v863_v62  ;;  %v11257_v26 = vld [vmem:[#allocation46_spill] sm:$0xff] }
 0x3e9   :  { %v853_v22 = vpop.xlane.xlu1 %852  ;;  %v8561_v32 = vmul.f32 %v6586_v31, %v8141_v59  ;;  %v6588_v47 = vpop.eup %6587  ;;  %6597 = vpow2.f32 %v1944_v33 }
 0x3ea   :  { %v876_v1 = vsub.f32 %v8231_v2, %v853_v22  ;;  %v8571_v31 = vmul.f32 %v7061_v36, %v6588_v47  ;;  %v6590_v28 = vpop.eup %6589  ;;  %v898_v2 = vmul.f32 1.442695, %v875_v19  ;;  %v1352_v22 = vsub.f32 %v11256_v25, %v8426_v44  ;;  %v11258_v19 = vld [vmem:[#allocation43_spill] sm:$0xff] }
 0x3eb   :  { %1419 = vadd.xlane.f32.xlu0 %v8558_v34  ;;  %944 = vadd.xlane.f32.xlu1 %v8561_v32  ;;  %v910_v33 = vmul.f32 1.442695, %v881_v6  ;;  %v8579_v62 = vmul.f32 %v6590_v28, %v11257_v26 }
 0x3ec   :  { %v900_v58 = vmul.f32 1.442695, %v876_v1  ;;  %v8584_v1 = vpop.xlane.xlu0 %1339  ;;  %v1375_v44 = vmul.f32 1.442695, %v1352_v22  ;;  %v11262_v22 = vld [vmem:[#allocation45_spill] sm:$0xff] }
 0x3ed   :  { %v8569_v16 = vpop.xlane.xlu1 %1329 }
 0x3ee   :  { %6599 = vpow2.f32 %v900_v58  ;;  %v11260_v58 = vld [vmem:[#allocation44_spill] sm:$0xff] }
 0x3ef   :  { %6601 = vpow2.f32 %v2511_v53  ;;  %2561 = vadd.xlane.f32.xlu0 %v8571_v31  ;;  %v1927_v53 = vsub.f32 %v11258_v19, %v8433_v29  ;;  %v2494_v29 = vsub.f32 %v11262_v22, %v8441_v51  ;;  %v1351_v51 = vsub.f32 %v8177_v41, %v8521_v50 }
 0x3f0   :  { %v6592_v48 = vpop.eup %6591  ;;  %6603 = vpow2.f32 %v906_v27  ;;  %v8602_v19 = vpop.xlane.xlu0 %1914 }
 0x3f1   :  { %v6594_v63 = vpop.eup %6593  ;;  %v8576_v3 = vpop.xlane.xlu1 %1904  ;;  %v8582_v36 = vmul.f32 %v6592_v48, %v8141_v59  ;;  %6605 = vpow2.f32 %v898_v2  ;;  %v1950_v25 = vmul.f32 1.442695, %v1927_v53  ;;  %11263 = vst [vmem:[#allocation53_spill] sm:$0xff] %v8602_v19 }
 0x3f2   :  { %v6596_v47 = vpop.eup %6595  ;;  %6607 = vpow2.f32 %v910_v33  ;;  %v8596_v28 = vmul.f32 %v6594_v63, %v11260_v58 }
 0x3f3   :  { %940 = vadd.xlane.f32.xlu0 %v8579_v62  ;;  %1996 = vadd.xlane.f32.xlu1 %v8582_v36  ;;  %v8593_v6 = vmul.f32 %v6596_v47, %v11257_v26  ;;  %v6598_v2 = vpop.eup %6597  ;;  %6609 = vpow2.f32 %v1375_v44  ;;  %v2517_v44 = vmul.f32 1.442695, %v2494_v29  ;;  %v11270_v29 = vld [vmem:[#allocation59_spill] sm:$0xff] }
 0x3f4   :  { %11261 = vst [vmem:[#allocation47_spill] sm:$0xff] %v8596_v28  ;;  %v8607_v47 = vmul.f32 %v6598_v2, %v11257_v26  ;;  %6611 = vpow2.f32 %v1950_v25  ;;  %v11267_v2 = vld [vmem:[#allocation50_spill] sm:$0xff]  ;;  %v1373_v25 = vmul.f32 1.442695, %v1351_v51  ;;  %v2493_v41 = vsub.f32 %v11270_v29, %v8549_v23 }
 0x3f5   :  { %v8590_v27 = vpop.xlane.xlu1 %2471  ;;  %11259 = vst [vmem:[#allocation40_spill] sm:$0xff] %v8593_v6  ;;  %6613 = vpow2.f32 %v2517_v44  ;;  %v11273_v44 = vld [vmem:[#allocation48_spill] sm:$0xff] }
 0x3f6   :  { %11264 = vst [vmem:[#allocation41_spill] sm:$0xff] %v8607_v47  ;;  %v1354_v51 = vsub.f32 %v11273_v44, %v8469_v17  ;;  %6615 = vpow2.f32 %v1373_v25  ;;  %v2515_v23 = vmul.f32 1.442695, %v2493_v41 }
 0x3f7   :  { %1417 = vadd.xlane.f32.xlu0 %v8593_v6  ;;  %950 = vadd.xlane.f32.xlu1 %v8596_v28  ;;  %v8622_v6 = vpop.xlane.xlu0 %2481 }
 0x3f8   :  { %v6600_v48 = vpop.eup %6599  ;;  %11269 = vst [vmem:[#allocation80_spill] sm:$0xff] %v8622_v6  ;;  %6617 = vpow2.f32 %v2515_v23 }
 0x3f9   :  { %v6602_v33 = vpop.eup %6601  ;;  %v8604_v7 = vpop.xlane.xlu1 %856  ;;  %v8610_v63 = vmul.f32 %v6600_v48, %v8207_v12 }
 0x3fa   :  { %v6604_v58 = vpop.eup %6603  ;;  %v8617_v19 = vmul.f32 %v6602_v33, %v11257_v26  ;;  %v7063_v33 = vld [vmem:[%s11013_s1 + $0x38] sm:$0xff] }
 0x3fb   :  { %11265 = vst [vmem:[#allocation42_spill] sm:$0xff] %v8610_v63  ;;  %1992 = vadd.xlane.f32.xlu0 %v8607_v47  ;;  %948 = vadd.xlane.f32.xlu1 %v8610_v63  ;;  %v6606_v53 = vpop.eup %6605  ;;  %v8620_v28 = vmul.f32 %v6604_v58, %v11267_v2  ;;  %v867_v29 = vpop.xlane.xlu0 %866  ;;  %v1379_v63 = vmul.f32 1.442695, %v1354_v51 }
 0x3fc   :  { %11266 = vst [vmem:[#allocation43_spill] sm:$0xff] %v8617_v19  ;;  %v6608_v48 = vpop.eup %6607  ;;  %v8633_v58 = vmul.f32 %v7063_v33, %v6606_v53 }
 0x3fd   :  { %v1334_v22 = vpop.xlane.xlu1 %1333  ;;  %11268 = vst [vmem:[#allocation45_spill] sm:$0xff] %v8620_v28  ;;  %v8636_v2 = vmul.f32 %v6608_v48, %v8198_v54  ;;  %v6610_v26 = vpop.eup %6609  ;;  %6619 = vpow2.f32 %v1379_v63 }
 0x3fe   :  { %11271 = vst [vmem:[#allocation59_spill] sm:$0xff] %v8633_v58  ;;  %v8644_v6 = vmul.f32 %v7063_v33, %v6610_v26  ;;  %v6612_v53 = vpop.eup %6611  ;;  %v11276_v26 = vld [vmem:[#allocation54_spill] sm:$0xff] }
 0x3ff   :  { %2559 = vadd.xlane.f32.xlu0 %v8617_v19  ;;  %954 = vadd.xlane.f32.xlu1 %v8620_v28  ;;  %11272 = vst [vmem:[#allocation81_spill] sm:$0xff] %v8636_v2  ;;  %v11275_v19 = vld [vmem:[#allocation61_spill] sm:$0xff]  ;;  %v8650_v47 = vmul.f32 %v7063_v33, %v6612_v53  ;;  %v6614_v17 = vpop.eup %6613  ;;  %v1356_v44 = vsub.f32 %v11276_v26, %v8515_v61  ;;  %v1344_v61 = vpop.xlane.xlu0 %1343 }
 0x400   :  { %11274 = vst [vmem:[#allocation48_spill] sm:$0xff] %v8644_v6  ;;  %v1353_v48 = vsub.f32 %v11275_v19, %v8569_v16  ;;  %v8656_v51 = vmul.f32 %v7063_v33, %v6614_v17  ;;  %v6616_v23 = vpop.eup %6615 }
 0x401   :  { %v8628_v50 = vpop.xlane.xlu1 %1908  ;;  %v8662_v63 = vmul.f32 %v6616_v23, %v8141_v59 }
 0x402   :  { %v1377_v41 = vmul.f32 1.442695, %v1353_v48 }
 0x403   :  { %946 = vadd.xlane.f32.xlu0 %v8633_v58  ;;  %958 = vadd.xlane.f32.xlu1 %v8636_v2  ;;  %v883_v2 = vsub.f32 %v8292_v13, %v867_v29  ;;  %v1383_v13 = vmul.f32 1.442695, %v1356_v44  ;;  %v1355_v29 = vsub.f32 %v8311_v5, %v1334_v22  ;;  %v8681_v5 = vld [vmem:[%s11013_s1 + $0x48] sm:$0xff] }
 0x405   :  { %v8642_v28 = vpop.xlane.xlu1 %2475  ;;  %v914_v16 = vmul.f32 1.442695, %v883_v2 }
 0x407   :  { %1423 = vadd.xlane.f32.xlu0 %v8644_v6 }
 0x409   :  { %v861_v58 = vpop.xlane.xlu1 %860 }
 0x40a   :  { %v880_v25 = vsub.f32 %v8348_v4, %v861_v58  ;;  %v878_v4 = vsub.f32 %v8299_v45, %v8604_v7  ;;  %v6618_v58 = vpop.eup %6617  ;;  %v11277_v7 = vld [vmem:[#allocation60_spill] sm:$0xff] }
 0x40b   :  { %1998 = vadd.xlane.f32.xlu0 %v8650_v47  ;;  %v8669_v53 = vmul.f32 %v6618_v58, %v8141_v59  ;;  %v6620_v48 = vpop.eup %6619  ;;  %v1358_v17 = vsub.f32 %v11277_v7, %v8584_v1 }
 0x40c   :  { %v908_v19 = vmul.f32 1.442695, %v880_v25  ;;  %v904_v33 = vmul.f32 1.442695, %v878_v4  ;;  %v1381_v25 = vmul.f32 1.442695, %v1355_v29  ;;  %v8684_v22 = vmul.f32 %v8681_v5, %v6620_v48 }
 0x40d   :  { %v1338_v6 = vpop.xlane.xlu1 %1337  ;;  %v1387_v1 = vmul.f32 1.442695, %v1358_v17  ;;  %v1360_v48 = vsub.f32 %v8306_v20, %v1344_v61 }
 0x40e   :  { %6621 = vpow2.f32 %v908_v19  ;;  %v1357_v23 = vsub.f32 %v8356_v56, %v1338_v6  ;;  %v8706_v56 = vld [vmem:[%s11013_s1 + $0x58] sm:$0xff] }
 0x40f   :  { %6623 = vpow2.f32 %v1377_v41  ;;  %2565 = vadd.xlane.f32.xlu0 %v8656_v51  ;;  %v8674_v41 = vpop.xlane.xlu0 %1918 }
 0x410   :  { %6625 = vpow2.f32 %v914_v16 }
 0x411   :  { %v8664_v2 = vpop.xlane.xlu1 %1912  ;;  %6627 = vpow2.f32 %v1383_v13 }
 0x412   :  { %6629 = vpow2.f32 %v904_v33 }
 0x413   :  { %1421 = vadd.xlane.f32.xlu0 %v8662_v63  ;;  %6631 = vpow2.f32 %v1381_v25  ;;  %v8698_v33 = vpop.xlane.xlu0 %2485  ;;  %v1391_v25 = vmul.f32 1.442695, %v1360_v48 }
 0x414   :  { %6633 = vpow2.f32 %v1387_v1 }
 0x415   :  { %v8676_v44 = vpop.xlane.xlu1 %2479 }
 0x417   :  { %2563 = vadd.xlane.f32.xlu0 %v8669_v53 }
 0x418   :  { %v6622_v45 = vpop.eup %6621 }
 0x419   :  { %v6624_v26 = vpop.eup %6623  ;;  %v8687_v16 = vmul.f32 %v6622_v45, %v8340_v35  ;;  %v865_v29 = vpop.xlane.xlu1 %864  ;;  %v1385_v45 = vmul.f32 1.442695, %v1357_v23 }
 0x41a   :  { %v6626_v19 = vpop.eup %6625  ;;  %v8693_v13 = vmul.f32 %v6624_v26, %v8207_v12  ;;  %v882_v26 = vsub.f32 %v8381_v42, %v865_v29 }
 0x41b   :  { %1427 = vadd.xlane.f32.xlu0 %v8684_v22  ;;  %956 = vadd.xlane.f32.xlu1 %v8687_v16  ;;  %v8696_v4 = vmul.f32 %v6626_v19, %v8265_v39  ;;  %v6628_v58 = vpop.eup %6627 }
 0x41c   :  { %v8709_v6 = vmul.f32 %v8706_v56, %v6628_v58  ;;  %v6630_v7 = vpop.eup %6629  ;;  %v912_v23 = vmul.f32 1.442695, %v882_v26 }
 0x41d   :  { %v1342_v19 = vpop.xlane.xlu1 %1341  ;;  %v8714_v20 = vmul.f32 %v6630_v7, %v8270_v21  ;;  %v6632_v61 = vpop.eup %6631 }
 0x41e   :  { %v1359_v58 = vsub.f32 %v8387_v46, %v1342_v19  ;;  %v8719_v12 = vmul.f32 %v6632_v61, %v8270_v21  ;;  %v6634_v48 = vpop.eup %6633  ;;  %v11278_v46 = vld [vmem:[#allocation20_spill] sm:$0xff] }
 0x41f   :  { %1425 = vadd.xlane.f32.xlu0 %v8693_v13  ;;  %962 = vadd.xlane.f32.xlu1 %v8696_v4 }
 0x420   :  { %v1389_v42 = vmul.f32 1.442695, %v1359_v58 }
 0x422   :  { %v935_v17 = vpop.xlane.xlu0 %934 }
 0x423   :  { %6635 = vrcp.f32 %v935_v17  ;;  %1431 = vadd.xlane.f32.xlu0 %v8709_v6  ;;  %vm981_vm10 = vcmp.gt.f32.partialorder %v935_v17, 0.0 }
 0x424   :  { %6637 = vpow2.f32 %v1385_v45  ;;  %v8723_v45 = vmul.f32 %v6634_v48, %v8198_v54  ;;  %v11280_v48 = vld [vmem:[#allocation74_spill] sm:$0xff] }
 0x426   :  { %v939_v1 = vpop.xlane.xlu0 %938 }
 0x427   :  { %6639 = vrcp.f32 %v939_v1  ;;  %952 = vadd.xlane.f32.xlu0 %v8714_v20  ;;  %vm983_vm4 = vcmp.gt.f32.partialorder %v939_v1, 0.0 }
 0x428   :  { %6641 = vpow2.f32 %v1391_v25 }
 0x429   :  { %6643 = vpow2.f32 %v912_v23  ;;  %v11279_v23 = vld [vmem:[#allocation78_spill] sm:$0xff] }
 0x42a   :  { %6645 = vpow2.f32 %v1389_v42 }
 0x42b   :  { %1429 = vadd.xlane.f32.xlu0 %v8719_v12 }
 0x42d   :  { %v6636_v29 = vpop.eup %6635 }
 0x42e   :  { %v6638_v7 = vpop.eup %6637  ;;  %v997_v59 = vsel %vm981_vm10, %v6636_v29, 0.0  ;;  %v11282_v29 = vld [vmem:[#allocation63_spill] sm:$0xff] }
 0x42f   :  { %v8726_v25 = vmul.f32 %v997_v59, %v8395_v43  ;;  %1435 = vadd.xlane.f32.xlu0 %v8723_v45  ;;  %v8733_v17 = vmul.f32 %v6638_v7, %v8340_v35  ;;  %v1928_v7 = vsub.f32 %v11282_v29, %v8576_v3 }
 0x430   :  { %2678 = vrot.lane.b32.xlu1 %v11278_v46, %s7261_s2 }
 0x431   :  { %v6640_v26 = vpop.eup %6639  ;;  %1029 = vst [vmem:[#allocation12 + $0x8] sm:$0xff] %v8726_v25 }
 0x432   :  { %v6642_v19 = vpop.eup %6641  ;;  %v999_v61 = vsel %vm983_vm4, %v6640_v26, 0.0  ;;  %v1952_v26 = vmul.f32 1.442695, %v1928_v7 }
 0x433   :  { %v8736_v58 = vmul.f32 %v999_v61, %v11279_v23  ;;  %1433 = vadd.xlane.f32.xlu0 %v8733_v17  ;;  %v8741_v59 = vmul.f32 %v6642_v19, %v8265_v39  ;;  %v6644_v43 = vpop.eup %6643  ;;  %v11284_v19 = vld [vmem:[#allocation69_spill] sm:$0xff]  ;;  %v8756_v23 = vpop.xlane.xlu1 %1916 }
 0x434   :  { %v8745_v1 = vmul.f32 %v6644_v43, %v11280_v48  ;;  %v6646_v42 = vpop.eup %6645  ;;  %v1930_v61 = vsub.f32 %v11284_v19, %v8628_v50  ;;  %v11285_v43 = vld [vmem:[#allocation55_spill] sm:$0xff]  ;;  %6647 = vpow2.f32 %v1952_v26 }
 0x435   :  { %1031 = vst [vmem:[#allocation12 + $0x18] sm:$0xff] %v8736_v58  ;;  %v8751_v46 = vmul.f32 %v6646_v42, %v11280_v48  ;;  %v1931_v39 = vsub.f32 %v11285_v43, %v8532_v9  ;;  %v11287_v42 = vld [vmem:[#allocation51_spill] sm:$0xff] }
 0x436   :  { %11281 = vst [vmem:[#allocation61_spill] sm:$0xff] %v8745_v1  ;;  %v1956_v35 = vmul.f32 1.442695, %v1930_v61  ;;  %v2496_v7 = vsub.f32 %v11287_v42, %v8490_v37  ;;  %v11288_v9 = vld [vmem:[#allocation71_spill] sm:$0xff] }
 0x437   :  { %1439 = vadd.xlane.f32.xlu0 %v8741_v59  ;;  %11283 = vst [vmem:[#allocation54_spill] sm:$0xff] %v8751_v46  ;;  %v1958_v54 = vmul.f32 1.442695, %v1931_v39  ;;  %v8762_v29 = vpop.xlane.xlu1 %2483  ;;  %v2497_v26 = vsub.f32 %v11288_v9, %v8642_v28 }
 0x438   :  { %6649 = vpow2.f32 %v1956_v35 }
 0x439   :  { %6651 = vpow2.f32 %v1958_v54  ;;  %v2523_v54 = vmul.f32 1.442695, %v2497_v26 }
 0x43b   :  { %960 = vadd.xlane.f32.xlu0 %v8745_v1  ;;  %v11286_v1 = vld [vmem:[#allocation67_spill] sm:$0xff] }
 0x43c   :  { %v2495_v3 = vsub.f32 %v11286_v1, %v8590_v27  ;;  %v7066_v27 = vld [vmem:[%s11013_s1 + $0x40] sm:$0xff] }
 0x43e   :  { %v2519_v48 = vmul.f32 1.442695, %v2495_v3  ;;  %v6648_v19 = vpop.eup %6647 }
 0x43f   :  { %1437 = vadd.xlane.f32.xlu0 %v8751_v46  ;;  %v2521_v46 = vmul.f32 1.442695, %v2496_v7  ;;  %v8771_v35 = vmul.f32 %v7066_v27, %v6648_v19 }
 0x441   :  { %11289 = vst [vmem:[#allocation60_spill] sm:$0xff] %v8771_v35 }
 0x442   :  { %v6650_v1 = vpop.eup %6649 }
 0x443   :  { %v6652_v28 = vpop.eup %6651  ;;  %v8777_v43 = vmul.f32 %v6650_v1, %v8270_v21  ;;  %v11292_v21 = vld [vmem:[#allocation49_spill] sm:$0xff] }
 0x444   :  { %v8782_v9 = vmul.f32 %v8706_v56, %v6652_v28 }
 0x445   :  { %11291 = vst [vmem:[#allocation20_spill] sm:$0xff] %v8777_v43 }
 0x44c   :  { %v933_v50 = vpop.xlane.xlu1 %932 }
 0x44d   :  { %6653 = vrcp.f32 %v933_v50  ;;  %vm980_vm9 = vcmp.gt.f32.partialorder %v933_v50, 0.0  ;;  %v1929_v50 = vsub.f32 %v11292_v21, %v8481_v10 }
 0x44e   :  { %6655 = vpow2.f32 %v2519_v48  ;;  %v11290_v48 = vld [vmem:[#allocation22_spill] sm:$0xff] }
 0x450   :  { %v1410_v39 = vpop.xlane.xlu0 %1409 }
 0x451   :  { %6657 = vrcp.f32 %v1410_v39  ;;  %vm1457_vm10 = vcmp.gt.f32.partialorder %v1410_v39, 0.0  ;;  %v1954_v39 = vmul.f32 1.442695, %v1929_v50 }
 0x452   :  { %6659 = vpow2.f32 %v2521_v46 }
 0x454   :  { %v1412_v37 = vpop.xlane.xlu0 %1411  ;;  %2000 = vadd.xlane.f32.xlu1 %v8771_v35  ;;  %v1985_v61 = vpop.xlane.xlu1 %1984 }
 0x455   :  { %6661 = vrcp.f32 %v1412_v37  ;;  %2113 = vrot.lane.b32.xlu0 %v11290_v48, %s7260_s21  ;;  %vm1458_vm4 = vcmp.gt.f32.partialorder %v1412_v37, 0.0 }
 0x456   :  { %6663 = vrcp.f32 %v1985_v61 }
 0x457   :  { %v6654_v3 = vpop.eup %6653  ;;  %6665 = vpow2.f32 %v2523_v54 }
 0x458   :  { %v996_v42 = vsel %vm980_vm9, %v6654_v3, 0.0  ;;  %v1416_v7 = vpop.xlane.xlu0 %1415  ;;  %2004 = vadd.xlane.f32.xlu1 %v8777_v43  ;;  %v6656_v19 = vpop.eup %6655  ;;  %vm2032_vm9 = vcmp.gt.f32.partialorder %v1985_v61, 0.0 }
 0x459   :  { %v1012_v46 = vmul.f32 %v996_v42, %v8430_v18  ;;  %6667 = vrcp.f32 %v1416_v7  ;;  %v8789_v28 = vmul.f32 %v7066_v27, %v6656_v19 }
 0x45b   :  { %v6658_v26 = vpop.eup %6657  ;;  %1028 = vst [vmem:[#allocation12] sm:$0xff] %v1012_v46  ;;  %v1044_v1 = vpack.c.bf16 %v8726_v25, %v1012_v46 }
 0x45c   :  { %v1473_v54 = vsel %vm1457_vm10, %v6658_v26, 0.0  ;;  %v1987_v3 = vpop.xlane.xlu0 %1986  ;;  %2006 = vadd.xlane.f32.xlu1 %v8782_v9  ;;  %v1414_v43 = vpop.xlane.xlu1 %1413  ;;  %vm1460_vm10 = vcmp.gt.f32.partialorder %v1416_v7, 0.0 }
 0x45d   :  { %v1489_v18 = vmul.f32 %v1473_v54, %v8438_v0  ;;  %6669 = vrcp.f32 %v1987_v3  ;;  %6054 = vmatprep.mubr.bf16.mxu1 %v1044_v1  ;;  %v6660_v42 = vpop.eup %6659 }
 0x45e   :  { %6671 = vrcp.f32 %v1414_v43  ;;  %v8797_v27 = vmul.f32 %v8681_v5, %v6660_v42 }
 0x45f   :  { %v6662_v35 = vpop.eup %6661  ;;  %1506 = vst [vmem:[#allocation12 + $0x80] sm:$0xff] %v1489_v18 }
 0x460   :  { %v6664_v25 = vpop.eup %6663  ;;  %v1474_v46 = vsel %vm1458_vm4, %v6662_v35, 0.0  ;;  %v1991_v21 = vpop.xlane.xlu0 %1990  ;;  %2567 = vadd.xlane.f32.xlu1 %v8789_v28  ;;  %vm2033_vm4 = vcmp.gt.f32.partialorder %v1987_v3, 0.0 }
 0x461   :  { %v1490_v10 = vmul.f32 %v1474_v46, %v8448_v40  ;;  %v2048_v26 = vsel %vm2032_vm9, %v6664_v25, 0.0  ;;  %6673 = vrcp.f32 %v1991_v21  ;;  %v6666_v0 = vpop.eup %6665  ;;  %vm1459_vm9 = vcmp.gt.f32.partialorder %v1414_v43, 0.0 }
 0x462   :  { %v8794_v1 = vmul.f32 %v2048_v26, %v8451_v57  ;;  %6675 = vpow2.f32 %v1954_v39  ;;  %v7067_v57 = vld [vmem:[%s11013_s1 + $0x50] sm:$0xff] }
 0x463   :  { %v6668_v19 = vpop.eup %6667  ;;  %1507 = vst [vmem:[#allocation12 + $0x88] sm:$0xff] %v1490_v10  ;;  %v1522_v37 = vpack.c.bf16 %v1490_v10, %v1489_v18  ;;  %v8805_v54 = vmul.f32 %v7067_v57, %v6666_v0 }
 0x464   :  { %2081 = vst [vmem:[#allocation12 + $0x100] sm:$0xff] %v8794_v1  ;;  %v1476_v35 = vsel %vm1460_vm10, %v6668_v19, 0.0  ;;  %v2552_v61 = vpop.xlane.xlu0 %2551  ;;  %2569 = vadd.xlane.f32.xlu1 %v8797_v27  ;;  %v2556_v40 = vpop.xlane.xlu1 %2555  ;;  %vm2035_vm10 = vcmp.gt.f32.partialorder %v1991_v21, 0.0  ;;  %v11294_v21 = vld [vmem:[#allocation26_spill] sm:$0xff] }
 0x465   :  { %v1492_v50 = vmul.f32 %v1476_v35, %v8467_v30  ;;  %6677 = vrcp.f32 %v2552_v61  ;;  %6086 = vmatprep.mubr.bf16.mxu0 %v1522_v37  ;;  %v11293_v35 = vld [vmem:[#allocation79_spill] sm:$0xff] }
 0x466   :  { %6679 = vrcp.f32 %v2556_v40 }
 0x467   :  { %v6670_v7 = vpop.eup %6669  ;;  %1509 = vst [vmem:[#allocation12 + $0x98] sm:$0xff] %v1492_v50 }
 0x468   :  { %v6672_v18 = vpop.eup %6671  ;;  %v2049_v42 = vsel %vm2033_vm4, %v6670_v7, 0.0  ;;  %v2554_v25 = vpop.xlane.xlu0 %2553  ;;  %2571 = vadd.xlane.f32.xlu1 %v8805_v54  ;;  %vm2599_vm4 = vcmp.gt.f32.partialorder %v2552_v61, 0.0 }
 0x469   :  { %v943_v39 = vpop.xlane.xlu1 %942  ;;  %v8809_v30 = vmul.f32 %v2049_v42, %v8476_v55  ;;  %v1475_v46 = vsel %vm1459_vm9, %v6672_v18, 0.0  ;;  %6681 = vrcp.f32 %v2554_v25  ;;  %vm2601_vm9 = vcmp.gt.f32.partialorder %v2556_v40, 0.0 }
 0x46a   :  { %v1491_v10 = vmul.f32 %v1475_v46, %v8479_v52  ;;  %6683 = vrcp.f32 %v943_v39 }
 0x46b   :  { %v6674_v26 = vpop.eup %6673  ;;  %2082 = vst [vmem:[#allocation12 + $0x108] sm:$0xff] %v8809_v30  ;;  %v2097_v3 = vpack.c.bf16 %v8809_v30, %v8794_v1 }
 0x46c   :  { %1508 = vst [vmem:[#allocation12 + $0x90] sm:$0xff] %v1491_v10  ;;  %v1523_v43 = vpack.c.bf16 %v1492_v50, %v1491_v10  ;;  %v2051_v0 = vsel %vm2035_vm10, %v6674_v26, 0.0  ;;  %v2558_v19 = vpop.xlane.xlu0 %2557  ;;  %v6676_v57 = vpop.eup %6675  ;;  %v11295_v50 = vld [vmem:[#allocation27_spill] sm:$0xff]  ;;  %vm2600_vm10 = vcmp.gt.f32.partialorder %v2554_v25, 0.0 }
 0x46d   :  { %v1995_v37 = vpop.xlane.xlu1 %1994  ;;  %v8816_v55 = vmul.f32 %v2051_v0, %v11293_v35  ;;  %6685 = vrcp.f32 %v2558_v19 }
 0x46e   :  { %6687 = vrcp.f32 %v1995_v37  ;;  %6087 = vmatmul.mubr.bf16.vlgmr.msra.gmra.mrb[32].mxu0 %v1523_v43  ;;  %v8828_v43 = vmul.f32 %v8681_v5, %v6676_v57 }
 0x46f   :  { %v6678_v52 = vpop.eup %6677  ;;  %2084 = vst [vmem:[#allocation12 + $0x118] sm:$0xff] %v8816_v55  ;;  %6135 = vmatpush3.bf16.msra.mxu0 %v11294_v21 }
 0x470   :  { %v6680_v7 = vpop.eup %6679  ;;  %v2615_v18 = vsel %vm2599_vm4, %v6678_v52, 0.0  ;;  %6136 = vmatprep.subr.bf16.mxu0 %v11295_v50  ;;  %v937_v42 = vpop.xlane.xlu0 %936  ;;  %vm985_vm4 = vcmp.gt.f32.partialorder %v943_v39, 0.0  ;;  %v11309_v39 = vld [vmem:[#allocation53_spill] sm:$0xff] }
 0x471   :  { %v8822_v46 = vmul.f32 %v2615_v18, %v8498_v38  ;;  %v2617_v10 = vsel %vm2601_vm9, %v6680_v7, 0.0  ;;  %6689 = vrcp.f32 %v937_v42  ;;  %v11296_v38 = vld [vmem:[#allocation29_spill] sm:$0xff]  ;;  %vm2602_vm9 = vcmp.gt.f32.partialorder %v2558_v19, 0.0 }
 0x472   :  { %v8825_v26 = vmul.f32 %v2617_v10, %v8501_v60 }
 0x473   :  { %v6682_v61 = vpop.eup %6681  ;;  %2648 = vst [vmem:[#allocation12 + $0x180] sm:$0xff] %v8822_v46  ;;  %6137 = vmatpush3.bf16.msra.mxu0 %v11295_v50  ;;  %v11297_v50 = vld [vmem:[#allocation21_spill] sm:$0xff] }
 0x474   :  { %v6684_v40 = vpop.eup %6683  ;;  %2650 = vst [vmem:[#allocation12 + $0x190] sm:$0xff] %v8825_v26  ;;  %v2616_v0 = vsel %vm2600_vm10, %v6682_v61, 0.0  ;;  %6138 = vmatprep.subr.bf16.mxu0 %v11296_v38  ;;  %v1989_v35 = vpop.xlane.xlu0 %1988  ;;  %2002 = vadd.xlane.f32.xlu0 %v8828_v43  ;;  %vm2037_vm10 = vcmp.gt.f32.partialorder %v1995_v37, 0.0  ;;  %v11305_v37 = vld [vmem:[#allocation57_spill] sm:$0xff] }
 0x475   :  { %v8836_v60 = vmul.f32 %v2616_v0, %v8509_v49  ;;  %v1001_v5 = vsel %vm985_vm4, %v6684_v40, 0.0  ;;  %6691 = vrcp.f32 %v1989_v35  ;;  %vm982_vm4 = vcmp.gt.f32.partialorder %v937_v42, 0.0 }
 0x476   :  { %v8839_v57 = vmul.f32 %v1001_v5, %v8512_v8 }
 0x477   :  { %v6686_v25 = vpop.eup %6685  ;;  %2649 = vst [vmem:[#allocation12 + $0x188] sm:$0xff] %v8836_v60  ;;  %6139 = vmatpush3.bf16.msra.mxu0 %v11296_v38 }
 0x478   :  { %v6688_v52 = vpop.eup %6687  ;;  %1033 = vst [vmem:[#allocation12 + $0x28] sm:$0xff] %v8839_v57  ;;  %v2618_v21 = vsel %vm2602_vm9, %v6686_v25, 0.0  ;;  %v1420_v49 = vpop.xlane.xlu0 %1419  ;;  %vm2034_vm9 = vcmp.gt.f32.partialorder %v1989_v35, 0.0  ;;  %v11300_v35 = vld [vmem:[#allocation25_spill] sm:$0xff] }
 0x479   :  { %v945_v7 = vpop.xlane.xlu1 %944  ;;  %v8847_v18 = vmul.f32 %v2618_v21, %v8523_v15  ;;  %v2053_v8 = vsel %vm2037_vm10, %v6688_v52, 0.0  ;;  %6693 = vrcp.f32 %v1420_v49  ;;  %2115 = vrot.lane.b32.xlu1 %v11297_v50, %s7260_s21  ;;  %v11298_v52 = vld [vmem:[#allocation24_spill] sm:$0xff]  ;;  %vm1462_vm10 = vcmp.gt.f32.partialorder %v1420_v49, 0.0  ;;  %v11301_v49 = vld [vmem:[#allocation31_spill] sm:$0xff] }
 0x47a   :  { %v8852_v19 = vmul.f32 %v2053_v8, %v8528_v24  ;;  %6695 = vrcp.f32 %v945_v7 }
 0x47b   :  { %v6690_v10 = vpop.eup %6689  ;;  %2651 = vst [vmem:[#allocation12 + $0x198] sm:$0xff] %v8847_v18 }
 0x47c   :  { %2086 = vst [vmem:[#allocation12 + $0x128] sm:$0xff] %v8852_v19  ;;  %v998_v15 = vsel %vm982_vm4, %v6690_v10, 0.0  ;;  %v2562_v61 = vpop.xlane.xlu0 %2561  ;;  %vm986_vm4 = vcmp.gt.f32.partialorder %v945_v7, 0.0 }
 0x47d   :  { %v1014_v40 = vmul.f32 %v998_v15, %v8541_v11  ;;  %6697 = vrcp.f32 %v2562_v61  ;;  %2682 = vrot.lane.b32.xlu1 %v11297_v50, %s7261_s2  ;;  %v11299_v11 = vld [vmem:[#allocation28_spill] sm:$0xff] }
 0x47f   :  { %v6692_v24 = vpop.eup %6691  ;;  %1030 = vst [vmem:[#allocation12 + $0x10] sm:$0xff] %v1014_v40  ;;  %v1045_v0 = vpack.c.bf16 %v8736_v58, %v1014_v40 }
 0x480   :  { %v2050_v38 = vsel %vm2034_vm9, %v6692_v24, 0.0  ;;  %v941_v5 = vpop.xlane.xlu0 %940  ;;  %v1997_v25 = vpop.xlane.xlu1 %1996  ;;  %vm2604_vm9 = vcmp.gt.f32.partialorder %v2562_v61, 0.0  ;;  %v11302_v61 = vld [vmem:[#allocation30_spill] sm:$0xff] }
 0x481   :  { %v8863_v42 = vmul.f32 %v2050_v38, %v8551_v14  ;;  %6699 = vrcp.f32 %v941_v5  ;;  %2117 = vrot.lane.b32.xlu1 %v11298_v52, %s7260_s21  ;;  %6055 = vmatmul.mubr.bf16.vlgmr.msra.gmra.mrb[16].mxu1 %v1045_v0 }
 0x482   :  { %6701 = vrcp.f32 %v1997_v25  ;;  %6103 = vmatpush3.bf16.msra.mxu1 %v11299_v11 }
 0x483   :  { %v6694_v21 = vpop.eup %6693  ;;  %2083 = vst [vmem:[#allocation12 + $0x110] sm:$0xff] %v8863_v42  ;;  %6104 = vmatprep.subr.bf16.mxu1 %v11300_v35 }
 0x484   :  { %v6696_v8 = vpop.eup %6695  ;;  %v1478_v14 = vsel %vm1462_vm10, %v6694_v21, 0.0  ;;  %v1418_v50 = vpop.xlane.xlu0 %1417  ;;  %vm984_vm10 = vcmp.gt.f32.partialorder %v941_v5, 0.0 }
 0x485   :  { %v951_v10 = vpop.xlane.xlu1 %950  ;;  %v8873_v15 = vmul.f32 %v1478_v14, %v8558_v34  ;;  %v1002_v40 = vsel %vm986_vm4, %v6696_v8, 0.0  ;;  %6703 = vrcp.f32 %v1418_v50  ;;  %vm2038_vm4 = vcmp.gt.f32.partialorder %v1997_v25, 0.0 }
 0x486   :  { %v8876_v24 = vmul.f32 %v1002_v40, %v8561_v32  ;;  %6705 = vrcp.f32 %v951_v10  ;;  %6105 = vmatpush3.bf16.msra.mxu1 %v11300_v35 }
 0x487   :  { %v6698_v0 = vpop.eup %6697  ;;  %1511 = vst [vmem:[#allocation12 + $0xa8] sm:$0xff] %v8873_v15  ;;  %6106 = vmatprep.subr.bf16.mxu1 %v11301_v49 }
 0x488   :  { %1034 = vst [vmem:[#allocation12 + $0x30] sm:$0xff] %v8876_v24  ;;  %v2620_v7 = vsel %vm2604_vm9, %v6698_v0, 0.0  ;;  %v1993_v38 = vpop.xlane.xlu0 %1992  ;;  %v11303_v0 = vld [vmem:[#allocation73_spill] sm:$0xff]  ;;  %vm1461_vm9 = vcmp.gt.f32.partialorder %v1418_v50, 0.0 }
 0x489   :  { %v949_v34 = vpop.xlane.xlu1 %948  ;;  %v8883_v11 = vmul.f32 %v2620_v7, %v8571_v31  ;;  %6707 = vrcp.f32 %v1993_v38 }
 0x48a   :  { %6709 = vrcp.f32 %v949_v34  ;;  %6107 = vmatpush3.bf16.msra.mxu1 %v11301_v49  ;;  %2680 = vrot.lane.b32.xlu0 %v11290_v48, %s7261_s2  ;;  %v1932_v49 = vsub.f32 %v11303_v0, %v8664_v2 }
 0x48b   :  { %v6700_v32 = vpop.eup %6699  ;;  %2653 = vst [vmem:[#allocation12 + $0x1a8] sm:$0xff] %v8883_v11  ;;  %6108 = vmatprep.subr.bf16.mxu1 %v11302_v61 }
 0x48c   :  { %v6702_v21 = vpop.eup %6701  ;;  %v1000_v35 = vsel %vm984_vm10, %v6700_v32, 0.0  ;;  %v2560_v8 = vpop.xlane.xlu0 %2559  ;;  %v11304_v32 = vld [vmem:[#allocation38_spill] sm:$0xff]  ;;  %vm989_vm10 = vcmp.gt.f32.partialorder %v951_v10, 0.0  ;;  %v1960_v58 = vmul.f32 1.442695, %v1932_v49  ;;  %v11311_v49 = vld [vmem:[#allocation41_spill] sm:$0xff] }
 0x48d   :  { %v955_v14 = vpop.xlane.xlu1 %954  ;;  %v1016_v31 = vmul.f32 %v1000_v35, %v8579_v62  ;;  %v2054_v40 = vsel %vm2038_vm4, %v6702_v21, 0.0  ;;  %6711 = vrcp.f32 %v2560_v8  ;;  %v2498_v62 = vsub.f32 %v11305_v37, %v11304_v32 }
 0x48e   :  { %v8894_v48 = vmul.f32 %v2054_v40, %v8582_v36  ;;  %6713 = vrcp.f32 %v955_v14  ;;  %6109 = vmatpush3.bf16.msra.mxu1 %v11302_v61  ;;  %v11306_v36 = vld [vmem:[#allocation40_spill] sm:$0xff]  ;;  %vm2036_vm4 = vcmp.gt.f32.partialorder %v1993_v38, 0.0 }
 0x48f   :  { %v6704_v5 = vpop.eup %6703  ;;  %1032 = vst [vmem:[#allocation12 + $0x20] sm:$0xff] %v1016_v31  ;;  %v1046_v25 = vpack.c.bf16 %v8839_v57, %v1016_v31  ;;  %v11307_v61 = vld [vmem:[#allocation68_spill] sm:$0xff]  ;;  %v11308_v57 = vld [vmem:[#allocation47_spill] sm:$0xff]  ;;  %v2525_v32 = vmul.f32 1.442695, %v2498_v62  ;;  %v11313_v62 = vld [vmem:[#allocation42_spill] sm:$0xff] }
 0x490   :  { %v6706_v7 = vpop.eup %6705  ;;  %2087 = vst [vmem:[#allocation12 + $0x130] sm:$0xff] %v8894_v48  ;;  %v1477_v21 = vsel %vm1461_vm9, %v6704_v5, 0.0  ;;  %v947_v2 = vpop.xlane.xlu0 %946  ;;  %v1935_v50 = vsub.f32 %v11307_v61, %v8674_v41  ;;  %vm988_vm9 = vcmp.gt.f32.partialorder %v949_v34, 0.0 }
 0x491   :  { %v959_v35 = vpop.xlane.xlu1 %958  ;;  %v1493_v40 = vmul.f32 %v1477_v21, %v11306_v36  ;;  %v1005_v0 = vsel %vm989_vm10, %v6706_v7, 0.0  ;;  %6715 = vrcp.f32 %v947_v2  ;;  %6058 = vmatprep.mubr.bf16.mxu1 %v1046_v25  ;;  %v11310_v21 = vld [vmem:[#allocation62_spill] sm:$0xff]  ;;  %vm2603_vm10 = vcmp.gt.f32.partialorder %v2560_v8, 0.0 }
 0x492   :  { %v8905_v31 = vmul.f32 %v1005_v0, %v11308_v57  ;;  %6717 = vrcp.f32 %v959_v35  ;;  %v1933_v7 = vsub.f32 %v11310_v21, %v11309_v39  ;;  %v1966_v61 = vmul.f32 1.442695, %v1935_v50  ;;  %v11315_v21 = vld [vmem:[#allocation80_spill] sm:$0xff] }
 0x493   :  { %v6708_v37 = vpop.eup %6707  ;;  %1510 = vst [vmem:[#allocation12 + $0xa0] sm:$0xff] %v1493_v40  ;;  %v1524_v10 = vpack.c.bf16 %v8873_v15, %v1493_v40  ;;  %v11312_v15 = vld [vmem:[#allocation75_spill] sm:$0xff] }
 0x494   :  { %v6710_v5 = vpop.eup %6709  ;;  %1037 = vst [vmem:[#allocation12 + $0x48] sm:$0xff] %v8905_v31  ;;  %v2052_v25 = vsel %vm2036_vm4, %v6708_v37, 0.0  ;;  %v1424_v41 = vpop.xlane.xlu0 %1423  ;;  %v2499_v38 = vsub.f32 %v11312_v15, %v8676_v44  ;;  %v1962_v37 = vmul.f32 1.442695, %v1933_v7  ;;  %vm991_vm4 = vcmp.gt.f32.partialorder %v955_v14, 0.0 }
 0x495   :  { %v8912_v36 = vmul.f32 %v2052_v25, %v11311_v49  ;;  %v1004_v0 = vsel %vm988_vm9, %v6710_v5, 0.0  ;;  %6719 = vrcp.f32 %v1424_v41  ;;  %6090 = vmatprep.mubr.bf16.mxu0 %v1524_v10  ;;  %v11316_v25 = vld [vmem:[#allocation66_spill] sm:$0xff]  ;;  %vm987_vm9 = vcmp.gt.f32.partialorder %v947_v2, 0.0  ;;  %v11320_v2 = vld [vmem:[#allocation81_spill] sm:$0xff] }
 0x496   :  { %6721 = vpow2.f32 %v1960_v58  ;;  %v1020_v40 = vmul.f32 %v1004_v0, %v11313_v62  ;;  %v11314_v58 = vld [vmem:[#allocation43_spill] sm:$0xff]  ;;  %v2500_v49 = vsub.f32 %v11316_v25, %v11315_v21  ;;  %v2527_v8 = vmul.f32 1.442695, %v2499_v38  ;;  %v11317_v0 = vld [vmem:[#allocation45_spill] sm:$0xff] }
 0x497   :  { %v6712_v57 = vpop.eup %6711  ;;  %2085 = vst [vmem:[#allocation12 + $0x120] sm:$0xff] %v8912_v36  ;;  %v2099_v39 = vpack.c.bf16 %v8852_v19, %v8912_v36  ;;  %6723 = vpow2.f32 %v2525_v32 }
 0x498   :  { %v6714_v34 = vpop.eup %6713  ;;  %1036 = vst [vmem:[#allocation12 + $0x40] sm:$0xff] %v1020_v40  ;;  %v2619_v5 = vsel %vm2603_vm10, %v6712_v57, 0.0  ;;  %v1999_v50 = vpop.xlane.xlu0 %1998  ;;  %vm993_vm10 = vcmp.gt.f32.partialorder %v959_v35, 0.0  ;;  %v11321_v35 = vld [vmem:[#allocation70_spill] sm:$0xff] }
 0x499   :  { %v8921_v10 = vmul.f32 %v2619_v5, %v11314_v58  ;;  %v1007_v44 = vsel %vm991_vm4, %v6714_v34, 0.0  ;;  %6725 = vrcp.f32 %v1999_v50  ;;  %v11318_v34 = vld [vmem:[#allocation59_spill] sm:$0xff]  ;;  %v2529_v5 = vmul.f32 1.442695, %v2500_v49  ;;  %v11319_v58 = vld [vmem:[#allocation77_spill] sm:$0xff] }
 0x49a   :  { %6727 = vpow2.f32 %v1966_v61  ;;  %v8926_v15 = vmul.f32 %v1007_v44, %v11317_v0  ;;  %v2501_v44 = vsub.f32 %v11319_v58, %v8762_v29  ;;  %vm1464_vm4 = vcmp.gt.f32.partialorder %v1424_v41, 0.0 }
 0x49b   :  { %v6716_v62 = vpop.eup %6715  ;;  %2652 = vst [vmem:[#allocation12 + $0x1a0] sm:$0xff] %v8921_v10  ;;  %v2666_v14 = vpack.c.bf16 %v8883_v11, %v8921_v10  ;;  %6729 = vpow2.f32 %v1962_v37 }
 0x49c   :  { %v6718_v32 = vpop.eup %6717  ;;  %1039 = vst [vmem:[#allocation12 + $0x58] sm:$0xff] %v8926_v15  ;;  %v1003_v7 = vsel %vm987_vm9, %v6716_v62, 0.0  ;;  %v2566_v57 = vpop.xlane.xlu0 %2565  ;;  %v2502_v62 = vsub.f32 %v11321_v35, %v8698_v33  ;;  %v2531_v41 = vmul.f32 1.442695, %v2501_v44  ;;  %vm2039_vm9 = vcmp.gt.f32.partialorder %v1999_v50, 0.0  ;;  %v7068_v33 = vld [vmem:[%s11013_s1 + $0x60] sm:$0xff] }
 0x49d   :  { %v1019_v61 = vmul.f32 %v1003_v7, %v11318_v34  ;;  %v1009_v38 = vsel %vm993_vm10, %v6718_v32, 0.0  ;;  %6731 = vrcp.f32 %v2566_v57  ;;  %v11322_v7 = vld [vmem:[#allocation48_spill] sm:$0xff]  ;;  %vm2606_vm10 = vcmp.gt.f32.partialorder %v2566_v57, 0.0  ;;  %v8960_v50 = vld [vmem:[%s11013_s1 + $0x78] sm:$0xff] }
 0x49e   :  { %6733 = vpow2.f32 %v2527_v8  ;;  %v8936_v21 = vmul.f32 %v1009_v38, %v11320_v2  ;;  %v1048_v8 = vpack.c.bf16 %v8905_v31, %v1020_v40  ;;  %v2533_v40 = vmul.f32 1.442695, %v2502_v62 }
 0x49f   :  { %v6720_v25 = vpop.eup %6719  ;;  %1035 = vst [vmem:[#allocation12 + $0x38] sm:$0xff] %v1019_v61  ;;  %v1047_v37 = vpack.c.bf16 %v1019_v61, %v8876_v24 }
 0x4a0   :  { %v6722_v0 = vpop.eup %6721  ;;  %1041 = vst [vmem:[#allocation12 + $0x68] sm:$0xff] %v8936_v21  ;;  %v1480_v32 = vsel %vm1464_vm4, %v6720_v25, 0.0  ;;  %v1422_v49 = vpop.xlane.xlu0 %1421 }
 0x4a1   :  { %v8944_v29 = vmul.f32 %v1480_v32, %v11322_v7  ;;  %6735 = vrcp.f32 %v1422_v49  ;;  %6059 = vmatmul.mubr.bf16.gmra.mrb[20].mxu1 %v1047_v37  ;;  %v6724_v34 = vpop.eup %6723  ;;  %v8950_v61 = vmul.f32 %v7068_v33, %v6722_v0  ;;  %vm1463_vm4 = vcmp.gt.f32.partialorder %v1422_v49, 0.0  ;;  %v7070_v7 = vld [vmem:[%s11013_s1 + $0x68] sm:$0xff] }
 0x4a2   :  { %6737 = vpow2.f32 %v2529_v5  ;;  %6062 = vmatprep.mubr.bf16.mxu1 %v1048_v8 }
 0x4a3   :  { %v6726_v24 = vpop.eup %6725  ;;  %1513 = vst [vmem:[#allocation12 + $0xb8] sm:$0xff] %v8944_v29 }
 0x4a4   :  { %v6728_v31 = vpop.eup %6727  ;;  %v2055_v38 = vsel %vm2039_vm9, %v6726_v24, 0.0  ;;  %v2564_v58 = vpop.xlane.xlu0 %2563 }
 0x4a5   :  { %v8953_v2 = vmul.f32 %v2055_v38, %v8650_v47  ;;  %6739 = vrcp.f32 %v2564_v58  ;;  %2008 = vadd.xlane.f32.xlu1 %v8950_v61  ;;  %v6730_v5 = vpop.eup %6729  ;;  %v8963_v25 = vmul.f32 %v8960_v50, %v6728_v31  ;;  %v8966_v47 = vmul.f32 %v8706_v56, %v6724_v34 }
 0x4a6   :  { %6741 = vpow2.f32 %v2531_v41  ;;  %v8981_v34 = vmul.f32 %v7070_v7, %v6730_v5  ;;  %vm2605_vm9 = vcmp.gt.f32.partialorder %v2564_v58, 0.0 }
 0x4a7   :  { %v6732_v44 = vpop.eup %6731  ;;  %2088 = vst [vmem:[#allocation12 + $0x138] sm:$0xff] %v8953_v2  ;;  %v2100_v37 = vpack.c.bf16 %v8953_v2, %v8894_v48  ;;  %6743 = vpow2.f32 %v2533_v40 }
 0x4a8   :  { %v6734_v0 = vpop.eup %6733  ;;  %v2622_v35 = vsel %vm2606_vm10, %v6732_v44, 0.0  ;;  %v1428_v62 = vpop.xlane.xlu0 %1427 }
 0x4a9   :  { %v957_v32 = vpop.xlane.xlu1 %956  ;;  %v8971_v57 = vmul.f32 %v2622_v35, %v8656_v51  ;;  %6745 = vrcp.f32 %v1428_v62  ;;  %2014 = vadd.xlane.f32.xlu1 %v8963_v25  ;;  %2573 = vadd.xlane.f32.xlu0 %v8966_v47  ;;  %v8976_v56 = vmul.f32 %v7068_v33, %v6734_v0  ;;  %vm1466_vm10 = vcmp.gt.f32.partialorder %v1428_v62, 0.0 }
 0x4aa   :  { %6747 = vrcp.f32 %v957_v32 }
 0x4ab   :  { %v6736_v8 = vpop.eup %6735  ;;  %2655 = vst [vmem:[#allocation12 + $0x1b8] sm:$0xff] %v8971_v57 }
 0x4ac   :  { %v6738_v51 = vpop.eup %6737  ;;  %v1479_v41 = vsel %vm1463_vm4, %v6736_v8, 0.0  ;;  %v1426_v24 = vpop.xlane.xlu0 %1425  ;;  %vm992_vm4 = vcmp.gt.f32.partialorder %v957_v32, 0.0 }
 0x4ad   :  { %v963_v31 = vpop.xlane.xlu1 %962  ;;  %v1495_v40 = vmul.f32 %v1479_v41, %v8662_v63  ;;  %6749 = vrcp.f32 %v1426_v24  ;;  %2575 = vadd.xlane.f32.xlu1 %v8976_v56  ;;  %2010 = vadd.xlane.f32.xlu0 %v8981_v34  ;;  %v8986_v33 = vmul.f32 %v7070_v7, %v6738_v51 }
 0x4ae   :  { %6751 = vrcp.f32 %v963_v31 }
 0x4af   :  { %v6740_v49 = vpop.eup %6739  ;;  %1512 = vst [vmem:[#allocation12 + $0xb0] sm:$0xff] %v1495_v40  ;;  %v1525_v38 = vpack.c.bf16 %v8944_v29, %v1495_v40  ;;  %v8997_v29 = vld [vmem:[%s11013_s1 + $0x70] sm:$0xff] }
 0x4b0   :  { %v6742_v5 = vpop.eup %6741  ;;  %v2621_v44 = vsel %vm2605_vm9, %v6740_v49, 0.0  ;;  %v1432_v0 = vpop.xlane.xlu0 %1431  ;;  %vm1465_vm9 = vcmp.gt.f32.partialorder %v1426_v24, 0.0 }
 0x4b1   :  { %v2679_v35 = vpop.permute.xlu1 %2678  ;;  %v8990_v8 = vmul.f32 %v2621_v44, %v8669_v53  ;;  %6753 = vrcp.f32 %v1432_v0  ;;  %2577 = vadd.xlane.f32.xlu1 %v8986_v33  ;;  %6091 = vmatmul.mubr.bf16.gmra.mrb[36].mxu0 %v1525_v38  ;;  %v6744_v63 = vpop.eup %6743  ;;  %v9000_v58 = vmul.f32 %v8997_v29, %v6742_v5 }
 0x4b2   :  { %6140 = vmatprep.subr.bf16.mxu0 %v2679_v35  ;;  %v9008_v5 = vmul.f32 %v8960_v50, %v6744_v63 }
 0x4b3   :  { %v6746_v41 = vpop.eup %6745  ;;  %2654 = vst [vmem:[#allocation12 + $0x1b0] sm:$0xff] %v8990_v8  ;;  %6141 = vmatpush3.bf16.msra.mxu0 %v2679_v35 }
 0x4b4   :  { %v6748_v7 = vpop.eup %6747  ;;  %v1482_v51 = vsel %vm1466_vm10, %v6746_v41, 0.0  ;;  %v953_v40 = vpop.xlane.xlu0 %952  ;;  %vm995_vm10 = vcmp.gt.f32.partialorder %v963_v31, 0.0 }
 0x4b5   :  { %v1498_v49 = vmul.f32 %v1482_v51, %v8684_v22  ;;  %v1008_v38 = vsel %vm992_vm4, %v6748_v7, 0.0  ;;  %6755 = vrcp.f32 %v953_v40  ;;  %2579 = vadd.xlane.f32.xlu1 %v9000_v58  ;;  %vm1468_vm4 = vcmp.gt.f32.partialorder %v1432_v0, 0.0 }
 0x4b6   :  { %v1024_v62 = vmul.f32 %v1008_v38, %v8687_v16 }
 0x4b7   :  { %v6750_v44 = vpop.eup %6749  ;;  %1515 = vst [vmem:[#allocation12 + $0xc8] sm:$0xff] %v1498_v49 }
 0x4b8   :  { %v6752_v35 = vpop.eup %6751  ;;  %1040 = vst [vmem:[#allocation12 + $0x60] sm:$0xff] %v1024_v62  ;;  %v1481_v53 = vsel %vm1465_vm9, %v6750_v44, 0.0  ;;  %v1430_v32 = vpop.xlane.xlu0 %1429  ;;  %vm990_vm9 = vcmp.gt.f32.partialorder %v953_v40, 0.0  ;;  %v1050_v44 = vpack.c.bf16 %v8936_v21, %v1024_v62  ;;  %v11324_v21 = vld [vmem:[#allocation76_spill] sm:$0xff] }
 0x4b9   :  { %v1497_v41 = vmul.f32 %v1481_v53, %v8693_v13  ;;  %v1011_v22 = vsel %vm995_vm10, %v6752_v35, 0.0  ;;  %6757 = vrcp.f32 %v1430_v32  ;;  %2581 = vadd.xlane.f32.xlu1 %v9008_v5  ;;  %vm1467_vm10 = vcmp.gt.f32.partialorder %v1430_v32, 0.0 }
 0x4ba   :  { %v9013_v7 = vmul.f32 %v1011_v22, %v8696_v4 }
 0x4bb   :  { %v6754_v16 = vpop.eup %6753  ;;  %1514 = vst [vmem:[#allocation12 + $0xc0] sm:$0xff] %v1497_v41  ;;  %v1526_v24 = vpack.c.bf16 %v1498_v49, %v1497_v41 }
 0x4bc   :  { %1043 = vst [vmem:[#allocation12 + $0x78] sm:$0xff] %v9013_v7  ;;  %v1484_v50 = vsel %vm1468_vm4, %v6754_v16, 0.0  ;;  %v1436_v63 = vpop.xlane.xlu0 %1435 }
 0x4bd   :  { %v1500_v31 = vmul.f32 %v1484_v50, %v8709_v6  ;;  %6759 = vrcp.f32 %v1436_v63  ;;  %6094 = vmatprep.mubr.bf16.mxu0 %v1526_v24  ;;  %vm1470_vm4 = vcmp.gt.f32.partialorder %v1436_v63, 0.0 }
 0x4bf   :  { %v6756_v13 = vpop.eup %6755  ;;  %1517 = vst [vmem:[#allocation12 + $0xd8] sm:$0xff] %v1500_v31 }
 0x4c0   :  { %v1006_v53 = vsel %vm990_vm9, %v6756_v13, 0.0  ;;  %v1434_v51 = vpop.xlane.xlu0 %1433 }
 0x4c1   :  { %v1022_v4 = vmul.f32 %v1006_v53, %v8714_v20  ;;  %6761 = vrcp.f32 %v1434_v51  ;;  %vm1469_vm9 = vcmp.gt.f32.partialorder %v1434_v51, 0.0 }
 0x4c3   :  { %v6758_v38 = vpop.eup %6757  ;;  %1038 = vst [vmem:[#allocation12 + $0x50] sm:$0xff] %v1022_v4  ;;  %2684 = vrot.lane.b32.xlu0 %v11298_v52, %s7261_s2  ;;  %v1049_v0 = vpack.c.bf16 %v8926_v15, %v1022_v4  ;;  %v11323_v52 = vld [vmem:[#allocation23_spill] sm:$0xff]  ;;  %v11325_v4 = vld [vmem:[#allocation61_spill] sm:$0xff] }
 0x4c4   :  { %v1483_v49 = vsel %vm1467_vm10, %v6758_v38, 0.0  ;;  %v1440_v6 = vpop.xlane.xlu0 %1439 }
 0x4c5   :  { %v1499_v35 = vmul.f32 %v1483_v49, %v8719_v12  ;;  %6763 = vrcp.f32 %v1440_v6  ;;  %6063 = vmatmul.mubr.bf16.gmra.mrb[24].mxu1 %v1049_v0  ;;  %v1934_v12 = vsub.f32 %v11324_v21, %v8756_v23  ;;  %vm1472_vm10 = vcmp.gt.f32.partialorder %v1440_v6, 0.0  ;;  %v11326_v6 = vld [vmem:[#allocation54_spill] sm:$0xff]  ;;  %v11329_v21 = vld [vmem:[#allocation20_spill] sm:$0xff] }
 0x4c6   :  { %6066 = vmatprep.mubr.bf16.mxu1 %v1050_v44 }
 0x4c7   :  { %v6760_v40 = vpop.eup %6759  ;;  %1516 = vst [vmem:[#allocation12 + $0xd0] sm:$0xff] %v1499_v35  ;;  %v1527_v20 = vpack.c.bf16 %v1500_v31, %v1499_v35  ;;  %v1964_v63 = vmul.f32 1.442695, %v1934_v12 }
 0x4c8   :  { %v1486_v41 = vsel %vm1470_vm4, %v6760_v40, 0.0  ;;  %v961_v32 = vpop.xlane.xlu0 %960  ;;  %v11327_v40 = vpack.c.bf16 %v8836_v60, %v8822_v46 }
 0x4c9   :  { %v1502_v22 = vmul.f32 %v1486_v41, %v8723_v45  ;;  %6765 = vrcp.f32 %v961_v32  ;;  %6095 = vmatmul.mubr.bf16.gmra.mrb[40].mxu0 %v1527_v20  ;;  %vm994_vm4 = vcmp.gt.f32.partialorder %v961_v32, 0.0 }
 0x4ca   :  { %2119 = vrot.lane.b32.xlu1 %v11323_v52, %s7260_s21 }
 0x4cb   :  { %v6762_v15 = vpop.eup %6761  ;;  %1519 = vst [vmem:[#allocation12 + $0xe8] sm:$0xff] %v1502_v22 }
 0x4cc   :  { %v1485_v62 = vsel %vm1469_vm9, %v6762_v15, 0.0  ;;  %v1438_v16 = vpop.xlane.xlu0 %1437 }
 0x4cd   :  { %v1501_v24 = vmul.f32 %v1485_v62, %v8733_v17  ;;  %6767 = vrcp.f32 %v1438_v16  ;;  %vm1471_vm9 = vcmp.gt.f32.partialorder %v1438_v16, 0.0 }
 0x4ce   :  { %6769 = vpow2.f32 %v1964_v63 }
 0x4cf   :  { %v6764_v50 = vpop.eup %6763  ;;  %1518 = vst [vmem:[#allocation12 + $0xe0] sm:$0xff] %v1501_v24  ;;  %v1528_v45 = vpack.c.bf16 %v1502_v22, %v1501_v24  ;;  %v11328_v22 = vld [vmem:[#allocation60_spill] sm:$0xff] }
 0x4d0   :  { %v1488_v31 = vsel %vm1472_vm10, %v6764_v50, 0.0  ;;  %v2114_v13 = vpop.permute.xlu0 %2113 }
 0x4d1   :  { %v1504_v53 = vmul.f32 %v1488_v31, %v8741_v59  ;;  %6098 = vmatprep.mubr.bf16.mxu0 %v1528_v45  ;;  %6110 = vmatprep.subr.bf16.mxu1 %v2114_v13 }
 0x4d2   :  { %6111 = vmatpush3.bf16.msra.mxu1 %v2114_v13 }
 0x4d3   :  { %v6766_v23 = vpop.eup %6765  ;;  %1521 = vst [vmem:[#allocation12 + $0xf8] sm:$0xff] %v1504_v53 }
 0x4d4   :  { %v1010_v51 = vsel %vm994_vm4, %v6766_v23, 0.0 }
 0x4d5   :  { %v1026_v17 = vmul.f32 %v1010_v51, %v11325_v4 }
 0x4d7   :  { %v6768_v38 = vpop.eup %6767  ;;  %1042 = vst [vmem:[#allocation12 + $0x70] sm:$0xff] %v1026_v17  ;;  %v1051_v0 = vpack.c.bf16 %v9013_v7, %v1026_v17 }
 0x4d8   :  { %v1487_v49 = vsel %vm1471_vm9, %v6768_v38, 0.0  ;;  %v6770_v35 = vpop.eup %6769 }
 0x4d9   :  { %v1503_v44 = vmul.f32 %v1487_v49, %v11326_v6  ;;  %6067 = vmatmul.mubr.bf16.gmra.mrb[28].mxu1 %v1051_v0  ;;  %v9040_v20 = vmul.f32 %v8997_v29, %v6770_v35 }
 0x4da   :  { %6118 = vmatprep.mubr.bf16.mxu1 %v2097_v3 }
 0x4db   :  { %1520 = vst [vmem:[#allocation12 + $0xf0] sm:$0xff] %v1503_v44  ;;  %v1529_v59 = vpack.c.bf16 %v1504_v53, %v1503_v44 }
 0x4dd   :  { %6099 = vmatmul.mubr.bf16.gmra.mrb[44].mxu0 %v1529_v59 }
 0x4de   :  { %6150 = vmatprep.mubr.bf16.mxu0 %v11327_v40 }
 0x4e1   :  { %v2001_v7 = vpop.xlane.xlu1 %2000 }
 0x4e2   :  { %6771 = vrcp.f32 %v2001_v7  ;;  %2012 = vadd.xlane.f32.xlu0 %v9040_v20  ;;  %vm2040_vm10 = vcmp.gt.f32.partialorder %v2001_v7, 0.0 }
 0x4e5   :  { %v2005_v41 = vpop.xlane.xlu1 %2004 }
 0x4e6   :  { %6773 = vrcp.f32 %v2005_v41  ;;  %vm2042_vm4 = vcmp.gt.f32.partialorder %v2005_v41, 0.0 }
 0x4e9   :  { %v2007_v32 = vpop.xlane.xlu1 %2006 }
 0x4ea   :  { %6775 = vrcp.f32 %v2007_v32  ;;  %vm2043_vm9 = vcmp.gt.f32.partialorder %v2007_v32, 0.0 }
 0x4ec   :  { %v6772_v1 = vpop.eup %6771 }
 0x4ed   :  { %v2056_v30 = vsel %vm2040_vm10, %v6772_v1, 0.0  ;;  %v2568_v3 = vpop.xlane.xlu1 %2567 }
 0x4ee   :  { %v9044_v15 = vmul.f32 %v2056_v30, %v11328_v22  ;;  %6777 = vrcp.f32 %v2568_v3  ;;  %vm2607_vm10 = vcmp.gt.f32.partialorder %v2568_v3, 0.0 }
 0x4f0   :  { %v6774_v46 = vpop.eup %6773  ;;  %2089 = vst [vmem:[#allocation12 + $0x140] sm:$0xff] %v9044_v15 }
 0x4f1   :  { %v2058_v60 = vsel %vm2042_vm4, %v6774_v46, 0.0  ;;  %v2570_v29 = vpop.xlane.xlu1 %2569 }
 0x4f2   :  { %v9048_v12 = vmul.f32 %v2058_v60, %v11329_v21  ;;  %6779 = vrcp.f32 %v2570_v29  ;;  %vm2608_vm4 = vcmp.gt.f32.partialorder %v2570_v29, 0.0 }
 0x4f4   :  { %v6776_v62 = vpop.eup %6775  ;;  %2091 = vst [vmem:[#allocation12 + $0x150] sm:$0xff] %v9048_v12 }
 0x4f5   :  { %v2059_v16 = vsel %vm2043_vm9, %v6776_v62, 0.0  ;;  %v2572_v24 = vpop.xlane.xlu1 %2571 }
 0x4f6   :  { %v9052_v50 = vmul.f32 %v2059_v16, %v8782_v9  ;;  %6781 = vrcp.f32 %v2572_v24  ;;  %vm2609_vm9 = vcmp.gt.f32.partialorder %v2572_v24, 0.0 }
 0x4f8   :  { %v6778_v63 = vpop.eup %6777  ;;  %2092 = vst [vmem:[#allocation12 + $0x158] sm:$0xff] %v9052_v50  ;;  %2686 = vrot.lane.b32.xlu0 %v11323_v52, %s7261_s2  ;;  %v2102_v45 = vpack.c.bf16 %v9052_v50, %v9048_v12 }
 0x4f9   :  { %v2623_v31 = vsel %vm2607_vm10, %v6778_v63, 0.0  ;;  %v2116_v13 = vpop.permute.xlu1 %2115 }
 0x4fa   :  { %v9060_v53 = vmul.f32 %v2623_v31, %v8789_v28  ;;  %6112 = vmatprep.subr.bf16.mxu1 %v2116_v13 }
 0x4fb   :  { %6113 = vmatpush3.bf16.msra.mxu1 %v2116_v13 }
 0x4fc   :  { %v6780_v9 = vpop.eup %6779  ;;  %2656 = vst [vmem:[#allocation12 + $0x1c0] sm:$0xff] %v9060_v53 }
 0x4fd   :  { %v2624_v23 = vsel %vm2608_vm4, %v6780_v9, 0.0  ;;  %v2683_v51 = vpop.permute.xlu1 %2682 }
 0x4fe   :  { %v9064_v4 = vmul.f32 %v2624_v23, %v8797_v27 }
 0x500   :  { %v6782_v52 = vpop.eup %6781  ;;  %2657 = vst [vmem:[#allocation12 + $0x1c8] sm:$0xff] %v9064_v4  ;;  %v2668_v17 = vpack.c.bf16 %v9064_v4, %v9060_v53 }
 0x501   :  { %v2625_v28 = vsel %vm2609_vm9, %v6782_v52, 0.0  ;;  %v2003_v38 = vpop.xlane.xlu0 %2002  ;;  %v2118_v0 = vpop.permute.xlu1 %2117 }
 0x502   :  { %v9070_v49 = vmul.f32 %v2625_v28, %v8805_v54  ;;  %6783 = vrcp.f32 %v2003_v38  ;;  %6114 = vmatprep.subr.bf16.mxu1 %v2118_v0  ;;  %vm2041_vm10 = vcmp.gt.f32.partialorder %v2003_v38, 0.0 }
 0x503   :  { %6115 = vmatpush3.bf16.msra.mxu1 %v2118_v0 }
 0x504   :  { %2658 = vst [vmem:[#allocation12 + $0x1d0] sm:$0xff] %v9070_v49 }
 0x505   :  { %v2681_v27 = vpop.permute.xlu0 %2680 }
 0x506   :  { %6142 = vmatprep.subr.bf16.mxu0 %v2681_v27 }
 0x507   :  { %6143 = vmatpush3.bf16.msra.mxu0 %v2681_v27 }
 0x508   :  { %6144 = vmatprep.subr.bf16.mxu0 %v2683_v51 }
 0x50b   :  { %6145 = vmatpush3.bf16.msra.mxu0 %v2683_v51 }
 0x50c   :  { %v6784_v6 = vpop.eup %6783 }
 0x50d   :  { %v2057_v44 = vsel %vm2041_vm10, %v6784_v6, 0.0 }
 0x50e   :  { %v9074_v59 = vmul.f32 %v2057_v44, %v8828_v43 }
 0x510   :  { %2090 = vst [vmem:[#allocation12 + $0x148] sm:$0xff] %v9074_v59  ;;  %v2101_v54 = vpack.c.bf16 %v9074_v59, %v9044_v15  ;;  %v11332_v59 = vpack.c.bf16 %v8971_v57, %v8990_v8 }
 0x532   :  { %v2009_v35 = vpop.xlane.xlu1 %2008 }
 0x533   :  { %6785 = vrcp.f32 %v2009_v35  ;;  %vm2044_vm4 = vcmp.gt.f32.partialorder %v2009_v35, 0.0  ;;  %v11330_v35 = vpack.c.bf16 %v8816_v55, %v8863_v42 }
 0x536   :  { %v2574_v40 = vpop.xlane.xlu0 %2573  ;;  %v2015_v7 = vpop.xlane.xlu1 %2014 }
 0x537   :  { %6787 = vrcp.f32 %v2574_v40  ;;  %vm2610_vm9 = vcmp.gt.f32.partialorder %v2574_v40, 0.0  ;;  %vm2047_vm10 = vcmp.gt.f32.partialorder %v2015_v7, 0.0 }
 0x538   :  { %6789 = vrcp.f32 %v2015_v7 }
 0x53a   :  { %v2011_v41 = vpop.xlane.xlu0 %2010  ;;  %v2576_v32 = vpop.xlane.xlu1 %2575 }
 0x53b   :  { %6791 = vrcp.f32 %v2011_v41 }
 0x53c   :  { %6793 = vrcp.f32 %v2576_v32 }
 0x53d   :  { %v6786_v1 = vpop.eup %6785 }
 0x53e   :  { %v2060_v30 = vsel %vm2044_vm4, %v6786_v1, 0.0  ;;  %v2685_v43 = vpop.permute.xlu0 %2684  ;;  %v2578_v3 = vpop.xlane.xlu1 %2577  ;;  %vm2045_vm4 = vcmp.gt.f32.partialorder %v2011_v41, 0.0 }
 0x53f   :  { %v9080_v22 = vmul.f32 %v2060_v30, %v8950_v61  ;;  %6795 = vrcp.f32 %v2578_v3  ;;  %6146 = vmatprep.subr.bf16.mxu0 %v2685_v43 }
 0x540   :  { %6147 = vmatpush3.bf16.msra.mxu0 %v2685_v43 }
 0x541   :  { %v6788_v46 = vpop.eup %6787  ;;  %2093 = vst [vmem:[#allocation12 + $0x160] sm:$0xff] %v9080_v22  ;;  %v6088_v60 = vpop.f32.mrb[32].mxu0 }
 0x542   :  { %v6790_v29 = vpop.eup %6789  ;;  %v2626_v21 = vsel %vm2610_vm9, %v6788_v46, 0.0  ;;  %1679 = vrot.lane.b32.xlu1 %v6088_v60, %s7254_s24  ;;  %v1596_v62 = vpop.f32.mrb[33].mxu0  ;;  %vm2611_vm9 = vcmp.gt.f32.partialorder %v2576_v32, 0.0 }
 0x543   :  { %v2580_v16 = vpop.xlane.xlu1 %2579  ;;  %v9085_v24 = vmul.f32 %v2626_v21, %v8966_v47  ;;  %v2063_v61 = vsel %vm2047_vm10, %v6790_v29, 0.0  ;;  %v6089_v63 = vpop.f32.mrb[34].mxu0  ;;  %vm2612_vm10 = vcmp.gt.f32.partialorder %v2578_v3, 0.0 }
 0x544   :  { %6797 = vrcp.f32 %v2580_v16  ;;  %v9088_v31 = vmul.f32 %v2063_v61, %v8963_v25  ;;  %1681 = vrot.lane.b32.xlu0 %v6089_v63, %s7254_s24  ;;  %v1599_v13 = vpop.f32.mrb[35].mxu0 }
 0x545   :  { %v6792_v9 = vpop.eup %6791  ;;  %2659 = vst [vmem:[#allocation12 + $0x1d8] sm:$0xff] %v9085_v24  ;;  %v2669_v10 = vpack.c.bf16 %v9085_v24, %v9070_v49 }
 0x546   :  { %v6794_v23 = vpop.eup %6793  ;;  %2096 = vst [vmem:[#allocation12 + $0x178] sm:$0xff] %v9088_v31  ;;  %v2061_v51 = vsel %vm2045_vm4, %v6792_v9, 0.0  ;;  %1675 = vrot.lane.b32.xlu1 %v1596_v62, %s7254_s24  ;;  %vm2613_vm4 = vcmp.gt.f32.partialorder %v2580_v16, 0.0 }
 0x547   :  { %v2582_v47 = vpop.xlane.xlu1 %2581  ;;  %v2077_v52 = vmul.f32 %v2061_v51, %v8981_v34  ;;  %v2627_v28 = vsel %vm2611_vm9, %v6794_v23, 0.0 }
 0x548   :  { %6799 = vrcp.f32 %v2582_v47  ;;  %v9096_v25 = vmul.f32 %v2627_v28, %v8976_v56  ;;  %vm2614_vm9 = vcmp.gt.f32.partialorder %v2582_v47, 0.0 }
 0x549   :  { %v6796_v38 = vpop.eup %6795  ;;  %2094 = vst [vmem:[#allocation12 + $0x168] sm:$0xff] %v2077_v52  ;;  %v2103_v19 = vpack.c.bf16 %v2077_v52, %v9080_v22 }
 0x54a   :  { %2660 = vst [vmem:[#allocation12 + $0x1e0] sm:$0xff] %v9096_v25  ;;  %v2628_v0 = vsel %vm2612_vm10, %v6796_v38, 0.0  ;;  %1677 = vrot.lane.b32.xlu1 %v1599_v13, %s7254_s24  ;;  %v2899_v38 = vld [vmem:[#allocation9 + $0x8] sm:$0xff] }
 0x54b   :  { %v2120_v27 = vpop.permute.xlu1 %2119  ;;  %v9101_v6 = vmul.f32 %v2628_v0, %v8986_v33 }
 0x54c   :  { %6116 = vmatprep.subr.bf16.mxu1 %v2120_v27 }
 0x54d   :  { %6117 = vmatpush3.bf16.msra.mxu1 %v2120_v27  ;;  %2661 = vst [vmem:[#allocation12 + $0x1e8] sm:$0xff] %v9101_v6 }
 0x54e   :  { %v6798_v34 = vpop.eup %6797 }
 0x54f   :  { %v2629_v56 = vsel %vm2613_vm4, %v6798_v34, 0.0  ;;  %vm11149_vm4 = vcmask 130112  }
 0x550   :  { %v2645_v44 = vmul.f32 %v2629_v56, %v9000_v58  ;;  %6119 = vmatmul.mubr.bf16.vlgmr.msra.gmra.mrb[32].mxu1 %v11330_v35 }
 0x551   :  { %6122 = vmatprep.mubr.bf16.mxu1 %v2099_v39 }
 0x552   :  { %v6800_v40 = vpop.eup %6799  ;;  %2662 = vst [vmem:[#allocation12 + $0x1f0] sm:$0xff] %v2645_v44 }
 0x553   :  { %v2630_v33 = vsel %vm2614_vm9, %v6800_v40, 0.0  ;;  %vm11147_vm9 = vcmask 195712  }
 0x554   :  { %v2646_v7 = vmul.f32 %v2630_v33, %v9008_v5  ;;  %v6056_v41 = vpop.f32.mrb[16].mxu1  ;;  %v11331_v5 = vpack.c.bf16 %v8847_v18, %v8825_v26 }
 0x555   :  { %1151 = vst.msk [vmem:[#allocation2 + $0x10] sm:$0xff] %vm159_vm1, %v6056_v41  ;;  %v1086_v32 = vpop.f32.mrb[17].mxu1 }
 0x556   :  { %2663 = vst [vmem:[#allocation12 + $0x1f8] sm:$0xff] %v2646_v7  ;;  %1149 = vst.msk [vmem:[#allocation2] sm:$0xff] %vm159_vm1, %v1086_v32  ;;  %v6057_v58 = vpop.f32.mrb[18].mxu1  ;;  %v2671_v57 = vpack.c.bf16 %v2646_v7, %v2645_v44 }
 0x557   :  { %1152 = vst.msk [vmem:[#allocation2 + $0x18] sm:$0xff] %vm159_vm1, %v6057_v58  ;;  %v1089_v55 = vpop.f32.mrb[19].mxu1 }
 0x558   :  { %6123 = vmatmul.mubr.bf16.gmra.mrb[36].mxu1 %v2100_v37  ;;  %1150 = vst.msk [vmem:[#allocation2 + $0x8] sm:$0xff] %vm159_vm1, %v1089_v55 }
 0x559   :  { %6126 = vmatprep.mubr.bf16.mxu1 %v2101_v54 }
 0x560   :  { %6127 = vmatmul.mubr.bf16.gmra.mrb[40].mxu1 %v2102_v45 }
 0x561   :  { %6130 = vmatprep.mubr.bf16.mxu1 %v2103_v19 }
 0x56f   :  { %v2013_v42 = vpop.xlane.xlu0 %2012 }
 0x570   :  { %6801 = vrcp.f32 %v2013_v42  ;;  %vm2046_vm10 = vcmp.gt.f32.partialorder %v2013_v42, 0.0 }
 0x573   :  { %v2687_v36 = vpop.permute.xlu0 %2686 }
 0x574   :  { %v6060_v39 = vpop.f32.mrb[20].mxu1  ;;  %6148 = vmatprep.subr.bf16.mxu0 %v2687_v36 }
 0x575   :  { %1155 = vst.msk [vmem:[#allocation2 + $0x30] sm:$0xff] %vm159_vm1, %v6060_v39  ;;  %v1102_v48 = vpop.f32.mrb[21].mxu1  ;;  %6149 = vmatpush3.bf16.msra.mxu0 %v2687_v36  ;;  %v2900_v39 = vld [vmem:[#allocation9 + $0x10] sm:$0xff] }
 0x576   :  { %1153 = vst.msk [vmem:[#allocation2 + $0x20] sm:$0xff] %vm159_vm1, %v1102_v48  ;;  %v6061_v2 = vpop.f32.mrb[22].mxu1  ;;  %v2901_v48 = vld [vmem:[#allocation9 + $0x18] sm:$0xff] }
 0x577   :  { %1156 = vst.msk [vmem:[#allocation2 + $0x38] sm:$0xff] %vm159_vm1, %v6061_v2  ;;  %v1105_v37 = vpop.f32.mrb[23].mxu1  ;;  %v2903_v2 = vpack.c.bf16 %v2901_v48, %v2900_v39 }
 0x578   :  { %1154 = vst.msk [vmem:[#allocation2 + $0x28] sm:$0xff] %vm159_vm1, %v1105_v37  ;;  %6151 = vmatmul.mubr.bf16.vlgmr.msra.gmra.mrb[48].mxu0 %v11331_v5 }
 0x579   :  { %6154 = vmatprep.mubr.bf16.mxu0 %v2666_v14 }
 0x57a   :  { %v6802_v15 = vpop.eup %6801 }
 0x57b   :  { %v2062_v12 = vsel %vm2046_vm10, %v6802_v15, 0.0  ;;  %vm11144_vm10 = vcmask 261312  }
 0x57c   :  { %v2078_v50 = vmul.f32 %v2062_v12, %v9040_v20  ;;  %v2670_v20 = vpack.c.bf16 %v9101_v6, %v9096_v25  ;;  %v2898_v25 = vld [vmem:[#allocation9] sm:$0xff] }
 0x57d   :  { %v2902_v0 = vpack.c.bf16 %v2899_v38, %v2898_v25 }
 0x57e   :  { %2095 = vst [vmem:[#allocation12 + $0x170] sm:$0xff] %v2078_v50  ;;  %v2104_v45 = vpack.c.bf16 %v9088_v31, %v2078_v50 }
 0x57f   :  { %6166 = vmatprep.subr.bf16.mxu1 %v2902_v0 }
 0x580   :  { %6131 = vmatmul.mubr.bf16.gmra.mrb[44].mxu1 %v2104_v45  ;;  %6155 = vmatmul.mubr.bf16.gmra.mrb[52].mxu0 %v11332_v59 }
 0x581   :  { %6158 = vmatprep.mubr.bf16.mxu0 %v2668_v17  ;;  %6167 = vmatpush3.bf16.msra.mxu1 %v2902_v0 }
 0x582   :  { %6168 = vmatprep.subr.bf16.mxu1 %v2903_v2 }
 0x584   :  { %v6092_v26 = vpop.f32.mrb[36].mxu0 }
 0x585   :  { %1687 = vrot.lane.b32.xlu1 %v6092_v26, %s7254_s24  ;;  %v1612_v18 = vpop.f32.mrb[37].mxu0  ;;  %6169 = vmatpush3.bf16.msra.mxu1 %v2903_v2 }
 0x586   :  { %v6093_v11 = vpop.f32.mrb[38].mxu0 }
 0x587   :  { %1689 = vrot.lane.b32.xlu0 %v6093_v11, %s7254_s24  ;;  %v1615_v14 = vpop.f32.mrb[39].mxu0 }
 0x588   :  { %6159 = vmatmul.mubr.bf16.gmra.mrb[56].mxu0 %v2669_v10 }
 0x589   :  { %1683 = vrot.lane.b32.xlu1 %v1612_v18, %s7254_s24  ;;  %6162 = vmatprep.mubr.bf16.mxu0 %v2670_v20 }
 0x58b   :  { %1685 = vrot.lane.b32.xlu0 %v1615_v14, %s7254_s24 }
 0x590   :  { %6163 = vmatmul.mubr.bf16.gmra.mrb[60].mxu0 %v2671_v57 }
 0x598   :  { %v6064_v8 = vpop.f32.mrb[24].mxu1 }
 0x599   :  { %1159 = vst.msk [vmem:[#allocation2 + $0x50] sm:$0xff] %vm159_vm1, %v6064_v8  ;;  %v1118_v53 = vpop.f32.mrb[25].mxu1 }
 0x59a   :  { %1157 = vst.msk [vmem:[#allocation2 + $0x40] sm:$0xff] %vm159_vm1, %v1118_v53  ;;  %v6065_v4 = vpop.f32.mrb[26].mxu1 }
 0x59b   :  { %1160 = vst.msk [vmem:[#allocation2 + $0x58] sm:$0xff] %vm159_vm1, %v6065_v4  ;;  %v1121_v17 = vpop.f32.mrb[27].mxu1 }
 0x59c   :  { %1158 = vst.msk [vmem:[#allocation2 + $0x48] sm:$0xff] %vm159_vm1, %v1121_v17  ;;  %v6096_v49 = vpop.f32.mrb[40].mxu0 }
 0x59d   :  { %1695 = vrot.lane.b32.xlu1 %v6096_v49, %s7254_s24  ;;  %v1628_v54 = vpop.f32.mrb[41].mxu0 }
 0x59e   :  { %v6097_v1 = vpop.f32.mrb[42].mxu0 }
 0x59f   :  { %1697 = vrot.lane.b32.xlu0 %v6097_v1, %s7254_s24  ;;  %v1631_v30 = vpop.f32.mrb[43].mxu0  ;;  %v3222_v1 = vld [vmem:[%s11019_s7] sm:$0xff] }
 0x5a1   :  { %1691 = vrot.lane.b32.xlu1 %v1628_v54, %s7254_s24 }
 0x5a3   :  { %1693 = vrot.lane.b32.xlu0 %v1631_v30, %s7254_s24  ;;  %v3223_v30 = vld [vmem:[%s11019_s7 + $0x8] sm:$0xff] }
 0x5ac   :  { %v6068_v43 = vpop.f32.mrb[28].mxu1 }
 0x5ad   :  { %1163 = vst.msk [vmem:[#allocation2 + $0x70] sm:$0xff] %vm159_vm1, %v6068_v43  ;;  %v1134_v3 = vpop.f32.mrb[29].mxu1  ;;  %v6402_v43 = vpack.c.bf16 %v3223_v30, %v3222_v1  ;;  %v3027_v30 = vld [vmem:[#allocation11 + $0x10] sm:$0xff] }
 0x5ae   :  { %1161 = vst.msk [vmem:[#allocation2 + $0x60] sm:$0xff] %vm159_vm1, %v1134_v3  ;;  %v6069_v22 = vpop.f32.mrb[30].mxu1  ;;  %v3025_v3 = vld [vmem:[#allocation11] sm:$0xff] }
 0x5af   :  { %1164 = vst.msk [vmem:[#allocation2 + $0x78] sm:$0xff] %vm159_vm1, %v6069_v22  ;;  %v1137_v46 = vpop.f32.mrb[31].mxu1  ;;  %v3026_v22 = vld [vmem:[#allocation11 + $0x8] sm:$0xff]  ;;  %6403 = vmatprep.subr.bf16.mxu1 %v6402_v43 }
 0x5b0   :  { %1162 = vst.msk [vmem:[#allocation2 + $0x68] sm:$0xff] %vm159_vm1, %v1137_v46  ;;  %v6100_v60 = vpop.f32.mrb[44].mxu0  ;;  %v6394_v46 = vpack.c.bf16 %v3026_v22, %v3025_v3 }
 0x5b1   :  { %1703 = vrot.lane.b32.xlu1 %v6100_v60, %s7254_s24  ;;  %v1644_v29 = vpop.f32.mrb[45].mxu0 }
 0x5b2   :  { %v6101_v21 = vpop.f32.mrb[46].mxu0  ;;  %6395 = vmatprep.subr.bf16.mxu0 %v6394_v46 }
 0x5b3   :  { %1705 = vrot.lane.b32.xlu0 %v6101_v21, %s7254_s24  ;;  %v1647_v62 = vpop.f32.mrb[47].mxu0  ;;  %6397 = vmatpush3.bf16.msra.mxu0 %v6394_v46 }
 0x5b4   :  { %v1680_v16 = vpop.permute.xlu1 %1679 }
 0x5b5   :  { %1726 = vst.msk [vmem:[#allocation2 + $0x10] sm:$0xff] %vm11149_vm4, %v1680_v16  ;;  %1699 = vrot.lane.b32.xlu1 %v1644_v29, %s7254_s24 }
 0x5b6   :  { %v1682_v24 = vpop.permute.xlu0 %1681 }
 0x5b7   :  { %1727 = vst.msk [vmem:[#allocation2 + $0x18] sm:$0xff] %vm11149_vm4, %v1682_v24  ;;  %1701 = vrot.lane.b32.xlu0 %v1647_v62, %s7254_s24 }
 0x5b8   :  { %v1676_v61 = vpop.permute.xlu1 %1675 }
 0x5b9   :  { %1724 = vst.msk [vmem:[#allocation2] sm:$0xff] %vm11149_vm4, %v1676_v61 }
 0x5bc   :  { %v1678_v63 = vpop.permute.xlu1 %1677 }
 0x5bd   :  { %1725 = vst.msk [vmem:[#allocation2 + $0x8] sm:$0xff] %vm11149_vm4, %v1678_v63 }
 0x5f7   :  { %v1688_v31 = vpop.permute.xlu1 %1687 }
 0x5f8   :  { %1730 = vst.msk [vmem:[#allocation2 + $0x30] sm:$0xff] %vm11149_vm4, %v1688_v31 }
 0x5f9   :  { %v1690_v13 = vpop.permute.xlu0 %1689 }
 0x5fa   :  { %1731 = vst.msk [vmem:[#allocation2 + $0x38] sm:$0xff] %vm11149_vm4, %v1690_v13 }
 0x5fb   :  { %v1684_v9 = vpop.permute.xlu1 %1683 }
 0x5fc   :  { %1728 = vst.msk [vmem:[#allocation2 + $0x20] sm:$0xff] %vm11149_vm4, %v1684_v9 }
 0x5fd   :  { %v1686_v23 = vpop.permute.xlu0 %1685 }
 0x5fe   :  { %1729 = vst.msk [vmem:[#allocation2 + $0x28] sm:$0xff] %vm11149_vm4, %v1686_v23 }
 0x60f   :  { %v1696_v51 = vpop.permute.xlu1 %1695 }
 0x610   :  { %1734 = vst.msk [vmem:[#allocation2 + $0x50] sm:$0xff] %vm11149_vm4, %v1696_v51  ;;  %v3224_v51 = vld [vmem:[%s11019_s7 + $0x10] sm:$0xff] }
 0x611   :  { %v1698_v47 = vpop.permute.xlu0 %1697 }
 0x612   :  { %1735 = vst.msk [vmem:[#allocation2 + $0x58] sm:$0xff] %vm11149_vm4, %v1698_v47  ;;  %v3225_v47 = vld [vmem:[%s11019_s7 + $0x18] sm:$0xff] }
 0x613   :  { %v1692_v52 = vpop.permute.xlu1 %1691 }
 0x614   :  { %1732 = vst.msk [vmem:[#allocation2 + $0x40] sm:$0xff] %vm11149_vm4, %v1692_v52 }
 0x615   :  { %v1694_v28 = vpop.permute.xlu0 %1693 }
 0x616   :  { %1733 = vst.msk [vmem:[#allocation2 + $0x48] sm:$0xff] %vm11149_vm4, %v1694_v28 }
 0x623   :  { %v6120_v27 = vpop.f32.mrb[32].mxu1  ;;  %v1704_v34 = vpop.permute.xlu1 %1703 }
 0x624   :  { %2246 = vrot.lane.b32.xlu1 %v6120_v27, %s7266_s6  ;;  %v2163_v6 = vpop.f32.mrb[33].mxu1  ;;  %1738 = vst.msk [vmem:[#allocation2 + $0x70] sm:$0xff] %vm11149_vm4, %v1704_v34  ;;  %v6406_v34 = vpack.c.bf16 %v3225_v47, %v3224_v51 }
 0x625   :  { %v6121_v56 = vpop.f32.mrb[34].mxu1  ;;  %v1706_v44 = vpop.permute.xlu0 %1705 }
 0x626   :  { %2248 = vrot.lane.b32.xlu0 %v6121_v56, %s7266_s6  ;;  %v2166_v35 = vpop.f32.mrb[35].mxu1  ;;  %1739 = vst.msk [vmem:[#allocation2 + $0x78] sm:$0xff] %vm11149_vm4, %v1706_v44 }
 0x627   :  { %v1700_v40 = vpop.permute.xlu1 %1699 }
 0x628   :  { %1736 = vst.msk [vmem:[#allocation2 + $0x60] sm:$0xff] %vm11149_vm4, %v1700_v40 }
 0x629   :  { %v1702_v33 = vpop.permute.xlu0 %1701 }
 0x62a   :  { %1737 = vst.msk [vmem:[#allocation2 + $0x68] sm:$0xff] %vm11149_vm4, %v1702_v33 }
 0x62b   :  { %v6124_v7 = vpop.f32.mrb[36].mxu1 }
 0x62c   :  { %v2179_v41 = vpop.f32.mrb[37].mxu1 }
 0x62d   :  { %v6125_v32 = vpop.f32.mrb[38].mxu1 }
 0x62e   :  { %v2182_v58 = vpop.f32.mrb[39].mxu1 }
 0x633   :  { %v6128_v55 = vpop.f32.mrb[40].mxu1 }
 0x634   :  { %v2195_v19 = vpop.f32.mrb[41].mxu1 }
 0x635   :  { %v6129_v42 = vpop.f32.mrb[42].mxu1 }
 0x636   :  { %v2198_v36 = vpop.f32.mrb[43].mxu1 }
 0x64b   :  { %v6152_v37 = vpop.f32.mrb[48].mxu0 }
 0x64c   :  { %v2730_v5 = vpop.f32.mrb[49].mxu0  ;;  %2813 = vrot.lane.b32.xlu1 %v6152_v37, %s7267_s16 }
 0x64d   :  { %v6153_v15 = vpop.f32.mrb[50].mxu0 }
 0x64e   :  { %v2733_v12 = vpop.f32.mrb[51].mxu0  ;;  %2815 = vrot.lane.b32.xlu0 %v6153_v15, %s7267_s16 }
 0x650   :  { %2242 = vrot.lane.b32.xlu1 %v2163_v6, %s7266_s6 }
 0x652   :  { %2244 = vrot.lane.b32.xlu0 %v2166_v35, %s7266_s6 }
 0x653   :  { %v6132_v50 = vpop.f32.mrb[44].mxu1  ;;  %v6156_v45 = vpop.f32.mrb[52].mxu0 }
 0x654   :  { %v2746_v59 = vpop.f32.mrb[53].mxu0  ;;  %2809 = vrot.lane.b32.xlu1 %v2730_v5, %s7267_s16  ;;  %v2211_v26 = vpop.f32.mrb[45].mxu1 }
 0x655   :  { %v6133_v18 = vpop.f32.mrb[46].mxu1  ;;  %v6157_v11 = vpop.f32.mrb[54].mxu0 }
 0x656   :  { %v2749_v10 = vpop.f32.mrb[55].mxu0  ;;  %2811 = vrot.lane.b32.xlu0 %v2733_v12, %s7267_s16  ;;  %v2214_v14 = vpop.f32.mrb[47].mxu1 }
 0x658   :  { %2254 = vrot.lane.b32.xlu1 %v6124_v7, %s7266_s6 }
 0x65a   :  { %2256 = vrot.lane.b32.xlu0 %v6125_v32, %s7266_s6 }
 0x65b   :  { %v6160_v20 = vpop.f32.mrb[56].mxu0 }
 0x65c   :  { %v2762_v57 = vpop.f32.mrb[57].mxu0  ;;  %2821 = vrot.lane.b32.xlu1 %v6156_v45, %s7267_s16 }
 0x65d   :  { %v6161_v8 = vpop.f32.mrb[58].mxu0 }
 0x65e   :  { %v2765_v53 = vpop.f32.mrb[59].mxu0  ;;  %2823 = vrot.lane.b32.xlu0 %v6157_v11, %s7267_s16 }
 0x660   :  { %2250 = vrot.lane.b32.xlu1 %v2179_v41, %s7266_s6 }
 0x662   :  { %2252 = vrot.lane.b32.xlu0 %v2182_v58, %s7266_s6 }
 0x663   :  { %v6164_v4 = vpop.f32.mrb[60].mxu0 }
 0x664   :  { %v2778_v17 = vpop.f32.mrb[61].mxu0  ;;  %2817 = vrot.lane.b32.xlu1 %v2746_v59, %s7267_s16 }
 0x665   :  { %v6165_v49 = vpop.f32.mrb[62].mxu0 }
 0x666   :  { %v2781_v54 = vpop.f32.mrb[63].mxu0  ;;  %2819 = vrot.lane.b32.xlu0 %v2749_v10, %s7267_s16 }
 0x668   :  { %2262 = vrot.lane.b32.xlu1 %v6128_v55, %s7266_s6 }
 0x66a   :  { %2264 = vrot.lane.b32.xlu0 %v6129_v42, %s7266_s6 }
 0x66c   :  { %2829 = vrot.lane.b32.xlu1 %v6160_v20, %s7267_s16 }
 0x66e   :  { %2831 = vrot.lane.b32.xlu0 %v6161_v8, %s7267_s16 }
 0x670   :  { %2258 = vrot.lane.b32.xlu1 %v2195_v19, %s7266_s6 }
 0x672   :  { %2260 = vrot.lane.b32.xlu0 %v2198_v36, %s7266_s6 }
 0x674   :  { %2825 = vrot.lane.b32.xlu1 %v2762_v57, %s7267_s16 }
 0x676   :  { %2827 = vrot.lane.b32.xlu0 %v2765_v53, %s7267_s16 }
 0x678   :  { %2270 = vrot.lane.b32.xlu1 %v6132_v50, %s7266_s6 }
 0x67a   :  { %2272 = vrot.lane.b32.xlu0 %v6133_v18, %s7266_s6 }
 0x67c   :  { %2266 = vrot.lane.b32.xlu1 %v2211_v26, %s7266_s6 }
 0x67e   :  { %2268 = vrot.lane.b32.xlu0 %v2214_v14, %s7266_s6 }
 0x680   :  { %2833 = vrot.lane.b32.xlu1 %v2778_v17, %s7267_s16 }
 0x682   :  { %2835 = vrot.lane.b32.xlu0 %v2781_v54, %s7267_s16 }
 0x684   :  { %2837 = vrot.lane.b32.xlu1 %v6164_v4, %s7267_s16 }
 0x686   :  { %2839 = vrot.lane.b32.xlu0 %v6165_v49, %s7267_s16 }
 0x696   :  { %v2247_v60 = vpop.permute.xlu1 %2246 }
 0x697   :  { %2293 = vst.msk [vmem:[#allocation2 + $0x10] sm:$0xff] %vm11147_vm9, %v2247_v60 }
 0x698   :  { %v2249_v29 = vpop.permute.xlu0 %2248 }
 0x699   :  { %2294 = vst.msk [vmem:[#allocation2 + $0x18] sm:$0xff] %vm11147_vm9, %v2249_v29 }
 0x6be   :  { %v2814_v21 = vpop.permute.xlu1 %2813 }
 0x6bf   :  { %2860 = vst.msk [vmem:[#allocation2 + $0x10] sm:$0xff] %vm11144_vm10, %v2814_v21 }
 0x6c0   :  { %v2816_v62 = vpop.permute.xlu0 %2815 }
 0x6c1   :  { %2861 = vst.msk [vmem:[#allocation2 + $0x18] sm:$0xff] %vm11144_vm10, %v2816_v62 }
 0x6c2   :  { %v2243_v16 = vpop.permute.xlu1 %2242 }
 0x6c3   :  { %2291 = vst.msk [vmem:[#allocation2] sm:$0xff] %vm11147_vm9, %v2243_v16 }
 0x6c4   :  { %v2245_v24 = vpop.permute.xlu0 %2244 }
 0x6c5   :  { %2292 = vst.msk [vmem:[#allocation2 + $0x8] sm:$0xff] %vm11147_vm9, %v2245_v24 }
 0x6c6   :  { %v2810_v61 = vpop.permute.xlu1 %2809  ;;  %v2876_v0 = vld [vmem:[#allocation2 + $0x10] sm:$0xff] }
 0x6c7   :  { %2858 = vst.msk [vmem:[#allocation2] sm:$0xff] %vm11144_vm10, %v2810_v61 }
 0x6c8   :  { %v2812_v63 = vpop.permute.xlu0 %2811  ;;  %v2877_v23 = vld [vmem:[#allocation2 + $0x18] sm:$0xff] }
 0x6c9   :  { %2859 = vst.msk [vmem:[#allocation2 + $0x8] sm:$0xff] %vm11144_vm10, %v2812_v63  ;;  %v2891_v6 = vpack.c.bf16 %v2877_v23, %v2876_v0 }
 0x6ca   :  { %v2255_v31 = vpop.permute.xlu1 %2254 }
 0x6cb   :  { %2297 = vst.msk [vmem:[#allocation2 + $0x30] sm:$0xff] %vm11147_vm9, %v2255_v31 }
 0x6cc   :  { %v2257_v13 = vpop.permute.xlu0 %2256 }
 0x6cd   :  { %2298 = vst.msk [vmem:[#allocation2 + $0x38] sm:$0xff] %vm11147_vm9, %v2257_v13 }
 0x6ce   :  { %v2822_v9 = vpop.permute.xlu1 %2821  ;;  %v2874_v28 = vld [vmem:[#allocation2] sm:$0xff] }
 0x6cf   :  { %2864 = vst.msk [vmem:[#allocation2 + $0x30] sm:$0xff] %vm11144_vm10, %v2822_v9 }
 0x6d0   :  { %v2824_v52 = vpop.permute.xlu0 %2823  ;;  %v2875_v25 = vld [vmem:[#allocation2 + $0x8] sm:$0xff] }
 0x6d1   :  { %2865 = vst.msk [vmem:[#allocation2 + $0x38] sm:$0xff] %vm11144_vm10, %v2824_v52  ;;  %v2890_v38 = vpack.c.bf16 %v2875_v25, %v2874_v28 }
 0x6d2   :  { %v2251_v27 = vpop.permute.xlu1 %2250 }
 0x6d3   :  { %2295 = vst.msk [vmem:[#allocation2 + $0x20] sm:$0xff] %vm11147_vm9, %v2251_v27  ;;  %6170 = vmatprep.mubr.msk.bf16.mxu1 %vm289_vm2, %v2890_v38 }
 0x6d4   :  { %v2253_v56 = vpop.permute.xlu0 %2252  ;;  %6171 = vmatmul.mubr.msk.bf16.vlgmr.msra.gmra.mrb[48].mxu1 %vm289_vm2, %v2891_v6 }
 0x6d5   :  { %2296 = vst.msk [vmem:[#allocation2 + $0x28] sm:$0xff] %vm11147_vm9, %v2253_v56  ;;  %6405 = vmatpush3.bf16.msra.mxu1 %v6402_v43  ;;  %v3028_v43 = vld [vmem:[#allocation11 + $0x18] sm:$0xff] }
 0x6d6   :  { %v2818_v44 = vpop.permute.xlu1 %2817  ;;  %6407 = vmatprep.subr.bf16.mxu1 %v6406_v34  ;;  %v2880_v42 = vld [vmem:[#allocation2 + $0x30] sm:$0xff]  ;;  %v6398_v3 = vpack.c.bf16 %v3028_v43, %v3027_v30 }
 0x6d7   :  { %2862 = vst.msk [vmem:[#allocation2 + $0x20] sm:$0xff] %vm11144_vm10, %v2818_v44 }
 0x6d8   :  { %v2820_v35 = vpop.permute.xlu0 %2819  ;;  %v2881_v41 = vld [vmem:[#allocation2 + $0x38] sm:$0xff]  ;;  %6399 = vmatprep.subr.bf16.mxu0 %v6398_v3 }
 0x6d9   :  { %2863 = vst.msk [vmem:[#allocation2 + $0x28] sm:$0xff] %vm11144_vm10, %v2820_v35  ;;  %6409 = vmatpush3.bf16.msra.mxu1 %v6406_v34  ;;  %v2893_v39 = vpack.c.bf16 %v2881_v41, %v2880_v42  ;;  %6401 = vmatpush3.bf16.msra.mxu0 %v6398_v3 }
 0x6da   :  { %v2263_v40 = vpop.permute.xlu1 %2262 }
 0x6db   :  { %2301 = vst.msk [vmem:[#allocation2 + $0x50] sm:$0xff] %vm11147_vm9, %v2263_v40 }
 0x6dc   :  { %v2265_v33 = vpop.permute.xlu0 %2264 }
 0x6dd   :  { %2302 = vst.msk [vmem:[#allocation2 + $0x58] sm:$0xff] %vm11147_vm9, %v2265_v33 }
 0x6de   :  { %v2830_v7 = vpop.permute.xlu1 %2829  ;;  %v2878_v58 = vld [vmem:[#allocation2 + $0x20] sm:$0xff] }
 0x6df   :  { %2868 = vst.msk [vmem:[#allocation2 + $0x50] sm:$0xff] %vm11144_vm10, %v2830_v7 }
 0x6e0   :  { %v2832_v32 = vpop.permute.xlu0 %2831  ;;  %v2879_v55 = vld [vmem:[#allocation2 + $0x28] sm:$0xff] }
 0x6e1   :  { %2869 = vst.msk [vmem:[#allocation2 + $0x58] sm:$0xff] %vm11144_vm10, %v2832_v32  ;;  %v2892_v19 = vpack.c.bf16 %v2879_v55, %v2878_v58 }
 0x6e2   :  { %v2259_v36 = vpop.permute.xlu1 %2258 }
 0x6e3   :  { %2299 = vst.msk [vmem:[#allocation2 + $0x40] sm:$0xff] %vm11147_vm9, %v2259_v36  ;;  %6174 = vmatprep.mubr.msk.bf16.mxu1 %vm289_vm2, %v2892_v19 }
 0x6e4   :  { %v2261_v48 = vpop.permute.xlu0 %2260  ;;  %6175 = vmatmul.mubr.msk.bf16.gmra.mrb[52].mxu1 %vm289_vm2, %v2893_v39 }
 0x6e5   :  { %2300 = vst.msk [vmem:[#allocation2 + $0x48] sm:$0xff] %vm11147_vm9, %v2261_v48 }
 0x6e6   :  { %v2826_v2 = vpop.permute.xlu1 %2825  ;;  %v2884_v11 = vld [vmem:[#allocation2 + $0x50] sm:$0xff] }
 0x6e7   :  { %2866 = vst.msk [vmem:[#allocation2 + $0x40] sm:$0xff] %vm11144_vm10, %v2826_v2 }
 0x6e8   :  { %v2828_v37 = vpop.permute.xlu0 %2827  ;;  %v2885_v50 = vld [vmem:[#allocation2 + $0x58] sm:$0xff] }
 0x6e9   :  { %2867 = vst.msk [vmem:[#allocation2 + $0x48] sm:$0xff] %vm11144_vm10, %v2828_v37  ;;  %v2895_v14 = vpack.c.bf16 %v2885_v50, %v2884_v11 }
 0x6ea   :  { %v2271_v5 = vpop.permute.xlu1 %2270 }
 0x6eb   :  { %2305 = vst.msk [vmem:[#allocation2 + $0x70] sm:$0xff] %vm11147_vm9, %v2271_v5 }
 0x6ec   :  { %v2273_v15 = vpop.permute.xlu0 %2272 }
 0x6ed   :  { %2306 = vst.msk [vmem:[#allocation2 + $0x78] sm:$0xff] %vm11147_vm9, %v2273_v15 }
 0x6ee   :  { %v2267_v12 = vpop.permute.xlu1 %2266  ;;  %v2882_v59 = vld [vmem:[#allocation2 + $0x40] sm:$0xff] }
 0x6ef   :  { %2303 = vst.msk [vmem:[#allocation2 + $0x60] sm:$0xff] %vm11147_vm9, %v2267_v12 }
 0x6f0   :  { %v2269_v45 = vpop.permute.xlu0 %2268  ;;  %v2883_v26 = vld [vmem:[#allocation2 + $0x48] sm:$0xff] }
 0x6f1   :  { %2304 = vst.msk [vmem:[#allocation2 + $0x68] sm:$0xff] %vm11147_vm9, %v2269_v45  ;;  %v2894_v18 = vpack.c.bf16 %v2883_v26, %v2882_v59 }
 0x6f2   :  { %v2834_v10 = vpop.permute.xlu1 %2833 }
 0x6f3   :  { %2870 = vst.msk [vmem:[#allocation2 + $0x60] sm:$0xff] %vm11144_vm10, %v2834_v10  ;;  %6178 = vmatprep.mubr.msk.bf16.mxu1 %vm289_vm2, %v2894_v18  ;;  %v11346_v10 = vmov 0  }
 0x6f4   :  { %v2836_v20 = vpop.permute.xlu0 %2835  ;;  %6179 = vmatmul.mubr.msk.bf16.gmra.mrb[56].mxu1 %vm289_vm2, %v2895_v14  ;;  %v11347_v14 = vmov 2  }
 0x6f5   :  { %2871 = vst.msk [vmem:[#allocation2 + $0x68] sm:$0xff] %vm11144_vm10, %v2836_v20 }
 0x6f6   :  { %v2838_v57 = vpop.permute.xlu1 %2837 }
 0x6f7   :  { %2872 = vst.msk [vmem:[#allocation2 + $0x70] sm:$0xff] %vm11144_vm10, %v2838_v57 }
 0x6f8   :  { %v2840_v8 = vpop.permute.xlu0 %2839 }
 0x6f9   :  { %2873 = vst.msk [vmem:[#allocation2 + $0x78] sm:$0xff] %vm11144_vm10, %v2840_v8  ;;  %v11348_v8 = vmov 3  }
 0x6fa   :  { %v2886_v53 = vld [vmem:[#allocation2 + $0x60] sm:$0xff] }
 0x6fc   :  { %v2887_v4 = vld [vmem:[#allocation2 + $0x68] sm:$0xff] }
 0x6fd   :  { %v2896_v17 = vpack.c.bf16 %v2887_v4, %v2886_v53  ;;  %v11349_v53 = vmov 1  }
 0x6fe   :  { %v2888_v49 = vld [vmem:[#allocation2 + $0x70] sm:$0xff] }
 0x6ff   :  { %6182 = vmatprep.mubr.msk.bf16.mxu1 %vm289_vm2, %v2896_v17 }
 0x700   :  { %v2889_v54 = vld [vmem:[#allocation2 + $0x78] sm:$0xff] }
 0x701   :  { %v2897_v1 = vpack.c.bf16 %v2889_v54, %v2888_v49 }
 0x703   :  { %6183 = vmatmul.mubr.msk.bf16.gmra.mrb[60].mxu1 %vm289_vm2, %v2897_v1 }
 0x7a7   :  { %v6172_v22 = vpop.f32.mrb[48].mxu1 }
 0x7a8   :  { %v2962_v46 = vpop.f32.mrb[49].mxu1 }
 0x7a9   :  { %v6173_v60 = vpop.f32.mrb[50].mxu1  ;;  %6194 = vmatprep.mubr.msk.f32.mxu0 %vm289_vm2, %v2962_v46  ;;  %6226 = vmatprep.mubr.msk.f32.mxu1 %vm289_vm2, %v2962_v46 }
 0x7aa   :  { %v3404_v29 = vpack.c.bf16 %v6173_v60, %v6172_v22  ;;  %v2965_v21 = vpop.f32.mrb[51].mxu1 }
 0x7ab   :  { %v3403_v62 = vpack.c.bf16 %v2965_v21, %v2962_v46  ;;  %6195 = vmatmul.mubr.msk.f32.vlgmr.msra.gmra.mrb[64].mxu0 %vm289_vm2, %v2965_v21  ;;  %6227 = vmatmul.mubr.msk.f32.vlgmr.msra.gmra.mrb[64].mxu1 %vm289_vm2, %v2965_v21 }
 0x7ac   :  { %4279 = vrot.lane.b32.xlu0 %v3404_v29, %s7259_s0  ;;  %6197 = vmatprep.mubr.msk.f32.mxu0 %vm289_vm2, %v6172_v22 }
 0x7ad   :  { %6229 = vmatprep.mubr.msk.f32.mxu1 %vm289_vm2, %v6172_v22  ;;  %5409 = vrot.lane.b32.xlu1 %v3403_v62, %s7261_s2 }
 0x7ae   :  { %6250 = vmatprep.subr.bf16.mxu0 %v3403_v62 }
 0x7af   :  { %6251 = vmatpush3.bf16.msra.mxu0 %v3403_v62  ;;  %6230 = vmatmul.mubr.msk.f32.gmra.mrb[66].mxu1 %vm289_vm2, %v6173_v60 }
 0x7b0   :  { %6198 = vmatmul.mubr.msk.f32.gmra.mrb[66].mxu0 %vm289_vm2, %v6173_v60  ;;  %6252 = vmatprep.subr.bf16.mxu0 %v3404_v29 }
 0x7b1   :  { %4845 = vrot.lane.b32.xlu0 %v3404_v29, %s7260_s21 }
 0x7b3   :  { %6253 = vmatpush3.bf16.msra.mxu0 %v3404_v29 }
 0x7b5   :  { %5411 = vrot.lane.b32.xlu0 %v3404_v29, %s7261_s2 }
 0x7b7   :  { %v6176_v16 = vpop.f32.mrb[52].mxu1 }
 0x7b8   :  { %v2978_v24 = vpop.f32.mrb[53].mxu1 }
 0x7b9   :  { %4277 = vrot.lane.b32.xlu0 %v3403_v62, %s7259_s0  ;;  %v6177_v61 = vpop.f32.mrb[54].mxu1  ;;  %6200 = vmatprep.mubr.msk.f32.mxu0 %vm289_vm2, %v2978_v24 }
 0x7ba   :  { %v3406_v63 = vpack.c.bf16 %v6177_v61, %v6176_v16  ;;  %6232 = vmatprep.mubr.msk.f32.mxu1 %vm289_vm2, %v2978_v24  ;;  %v2981_v31 = vpop.f32.mrb[55].mxu1 }
 0x7bb   :  { %v3405_v13 = vpack.c.bf16 %v2981_v31, %v2978_v24  ;;  %6201 = vmatmul.mubr.msk.f32.gmra.mrb[68].mxu0 %vm289_vm2, %v2981_v31  ;;  %6233 = vmatmul.mubr.msk.f32.gmra.mrb[68].mxu1 %vm289_vm2, %v2981_v31 }
 0x7bc   :  { %5415 = vrot.lane.b32.xlu1 %v3406_v63, %s7261_s2  ;;  %6203 = vmatprep.mubr.msk.f32.mxu0 %vm289_vm2, %v6176_v16 }
 0x7bd   :  { %4843 = vrot.lane.b32.xlu0 %v3403_v62, %s7260_s21  ;;  %6235 = vmatprep.mubr.msk.f32.mxu1 %vm289_vm2, %v6176_v16 }
 0x7be   :  { %6254 = vmatprep.subr.bf16.mxu0 %v3405_v13 }
 0x7bf   :  { %6255 = vmatpush3.bf16.msra.mxu0 %v3405_v13  ;;  %6236 = vmatmul.mubr.msk.f32.gmra.mrb[70].mxu1 %vm289_vm2, %v6177_v61 }
 0x7c0   :  { %6204 = vmatmul.mubr.msk.f32.gmra.mrb[70].mxu0 %vm289_vm2, %v6177_v61  ;;  %6256 = vmatprep.subr.bf16.mxu0 %v3406_v63 }
 0x7c1   :  { %4283 = vrot.lane.b32.xlu0 %v3406_v63, %s7259_s0  ;;  %4281 = vrot.lane.b32.xlu1 %v3405_v13, %s7259_s0 }
 0x7c3   :  { %6257 = vmatpush3.bf16.msra.mxu0 %v3406_v63 }
 0x7c5   :  { %4849 = vrot.lane.b32.xlu0 %v3406_v63, %s7260_s21  ;;  %5413 = vrot.lane.b32.xlu1 %v3405_v13, %s7261_s2 }
 0x7c7   :  { %v6180_v9 = vpop.f32.mrb[56].mxu1 }
 0x7c8   :  { %v2994_v23 = vpop.f32.mrb[57].mxu1 }
 0x7c9   :  { %4847 = vrot.lane.b32.xlu0 %v3405_v13, %s7260_s21  ;;  %v6181_v51 = vpop.f32.mrb[58].mxu1  ;;  %6206 = vmatprep.mubr.msk.f32.mxu0 %vm289_vm2, %v2994_v23 }
 0x7ca   :  { %v3408_v47 = vpack.c.bf16 %v6181_v51, %v6180_v9  ;;  %6238 = vmatprep.mubr.msk.f32.mxu1 %vm289_vm2, %v2994_v23  ;;  %v2997_v52 = vpop.f32.mrb[59].mxu1 }
 0x7cb   :  { %v3407_v28 = vpack.c.bf16 %v2997_v52, %v2994_v23  ;;  %6207 = vmatmul.mubr.msk.f32.gmra.mrb[72].mxu0 %vm289_vm2, %v2997_v52  ;;  %6239 = vmatmul.mubr.msk.f32.gmra.mrb[72].mxu1 %vm289_vm2, %v2997_v52 }
 0x7cc   :  { %4287 = vrot.lane.b32.xlu1 %v3408_v47, %s7259_s0  ;;  %6209 = vmatprep.mubr.msk.f32.mxu0 %vm289_vm2, %v6180_v9 }
 0x7cd   :  { %4853 = vrot.lane.b32.xlu0 %v3408_v47, %s7260_s21  ;;  %6241 = vmatprep.mubr.msk.f32.mxu1 %vm289_vm2, %v6180_v9 }
 0x7ce   :  { %6258 = vmatprep.subr.bf16.mxu0 %v3407_v28 }
 0x7cf   :  { %6259 = vmatpush3.bf16.msra.mxu0 %v3407_v28  ;;  %6242 = vmatmul.mubr.msk.f32.gmra.mrb[74].mxu1 %vm289_vm2, %v6181_v51 }
 0x7d0   :  { %6210 = vmatmul.mubr.msk.f32.gmra.mrb[74].mxu0 %vm289_vm2, %v6181_v51  ;;  %6260 = vmatprep.subr.bf16.mxu0 %v3408_v47 }
 0x7d1   :  { %5419 = vrot.lane.b32.xlu1 %v3408_v47, %s7261_s2  ;;  %4851 = vrot.lane.b32.xlu0 %v3407_v28, %s7260_s21 }
 0x7d3   :  { %6261 = vmatpush3.bf16.msra.mxu0 %v3408_v47 }
 0x7d5   :  { %5417 = vrot.lane.b32.xlu0 %v3407_v28, %s7261_s2  ;;  %4285 = vrot.lane.b32.xlu1 %v3407_v28, %s7259_s0 }
 0x7d6   :  { %v6184_v25 = vpop.f32.mrb[60].mxu1 }
 0x7d7   :  { %v3010_v38 = vpop.f32.mrb[61].mxu1 }
 0x7d8   :  { %v6185_v0 = vpop.f32.mrb[62].mxu1  ;;  %6212 = vmatprep.mubr.msk.f32.mxu0 %vm289_vm2, %v3010_v38  ;;  %6244 = vmatprep.mubr.msk.f32.mxu1 %vm289_vm2, %v3010_v38 }
 0x7d9   :  { %v9312_v27 = vpack.c.bf16 %v6185_v0, %v6184_v25  ;;  %v3013_v6 = vpop.f32.mrb[63].mxu1 }
 0x7da   :  { %v3409_v34 = vpack.c.bf16 %v3013_v6, %v3010_v38  ;;  %6213 = vmatmul.mubr.msk.f32.gmra.mrb[76].mxu0 %vm289_vm2, %v3013_v6  ;;  %6245 = vmatmul.mubr.msk.f32.gmra.mrb[76].mxu1 %vm289_vm2, %v3013_v6 }
 0x7db   :  { %11333 = vst [vmem:[#allocation78_spill] sm:$0xff] %v9312_v27  ;;  %4291 = vrot.lane.b32.xlu1 %v9312_v27, %s7259_s0  ;;  %6215 = vmatprep.mubr.msk.f32.mxu0 %vm289_vm2, %v6184_v25 }
 0x7dc   :  { %6247 = vmatprep.mubr.msk.f32.mxu1 %vm289_vm2, %v6184_v25  ;;  %4289 = vrot.lane.b32.xlu0 %v3409_v34, %s7259_s0 }
 0x7dd   :  { %6262 = vmatprep.subr.bf16.mxu0 %v3409_v34 }
 0x7de   :  { %6263 = vmatpush3.bf16.msra.mxu0 %v3409_v34  ;;  %6248 = vmatmul.mubr.msk.f32.gmra.mrb[78].mxu1 %vm289_vm2, %v6185_v0 }
 0x7df   :  { %6216 = vmatmul.mubr.msk.f32.gmra.mrb[78].mxu0 %vm289_vm2, %v6185_v0  ;;  %6264 = vmatprep.subr.bf16.mxu0 %v9312_v27 }
 0x7e0   :  { %4855 = vrot.lane.b32.xlu0 %v3409_v34, %s7260_s21 }
 0x7e2   :  { %6265 = vmatpush3.bf16.msra.mxu0 %v9312_v27 }
 0x7e4   :  { %5421 = vrot.lane.b32.xlu0 %v3409_v34, %s7261_s2 }
 0x81e   :  { %v4280_v56 = vpop.permute.xlu0 %4279 }
 0x81f   :  { %v9331_v40 = vpop.permute.xlu1 %5409 }
 0x820   :  { %11336 = vst [vmem:[#allocation55_spill] sm:$0xff] %v9331_v40 }
 0x823   :  { %v9327_v44 = vpop.permute.xlu0 %4845 }
 0x824   :  { %11334 = vst [vmem:[#allocation63_spill] sm:$0xff] %v9327_v44 }
 0x827   :  { %v9329_v35 = vpop.permute.xlu0 %5411 }
 0x828   :  { %11335 = vst [vmem:[#allocation69_spill] sm:$0xff] %v9329_v35 }
 0x82b   :  { %v4278_v33 = vpop.permute.xlu0 %4277 }
 0x82c   :  { %6282 = vmatprep.subr.bf16.mxu1 %v4278_v33 }
 0x82d   :  { %6283 = vmatpush3.bf16.msra.mxu1 %v4278_v33 }
 0x82e   :  { %6284 = vmatprep.subr.bf16.mxu1 %v4280_v56  ;;  %v9333_v7 = vpop.permute.xlu1 %5415 }
 0x82f   :  { %11337 = vst [vmem:[#allocation67_spill] sm:$0xff] %v9333_v7  ;;  %v9335_v41 = vpop.permute.xlu0 %4843 }
 0x830   :  { %11338 = vst [vmem:[#allocation51_spill] sm:$0xff] %v9335_v41  ;;  %6314 = vmatprep.subr.bf16.mxu0 %v9335_v41 }
 0x831   :  { %6285 = vmatpush3.bf16.msra.mxu1 %v4280_v56 }
 0x833   :  { %v4284_v32 = vpop.permute.xlu0 %4283  ;;  %v4282_v58 = vpop.permute.xlu1 %4281 }
 0x834   :  { %6286 = vmatprep.subr.bf16.mxu1 %v4282_v58 }
 0x835   :  { %6287 = vmatpush3.bf16.msra.mxu1 %v4282_v58 }
 0x836   :  { %6288 = vmatprep.subr.bf16.mxu1 %v4284_v32 }
 0x837   :  { %v9338_v55 = vpop.permute.xlu0 %4849  ;;  %v9340_v19 = vpop.permute.xlu1 %5413 }
 0x838   :  { %11339 = vst [vmem:[#allocation71_spill] sm:$0xff] %v9338_v55  ;;  %11340 = vst [vmem:[#allocation22_spill] sm:$0xff] %v9340_v19 }
 0x839   :  { %6289 = vmatpush3.bf16.msra.mxu1 %v4284_v32 }
 0x83b   :  { %v9342_v42 = vpop.permute.xlu0 %4847 }
 0x83c   :  { %11341 = vst [vmem:[#allocation49_spill] sm:$0xff] %v9342_v42 }
 0x83e   :  { %v4288_v36 = vpop.permute.xlu1 %4287 }
 0x83f   :  { %v9344_v39 = vpop.permute.xlu0 %4853 }
 0x840   :  { %11342 = vst [vmem:[#allocation79_spill] sm:$0xff] %v9344_v39 }
 0x843   :  { %v9346_v48 = vpop.permute.xlu1 %5419  ;;  %v9348_v2 = vpop.permute.xlu0 %4851 }
 0x844   :  { %11343 = vst [vmem:[#allocation26_spill] sm:$0xff] %v9346_v48  ;;  %11344 = vst [vmem:[#allocation27_spill] sm:$0xff] %v9348_v2 }
 0x847   :  { %v4286_v37 = vpop.permute.xlu1 %4285  ;;  %v9350_v5 = vpop.permute.xlu0 %5417 }
 0x848   :  { %6290 = vmatprep.subr.bf16.mxu1 %v4286_v37  ;;  %11345 = vst [vmem:[#allocation29_spill] sm:$0xff] %v9350_v5 }
 0x849   :  { %6291 = vmatpush3.bf16.msra.mxu1 %v4286_v37 }
 0x84a   :  { %6292 = vmatprep.subr.bf16.mxu1 %v4288_v36 }
 0x84d   :  { %6293 = vmatpush3.bf16.msra.mxu1 %v4288_v36  ;;  %v4292_v12 = vpop.permute.xlu1 %4291 }
 0x84e   :  { %v4290_v15 = vpop.permute.xlu0 %4289 }
 0x84f   :  { %6294 = vmatprep.subr.bf16.mxu1 %v4290_v15 }
 0x851   :  { %6295 = vmatpush3.bf16.msra.mxu1 %v4290_v15 }
 0x852   :  { %6296 = vmatprep.subr.bf16.mxu1 %v4292_v12  ;;  %v9491_v0 = vpop.permute.xlu0 %4855 }
 0x853   :  { %11350 = vst [vmem:[#allocation21_spill] sm:$0xff] %v9491_v0 }
 0x855   :  { %6297 = vmatpush3.bf16.msra.mxu1 %v4292_v12 }
 0x856   :  { %6346 = vmatprep.subr.bf16.mxu1 %v9331_v40  ;;  %v9499_v34 = vpop.permute.xlu0 %5421 }
 0x857   :  { %11351 = vst [vmem:[#allocation24_spill] sm:$0xff] %v9499_v34 }
 0x87e   :  { %v9353_v50 = vpop.f32.mrb[64].mxu0  ;;  %v6228_v45 = vpop.f32.mrb[64].mxu1 }
 0x87f   :  { %v9355_v59 = vpop.f32.mrb[65].mxu0  ;;  %3909 = vperm.xlu1 %6491, %v6228_v45   ;;  %3418 = vperm.xlu0 %6490, %v6228_v45   ;;  %v3292_v26 = vpop.f32.mrb[65].mxu1 }
 0x882   :  { %v6231_v18 = vpop.f32.mrb[66].mxu1 }
 0x883   :  { %v9357_v11 = vpop.f32.mrb[66].mxu0  ;;  %6494 = vset.pattern.permute.xlu1 %v11346_v10  ;;  %6492 = vset.pattern.permute.xlu0 %v11347_v14  ;;  %v3302_v20 = vpop.f32.mrb[67].mxu1 }
 0x884   :  { %v9361_v57 = vpop.f32.mrb[67].mxu0  ;;  %4483 = vperm.xlu0 %6492, %v6228_v45   ;;  %3413 = vperm.xlu1 %6494, %v3292_v26  }
 0x888   :  { %6493 = vset.pattern.permute.xlu0 %v11348_v8  ;;  %3428 = vperm.xlu1 %6494, %v6231_v18  }
 0x889   :  { %5049 = vperm.xlu0 %6493, %v6228_v45  }
 0x88c   :  { %3423 = vperm.xlu1 %6494, %v3302_v20  }
 0x88d   :  { %6495 = vset.pattern.permute.xlu0 %v11349_v53 }
 0x88e   :  { %v9365_v4 = vpop.f32.mrb[68].mxu0  ;;  %3905 = vperm.xlu0 %6495, %v3292_v26   ;;  %v6234_v17 = vpop.f32.mrb[68].mxu1 }
 0x88f   :  { %v9367_v49 = vpop.f32.mrb[69].mxu0  ;;  %v9369_v54 = vpop.f32.mrb[69].mxu1 }
 0x890   :  { %6501 = vset.pattern.permute.xlu1 %v11349_v53 }
 0x891   :  { %3913 = vperm.xlu1 %6501, %v3302_v20  }
 0x892   :  { %6496 = vset.pattern.permute.xlu0 %v11347_v14  ;;  %v9373_v1 = vpop.f32.mrb[70].mxu1 }
 0x893   :  { %v9375_v30 = vpop.f32.mrb[70].mxu0  ;;  %4479 = vperm.xlu0 %6496, %v3292_v26   ;;  %v9377_v43 = vpop.f32.mrb[71].mxu1 }
 0x894   :  { %v9379_v3 = vpop.f32.mrb[71].mxu0 }
 0x895   :  { %3925 = vperm.xlu1 %6501, %v6234_v17  }
 0x897   :  { %6497 = vset.pattern.permute.xlu0 %v11348_v8 }
 0x898   :  { %5045 = vperm.xlu0 %6497, %v3292_v26  }
 0x899   :  { %6507 = vset.pattern.permute.xlu1 %v11346_v10 }
 0x89a   :  { %3433 = vperm.xlu1 %6507, %v9369_v54  }
 0x89c   :  { %6498 = vset.pattern.permute.xlu0 %v11349_v53 }
 0x89d   :  { %3917 = vperm.xlu0 %6498, %v6231_v18  }
 0x89e   :  { %v9385_v22 = vpop.f32.mrb[72].mxu0  ;;  %3448 = vperm.xlu1 %6507, %v9373_v1   ;;  %v9388_v46 = vpop.f32.mrb[72].mxu1 }
 0x89f   :  { %v9390_v60 = vpop.f32.mrb[73].mxu0  ;;  %v9392_v29 = vpop.f32.mrb[73].mxu1 }
 0x8a1   :  { %6499 = vset.pattern.permute.xlu0 %v11347_v14 }
 0x8a2   :  { %4491 = vperm.xlu0 %6499, %v6231_v18   ;;  %3443 = vperm.xlu1 %6507, %v9377_v43   ;;  %v9396_v21 = vpop.f32.mrb[74].mxu1 }
 0x8a3   :  { %v9398_v62 = vpop.f32.mrb[74].mxu0  ;;  %v9400_v16 = vpop.f32.mrb[75].mxu1 }
 0x8a4   :  { %v9402_v24 = vpop.f32.mrb[75].mxu0 }
 0x8a6   :  { %6500 = vset.pattern.permute.xlu0 %v11348_v8  ;;  %6514 = vset.pattern.permute.xlu1 %v11349_v53 }
 0x8a7   :  { %5057 = vperm.xlu0 %6500, %v6231_v18   ;;  %3929 = vperm.xlu1 %6514, %v9377_v43  }
 0x8ab   :  { %6502 = vset.pattern.permute.xlu0 %v11347_v14  ;;  %3941 = vperm.xlu1 %6514, %v9388_v46  }
 0x8ac   :  { %4487 = vperm.xlu0 %6502, %v3302_v20  }
 0x8ad   :  { %v9409_v61 = vpop.f32.mrb[76].mxu0  ;;  %v9411_v63 = vpop.f32.mrb[76].mxu1 }
 0x8ae   :  { %v9413_v31 = vpop.f32.mrb[77].mxu0  ;;  %v9415_v13 = vpop.f32.mrb[77].mxu1 }
 0x8af   :  { %6520 = vset.pattern.permute.xlu1 %v11346_v10 }
 0x8b0   :  { %6503 = vset.pattern.permute.xlu0 %v11348_v8  ;;  %3453 = vperm.xlu1 %6520, %v9392_v29  }
 0x8b1   :  { %5053 = vperm.xlu0 %6503, %v3302_v20   ;;  %v9420_v9 = vpop.f32.mrb[78].mxu1 }
 0x8b2   :  { %v9422_v23 = vpop.f32.mrb[78].mxu0  ;;  %v3362_v51 = vpop.f32.mrb[79].mxu1 }
 0x8b3   :  { %v9424_v47 = vpop.f32.mrb[79].mxu0 }
 0x8b4   :  { %6523 = vset.pattern.permute.xlu1 %v11348_v8 }
 0x8b5   :  { %6504 = vset.pattern.permute.xlu0 %v11346_v10  ;;  %5077 = vperm.xlu1 %6523, %v9392_v29  }
 0x8b6   :  { %3438 = vperm.xlu0 %6504, %v6234_v17  }
 0x8b9   :  { %6524 = vset.pattern.permute.xlu1 %v11346_v10 }
 0x8ba   :  { %6505 = vset.pattern.permute.xlu0 %v11347_v14  ;;  %3468 = vperm.xlu1 %6524, %v9396_v21  }
 0x8bb   :  { %4499 = vperm.xlu0 %6505, %v6234_v17  }
 0x8be   :  { %3463 = vperm.xlu1 %6524, %v9400_v16  }
 0x8bf   :  { %6506 = vset.pattern.permute.xlu0 %v11348_v8 }
 0x8c0   :  { %5065 = vperm.xlu0 %6506, %v6234_v17  }
 0x8c2   :  { %6528 = vset.pattern.permute.xlu1 %v11349_v53 }
 0x8c3   :  { %3945 = vperm.xlu1 %6528, %v9400_v16  }
 0x8c4   :  { %6508 = vset.pattern.permute.xlu0 %v11349_v53 }
 0x8c5   :  { %3921 = vperm.xlu0 %6508, %v9369_v54  }
 0x8c7   :  { %3957 = vperm.xlu1 %6528, %v9411_v63  }
 0x8c9   :  { %6509 = vset.pattern.permute.xlu0 %v11347_v14 }
 0x8ca   :  { %4495 = vperm.xlu0 %6509, %v9369_v54  }
 0x8cb   :  { %6534 = vset.pattern.permute.xlu1 %v11346_v10 }
 0x8cc   :  { %3473 = vperm.xlu1 %6534, %v9415_v13  }
 0x8ce   :  { %6510 = vset.pattern.permute.xlu0 %v11348_v8 }
 0x8cf   :  { %5061 = vperm.xlu0 %6510, %v9369_v54  }
 0x8d0   :  { %6537 = vset.pattern.permute.xlu1 %v11348_v8 }
 0x8d1   :  { %5093 = vperm.xlu1 %6537, %v9415_v13  }
 0x8d3   :  { %6511 = vset.pattern.permute.xlu0 %v11349_v53 }
 0x8d4   :  { %3933 = vperm.xlu0 %6511, %v9373_v1  }
 0x8d5   :  { %6538 = vset.pattern.permute.xlu1 %v11346_v10 }
 0x8d6   :  { %3488 = vperm.xlu1 %6538, %v9420_v9  }
 0x8d8   :  { %6512 = vset.pattern.permute.xlu0 %v11347_v14 }
 0x8d9   :  { %4507 = vperm.xlu0 %6512, %v9373_v1  }
 0x8da   :  { %6541 = vset.pattern.permute.xlu1 %v11348_v8 }
 0x8db   :  { %5105 = vperm.xlu1 %6541, %v9420_v9  }
 0x8dd   :  { %6513 = vset.pattern.permute.xlu0 %v11348_v8 }
 0x8de   :  { %5073 = vperm.xlu0 %6513, %v9373_v1  }
 0x8df   :  { %6542 = vset.pattern.permute.xlu1 %v11346_v10 }
 0x8e0   :  { %3483 = vperm.xlu1 %6542, %v3362_v51  }
 0x8e2   :  { %6515 = vset.pattern.permute.xlu0 %v11347_v14 }
 0x8e3   :  { %4503 = vperm.xlu0 %6515, %v9377_v43  }
 0x8e4   :  { %6543 = vset.pattern.permute.xlu1 %v11349_v53 }
 0x8e5   :  { %3961 = vperm.xlu1 %6543, %v3362_v51  }
 0x8e7   :  { %6516 = vset.pattern.permute.xlu0 %v11348_v8 }
 0x8e8   :  { %5069 = vperm.xlu0 %6516, %v9377_v43  }
 0x8e9   :  { %6544 = vset.pattern.permute.xlu1 %v11347_v14 }
 0x8ea   :  { %4535 = vperm.xlu1 %6544, %v3362_v51  }
 0x8ec   :  { %6517 = vset.pattern.permute.xlu0 %v11346_v10 }
 0x8ed   :  { %3458 = vperm.xlu0 %6517, %v9388_v46  }
 0x8ee   :  { %6545 = vset.pattern.permute.xlu1 %v11348_v8 }
 0x8ef   :  { %5101 = vperm.xlu1 %6545, %v3362_v51  }
 0x8f1   :  { %6518 = vset.pattern.permute.xlu0 %v11347_v14 }
 0x8f2   :  { %4515 = vperm.xlu0 %6518, %v9388_v46  }
 0x8f6   :  { %6519 = vset.pattern.permute.xlu0 %v11348_v8 }
 0x8f7   :  { %5081 = vperm.xlu0 %6519, %v9388_v46  }
 0x8fb   :  { %6521 = vset.pattern.permute.xlu0 %v11349_v53 }
 0x8fc   :  { %3937 = vperm.xlu0 %6521, %v9392_v29  }
 0x8fe   :  { %v9475_v52 = vpop.permute.xlu1 %3909  ;;  %v9504_v56 = vpop.permute.xlu0 %3418 }
 0x900   :  { %6522 = vset.pattern.permute.xlu0 %v11347_v14 }
 0x901   :  { %4511 = vperm.xlu0 %6522, %v9392_v29  }
 0x903   :  { %v9479_v28 = vpop.permute.xlu1 %3413  ;;  %v9511_v32 = vpop.permute.xlu0 %4483 }
 0x905   :  { %6525 = vset.pattern.permute.xlu0 %v11349_v53 }
 0x906   :  { %3949 = vperm.xlu0 %6525, %v9396_v21  }
 0x907   :  { %v9484_v25 = vpop.permute.xlu1 %3428 }
 0x908   :  { %v9520_v36 = vpop.permute.xlu0 %5049 }
 0x90a   :  { %6526 = vset.pattern.permute.xlu0 %v11347_v14 }
 0x90b   :  { %4523 = vperm.xlu0 %6526, %v9396_v21   ;;  %v9489_v38 = vpop.permute.xlu1 %3423 }
 0x90d   :  { %v9528_v15 = vpop.permute.xlu0 %3905 }
 0x90f   :  { %6527 = vset.pattern.permute.xlu0 %v11348_v8 }
 0x910   :  { %5089 = vperm.xlu0 %6527, %v9396_v21   ;;  %v9496_v6 = vpop.permute.xlu1 %3913 }
 0x914   :  { %6529 = vset.pattern.permute.xlu0 %v11347_v14  ;;  %v9506_v33 = vpop.permute.xlu1 %3925 }
 0x915   :  { %4519 = vperm.xlu0 %6529, %v9400_v16  }
 0x918   :  { %3371 = vxpose.xlu1.b32.start [1/16] (narrow) %v9355_v59, 8 }
 0x919   :  { %6530 = vset.pattern.permute.xlu0 %v11348_v8  ;;  %v9513_v58 = vpop.permute.xlu1 %3433 }
 0x91a   :  { %5085 = vperm.xlu0 %6530, %v9400_v16  }
 0x91c   :  { %3372 = vxpose.xlu1.b32.cont [2/16] (narrow) %v9353_v50, 8  ;;  %v9536_v50 = vpop.permute.xlu0 %4479 }
 0x91d   :  { %v9522_v37 = vpop.permute.xlu1 %3448 }
 0x91e   :  { %6531 = vset.pattern.permute.xlu0 %v11346_v10 }
 0x91f   :  { %3478 = vperm.xlu0 %6531, %v9411_v63  }
 0x920   :  { %3373 = vxpose.xlu1.b32.cont [3/16] (narrow) %v9361_v57, 8  ;;  %v9543_v59 = vpop.permute.xlu0 %5045 }
 0x921   :  { %v9530_v12 = vpop.permute.xlu1 %3443 }
 0x923   :  { %6532 = vset.pattern.permute.xlu0 %v11347_v14 }
 0x924   :  { %4531 = vperm.xlu0 %6532, %v9411_v63   ;;  %3374 = vxpose.xlu1.b32.cont [4/16] (narrow) %v9357_v11, 8  ;;  %v3918_v18 = vpop.permute.xlu0 %3917 }
 0x926   :  { %v9538_v45 = vpop.permute.xlu1 %3929 }
 0x928   :  { %6533 = vset.pattern.permute.xlu0 %v11348_v8  ;;  %3375 = vxpose.xlu1.b32.cont [5/16] (narrow) %v9367_v49, 8  ;;  %v9553_v10 = vpop.permute.xlu0 %4491 }
 0x929   :  { %5097 = vperm.xlu0 %6533, %v9411_v63  }
 0x92a   :  { %v9545_v26 = vpop.permute.xlu1 %3941 }
 0x92c   :  { %3376 = vxpose.xlu1.b32.cont [6/16] (narrow) %v9365_v4, 8  ;;  %v9559_v20 = vpop.permute.xlu0 %5057 }
 0x92d   :  { %6535 = vset.pattern.permute.xlu0 %v11349_v53 }
 0x92e   :  { %3953 = vperm.xlu0 %6535, %v9415_v13  }
 0x92f   :  { %v9550_v11 = vpop.permute.xlu1 %3453 }
 0x930   :  { %3377 = vxpose.xlu1.b32.cont [7/16] (narrow) %v9379_v3, 8 }
 0x932   :  { %6536 = vset.pattern.permute.xlu0 %v11347_v14 }
 0x933   :  { %4527 = vperm.xlu0 %6536, %v9415_v13  }
 0x934   :  { %3378 = vxpose.xlu1.b32.cont [8/16] (narrow) %v9375_v30, 8 }
 0x937   :  { %6539 = vset.pattern.permute.xlu0 %v11349_v53 }
 0x938   :  { %3965 = vperm.xlu0 %6539, %v9420_v9   ;;  %3379 = vxpose.xlu1.b32.cont [9/16] (narrow) %v9390_v60, 8 }
 0x93c   :  { %6540 = vset.pattern.permute.xlu0 %v11347_v14  ;;  %3380 = vxpose.xlu1.b32.cont [10/16] (narrow) %v9385_v22, 8  ;;  %v9555_v14 = vpop.permute.xlu1 %5077 }
 0x93d   :  { %4539 = vperm.xlu0 %6540, %v9420_v9  }
 0x940   :  { %3381 = vxpose.xlu1.b32.cont [11/16] (narrow) %v9402_v24, 8  ;;  %v9561_v57 = vpop.permute.xlu1 %3468 }
 0x941   :  { %6546 = vset.pattern.permute.xlu0 %v11348_v8  ;;  %v9564_v8 = vpop.permute.xlu0 %4487 }
 0x944   :  { %3382 = vxpose.xlu1.b32.cont [12/16] (narrow) %v9398_v62, 8  ;;  %v9566_v53 = vpop.permute.xlu1 %3463 }
 0x945   :  { %v9568_v4 = vpop.permute.xlu0 %5053 }
 0x948   :  { %3383 = vxpose.xlu1.b32.cont [13/16] (narrow) %v9413_v31, 8  ;;  %v9570_v17 = vpop.permute.xlu1 %3945 }
 0x949   :  { %v9572_v49 = vpop.permute.xlu0 %3438 }
 0x94c   :  { %3384 = vxpose.xlu1.b32.cont [14/16] (narrow) %v9409_v61, 8  ;;  %v9574_v54 = vpop.permute.xlu1 %3957 }
 0x94d   :  { %v9576_v1 = vpop.permute.xlu0 %4499 }
 0x950   :  { %3385 = vxpose.xlu1.b32.cont [15/16] (narrow) %v9424_v47, 8  ;;  %v9578_v30 = vpop.permute.xlu1 %3473 }
 0x951   :  { %v9580_v43 = vpop.permute.xlu0 %5065 }
 0x954   :  { %3386 = vxpose.xlu1.b32.end [16/16] (narrow) %v9422_v23, 8  ;;  %v9582_v3 = vpop.permute.xlu1 %5093  ;;  %v11353_v23 = vld [vmem:[#allocation32_spill] sm:$0xff] }
 0x955   :  { %v9584_v22 = vpop.permute.xlu0 %3921  ;;  %v11354_v51 = vsub.s32 0, %v11353_v23  ;;  %v11355_v34 = vsub.s32 1, %v11353_v23  ;;  %v11356_v2 = vsub.s32 2, %v11353_v23 }
 0x958   :  { %v9586_v46 = vpop.permute.xlu1 %3488 }
 0x959   :  { %v9588_v60 = vpop.permute.xlu0 %4495 }
 0x95c   :  { %v9590_v29 = vpop.permute.xlu1 %5105 }
 0x95d   :  { %v9592_v21 = vpop.permute.xlu0 %5061 }
 0x960   :  { %v9594_v62 = vpop.permute.xlu1 %3483 }
 0x961   :  { %v9596_v16 = vpop.permute.xlu0 %3933 }
 0x964   :  { %v9598_v24 = vpop.permute.xlu1 %3961 }
 0x965   :  { %v9600_v61 = vpop.permute.xlu0 %4507 }
 0x969   :  { %v9602_v63 = vpop.permute.xlu1 %4535  ;;  %v9604_v31 = vpop.permute.xlu0 %5073 }
 0x96d   :  { %v9616_v0 = vpop.permute.xlu0 %4503 }
 0x96e   :  { %v9606_v13 = vpop.permute.xlu1 %5101 }
 0x96f   :  { %11352 = vst [vmem:[#allocation28_spill] sm:$0xff] %v9606_v13 }
 0x971   :  { %v9633_v40 = vpop.permute.xlu0 %5069 }
 0x998   :  { %v3387_v9 = vpop.trf.xlu1 }
 0x999   :  { %v9610_v47 = vrot.slane %v3387_v9, %v11354_v51  ;;  %v9614_v48 = vrot.slane %v3387_v9, %v11355_v34  ;;  %v9626_v19 = vrot.slane %v3387_v9, %v11356_v2 }
 0x99b   :  { %v3496_v5 = vadd.f32 %v9610_v47, %v9504_v56  ;;  %v3495_v39 = vadd.f32 %v9610_v47, %v9479_v28  ;;  %v3973_v7 = vadd.f32 %v9614_v48, %v9475_v52  ;;  %v3498_v51 = vadd.f32 %v9610_v47, %v9484_v25 }
 0x99c   :  { %v3975_v55 = vadd.f32 %v9614_v48, %v3918_v18  ;;  %v3972_v28 = vadd.f32 %v9614_v48, %v9528_v15  ;;  %v11359_v15 = vsub.s32 3, %v11353_v23 }
 0x99d   :  { %vm3512_vm2 = vcmp.gt.f32.partialorder %v3496_v5, 0.0  ;;  %v3528_v34 = vmul.f32 0.2, %v3496_v5  ;;  %vm3511_vm10 = vcmp.gt.f32.partialorder %v3495_v39, 0.0  ;;  %v3527_v35 = vmul.f32 0.2, %v3495_v39 }
 0x99e   :  { %vm3989_vm9 = vcmp.gt.f32.partialorder %v3973_v7, 0.0  ;;  %v4005_v56 = vmul.f32 0.2, %v3973_v7  ;;  %vm3514_vm4 = vcmp.gt.f32.partialorder %v3498_v51, 0.0  ;;  %v3530_v52 = vmul.f32 0.2, %v3498_v51 }
 0x99f   :  { %v3544_v42 = vsel %vm3512_vm2, %v3496_v5, %v3528_v34  ;;  %v3543_v25 = vsel %vm3511_vm10, %v3495_v39, %v3527_v35  ;;  %v4007_v13 = vmul.f32 0.2, %v3975_v55  ;;  %v4547_v5 = vadd.f32 %v9626_v19, %v9511_v32 }
 0x9a0   :  { %v9637_v44 = vsel %vm118_vm3, %v3544_v42, -1e+30  ;;  %v9642_v18 = vsel %vm117_vm8, %v3543_v25, -1e+30  ;;  %v4021_v27 = vsel %vm3989_vm9, %v3973_v7, %v4005_v56  ;;  %v9648_v34 = vrot.slane %v3387_v9, %v11359_v15 }
 0x9a1   :  { %3577 = vmax.xlane.f32.xlu1 %v9637_v44  ;;  %3575 = vmax.xlane.f32.xlu0 %v9642_v18  ;;  %v3546_v42 = vsel %vm3514_vm4, %v3498_v51, %v3530_v52  ;;  %vm3991_vm2 = vcmp.gt.f32.partialorder %v3975_v55, 0.0  ;;  %v4004_v35 = vmul.f32 0.2, %v3972_v28  ;;  %vm3988_vm10 = vcmp.gt.f32.partialorder %v3972_v28, 0.0  ;;  %v9664_v52 = vpop.permute.xlu0 %3458 }
 0x9a2   :  { %v4546_v39 = vadd.f32 %v9626_v19, %v9536_v50  ;;  %v9655_v7 = vsel %vm118_vm3, %v4021_v27, -1e+30  ;;  %v9660_v23 = vsel %vm120_vm6, %v3546_v42, -1e+30  ;;  %v4023_v9 = vsel %vm3991_vm2, %v3975_v55, %v4007_v13 }
 0x9a3   :  { %v4579_v56 = vmul.f32 0.2, %v4547_v5  ;;  %v4549_v51 = vadd.f32 %v9626_v19, %v9553_v10  ;;  %v4020_v50 = vsel %vm3988_vm10, %v3972_v28, %v4004_v35  ;;  %vm4563_vm4 = vcmp.gt.f32.partialorder %v4547_v5, 0.0 }
 0x9a4   :  { %v4578_v25 = vmul.f32 0.2, %v4546_v39  ;;  %v5112_v27 = vadd.f32 %v9648_v34, %v9543_v59  ;;  %vm4562_vm9 = vcmp.gt.f32.partialorder %v4546_v39, 0.0  ;;  %v9671_v15 = vsel %vm120_vm6, %v4023_v9, -1e+30 }
 0x9a5   :  { %4054 = vmax.xlane.f32.xlu1 %v9655_v7  ;;  %3581 = vmax.xlane.f32.xlu0 %v9660_v23  ;;  %v9676_v55 = vsel %vm117_vm8, %v4020_v50, -1e+30  ;;  %v4595_v10 = vsel %vm4563_vm4, %v4547_v5, %v4579_v56  ;;  %v4581_v13 = vmul.f32 0.2, %v4549_v51  ;;  %v5113_v28 = vadd.f32 %v9648_v34, %v9520_v36  ;;  %v9683_v9 = vpop.permute.xlu0 %4515 }
 0x9a6   :  { %v4594_v42 = vsel %vm4562_vm9, %v4546_v39, %v4578_v25  ;;  %vm4565_vm2 = vcmp.gt.f32.partialorder %v4549_v51, 0.0  ;;  %v5144_v59 = vmul.f32 0.2, %v5112_v27  ;;  %v3497_v35 = vadd.f32 %v9610_v47, %v9489_v38 }
 0x9a7   :  { %vm5128_vm10 = vcmp.gt.f32.partialorder %v5112_v27, 0.0  ;;  %v9687_v50 = vsel %vm118_vm3, %v4595_v10, -1e+30  ;;  %v9692_v36 = vsel %vm117_vm8, %v4594_v42, -1e+30  ;;  %v4597_v5 = vsel %vm4565_vm2, %v4549_v51, %v4581_v13 }
 0x9a8   :  { %11361 = vst [vmem:[#allocation25_spill] sm:$0xff] %v9687_v50  ;;  %v5145_v39 = vmul.f32 0.2, %v5113_v28  ;;  %v5115_v56 = vadd.f32 %v9648_v34, %v9559_v20  ;;  %v5160_v38 = vsel %vm5128_vm10, %v5112_v27, %v5144_v59  ;;  %vm5129_vm4 = vcmp.gt.f32.partialorder %v5113_v28, 0.0 }
 0x9a9   :  { %4058 = vmax.xlane.f32.xlu1 %v9671_v15  ;;  %4052 = vmax.xlane.f32.xlu0 %v9676_v55  ;;  %v3529_v25 = vmul.f32 0.2, %v3497_v35  ;;  %v3974_v10 = vadd.f32 %v9614_v48, %v9496_v6  ;;  %vm3513_vm9 = vcmp.gt.f32.partialorder %v3497_v35, 0.0  ;;  %v9706_v51 = vsel %vm117_vm8, %v5160_v38, -1e+30  ;;  %v9710_v42 = vpop.permute.xlu0 %5081 }
 0x9aa   :  { %v5161_v20 = vsel %vm5129_vm4, %v5113_v28, %v5145_v39  ;;  %v5147_v13 = vmul.f32 0.2, %v5115_v56  ;;  %v3500_v27 = vadd.f32 %v9610_v47, %v9572_v49  ;;  %vm5131_vm2 = vcmp.gt.f32.partialorder %v5115_v56, 0.0 }
 0x9ab   :  { %v3545_v6 = vsel %vm3513_vm9, %v3497_v35, %v3529_v25  ;;  %v4006_v59 = vmul.f32 0.2, %v3974_v10  ;;  %vm3990_vm10 = vcmp.gt.f32.partialorder %v3974_v10, 0.0  ;;  %v9717_v41 = vsel %vm118_vm3, %v5161_v20, -1e+30 }
 0x9ac   :  { %v9722_v49 = vsel %vm119_vm14, %v3545_v6, -1e+30  ;;  %v5163_v39 = vsel %vm5131_vm2, %v5115_v56, %v5147_v13  ;;  %v3532_v38 = vmul.f32 0.2, %v3500_v27  ;;  %v3977_v35 = vadd.f32 %v9614_v48, %v9506_v33 }
 0x9ad   :  { %4628 = vmax.xlane.f32.xlu1 %v9687_v50  ;;  %4626 = vmax.xlane.f32.xlu0 %v9692_v36  ;;  %v9701_v50 = vsel %vm120_vm6, %v4597_v5, -1e+30  ;;  %v4548_v5 = vadd.f32 %v9626_v19, %v9564_v8  ;;  %v4022_v25 = vsel %vm3990_vm10, %v3974_v10, %v4006_v59  ;;  %vm3516_vm8 = vcmp.gt.f32.partialorder %v3500_v27, 0.0  ;;  %v9729_v20 = vpop.permute.xlu0 %3937 }
 0x9ae   :  { %v5114_v2 = vadd.f32 %v9648_v34, %v9568_v4  ;;  %v9733_v6 = vsel %vm120_vm6, %v5163_v39, -1e+30  ;;  %v9738_v33 = vsel %vm119_vm14, %v4022_v25, -1e+30  ;;  %v3548_v56 = vsel %vm3516_vm8, %v3500_v27, %v3532_v38 }
 0x9af   :  { %v4580_v8 = vmul.f32 0.2, %v4548_v5  ;;  %vm4564_vm3 = vcmp.gt.f32.partialorder %v4548_v5, 0.0  ;;  %11363 = vst [vmem:[#allocation31_spill] sm:$0xff] %v9733_v6  ;;  %v4009_v10 = vmul.f32 0.2, %v3977_v35  ;;  %v4551_v13 = vadd.f32 %v9626_v19, %v9576_v1 }
 0x9b0   :  { %vm3993_vm4 = vcmp.gt.f32.partialorder %v3977_v35, 0.0  ;;  %v5146_v59 = vmul.f32 0.2, %v5114_v2  ;;  %v3499_v32 = vadd.f32 %v9610_v47, %v9513_v58  ;;  %vm5130_vm6 = vcmp.gt.f32.partialorder %v5114_v2, 0.0 }
 0x9b1   :  { %4632 = vmax.xlane.f32.xlu1 %v9701_v50  ;;  %5192 = vmax.xlane.f32.xlu0 %v9706_v51  ;;  %v4596_v4 = vsel %vm4564_vm3, %v4548_v5, %v4580_v8  ;;  %v4025_v1 = vsel %vm3993_vm4, %v3977_v35, %v4009_v10  ;;  %v4583_v38 = vmul.f32 0.2, %v4551_v13  ;;  %v5117_v5 = vadd.f32 %v9648_v34, %v9580_v43  ;;  %v9756_v25 = vpop.permute.xlu0 %4511 }
 0x9b2   :  { %v9752_v27 = vsel %vm119_vm14, %v4596_v4, -1e+30  ;;  %v5162_v58 = vsel %vm5130_vm6, %v5114_v2, %v5146_v59  ;;  %vm4567_vm9 = vcmp.gt.f32.partialorder %v4551_v13, 0.0  ;;  %v3531_v8 = vmul.f32 0.2, %v3499_v32 }
 0x9b3   :  { %vm3515_vm2 = vcmp.gt.f32.partialorder %v3499_v32, 0.0  ;;  %v9763_v4 = vsel %vm122_vm0, %v4025_v1, -1e+30  ;;  %v9768_v43 = vsel %vm119_vm14, %v5162_v58, -1e+30  ;;  %v4599_v35 = vsel %vm4567_vm9, %v4551_v13, %v4583_v38  ;;  %v11371_v13 = vld [vmem:[#allocation52_spill] sm:$0xff] }
 0x9b4   :  { %v5149_v10 = vmul.f32 0.2, %v5117_v5  ;;  %v3502_v2 = vadd.f32 %v9610_v47, %v9522_v37  ;;  %v3547_v59 = vsel %vm3515_vm2, %v3499_v32, %v3531_v8  ;;  %vm5133_vm10 = vcmp.gt.f32.partialorder %v5117_v5, 0.0 }
 0x9b5   :  { %5194 = vmax.xlane.f32.xlu1 %v9717_v41  ;;  %3579 = vmax.xlane.f32.xlu0 %v9722_v49  ;;  %v4550_v1 = vadd.f32 %v9626_v19, %v9588_v60  ;;  %v9779_v28 = vsel %vm122_vm0, %v4599_v35, -1e+30  ;;  %v9784_v37 = vsel %vm121_vm7, %v3547_v59, -1e+30  ;;  %v3979_v58 = vadd.f32 %v9614_v48, %v9596_v16 }
 0x9b6   :  { %11366 = vst [vmem:[#allocation73_spill] sm:$0xff] %v9779_v28  ;;  %v5165_v38 = vsel %vm5133_vm10, %v5117_v5, %v5149_v10  ;;  %v3534_v32 = vmul.f32 0.2, %v3502_v2  ;;  %vm3518_vm14 = vcmp.gt.f32.partialorder %v3502_v2, 0.0  ;;  %v5116_v35 = vadd.f32 %v9648_v34, %v9592_v21 }
 0x9b7   :  { %v4582_v8 = vmul.f32 0.2, %v4550_v1  ;;  %vm4566_vm3 = vcmp.gt.f32.partialorder %v4550_v1, 0.0  ;;  %v4011_v10 = vmul.f32 0.2, %v3979_v58  ;;  %vm3995_vm4 = vcmp.gt.f32.partialorder %v3979_v58, 0.0 }
 0x9b8   :  { %v3550_v16 = vsel %vm3518_vm14, %v3502_v2, %v3534_v32  ;;  %v5148_v39 = vmul.f32 0.2, %v5116_v35 }
 0x9b9   :  { %5198 = vmax.xlane.f32.xlu1 %v9733_v6  ;;  %4056 = vmax.xlane.f32.xlu0 %v9738_v33  ;;  %v9747_v6 = vsel %vm122_vm0, %v3548_v56, -1e+30  ;;  %v3976_v56 = vadd.f32 %v9614_v48, %v9584_v22  ;;  %v4598_v21 = vsel %vm4566_vm3, %v4550_v1, %v4582_v8  ;;  %v4027_v2 = vsel %vm3995_vm4, %v3979_v58, %v4011_v10 }
 0x9ba   :  { %11365 = vst [vmem:[#allocation30_spill] sm:$0xff] %v9747_v6  ;;  %v5119_v1 = vadd.f32 %v9648_v34, %v9604_v31  ;;  %v3504_v10 = vadd.f32 %v9610_v47, %v9664_v52 }
 0x9bb   :  { %v4008_v22 = vmul.f32 0.2, %v3976_v56  ;;  %vm3992_vm8 = vcmp.gt.f32.partialorder %v3976_v56, 0.0 }
 0x9bc   :  { %vm5135_vm2 = vcmp.gt.f32.partialorder %v5119_v1, 0.0 }
 0x9bd   :  { %3585 = vmax.xlane.f32.xlu1 %v9747_v6  ;;  %4630 = vmax.xlane.f32.xlu0 %v9752_v27  ;;  %v9775_v6 = vpop.permute.xlu0 %3949  ;;  %v4024_v60 = vsel %vm3992_vm8, %v3976_v56, %v4008_v22  ;;  %v4553_v56 = vadd.f32 %v9626_v19, %v9600_v61  ;;  %v3501_v22 = vadd.f32 %v9610_v47, %v9530_v12  ;;  %v9814_v61 = vsel %vm121_vm7, %v4598_v21, -1e+30 }
 0x9be   :  { %v9798_v5 = vsel %vm121_vm7, %v4024_v60, -1e+30  ;;  %v9809_v60 = vsel %vm124_vm15, %v3550_v16, -1e+30  ;;  %v3978_v16 = vadd.f32 %v9614_v48, %v9538_v45  ;;  %v9825_v21 = vsel %vm124_vm15, %v4027_v2, -1e+30 }
 0x9bf   :  { %11368 = vst [vmem:[#allocation38_spill] sm:$0xff] %v9798_v5  ;;  %v4585_v32 = vmul.f32 0.2, %v4553_v56  ;;  %vm4569_vm6 = vcmp.gt.f32.partialorder %v4553_v56, 0.0  ;;  %v3533_v12 = vmul.f32 0.2, %v3501_v22  ;;  %v4552_v2 = vadd.f32 %v9626_v19, %v9616_v0 }
 0x9c0   :  { %vm3517_vm9 = vcmp.gt.f32.partialorder %v3501_v22, 0.0  ;;  %11370 = vst [vmem:[#allocation57_spill] sm:$0xff] %v9825_v21  ;;  %vm3994_vm10 = vcmp.gt.f32.partialorder %v3978_v16, 0.0  ;;  %vm3520_vm8 = vcmp.gt.f32.partialorder %v3504_v10, 0.0 }
 0x9c1   :  { %4062 = vmax.xlane.f32.xlu1 %v9763_v4  ;;  %5196 = vmax.xlane.f32.xlu0 %v9768_v43  ;;  %v9802_v59 = vpop.permute.xlu0 %4523  ;;  %v4601_v58 = vsel %vm4569_vm6, %v4553_v56, %v4585_v32  ;;  %v3549_v45 = vsel %vm3517_vm9, %v3501_v22, %v3533_v12  ;;  %v3536_v32 = vmul.f32 0.2, %v3504_v10  ;;  %v3981_v22 = vadd.f32 %v9614_v48, %v9545_v26 }
 0x9c2   :  { %v4584_v12 = vmul.f32 0.2, %v4552_v2  ;;  %vm4568_vm14 = vcmp.gt.f32.partialorder %v4552_v2, 0.0 }
 0x9c3   :  { %vm3997_vm4 = vcmp.gt.f32.partialorder %v3981_v22, 0.0 }
 0x9c5   :  { %4636 = vmax.xlane.f32.xlu1 %v9779_v28  ;;  %3583 = vmax.xlane.f32.xlu0 %v9784_v37  ;;  %v9793_v28 = vsel %vm122_vm0, %v5165_v38, -1e+30  ;;  %vm5132_vm0 = vcmp.gt.f32.partialorder %v5116_v35, 0.0  ;;  %v3503_v38 = vadd.f32 %v9610_v47, %v9550_v11 }
 0x9c6   :  { %v5164_v8 = vsel %vm5132_vm0, %v5116_v35, %v5148_v39  ;;  %v5151_v35 = vmul.f32 0.2, %v5119_v1  ;;  %v4010_v39 = vmul.f32 0.2, %v3978_v16 }
 0x9c7   :  { %v9830_v31 = vsel %vm121_vm7, %v5164_v8, -1e+30  ;;  %vm11372_vm7 = vcmp.gt.f32.partialorder %v11371_v13, 0.0 }
 0x9c8   :  { %v9844_v56 = vsel %vm11372_vm7, %v3549_v45, -1e+30  ;;  %v5167_v52 = vsel %vm5135_vm2, %v5119_v1, %v5151_v35  ;;  %v4026_v0 = vsel %vm3994_vm10, %v3978_v16, %v4010_v39  ;;  %vm11374_vm3 = vmmov %vm11372_vm7  ;;  %v3552_v1 = vsel %vm3520_vm8, %v3504_v10, %v3536_v32 }
 0x9c9   :  { %5202 = vmax.xlane.f32.xlu1 %v9793_v28  ;;  %4060 = vmax.xlane.f32.xlu0 %v9798_v5  ;;  %v9821_v5 = vpop.permute.xlu0 %5089  ;;  %v9855_v45 = vsel %vm124_vm15, %v5167_v52, -1e+30  ;;  %v9860_v26 = vsel %vm11374_vm3, %v4026_v0, -1e+30  ;;  %v4013_v35 = vmul.f32 0.2, %v3981_v22  ;;  %v4555_v16 = vadd.f32 %v9626_v19, %v9683_v9  ;;  %vm11378_vm6 = vmmov %vm11374_vm3 }
 0x9ca   :  { %11373 = vst [vmem:[#allocation40_spill] sm:$0xff] %v9855_v45  ;;  %11375 = vst [vmem:[#allocation68_spill] sm:$0xff] %v9860_v26  ;;  %v4600_v39 = vsel %vm4568_vm14, %v4552_v2, %v4584_v12  ;;  %v5121_v32 = vadd.f32 %v9648_v34, %v9710_v42  ;;  %v3535_v12 = vmul.f32 0.2, %v3503_v38  ;;  %vm3519_vm2 = vcmp.gt.f32.partialorder %v3503_v38, 0.0 }
 0x9cb   :  { %v9876_v9 = vsel %vm11378_vm6, %v4600_v39, -1e+30  ;;  %v4029_v10 = vsel %vm3997_vm4, %v3981_v22, %v4013_v35  ;;  %v4587_v2 = vmul.f32 0.2, %v4555_v16  ;;  %vm4571_vm9 = vcmp.gt.f32.partialorder %v4555_v16, 0.0  ;;  %vm11381_vm7 = vmmov %vm11374_vm3 }
 0x9cc   :  { %v5153_v35 = vmul.f32 0.2, %v5121_v32  ;;  %vm5137_vm8 = vcmp.gt.f32.partialorder %v5121_v32, 0.0 }
 0x9cd   :  { %3589 = vmax.xlane.f32.xlu1 %v9809_v60  ;;  %4634 = vmax.xlane.f32.xlu0 %v9814_v61  ;;  %v9848_v8 = vpop.permute.xlu0 %4519  ;;  %v4603_v42 = vsel %vm4571_vm9, %v4555_v16, %v4587_v2 }
 0x9d1   :  { %4066 = vmax.xlane.f32.xlu1 %v9825_v21  ;;  %5200 = vmax.xlane.f32.xlu0 %v9830_v31  ;;  %v9839_v21 = vsel %vm124_vm15, %v4601_v58, -1e+30  ;;  %v5118_v58 = vadd.f32 %v9648_v34, %v9633_v40  ;;  %v9867_v52 = vpop.permute.xlu0 %5085 }
 0x9d3   :  { %v5150_v40 = vmul.f32 0.2, %v5118_v58  ;;  %vm5134_vm15 = vcmp.gt.f32.partialorder %v5118_v58, 0.0 }
 0x9d5   :  { %4640 = vmax.xlane.f32.xlu1 %v9839_v21  ;;  %3587 = vmax.xlane.f32.xlu0 %v9844_v56  ;;  %v5166_v11 = vsel %vm5134_vm15, %v5118_v58, %v5150_v40  ;;  %v3506_v58 = vadd.f32 %v9610_v47, %v9561_v57  ;;  %v3479_v39 = vpop.permute.xlu0 %3478  ;;  %v5169_v57 = vsel %vm5137_vm8, %v5121_v32, %v5153_v35 }
 0x9d6   :  { %v9890_v22 = vsel %vm11381_vm7, %v5166_v11, -1e+30 }
 0x9d7   :  { %v3538_v11 = vmul.f32 0.2, %v3506_v58  ;;  %vm3522_vm4 = vcmp.gt.f32.partialorder %v3506_v58, 0.0 }
 0x9d9   :  { %5206 = vmax.xlane.f32.xlu1 %v9855_v45  ;;  %4064 = vmax.xlane.f32.xlu0 %v9860_v26  ;;  %v11376_v45 = vld [vmem:[#allocation44_spill] sm:$0xff] }
 0x9da   :  { %vm11377_vm0 = vcmp.gt.f32.partialorder %v11376_v45, 0.0  ;;  %v3505_v45 = vadd.f32 %v9610_v47, %v9566_v53 }
 0x9db   :  { %v9871_v0 = vsel %vm11377_vm0, %v3552_v1, -1e+30  ;;  %v3980_v1 = vadd.f32 %v9614_v48, %v9729_v20  ;;  %vm11379_vm10 = vmmov %vm11377_vm0  ;;  %v3551_v20 = vsel %vm3519_vm2, %v3503_v38, %v3535_v12  ;;  %v3983_v38 = vadd.f32 %v9614_v48, %v9775_v6 }
 0x9dc   :  { %v9885_v26 = vsel %vm11379_vm10, %v4029_v10, -1e+30  ;;  %v4554_v10 = vadd.f32 %v9626_v19, %v9756_v25  ;;  %vm11382_vm3 = vmmov %vm11377_vm0  ;;  %v9904_v2 = vsel %vm125_vm5, %v3551_v20, -1e+30  ;;  %v3554_v6 = vsel %vm3522_vm4, %v3506_v58, %v3538_v11 }
 0x9dd   :  { %3593 = vmax.xlane.f32.xlu1 %v9871_v0  ;;  %4638 = vmax.xlane.f32.xlu0 %v9876_v9  ;;  %11380 = vst [vmem:[#allocation47_spill] sm:$0xff] %v9885_v26  ;;  %v4012_v40 = vmul.f32 0.2, %v3980_v1  ;;  %vm3996_vm14 = vcmp.gt.f32.partialorder %v3980_v1, 0.0  ;;  %v9899_v13 = vsel %vm11382_vm3, %v4603_v42, -1e+30  ;;  %v5120_v42 = vadd.f32 %v9648_v34, %v9555_v14 }
 0x9de   :  { %11383 = vst [vmem:[#allocation53_spill] sm:$0xff] %v9899_v13  ;;  %v4586_v25 = vmul.f32 0.2, %v4554_v10  ;;  %vm4570_vm15 = vcmp.gt.f32.partialorder %v4554_v10, 0.0  ;;  %v4015_v35 = vmul.f32 0.2, %v3983_v38 }
 0x9df   :  { %v4028_v12 = vsel %vm3996_vm14, %v3980_v1, %v4012_v40  ;;  %v4557_v1 = vadd.f32 %v9626_v19, %v9802_v59  ;;  %vm3999_vm6 = vcmp.gt.f32.partialorder %v3983_v38, 0.0  ;;  %v5152_v20 = vmul.f32 0.2, %v5120_v42  ;;  %v11386_v40 = vld [vmem:[#allocation50_spill] sm:$0xff] }
 0x9e0   :  { %v9918_v32 = vsel %vm125_vm5, %v4028_v12, -1e+30  ;;  %v4602_v14 = vsel %vm4570_vm15, %v4554_v10, %v4586_v25  ;;  %vm5136_vm9 = vcmp.gt.f32.partialorder %v5120_v42, 0.0  ;;  %vm11387_vm2 = vcmp.gt.f32.partialorder %v11386_v40, 0.0 }
 0x9e1   :  { %4070 = vmax.xlane.f32.xlu1 %v9885_v26  ;;  %5204 = vmax.xlane.f32.xlu0 %v9890_v22  ;;  %v4532_v26 = vpop.permute.xlu0 %4531  ;;  %11385 = vst [vmem:[#allocation62_spill] sm:$0xff] %v9918_v32  ;;  %v9932_v58 = vsel %vm125_vm5, %v4602_v14, -1e+30  ;;  %v4031_v59 = vsel %vm3999_vm6, %v3983_v38, %v4015_v35  ;;  %v4589_v11 = vmul.f32 0.2, %v4557_v1  ;;  %v5123_v10 = vadd.f32 %v9648_v34, %v9821_v5  ;;  %vm11388_vm8 = vmmov %vm11387_vm2 }
 0x9e2   :  { %v5168_v53 = vsel %vm5136_vm9, %v5120_v42, %v5152_v20  ;;  %vm4573_vm10 = vcmp.gt.f32.partialorder %v4557_v1, 0.0  ;;  %v3537_v25 = vmul.f32 0.2, %v3505_v45  ;;  %vm3521_vm7 = vcmp.gt.f32.partialorder %v3505_v45, 0.0  ;;  %vm11390_vm4 = vmmov %vm11387_vm2 }
 0x9e3   :  { %v3508_v38 = vadd.f32 %v9610_v47, %v3479_v39  ;;  %v9947_v5 = vsel %vm125_vm5, %v5168_v53, -1e+30  ;;  %v4605_v35 = vsel %vm4573_vm10, %v4557_v1, %v4589_v11  ;;  %v5155_v42 = vmul.f32 0.2, %v5123_v10 }
 0x9e4   :  { %v3553_v14 = vsel %vm3521_vm7, %v3505_v45, %v3537_v25  ;;  %vm5139_vm14 = vcmp.gt.f32.partialorder %v5123_v10, 0.0  ;;  %v4556_v20 = vadd.f32 %v9626_v19, %v9848_v8  ;;  %v9954_v39 = vsel %vm11390_vm4, %v4605_v35, -1e+30 }
 0x9e5   :  { %4644 = vmax.xlane.f32.xlu1 %v9899_v13  ;;  %3591 = vmax.xlane.f32.xlu0 %v9904_v2  ;;  %v9913_v13 = vsel %vm11377_vm0, %v5169_v57, -1e+30  ;;  %v9927_v57 = vsel %vm11387_vm2, %v3554_v6, -1e+30  ;;  %v5098_v12 = vpop.permute.xlu0 %5097  ;;  %v3982_v6 = vadd.f32 %v9614_v48, %v9570_v17  ;;  %v9959_v1 = vsel %vm127_vm12, %v3553_v14, -1e+30  ;;  %vm11393_vm0 = vmmov %vm11387_vm2 }
 0x9e6   :  { %11392 = vst [vmem:[#allocation75_spill] sm:$0xff] %v9959_v1  ;;  %v5171_v11 = vsel %vm5139_vm14, %v5123_v10, %v5155_v42  ;;  %v3985_v45 = vadd.f32 %v9614_v48, %v9574_v54  ;;  %v5122_v8 = vadd.f32 %v9648_v34, %v9867_v52  ;;  %vm3524_vm5 = vcmp.gt.f32.partialorder %v3508_v38, 0.0 }
 0x9e7   :  { %v4014_v17 = vmul.f32 0.2, %v3982_v6  ;;  %vm3998_vm3 = vcmp.gt.f32.partialorder %v3982_v6, 0.0  ;;  %v4588_v25 = vmul.f32 0.2, %v4556_v20  ;;  %vm4572_vm15 = vcmp.gt.f32.partialorder %v4556_v20, 0.0 }
 0x9e8   :  { %v9968_v35 = vsel %vm11393_vm0, %v5171_v11, -1e+30  ;;  %v4559_v14 = vadd.f32 %v9626_v19, %v4532_v26  ;;  %v4017_v52 = vmul.f32 0.2, %v3985_v45  ;;  %v5154_v42 = vmul.f32 0.2, %v5122_v8 }
 0x9e9   :  { %5210 = vmax.xlane.f32.xlu1 %v9913_v13  ;;  %4068 = vmax.xlane.f32.xlu0 %v9918_v32  ;;  %v9941_v32 = vsel %vm11388_vm8, %v4031_v59, -1e+30  ;;  %v3954_v59 = vpop.permute.xlu0 %3953  ;;  %v4030_v53 = vsel %vm3998_vm3, %v3982_v6, %v4014_v17  ;;  %v4604_v6 = vsel %vm4572_vm15, %v4556_v20, %v4588_v25  ;;  %vm4001_vm6 = vcmp.gt.f32.partialorder %v3985_v45, 0.0  ;;  %v11395_v17 = vld [vmem:[#allocation56_spill] sm:$0xff] }
 0x9ea   :  { %11389 = vst [vmem:[#allocation41_spill] sm:$0xff] %v9941_v32  ;;  %v9974_v54 = vsel %vm127_vm12, %v4030_v53, -1e+30  ;;  %v3507_v40 = vadd.f32 %v9610_v47, %v9578_v30  ;;  %vm5138_vm9 = vcmp.gt.f32.partialorder %v5122_v8, 0.0  ;;  %vm11396_vm2 = vcmp.gt.f32.partialorder %v11395_v17, 0.0 }
 0x9eb   :  { %11394 = vst [vmem:[#allocation42_spill] sm:$0xff] %v9974_v54  ;;  %v4591_v11 = vmul.f32 0.2, %v4559_v14  ;;  %v5125_v53 = vadd.f32 %v9648_v34, %v5098_v12  ;;  %v3984_v20 = vadd.f32 %v9614_v48, %v3954_v59  ;;  %v5170_v30 = vsel %vm5138_vm9, %v5122_v8, %v5154_v42  ;;  %vm11397_vm8 = vmmov %vm11396_vm2 }
 0x9ec   :  { %vm4575_vm10 = vcmp.gt.f32.partialorder %v4559_v14, 0.0  ;;  %v3539_v25 = vmul.f32 0.2, %v3507_v40  ;;  %vm3523_vm7 = vcmp.gt.f32.partialorder %v3507_v40, 0.0  ;;  %v3510_v59 = vadd.f32 %v9610_v47, %v9586_v46  ;;  %vm11399_vm4 = vmmov %vm11396_vm2 }
 0x9ed   :  { %3597 = vmax.xlane.f32.xlu1 %v9927_v57  ;;  %4642 = vmax.xlane.f32.xlu0 %v9932_v58  ;;  %v5157_v12 = vmul.f32 0.2, %v5125_v53  ;;  %v4016_v8 = vmul.f32 0.2, %v3984_v20  ;;  %vm5141_vm14 = vcmp.gt.f32.partialorder %v5125_v53, 0.0  ;;  %vm4000_vm3 = vcmp.gt.f32.partialorder %v3984_v20, 0.0  ;;  %vm11401_vm15 = vmmov %vm11396_vm2 }
 0x9ee   :  { %v3555_v42 = vsel %vm3523_vm7, %v3507_v40, %v3539_v25  ;;  %v5124_v25 = vadd.f32 %v9648_v34, %v9582_v3  ;;  %v3509_v17 = vadd.f32 %v9610_v47, %v9594_v62  ;;  %v3986_v47 = vadd.f32 %v9614_v48, %v9598_v24 }
 0x9ef   :  { %v5173_v46 = vsel %vm5141_vm14, %v5125_v53, %v5157_v12  ;;  %v4032_v40 = vsel %vm4000_vm3, %v3984_v20, %v4016_v8  ;;  %v11402_v8 = vld [vmem:[#allocation64_spill] sm:$0xff] }
 0x9f0   :  { %v10025_v53 = vsel %vm129_vm13, %v4032_v40, -1e+30  ;;  %v5156_v3 = vmul.f32 0.2, %v5124_v25  ;;  %vm11403_vm9 = vcmp.gt.f32.partialorder %v11402_v8, 0.0  ;;  %vm4002_vm14 = vcmp.gt.f32.partialorder %v3986_v47, 0.0 }
 0x9f1   :  { %4074 = vmax.xlane.f32.xlu1 %v9941_v32  ;;  %5208 = vmax.xlane.f32.xlu0 %v9947_v5  ;;  %v3540_v32 = vmul.f32 0.2, %v3508_v38  ;;  %v3541_v62 = vmul.f32 0.2, %v3509_v17  ;;  %vm11404_vm7 = vmmov %vm11403_vm9 }
 0x9f2   :  { %vm11405_vm3 = vmmov %vm11404_vm7 }
 0x9f3   :  { %v3556_v10 = vsel %vm3524_vm5, %v3508_v38, %v3540_v32  ;;  %v9987_v32 = vsel %vm127_vm12, %v4604_v6, -1e+30  ;;  %v4033_v38 = vsel %vm4001_vm6, %v3985_v45, %v4017_v52  ;;  %v9998_v6 = vsel %vm127_vm12, %v5170_v30, -1e+30 }
 0x9f4   :  { %v9981_v26 = vsel %vm11396_vm2, %v3556_v10, -1e+30  ;;  %v4607_v45 = vsel %vm4575_vm10, %v4559_v14, %v4591_v11  ;;  %v10012_v11 = vsel %vm129_vm13, %v3555_v42, -1e+30  ;;  %v3542_v30 = vmul.f32 0.2, %v3510_v59 }
 0x9f5   :  { %4648 = vmax.xlane.f32.xlu1 %v9954_v39  ;;  %3595 = vmax.xlane.f32.xlu0 %v9959_v1  ;;  %v4528_v1 = vpop.permute.xlu0 %4527  ;;  %vm3526_vm12 = vcmp.gt.f32.partialorder %v3510_v59, 0.0  ;;  %vm5140_vm6 = vcmp.gt.f32.partialorder %v5124_v25, 0.0  ;;  %vm3525_vm10 = vcmp.gt.f32.partialorder %v3509_v17, 0.0 }
 0x9f6   :  { %v4558_v52 = vadd.f32 %v9626_v19, %v4528_v1  ;;  %v3558_v12 = vsel %vm3526_vm12, %v3510_v59, %v3542_v30  ;;  %v5172_v30 = vsel %vm5140_vm6, %v5124_v25, %v5156_v3  ;;  %v3557_v25 = vsel %vm3525_vm10, %v3509_v17, %v3541_v62 }
 0x9f8   :  { %v4590_v1 = vmul.f32 0.2, %v4558_v52  ;;  %vm4574_vm5 = vcmp.gt.f32.partialorder %v4558_v52, 0.0 }
 0x9f9   :  { %5214 = vmax.xlane.f32.xlu1 %v9968_v35  ;;  %4072 = vmax.xlane.f32.xlu0 %v9974_v54  ;;  %v3966_v10 = vpop.permute.xlu0 %3965  ;;  %v9993_v54 = vsel %vm11397_vm8, %v4033_v38, -1e+30  ;;  %v10006_v38 = vsel %vm11399_vm4, %v4607_v45, -1e+30  ;;  %vm11408_vm4 = vmmov %vm11405_vm3 }
 0x9fa   :  { %11398 = vst [vmem:[#allocation43_spill] sm:$0xff] %v9993_v54  ;;  %v3987_v16 = vadd.f32 %v9614_v48, %v3966_v10  ;;  %v10019_v10 = vsel %vm11401_vm15, %v5173_v46, -1e+30  ;;  %v4606_v20 = vsel %vm4574_vm5, %v4558_v52, %v4590_v1  ;;  %v10032_v46 = vsel %vm11403_vm9, %v3558_v12, -1e+30 }
 0x9fb   :  { %v10037_v40 = vsel %vm129_vm13, %v4606_v20, -1e+30  ;;  %v5127_v52 = vadd.f32 %v9648_v34, %v9590_v29  ;;  %v4018_v12 = vmul.f32 0.2, %v3986_v47  ;;  %v4560_v48 = vadd.f32 %v9626_v19, %v9602_v63 }
 0x9fc   :  { %v4019_v45 = vmul.f32 0.2, %v3987_v16  ;;  %vm4003_vm0 = vcmp.gt.f32.partialorder %v3987_v16, 0.0  ;;  %v10063_v20 = vsel %vm131_vm11, %v3557_v25, -1e+30 }
 0x9fd   :  { %3601 = vmax.xlane.f32.xlu1 %v9981_v26  ;;  %4646 = vmax.xlane.f32.xlu0 %v9987_v32  ;;  %vm5143_vm8 = vcmp.gt.f32.partialorder %v5127_v52, 0.0  ;;  %v4034_v3 = vsel %vm4002_vm14, %v3986_v47, %v4018_v12  ;;  %v4592_v17 = vmul.f32 0.2, %v4560_v48 }
 0x9fe   :  { %v4035_v59 = vsel %vm4003_vm0, %v3987_v16, %v4019_v45  ;;  %v10051_v16 = vsel %vm129_vm13, %v5172_v30, -1e+30  ;;  %v5159_v45 = vmul.f32 0.2, %v5127_v52  ;;  %vm4576_vm13 = vcmp.gt.f32.partialorder %v4560_v48, 0.0 }
 0x9ff   :  { %v10046_v1 = vsel %vm11404_vm7, %v4035_v59, -1e+30  ;;  %v10075_v63 = vsel %vm131_vm11, %v4034_v3, -1e+30 }
 0xa01   :  { %4078 = vmax.xlane.f32.xlu1 %v9993_v54  ;;  %5212 = vmax.xlane.f32.xlu0 %v9998_v6  ;;  %v4540_v54 = vpop.permute.xlu0 %4539 }
 0xa02   :  { %v4561_v42 = vadd.f32 %v9626_v19, %v4540_v54 }
 0xa04   :  { %v4593_v54 = vmul.f32 0.2, %v4561_v42  ;;  %vm4577_vm2 = vcmp.gt.f32.partialorder %v4561_v42, 0.0 }
 0xa05   :  { %4652 = vmax.xlane.f32.xlu1 %v10006_v38  ;;  %3599 = vmax.xlane.f32.xlu0 %v10012_v11 }
 0xa06   :  { %v4609_v29 = vsel %vm4577_vm2, %v4561_v42, %v4593_v54  ;;  %v5175_v42 = vsel %vm5143_vm8, %v5127_v52, %v5159_v45  ;;  %v11407_v54 = vld [vmem:[#allocation28_spill] sm:$0xff]  ;;  %v4608_v52 = vsel %vm4576_vm13, %v4560_v48, %v4592_v17 }
 0xa07   :  { %v10058_v24 = vsel %vm11405_vm3, %v4609_v29, -1e+30  ;;  %v5126_v59 = vadd.f32 %v9648_v34, %v11407_v54  ;;  %v10070_v19 = vsel %vm11408_vm4, %v5175_v42, -1e+30  ;;  %v10080_v62 = vsel %vm131_vm11, %v4608_v52, -1e+30 }
 0xa09   :  { %5218 = vmax.xlane.f32.xlu1 %v10019_v10  ;;  %4076 = vmax.xlane.f32.xlu0 %v10025_v53  ;;  %v5158_v30 = vmul.f32 0.2, %v5126_v59  ;;  %vm5142_vm12 = vcmp.gt.f32.partialorder %v5126_v59, 0.0 }
 0xa0b   :  { %v5174_v34 = vsel %vm5142_vm12, %v5126_v59, %v5158_v30 }
 0xa0c   :  { %v10085_v8 = vsel %vm131_vm11, %v5174_v34, -1e+30 }
 0xa0d   :  { %3605 = vmax.xlane.f32.xlu1 %v10032_v46  ;;  %4650 = vmax.xlane.f32.xlu0 %v10037_v40 }
 0xa11   :  { %4082 = vmax.xlane.f32.xlu1 %v10046_v1  ;;  %5216 = vmax.xlane.f32.xlu0 %v10051_v16 }
 0xa15   :  { %4656 = vmax.xlane.f32.xlu1 %v10058_v24  ;;  %3603 = vmax.xlane.f32.xlu0 %v10063_v20 }
 0xa19   :  { %5222 = vmax.xlane.f32.xlu1 %v10070_v19  ;;  %4080 = vmax.xlane.f32.xlu0 %v10075_v63 }
 0xa1d   :  { %4654 = vmax.xlane.f32.xlu0 %v10080_v62 }
 0xa21   :  { %5220 = vmax.xlane.f32.xlu0 %v10085_v8 }
 0xa2e   :  { %v3578_v47 = vpop.xlane.xlu1 %3577  ;;  %v3576_v45 = vpop.xlane.xlu0 %3575 }
 0xa2f   :  { %v3608_v29 = vsub.f32 %v9637_v44, %v3578_v47  ;;  %v3607_v25 = vsub.f32 %v9642_v18, %v3576_v45 }
 0xa31   :  { %v3625_v12 = vmul.f32 1.442695, %v3608_v29  ;;  %v3623_v48 = vmul.f32 1.442695, %v3607_v25  ;;  %v11409_v29 = vld [vmem:[#allocation25_spill] sm:$0xff] }
 0xa32   :  { %v4055_v42 = vpop.xlane.xlu1 %4054  ;;  %v3582_v3 = vpop.xlane.xlu0 %3581 }
 0xa33   :  { %6803 = vpow2.f32 %v3625_v12  ;;  %v3610_v17 = vsub.f32 %v9660_v23, %v3582_v3  ;;  %v4085_v14 = vsub.f32 %v9655_v7, %v4055_v42 }
 0xa34   :  { %6805 = vpow2.f32 %v3623_v48 }
 0xa35   :  { %v3629_v54 = vmul.f32 1.442695, %v3610_v17  ;;  %v4102_v44 = vmul.f32 1.442695, %v4085_v14 }
 0xa36   :  { %v4059_v59 = vpop.xlane.xlu1 %4058  ;;  %v4053_v52 = vpop.xlane.xlu0 %4052 }
 0xa37   :  { %6807 = vpow2.f32 %v3629_v54  ;;  %v4084_v30 = vsub.f32 %v9676_v55, %v4053_v52  ;;  %v4087_v34 = vsub.f32 %v9671_v15, %v4059_v59  ;;  %v10099_v55 = vld [vmem:[%s11013_s1 + $0x8] sm:$0xff]  ;;  %v10108_v54 = vld [vmem:[%s11013_s1] sm:$0xff] }
 0xa39   :  { %v4100_v18 = vmul.f32 1.442695, %v4084_v30  ;;  %v4106_v7 = vmul.f32 1.442695, %v4087_v34 }
 0xa3a   :  { %v4629_v47 = vpop.xlane.xlu1 %4628  ;;  %v4627_v25 = vpop.xlane.xlu0 %4626 }
 0xa3b   :  { %v4659_v45 = vsub.f32 %v11409_v29, %v4629_v47  ;;  %6809 = vpow2.f32 %v4100_v18  ;;  %v4658_v42 = vsub.f32 %v9692_v36, %v4627_v25  ;;  %v10120_v29 = vld [vmem:[%s11013_s1 + $0x18] sm:$0xff] }
 0xa3c   :  { %6811 = vpow2.f32 %v4102_v44 }
 0xa3d   :  { %v6804_v12 = vpop.eup %6803  ;;  %v4676_v48 = vmul.f32 1.442695, %v4659_v45  ;;  %v4674_v44 = vmul.f32 1.442695, %v4658_v42 }
 0xa3e   :  { %v6806_v23 = vpop.eup %6805  ;;  %v4633_v3 = vpop.xlane.xlu1 %4632  ;;  %v10102_v15 = vmul.f32 %v10099_v55, %v6804_v12 }
 0xa3f   :  { %6813 = vpow2.f32 %v4676_v48  ;;  %v4661_v17 = vsub.f32 %v9701_v50, %v4633_v3  ;;  %v5193_v14 = vpop.xlane.xlu0 %5192  ;;  %v10111_v36 = vmul.f32 %v10108_v54, %v6806_v23 }
 0xa40   :  { %v5224_v59 = vsub.f32 %v9706_v51, %v5193_v14  ;;  %3673 = vadd.xlane.f32.xlu1 %v10102_v15  ;;  %6815 = vpow2.f32 %v4106_v7 }
 0xa41   :  { %v4680_v52 = vmul.f32 1.442695, %v4661_v17  ;;  %3671 = vadd.xlane.f32.xlu0 %v10111_v36  ;;  %v6808_v30 = vpop.eup %6807 }
 0xa42   :  { %v5240_v50 = vmul.f32 1.442695, %v5224_v59  ;;  %v5195_v34 = vpop.xlane.xlu1 %5194  ;;  %v10123_v51 = vmul.f32 %v10120_v29, %v6808_v30 }
 0xa43   :  { %6817 = vpow2.f32 %v4680_v52  ;;  %v5225_v18 = vsub.f32 %v9717_v41, %v5195_v34  ;;  %v3580_v47 = vpop.xlane.xlu0 %3579  ;;  %v11410_v41 = vld [vmem:[#allocation31_spill] sm:$0xff] }
 0xa44   :  { %v3609_v45 = vsub.f32 %v9722_v49, %v3580_v47  ;;  %6819 = vpow2.f32 %v5240_v50  ;;  %3677 = vadd.xlane.f32.xlu1 %v10123_v51 }
 0xa45   :  { %v5242_v25 = vmul.f32 1.442695, %v5225_v18  ;;  %v6810_v12 = vpop.eup %6809  ;;  %6821 = vpow2.f32 %v4674_v44 }
 0xa46   :  { %v3627_v48 = vmul.f32 1.442695, %v3609_v45  ;;  %v5199_v23 = vpop.xlane.xlu1 %5198  ;;  %v10129_v3 = vmul.f32 %v10108_v54, %v6810_v12  ;;  %v6812_v17 = vpop.eup %6811  ;;  %v11411_v45 = vld [vmem:[#allocation30_spill] sm:$0xff] }
 0xa47   :  { %v5227_v7 = vsub.f32 %v11410_v41, %v5199_v23  ;;  %v4057_v42 = vpop.xlane.xlu0 %4056  ;;  %6823 = vpow2.f32 %v5242_v25  ;;  %v10137_v34 = vmul.f32 %v10099_v55, %v6812_v17 }
 0xa48   :  { %v4086_v14 = vsub.f32 %v9738_v33, %v4057_v42  ;;  %4148 = vadd.xlane.f32.xlu1 %v10129_v3  ;;  %6825 = vpow2.f32 %v3627_v48 }
 0xa49   :  { %v6814_v59 = vpop.eup %6813  ;;  %v5246_v49 = vmul.f32 1.442695, %v5227_v7 }
 0xa4a   :  { %v4104_v52 = vmul.f32 1.442695, %v4086_v14  ;;  %v3586_v30 = vpop.xlane.xlu1 %3585  ;;  %v10134_v44 = vmul.f32 %v10099_v55, %v6814_v59  ;;  %v6816_v18 = vpop.eup %6815 }
 0xa4b   :  { %v4631_v50 = vpop.xlane.xlu0 %4630  ;;  %6827 = vpow2.f32 %v5246_v49  ;;  %v3612_v25 = vsub.f32 %v11411_v45, %v3586_v30  ;;  %v10147_v42 = vmul.f32 %v10120_v29, %v6816_v18  ;;  %v11412_v45 = vld [vmem:[#allocation73_spill] sm:$0xff] }
 0xa4c   :  { %v4660_v47 = vsub.f32 %v9752_v27, %v4631_v50  ;;  %4724 = vadd.xlane.f32.xlu0 %v10134_v44  ;;  %4150 = vadd.xlane.f32.xlu1 %v10137_v34  ;;  %6829 = vpow2.f32 %v4104_v52 }
 0xa4d   :  { %v6818_v33 = vpop.eup %6817  ;;  %v3633_v14 = vmul.f32 1.442695, %v3612_v25 }
 0xa4e   :  { %v4678_v12 = vmul.f32 1.442695, %v4660_v47  ;;  %v4063_v48 = vpop.xlane.xlu1 %4062  ;;  %v10144_v23 = vmul.f32 %v10120_v29, %v6818_v33  ;;  %v6820_v41 = vpop.eup %6819 }
 0xa4f   :  { %v5197_v7 = vpop.xlane.xlu0 %5196  ;;  %v6822_v27 = vpop.eup %6821  ;;  %v4089_v59 = vsub.f32 %v9763_v4, %v4063_v48  ;;  %v10154_v30 = vmul.f32 %v10108_v54, %v6820_v41 }
 0xa50   :  { %v5226_v17 = vsub.f32 %v9768_v43, %v5197_v7  ;;  %4728 = vadd.xlane.f32.xlu0 %v10144_v23  ;;  %6831 = vpow2.f32 %v4678_v12  ;;  %4154 = vadd.xlane.f32.xlu1 %v10147_v42  ;;  %v10157_v18 = vmul.f32 %v10108_v54, %v6822_v27  ;;  %v7075_v27 = vld [vmem:[%s11013_s1 + $0x10] sm:$0xff] }
 0xa51   :  { %v6824_v50 = vpop.eup %6823  ;;  %v4110_v4 = vmul.f32 1.442695, %v4089_v59 }
 0xa52   :  { %v5244_v49 = vmul.f32 1.442695, %v5226_v17  ;;  %v4637_v52 = vpop.xlane.xlu1 %4636  ;;  %v6826_v33 = vpop.eup %6825  ;;  %v10164_v41 = vmul.f32 %v10099_v55, %v6824_v50 }
 0xa53   :  { %v3584_v47 = vpop.xlane.xlu0 %3583  ;;  %v4663_v25 = vsub.f32 %v11412_v45, %v4637_v52 }
 0xa54   :  { %6833 = vpow2.f32 %v5244_v49  ;;  %v3611_v43 = vsub.f32 %v9784_v37, %v3584_v47  ;;  %5288 = vadd.xlane.f32.xlu0 %v10154_v30  ;;  %4722 = vadd.xlane.f32.xlu1 %v10157_v18  ;;  %v10169_v37 = vmul.f32 %v7075_v27, %v6826_v33 }
 0xa55   :  { %6835 = vpow2.f32 %v3633_v14  ;;  %v6828_v7 = vpop.eup %6827  ;;  %v4684_v14 = vmul.f32 1.442695, %v4663_v25 }
 0xa56   :  { %v3631_v12 = vmul.f32 1.442695, %v3611_v43  ;;  %v5203_v48 = vpop.xlane.xlu1 %5202  ;;  %11413 = vst [vmem:[#allocation80_spill] sm:$0xff] %v10169_v37  ;;  %v6830_v17 = vpop.eup %6829  ;;  %v10175_v49 = vmul.f32 %v10120_v29, %v6828_v7 }
 0xa57   :  { %v4061_v54 = vpop.xlane.xlu0 %4060  ;;  %v5229_v59 = vsub.f32 %v9793_v28, %v5203_v48  ;;  %v10177_v47 = vmul.f32 %v7075_v27, %v6830_v17 }
 0xa58   :  { %6837 = vpow2.f32 %v3631_v12  ;;  %5290 = vadd.xlane.f32.xlu0 %v10164_v41  ;;  %3675 = vadd.xlane.f32.xlu1 %v10169_v37 }
 0xa59   :  { %6839 = vpow2.f32 %v4110_v4  ;;  %v5250_v43 = vmul.f32 1.442695, %v5229_v59  ;;  %v11414_v4 = vld [vmem:[#allocation38_spill] sm:$0xff]  ;;  %v7076_v59 = vld [vmem:[%s11013_s1 + $0x28] sm:$0xff] }
 0xa5a   :  { %v3590_v55 = vpop.xlane.xlu1 %3589  ;;  %v6832_v52 = vpop.eup %6831  ;;  %6841 = vpow2.f32 %v4684_v14  ;;  %v4088_v45 = vsub.f32 %v11414_v4, %v4061_v54 }
 0xa5b   :  { %v4635_v50 = vpop.xlane.xlu0 %4634  ;;  %v10183_v48 = vmul.f32 %v7075_v27, %v6832_v52  ;;  %v3614_v4 = vsub.f32 %v9809_v60, %v3590_v55 }
 0xa5c   :  { %v4662_v33 = vsub.f32 %v9814_v61, %v4635_v50  ;;  %5294 = vadd.xlane.f32.xlu0 %v10175_v49  ;;  %4152 = vadd.xlane.f32.xlu1 %v10177_v47  ;;  %v4108_v61 = vmul.f32 1.442695, %v4088_v45 }
 0xa5d   :  { %11415 = vst [vmem:[#allocation66_spill] sm:$0xff] %v10183_v48 }
 0xa5e   :  { %v6834_v28 = vpop.eup %6833  ;;  %v4682_v25 = vmul.f32 1.442695, %v4662_v33  ;;  %v4067_v12 = vpop.xlane.xlu1 %4066  ;;  %v7077_v33 = vld [vmem:[%s11013_s1 + $0x20] sm:$0xff] }
 0xa5f   :  { %v6836_v29 = vpop.eup %6835  ;;  %v5201_v7 = vpop.xlane.xlu0 %5200  ;;  %v10185_v37 = vmul.f32 %v7075_v27, %v6834_v28 }
 0xa60   :  { %6843 = vpow2.f32 %v4682_v25  ;;  %4726 = vadd.xlane.f32.xlu0 %v10183_v48  ;;  %v5228_v17 = vsub.f32 %v9830_v31, %v5201_v7  ;;  %v10193_v52 = vmul.f32 %v7076_v59, %v6836_v29  ;;  %v11419_v48 = vld [vmem:[#allocation57_spill] sm:$0xff] }
 0xa61   :  { %11416 = vst [vmem:[#allocation45_spill] sm:$0xff] %v10185_v37  ;;  %6845 = vpow2.f32 %v5250_v43  ;;  %5292 = vadd.xlane.f32.xlu1 %v10185_v37 }
 0xa62   :  { %v6838_v54 = vpop.eup %6837  ;;  %v4641_v14 = vpop.xlane.xlu1 %4640  ;;  %11417 = vst [vmem:[#allocation59_spill] sm:$0xff] %v10193_v52  ;;  %6847 = vpow2.f32 %v4108_v61  ;;  %v5248_v45 = vmul.f32 1.442695, %v5228_v17 }
 0xa63   :  { %v6840_v50 = vpop.eup %6839  ;;  %v3588_v27 = vpop.xlane.xlu0 %3587  ;;  %v10198_v43 = vmul.f32 %v7077_v33, %v6838_v54  ;;  %v3637_v54 = vmul.f32 1.442695, %v3614_v4  ;;  %v4665_v4 = vsub.f32 %v9839_v21, %v4641_v14 }
 0xa64   :  { %v3613_v31 = vsub.f32 %v9844_v56, %v3588_v27  ;;  %3681 = vadd.xlane.f32.xlu0 %v10193_v52  ;;  %v10204_v29 = vmul.f32 %v7076_v59, %v6840_v50  ;;  %v6842_v7 = vpop.eup %6841  ;;  %v4091_v56 = vsub.f32 %v11419_v48, %v4067_v12 }
 0xa65   :  { %3679 = vadd.xlane.f32.xlu1 %v10198_v43  ;;  %v10208_v52 = vmul.f32 %v7076_v59, %v6842_v7 }
 0xa66   :  { %v3635_v28 = vmul.f32 1.442695, %v3613_v31  ;;  %v5207_v25 = vpop.xlane.xlu1 %5206  ;;  %11418 = vst [vmem:[#allocation77_spill] sm:$0xff] %v10204_v29 }
 0xa67   :  { %v4065_v37 = vpop.xlane.xlu0 %4064 }
 0xa68   :  { %6849 = vpow2.f32 %v3635_v28  ;;  %4158 = vadd.xlane.f32.xlu0 %v10204_v29  ;;  %v4114_v28 = vmul.f32 1.442695, %v4091_v56 }
 0xa69   :  { %6851 = vpow2.f32 %v5248_v45 }
 0xa6a   :  { %v6844_v27 = vpop.eup %6843  ;;  %v3594_v61 = vpop.xlane.xlu1 %3593  ;;  %6853 = vpow2.f32 %v3637_v54 }
 0xa6b   :  { %v6846_v60 = vpop.eup %6845  ;;  %v3616_v55 = vsub.f32 %v9871_v0, %v3594_v61  ;;  %v4639_v17 = vpop.xlane.xlu0 %4638  ;;  %v10211_v31 = vmul.f32 %v7077_v33, %v6844_v27  ;;  %v11421_v27 = vld [vmem:[#allocation40_spill] sm:$0xff] }
 0xa6c   :  { %v4664_v50 = vsub.f32 %v9876_v9, %v4639_v17  ;;  %4732 = vadd.xlane.f32.xlu0 %v10208_v52  ;;  %v10217_v7 = vmul.f32 %v7076_v59, %v6846_v60  ;;  %v6848_v29 = vpop.eup %6847  ;;  %v4688_v9 = vmul.f32 1.442695, %v4665_v4  ;;  %v5231_v61 = vsub.f32 %v11421_v27, %v5207_v25  ;;  %v10226_v59 = vld [vmem:[%s11013_s1 + $0x30] sm:$0xff]  ;;  %v11422_v17 = vld [vmem:[#allocation68_spill] sm:$0xff] }
 0xa6d   :  { %4730 = vadd.xlane.f32.xlu1 %v10211_v31  ;;  %v3641_v12 = vmul.f32 1.442695, %v3616_v55  ;;  %v10221_v21 = vmul.f32 %v7077_v33, %v6848_v29 }
 0xa6e   :  { %v4686_v48 = vmul.f32 1.442695, %v4664_v50  ;;  %v4071_v45 = vpop.xlane.xlu1 %4070  ;;  %11420 = vst [vmem:[#allocation81_spill] sm:$0xff] %v10217_v7  ;;  %v4090_v50 = vsub.f32 %v11422_v17, %v4065_v37  ;;  %v5254_v25 = vmul.f32 1.442695, %v5231_v61 }
 0xa6f   :  { %v5205_v0 = vpop.xlane.xlu0 %5204 }
 0xa70   :  { %6855 = vpow2.f32 %v4686_v48  ;;  %5298 = vadd.xlane.f32.xlu0 %v10217_v7  ;;  %v4112_v7 = vmul.f32 1.442695, %v4090_v50 }
 0xa71   :  { %6857 = vpow2.f32 %v4114_v28 }
 0xa72   :  { %v6850_v54 = vpop.eup %6849  ;;  %6859 = vpow2.f32 %v3641_v12  ;;  %v4645_v56 = vpop.xlane.xlu1 %4644 }
 0xa73   :  { %v6852_v14 = vpop.eup %6851  ;;  %v3592_v55 = vpop.xlane.xlu0 %3591  ;;  %v10229_v60 = vmul.f32 %v10226_v59, %v6850_v54  ;;  %6861 = vpow2.f32 %v4688_v9  ;;  %v5230_v54 = vsub.f32 %v9890_v22, %v5205_v0  ;;  %v11426_v0 = vld [vmem:[#allocation47_spill] sm:$0xff] }
 0xa74   :  { %4156 = vadd.xlane.f32.xlu0 %v10221_v21  ;;  %v3615_v28 = vsub.f32 %v9904_v2, %v3592_v55  ;;  %v10235_v4 = vmul.f32 %v7077_v33, %v6852_v14  ;;  %v6854_v12 = vpop.eup %6853  ;;  %6863 = vpow2.f32 %v5254_v25  ;;  %v7079_v2 = vld [vmem:[%s11013_s1 + $0x38] sm:$0xff]  ;;  %v4093_v50 = vsub.f32 %v11426_v0, %v4071_v45 }
 0xa75   :  { %3683 = vadd.xlane.f32.xlu1 %v10229_v60  ;;  %v10243_v33 = vmul.f32 %v7079_v2, %v6854_v12  ;;  %v5252_v25 = vmul.f32 1.442695, %v5230_v54  ;;  %v11427_v54 = vld [vmem:[#allocation53_spill] sm:$0xff] }
 0xa76   :  { %v5211_v29 = vpop.xlane.xlu1 %5210  ;;  %11423 = vst [vmem:[#allocation70_spill] sm:$0xff] %v10235_v4  ;;  %v3639_v37 = vmul.f32 1.442695, %v3615_v28 }
 0xa77   :  { %v5233_v48 = vsub.f32 %v9913_v13, %v5211_v29  ;;  %v4069_v27 = vpop.xlane.xlu0 %4068  ;;  %11424 = vst [vmem:[#allocation48_spill] sm:$0xff] %v10243_v33 }
 0xa78   :  { %5296 = vadd.xlane.f32.xlu0 %v10235_v4 }
 0xa79   :  { %v5258_v9 = vmul.f32 1.442695, %v5233_v48 }
 0xa7a   :  { %v6856_v61 = vpop.eup %6855  ;;  %v3598_v17 = vpop.xlane.xlu1 %3597 }
 0xa7b   :  { %v6858_v14 = vpop.eup %6857  ;;  %6865 = vpow2.f32 %v5258_v9  ;;  %v4643_v13 = vpop.xlane.xlu0 %4642  ;;  %v10246_v55 = vmul.f32 %v10226_v59, %v6856_v61 }
 0xa7c   :  { %v6860_v22 = vpop.eup %6859  ;;  %6867 = vpow2.f32 %v4112_v7  ;;  %v4666_v28 = vsub.f32 %v9932_v58, %v4643_v13  ;;  %3685 = vadd.xlane.f32.xlu0 %v10243_v33  ;;  %v10252_v48 = vmul.f32 %v7079_v2, %v6858_v14  ;;  %v10257_v7 = vld [vmem:[%s11013_s1 + $0x48] sm:$0xff]  ;;  %v4118_v58 = vmul.f32 1.442695, %v4093_v50 }
 0xa7d   :  { %11425 = vst [vmem:[#allocation23_spill] sm:$0xff] %v10246_v55  ;;  %6869 = vpow2.f32 %v3639_v37  ;;  %4734 = vadd.xlane.f32.xlu1 %v10246_v55  ;;  %v6862_v9 = vpop.eup %6861  ;;  %v10260_v45 = vmul.f32 %v10257_v7, %v6860_v22  ;;  %v4667_v37 = vsub.f32 %v11427_v54, %v4645_v56  ;;  %v3618_v14 = vsub.f32 %v9927_v57, %v3598_v17 }
 0xa7e   :  { %v4690_v29 = vmul.f32 1.442695, %v4666_v28  ;;  %v4075_v12 = vpop.xlane.xlu1 %4074  ;;  %6871 = vpow2.f32 %v5252_v25  ;;  %v10267_v28 = vmul.f32 %v7079_v2, %v6862_v9  ;;  %v6864_v55 = vpop.eup %6863  ;;  %v11428_v25 = vld [vmem:[#allocation62_spill] sm:$0xff] }
 0xa7f   :  { %v5209_v4 = vpop.xlane.xlu0 %5208  ;;  %v4692_v50 = vmul.f32 1.442695, %v4667_v37  ;;  %v4092_v33 = vsub.f32 %v11428_v25, %v4069_v27  ;;  %v3645_v56 = vmul.f32 1.442695, %v3618_v14  ;;  %v11430_v37 = vld [vmem:[#allocation41_spill] sm:$0xff] }
 0xa80   :  { %v5232_v61 = vsub.f32 %v9947_v5, %v5209_v4  ;;  %4162 = vadd.xlane.f32.xlu0 %v10252_v48  ;;  %6873 = vpow2.f32 %v4690_v29  ;;  %v10272_v29 = vmul.f32 %v7079_v2, %v6864_v55  ;;  %v4095_v27 = vsub.f32 %v11430_v37, %v4075_v12 }
 0xa81   :  { %3689 = vadd.xlane.f32.xlu1 %v10260_v45  ;;  %6875 = vpow2.f32 %v4118_v58  ;;  %v4116_v58 = vmul.f32 1.442695, %v4092_v33 }
 0xa82   :  { %v5256_v13 = vmul.f32 1.442695, %v5232_v61  ;;  %v4649_v0 = vpop.xlane.xlu1 %4648  ;;  %11429 = vst [vmem:[#allocation76_spill] sm:$0xff] %v10272_v29  ;;  %v4122_v25 = vmul.f32 1.442695, %v4095_v27 }
 0xa83   :  { %v3596_v22 = vpop.xlane.xlu0 %3595  ;;  %v4669_v57 = vsub.f32 %v9954_v39, %v4649_v0  ;;  %v7081_v0 = vld [vmem:[%s11013_s1 + $0x40] sm:$0xff] }
 0xa84   :  { %4736 = vadd.xlane.f32.xlu0 %v10267_v28  ;;  %6877 = vpow2.f32 %v5256_v13 }
 0xa85   :  { %v6866_v5 = vpop.eup %6865  ;;  %6879 = vpow2.f32 %v4692_v50  ;;  %v4696_v14 = vmul.f32 1.442695, %v4669_v57 }
 0xa86   :  { %v6868_v4 = vpop.eup %6867  ;;  %v5215_v17 = vpop.xlane.xlu1 %5214  ;;  %v10275_v9 = vmul.f32 %v10257_v7, %v6866_v5  ;;  %6881 = vpow2.f32 %v3645_v56  ;;  %v11431_v5 = vld [vmem:[#allocation75_spill] sm:$0xff] }
 0xa87   :  { %v6870_v54 = vpop.eup %6869  ;;  %v4073_v61 = vpop.xlane.xlu0 %4072  ;;  %v5235_v39 = vsub.f32 %v9968_v35, %v5215_v17  ;;  %v10282_v55 = vmul.f32 %v10226_v59, %v6868_v4  ;;  %6883 = vpow2.f32 %v4116_v58  ;;  %v3617_v56 = vsub.f32 %v11431_v5, %v3596_v22  ;;  %v11432_v22 = vld [vmem:[#allocation42_spill] sm:$0xff] }
 0xa88   :  { %5302 = vadd.xlane.f32.xlu0 %v10272_v29  ;;  %5306 = vadd.xlane.f32.xlu1 %v10275_v9  ;;  %v6872_v13 = vpop.eup %6871  ;;  %v10287_v33 = vmul.f32 %v7081_v0, %v6870_v54  ;;  %6885 = vpow2.f32 %v4696_v14  ;;  %v4094_v5 = vsub.f32 %v11432_v22, %v4073_v61 }
 0xa89   :  { %v5262_v35 = vmul.f32 1.442695, %v5235_v39  ;;  %v10294_v37 = vmul.f32 %v10226_v59, %v6872_v13  ;;  %6887 = vpow2.f32 %v4122_v25  ;;  %v3643_v27 = vmul.f32 1.442695, %v3617_v56 }
 0xa8a   :  { %v3602_v2 = vpop.xlane.xlu1 %3601  ;;  %v6874_v12 = vpop.eup %6873  ;;  %v4120_v56 = vmul.f32 1.442695, %v4094_v5 }
 0xa8b   :  { %v4647_v50 = vpop.xlane.xlu0 %4646  ;;  %v6876_v4 = vpop.eup %6875  ;;  %v10296_v54 = vmul.f32 %v7081_v0, %v6874_v12  ;;  %6889 = vpow2.f32 %v5262_v35  ;;  %v3620_v61 = vsub.f32 %v9981_v26, %v3602_v2  ;;  %v11435_v35 = vld [vmem:[#allocation43_spill] sm:$0xff] }
 0xa8c   :  { %4160 = vadd.xlane.f32.xlu0 %v10282_v55  ;;  %3687 = vadd.xlane.f32.xlu1 %v10287_v33  ;;  %v4668_v57 = vsub.f32 %v9987_v32, %v4647_v50  ;;  %v10303_v59 = vmul.f32 %v10257_v7, %v6876_v4  ;;  %6891 = vpow2.f32 %v3643_v27 }
 0xa8d   :  { %v3649_v5 = vmul.f32 1.442695, %v3620_v61 }
 0xa8e   :  { %v4079_v17 = vpop.xlane.xlu1 %4078  ;;  %v6878_v29 = vpop.eup %6877  ;;  %v4694_v14 = vmul.f32 1.442695, %v4668_v57  ;;  %11433 = vst [vmem:[#allocation61_spill] sm:$0xff] %v10303_v59 }
 0xa8f   :  { %v5213_v58 = vpop.xlane.xlu0 %5212  ;;  %v6880_v39 = vpop.eup %6879  ;;  %v10305_v13 = vmul.f32 %v7081_v0, %v6878_v29  ;;  %v7082_v29 = vld [vmem:[%s11013_s1 + $0x58] sm:$0xff] }
 0xa90   :  { %5300 = vadd.xlane.f32.xlu0 %v10294_v37  ;;  %4738 = vadd.xlane.f32.xlu1 %v10296_v54  ;;  %v5234_v32 = vsub.f32 %v9998_v6, %v5213_v58  ;;  %v6882_v12 = vpop.eup %6881  ;;  %6893 = vpow2.f32 %v4694_v14  ;;  %v4097_v6 = vsub.f32 %v11435_v35, %v4079_v17  ;;  %v10312_v4 = vmul.f32 %v10257_v7, %v6880_v39 }
 0xa91   :  { %11434 = vst [vmem:[#allocation54_spill] sm:$0xff] %v10305_v13  ;;  %v6884_v58 = vpop.eup %6883  ;;  %v10317_v27 = vmul.f32 %v7082_v29, %v6882_v12  ;;  %6895 = vpow2.f32 %v4120_v56 }
 0xa92   :  { %v4653_v50 = vpop.xlane.xlu1 %4652  ;;  %v5260_v57 = vmul.f32 1.442695, %v5234_v32  ;;  %v6886_v26 = vpop.eup %6885  ;;  %v4126_v17 = vmul.f32 1.442695, %v4097_v6  ;;  %v10323_v35 = vmul.f32 %v7081_v0, %v6884_v58 }
 0xa93   :  { %v3600_v25 = vpop.xlane.xlu0 %3599  ;;  %v4671_v14 = vsub.f32 %v10006_v38, %v4653_v50  ;;  %v6888_v32 = vpop.eup %6887  ;;  %v10325_v12 = vmul.f32 %v7082_v29, %v6886_v26 }
 0xa94   :  { %4166 = vadd.xlane.f32.xlu0 %v10303_v59  ;;  %5304 = vadd.xlane.f32.xlu1 %v10305_v13  ;;  %6897 = vpow2.f32 %v5260_v57  ;;  %v3619_v7 = vsub.f32 %v10012_v11, %v3600_v25  ;;  %v10331_v0 = vmul.f32 %v7082_v29, %v6888_v32 }
 0xa95   :  { %v6890_v59 = vpop.eup %6889  ;;  %6899 = vpow2.f32 %v3649_v5  ;;  %v4700_v56 = vmul.f32 1.442695, %v4671_v14 }
 0xa96   :  { %v5219_v22 = vpop.xlane.xlu1 %5218  ;;  %6901 = vpow2.f32 %v4126_v17  ;;  %v3647_v50 = vmul.f32 1.442695, %v3619_v7  ;;  %v6892_v25 = vpop.eup %6891  ;;  %v10333_v6 = vmul.f32 %v7082_v29, %v6890_v59  ;;  %v7083_v59 = vld [vmem:[%s11013_s1 + $0x50] sm:$0xff] }
 0xa97   :  { %v4077_v2 = vpop.xlane.xlu0 %4076  ;;  %6903 = vpow2.f32 %v4700_v56  ;;  %v5237_v26 = vsub.f32 %v10019_v10, %v5219_v22  ;;  %v10342_v29 = vmul.f32 %v7083_v59, %v6892_v25 }
 0xa98   :  { %4740 = vadd.xlane.f32.xlu0 %v10312_v4  ;;  %3693 = vadd.xlane.f32.xlu1 %v10317_v27  ;;  %v4096_v38 = vsub.f32 %v10025_v53, %v4077_v2  ;;  %6905 = vpow2.f32 %v3647_v50 }
 0xa99   :  { %v5266_v22 = vmul.f32 1.442695, %v5237_v26 }
 0xa9a   :  { %v3606_v39 = vpop.xlane.xlu1 %3605  ;;  %v6894_v57 = vpop.eup %6893  ;;  %v4124_v53 = vmul.f32 1.442695, %v4096_v38 }
 0xa9b   :  { %v4651_v13 = vpop.xlane.xlu0 %4650  ;;  %v3622_v2 = vsub.f32 %v10032_v46, %v3606_v39  ;;  %v10344_v14 = vmul.f32 %v7083_v59, %v6894_v57 }
 0xa9c   :  { %4164 = vadd.xlane.f32.xlu0 %v10323_v35  ;;  %4744 = vadd.xlane.f32.xlu1 %v10325_v12  ;;  %v4670_v11 = vsub.f32 %v10037_v40, %v4651_v13  ;;  %v6896_v13 = vpop.eup %6895  ;;  %6907 = vpow2.f32 %v4124_v53  ;;  %v7084_v53 = vld [vmem:[%s11013_s1 + $0x68] sm:$0xff] }
 0xa9d   :  { %v3653_v46 = vmul.f32 1.442695, %v3622_v2  ;;  %v10350_v38 = vmul.f32 %v7083_v59, %v6896_v13 }
 0xa9e   :  { %v4083_v61 = vpop.xlane.xlu1 %4082  ;;  %v4698_v40 = vmul.f32 1.442695, %v4670_v11  ;;  %v6898_v10 = vpop.eup %6897 }
 0xa9f   :  { %v5217_v58 = vpop.xlane.xlu0 %5216  ;;  %v4099_v17 = vsub.f32 %v10046_v1, %v4083_v61  ;;  %v6900_v39 = vpop.eup %6899  ;;  %v10352_v50 = vmul.f32 %v7083_v59, %v6898_v10  ;;  %v7085_v10 = vld [vmem:[%s11013_s1 + $0x60] sm:$0xff] }
 0xaa0   :  { %4170 = vadd.xlane.f32.xlu0 %v10331_v0  ;;  %5310 = vadd.xlane.f32.xlu1 %v10333_v6  ;;  %6909 = vpow2.f32 %v4698_v40  ;;  %v6902_v11 = vpop.eup %6901  ;;  %v5236_v1 = vsub.f32 %v10051_v16, %v5217_v58  ;;  %v10361_v2 = vmul.f32 %v7084_v53, %v6900_v39 }
 0xaa1   :  { %6911 = vpow2.f32 %v5266_v22  ;;  %v4130_v25 = vmul.f32 1.442695, %v4099_v17  ;;  %v10363_v40 = vmul.f32 %v7084_v53, %v6902_v11 }
 0xaa2   :  { %v4657_v5 = vpop.xlane.xlu1 %4656  ;;  %6913 = vpow2.f32 %v3653_v46  ;;  %v5264_v16 = vmul.f32 1.442695, %v5236_v1 }
 0xaa3   :  { %v3604_v7 = vpop.xlane.xlu0 %3603  ;;  %v4673_v32 = vsub.f32 %v10058_v24, %v4657_v5  ;;  %v6904_v24 = vpop.eup %6903  ;;  %6915 = vpow2.f32 %v4130_v25 }
 0xaa4   :  { %3691 = vadd.xlane.f32.xlu0 %v10342_v29  ;;  %4742 = vadd.xlane.f32.xlu1 %v10344_v14  ;;  %v6906_v13 = vpop.eup %6905  ;;  %v10368_v59 = vmul.f32 %v7084_v53, %v6904_v24 }
 0xaa5   :  { %v4704_v61 = vmul.f32 1.442695, %v4673_v32  ;;  %v10373_v22 = vmul.f32 %v7085_v10, %v6906_v13 }
 0xaa6   :  { %v5223_v56 = vpop.xlane.xlu1 %5222  ;;  %v6908_v5 = vpop.eup %6907 }
 0xaa7   :  { %v5239_v57 = vsub.f32 %v10070_v19, %v5223_v56  ;;  %v4081_v26 = vpop.xlane.xlu0 %4080  ;;  %6917 = vpow2.f32 %v4704_v61  ;;  %v3621_v19 = vsub.f32 %v10063_v20, %v3604_v7  ;;  %v10378_v39 = vmul.f32 %v7085_v10, %v6908_v5 }
 0xaa8   :  { %4168 = vadd.xlane.f32.xlu0 %v10350_v38  ;;  %5308 = vadd.xlane.f32.xlu1 %v10352_v50  ;;  %6919 = vpow2.f32 %v5264_v16  ;;  %v4098_v20 = vsub.f32 %v10075_v63, %v4081_v26  ;;  %v7086_v63 = vld [vmem:[%s11013_s1 + $0x78] sm:$0xff] }
 0xaa9   :  { %v5270_v58 = vmul.f32 1.442695, %v5239_v57  ;;  %v3651_v32 = vmul.f32 1.442695, %v3621_v19 }
 0xaaa   :  { %v6910_v17 = vpop.eup %6909  ;;  %v4128_v25 = vmul.f32 1.442695, %v4098_v20 }
 0xaab   :  { %v4655_v46 = vpop.xlane.xlu0 %4654  ;;  %6921 = vpow2.f32 %v5270_v58  ;;  %v6912_v7 = vpop.eup %6911  ;;  %v10380_v56 = vmul.f32 %v7085_v10, %v6910_v17 }
 0xaac   :  { %3697 = vadd.xlane.f32.xlu0 %v10361_v2  ;;  %4174 = vadd.xlane.f32.xlu1 %v10363_v40  ;;  %v6914_v11 = vpop.eup %6913  ;;  %6923 = vpow2.f32 %v3651_v32  ;;  %v4672_v1 = vsub.f32 %v10080_v62, %v4655_v46  ;;  %v10385_v24 = vmul.f32 %v7084_v53, %v6912_v7 }
 0xaad   :  { %v6916_v61 = vpop.eup %6915  ;;  %v10390_v26 = vmul.f32 %v7086_v63, %v6914_v11  ;;  %6925 = vpow2.f32 %v4128_v25 }
 0xaae   :  { %v4702_v16 = vmul.f32 1.442695, %v4672_v1  ;;  %v10397_v53 = vmul.f32 %v7086_v63, %v6916_v61 }
 0xaaf   :  { %v5221_v57 = vpop.xlane.xlu0 %5220 }
 0xab0   :  { %4748 = vadd.xlane.f32.xlu1 %v10368_v59  ;;  %3695 = vadd.xlane.f32.xlu0 %v10373_v22  ;;  %v5238_v19 = vsub.f32 %v10085_v8, %v5221_v57  ;;  %6927 = vpow2.f32 %v4702_v16  ;;  %v7087_v8 = vld [vmem:[%s11013_s1 + $0x70] sm:$0xff] }
 0xab1   :  { %v6918_v13 = vpop.eup %6917 }
 0xab2   :  { %v6920_v62 = vpop.eup %6919  ;;  %v10395_v58 = vmul.f32 %v7086_v63, %v6918_v13  ;;  %v5268_v17 = vmul.f32 1.442695, %v5238_v19 }
 0xab3   :  { %v10403_v32 = vmul.f32 %v7085_v10, %v6920_v62  ;;  %v11441_v62 = vld [vmem:[#allocation78_spill] sm:$0xff] }
 0xab4   :  { %4172 = vadd.xlane.f32.xlu1 %v10378_v39  ;;  %4746 = vadd.xlane.f32.xlu0 %v10380_v56  ;;  %6929 = vpow2.f32 %v5268_v17 }
 0xab5   :  { %v6922_v5 = vpop.eup %6921  ;;  %11436 = vst [vmem:[#allocation60_spill] sm:$0xff] %v10403_v32 }
 0xab6   :  { %v10401_v46 = vmul.f32 %v7086_v63, %v6922_v5  ;;  %v6924_v20 = vpop.eup %6923 }
 0xab7   :  { %v10410_v7 = vmul.f32 %v7087_v8, %v6924_v20  ;;  %v6926_v11 = vpop.eup %6925 }
 0xab8   :  { %5314 = vadd.xlane.f32.xlu1 %v10385_v24  ;;  %3701 = vadd.xlane.f32.xlu0 %v10390_v26  ;;  %v10413_v25 = vmul.f32 %v7087_v8, %v6926_v11 }
 0xab9   :  { %11437 = vst [vmem:[#allocation20_spill] sm:$0xff] %v10410_v7 }
 0xaba   :  { %11438 = vst [vmem:[#allocation32_spill] sm:$0xff] %v10413_v25  ;;  %v6928_v1 = vpop.eup %6927 }
 0xabb   :  { %v10416_v10 = vmul.f32 %v7087_v8, %v6928_v1 }
 0xabc   :  { %4752 = vadd.xlane.f32.xlu1 %v10395_v58  ;;  %4178 = vadd.xlane.f32.xlu0 %v10397_v53 }
 0xabd   :  { %11439 = vst [vmem:[#allocation33_spill] sm:$0xff] %v10416_v10 }
 0xabe   :  { %v6930_v61 = vpop.eup %6929 }
 0xabf   :  { %v10419_v13 = vmul.f32 %v7087_v8, %v6930_v61 }
 0xac0   :  { %5318 = vadd.xlane.f32.xlu1 %v10401_v46  ;;  %5312 = vadd.xlane.f32.xlu0 %v10403_v32 }
 0xac1   :  { %11440 = vst [vmem:[#allocation37_spill] sm:$0xff] %v10419_v13 }
 0xac4   :  { %3699 = vadd.xlane.f32.xlu1 %v10410_v7 }
 0xac8   :  { %4176 = vadd.xlane.f32.xlu1 %v10413_v25 }
 0xacc   :  { %4750 = vadd.xlane.f32.xlu1 %v10416_v10 }
 0xacd   :  { %v3674_v57 = vpop.xlane.xlu1 %3673 }
 0xace   :  { %6931 = vrcp.f32 %v3674_v57  ;;  %v3672_v63 = vpop.xlane.xlu0 %3671  ;;  %vm3720_vm11 = vcmp.gt.f32.partialorder %v3674_v57, 0.0 }
 0xacf   :  { %6933 = vrcp.f32 %v3672_v63  ;;  %vm3719_vm5 = vcmp.gt.f32.partialorder %v3672_v63, 0.0 }
 0xad0   :  { %5316 = vadd.xlane.f32.xlu1 %v10419_v13 }
 0xad1   :  { %v3678_v16 = vpop.xlane.xlu1 %3677 }
 0xad2   :  { %6935 = vrcp.f32 %v3678_v16  ;;  %vm3722_vm15 = vcmp.gt.f32.partialorder %v3678_v16, 0.0 }
 0xad5   :  { %v4149_v19 = vpop.xlane.xlu1 %4148 }
 0xad6   :  { %5423 = vrot.lane.b32.xlu0 %v11441_v62, %s7261_s2  ;;  %6937 = vrcp.f32 %v4149_v19  ;;  %vm4196_vm0 = vcmp.gt.f32.partialorder %v4149_v19, 0.0  ;;  %s7198_s2 = scalar_lea.vmem %s5618_s13, 8192 }
 0xad7   :  { %p7199_p12 = scmp.ne.s32.totalorder %s5618_s13, %s7198_s2  ;;  %p7204_p0 = scmp.lt.s32.totalorder %s7198_s2, %s7198_s2 }
 0xad8   :  { %v6932_v5 = vpop.eup %6931 }
 0xad9   :  { %v6934_v17 = vpop.eup %6933  ;;  %v3736_v20 = vsel %vm3720_vm11, %v6932_v5, 0.0  ;;  %v4725_v11 = vpop.xlane.xlu0 %4724  ;;  %p7205_p1 = por %p7204_p0, %p7203_p13 }
 0xada   :  { %v3752_v1 = vmul.f32 %v3736_v20, %v10102_v15  ;;  %v3735_v8 = vsel %vm3719_vm5, %v6934_v17, 0.0  ;;  %v4151_v61 = vpop.xlane.xlu1 %4150  ;;  %6939 = vrcp.f32 %v4725_v11  ;;  %vm4771_vm6 = vcmp.gt.f32.partialorder %v4725_v11, 0.0 }
 0xadb   :  { %v3751_v13 = vmul.f32 %v3735_v8, %v10111_v36  ;;  %6941 = vrcp.f32 %v4151_v61  ;;  %vm4197_vm9 = vcmp.gt.f32.partialorder %v4151_v61, 0.0  ;;  %p7206_p2 = pnand %p7205_p1, %p7199_p12 }
 0xadc   :  { %3768 = vst [vmem:[#allocation13 + $0x8] sm:$0xff] %v3752_v1  ;;  %v6936_v10 = vpop.eup %6935 }
 0xadd   :  { %3767 = vst [vmem:[#allocation13] sm:$0xff] %v3751_v13  ;;  %v4729_v25 = vpop.xlane.xlu0 %4728  ;;  %v3783_v7 = vpack.c.bf16 %v3752_v1, %v3751_v13  ;;  %v3738_v32 = vsel %vm3722_vm15, %v6936_v10, 0.0 }
 0xade   :  { %v4155_v57 = vpop.xlane.xlu1 %4154  ;;  %6943 = vrcp.f32 %v4729_v25  ;;  %v10427_v63 = vmul.f32 %v3738_v32, %v10123_v51  ;;  %vm4773_vm2 = vcmp.gt.f32.partialorder %v4729_v25, 0.0 }
 0xadf   :  { %6945 = vrcp.f32 %v4155_v57  ;;  %6266 = vmatprep.mubr.bf16.mxu0 %v3783_v7  ;;  %vm4199_vm10 = vcmp.gt.f32.partialorder %v4155_v57, 0.0 }
 0xae0   :  { %v6938_v15 = vpop.eup %6937  ;;  %3770 = vst [vmem:[#allocation13 + $0x18] sm:$0xff] %v10427_v63 }
 0xae1   :  { %4857 = vrot.lane.b32.xlu1 %v11441_v62, %s7260_s21  ;;  %v5289_v36 = vpop.xlane.xlu0 %5288  ;;  %v4212_v5 = vsel %vm4196_vm0, %v6938_v15, 0.0 }
 0xae2   :  { %v4723_v16 = vpop.xlane.xlu1 %4722  ;;  %6947 = vrcp.f32 %v5289_v36  ;;  %v4228_v10 = vmul.f32 %v4212_v5, %v10129_v3  ;;  %vm5336_vm7 = vcmp.gt.f32.partialorder %v5289_v36, 0.0 }
 0xae3   :  { %6949 = vrcp.f32 %v4723_v16  ;;  %vm4770_vm8 = vcmp.gt.f32.partialorder %v4723_v16, 0.0 }
 0xae4   :  { %v6940_v13 = vpop.eup %6939  ;;  %4245 = vst [vmem:[#allocation13 + $0x80] sm:$0xff] %v4228_v10 }
 0xae5   :  { %v6942_v51 = vpop.eup %6941  ;;  %v4787_v32 = vsel %vm4771_vm6, %v6940_v13, 0.0  ;;  %v5291_v7 = vpop.xlane.xlu0 %5290 }
 0xae6   :  { %v4213_v17 = vsel %vm4197_vm9, %v6942_v51, 0.0  ;;  %v10434_v19 = vmul.f32 %v4787_v32, %v10134_v44  ;;  %v3676_v20 = vpop.xlane.xlu1 %3675  ;;  %6951 = vrcp.f32 %v5291_v7  ;;  %vm5337_vm14 = vcmp.gt.f32.partialorder %v5291_v7, 0.0 }
 0xae7   :  { %v4229_v62 = vmul.f32 %v4213_v17, %v10137_v34  ;;  %6953 = vrcp.f32 %v3676_v20  ;;  %vm3721_vm3 = vcmp.gt.f32.partialorder %v3676_v20, 0.0 }
 0xae8   :  { %v6944_v1 = vpop.eup %6943  ;;  %4820 = vst [vmem:[#allocation13 + $0x108] sm:$0xff] %v10434_v19 }
 0xae9   :  { %v6946_v3 = vpop.eup %6945  ;;  %4246 = vst [vmem:[#allocation13 + $0x88] sm:$0xff] %v4229_v62  ;;  %v4789_v11 = vsel %vm4773_vm2, %v6944_v1, 0.0  ;;  %v5295_v8 = vpop.xlane.xlu0 %5294  ;;  %v4261_v61 = vpack.c.bf16 %v4229_v62, %v4228_v10 }
 0xaea   :  { %v4215_v15 = vsel %vm4199_vm10, %v6946_v3, 0.0  ;;  %v10439_v5 = vmul.f32 %v4789_v11, %v10144_v23  ;;  %v4153_v44 = vpop.xlane.xlu1 %4152  ;;  %6955 = vrcp.f32 %v5295_v8  ;;  %v11442_v11 = vld [vmem:[#allocation80_spill] sm:$0xff]  ;;  %vm5339_vm13 = vcmp.gt.f32.partialorder %v5295_v8, 0.0  ;;  %v11443_v8 = vld [vmem:[#allocation51_spill] sm:$0xff] }
 0xaeb   :  { %v10442_v13 = vmul.f32 %v4215_v15, %v10147_v42  ;;  %6957 = vrcp.f32 %v4153_v44  ;;  %6298 = vmatprep.mubr.bf16.mxu1 %v4261_v61  ;;  %vm4198_vm4 = vcmp.gt.f32.partialorder %v4153_v44, 0.0 }
 0xaec   :  { %v6948_v34 = vpop.eup %6947  ;;  %4822 = vst [vmem:[#allocation13 + $0x118] sm:$0xff] %v10439_v5 }
 0xaed   :  { %v6950_v25 = vpop.eup %6949  ;;  %4248 = vst [vmem:[#allocation13 + $0x98] sm:$0xff] %v10442_v13  ;;  %v5352_v57 = vsel %vm5336_vm7, %v6948_v34, 0.0  ;;  %v4727_v10 = vpop.xlane.xlu0 %4726 }
 0xaee   :  { %v4786_v51 = vsel %vm4770_vm8, %v6950_v25, 0.0  ;;  %v10447_v23 = vmul.f32 %v5352_v57, %v10154_v30  ;;  %v5293_v32 = vpop.xlane.xlu1 %5292  ;;  %6959 = vrcp.f32 %v4727_v10  ;;  %vm4772_vm12 = vcmp.gt.f32.partialorder %v4727_v10, 0.0 }
 0xaef   :  { %v10450_v42 = vmul.f32 %v4786_v51, %v10157_v18  ;;  %6961 = vrcp.f32 %v5293_v32  ;;  %vm5338_vm11 = vcmp.gt.f32.partialorder %v5293_v32, 0.0  ;;  %v11447_v32 = vld [vmem:[#allocation55_spill] sm:$0xff] }
 0xaf0   :  { %v6952_v17 = vpop.eup %6951  ;;  %5385 = vst [vmem:[#allocation13 + $0x180] sm:$0xff] %v10447_v23 }
 0xaf1   :  { %v6954_v36 = vpop.eup %6953  ;;  %4819 = vst [vmem:[#allocation13 + $0x100] sm:$0xff] %v10450_v42  ;;  %v5353_v16 = vsel %vm5337_vm14, %v6952_v17, 0.0  ;;  %v3682_v62 = vpop.xlane.xlu0 %3681  ;;  %v4835_v30 = vpack.c.bf16 %v10434_v19, %v10450_v42 }
 0xaf2   :  { %v3737_v1 = vsel %vm3721_vm3, %v6954_v36, 0.0  ;;  %v10457_v3 = vmul.f32 %v5353_v16, %v10164_v41  ;;  %v3680_v18 = vpop.xlane.xlu1 %3679  ;;  %6963 = vrcp.f32 %v3682_v62  ;;  %vm3724_vm5 = vcmp.gt.f32.partialorder %v3682_v62, 0.0 }
 0xaf3   :  { %v3753_v61 = vmul.f32 %v3737_v1, %v11442_v11  ;;  %6965 = vrcp.f32 %v3680_v18  ;;  %v11444_v1 = vld [vmem:[#allocation63_spill] sm:$0xff]  ;;  %vm3723_vm15 = vcmp.gt.f32.partialorder %v3680_v18, 0.0 }
 0xaf4   :  { %v6956_v15 = vpop.eup %6955  ;;  %5386 = vst [vmem:[#allocation13 + $0x188] sm:$0xff] %v10457_v3  ;;  %v5401_v7 = vpack.c.bf16 %v10457_v3, %v10447_v23 }
 0xaf5   :  { %v6958_v20 = vpop.eup %6957  ;;  %3769 = vst [vmem:[#allocation13 + $0x10] sm:$0xff] %v3753_v61  ;;  %v3784_v34 = vpack.c.bf16 %v10427_v63, %v3753_v61  ;;  %v5355_v25 = vsel %vm5339_vm13, %v6956_v15, 0.0  ;;  %v4159_v41 = vpop.xlane.xlu0 %4158  ;;  %v11445_v61 = vld [vmem:[#allocation66_spill] sm:$0xff] }
 0xaf6   :  { %v4214_v57 = vsel %vm4198_vm4, %v6958_v20, 0.0  ;;  %v10465_v51 = vmul.f32 %v5355_v25, %v10175_v49  ;;  %6967 = vrcp.f32 %v4159_v41  ;;  %v11446_v20 = vld [vmem:[#allocation45_spill] sm:$0xff]  ;;  %vm4201_vm0 = vcmp.gt.f32.partialorder %v4159_v41, 0.0 }
 0xaf7   :  { %v4230_v17 = vmul.f32 %v4214_v57, %v10177_v47  ;;  %6267 = vmatmul.mubr.bf16.vlgmr.msra.gmra.mrb[80].mxu0 %v3784_v34 }
 0xaf8   :  { %v6960_v36 = vpop.eup %6959  ;;  %5388 = vst [vmem:[#allocation13 + $0x198] sm:$0xff] %v10465_v51  ;;  %6315 = vmatpush3.bf16.msra.mxu0 %v11443_v8  ;;  %v11449_v8 = vld [vmem:[#allocation69_spill] sm:$0xff] }
 0xaf9   :  { %v6962_v16 = vpop.eup %6961  ;;  %4247 = vst [vmem:[#allocation13 + $0x90] sm:$0xff] %v4230_v17  ;;  %v4262_v63 = vpack.c.bf16 %v10442_v13, %v4230_v17  ;;  %v4788_v44 = vsel %vm4772_vm12, %v6960_v36, 0.0  ;;  %6316 = vmatprep.subr.bf16.mxu0 %v11444_v1  ;;  %v4733_v49 = vpop.xlane.xlu0 %4732  ;;  %v11448_v36 = vld [vmem:[#allocation49_spill] sm:$0xff] }
 0xafa   :  { %v5354_v11 = vsel %vm5338_vm11, %v6962_v16, 0.0  ;;  %v10473_v15 = vmul.f32 %v4788_v44, %v11445_v61  ;;  %v4731_v47 = vpop.xlane.xlu1 %4730  ;;  %6969 = vrcp.f32 %v4733_v49  ;;  %v11450_v44 = vld [vmem:[#allocation59_spill] sm:$0xff]  ;;  %vm4775_vm6 = vcmp.gt.f32.partialorder %v4733_v49, 0.0 }
 0xafb   :  { %v10476_v34 = vmul.f32 %v5354_v11, %v11446_v20  ;;  %6971 = vrcp.f32 %v4731_v47  ;;  %6299 = vmatmul.mubr.bf16.vlgmr.msra.gmra.mrb[80].mxu1 %v4262_v63  ;;  %v11451_v61 = vld [vmem:[#allocation71_spill] sm:$0xff]  ;;  %v11452_v20 = vld [vmem:[#allocation22_spill] sm:$0xff]  ;;  %vm4774_vm9 = vcmp.gt.f32.partialorder %v4731_v47, 0.0 }
 0xafc   :  { %v6964_v10 = vpop.eup %6963  ;;  %4821 = vst [vmem:[#allocation13 + $0x110] sm:$0xff] %v10473_v15  ;;  %6317 = vmatpush3.bf16.msra.mxu0 %v11444_v1  ;;  %6347 = vmatpush3.bf16.msra.mxu1 %v11447_v32  ;;  %v11473_v19 = vpack.c.bf16 %v10439_v5, %v10473_v15 }
 0xafd   :  { %v6966_v25 = vpop.eup %6965  ;;  %5387 = vst [vmem:[#allocation13 + $0x190] sm:$0xff] %v10476_v34  ;;  %v3740_v17 = vsel %vm3724_vm5, %v6964_v10, 0.0  ;;  %6318 = vmatprep.subr.bf16.mxu0 %v11448_v36  ;;  %6348 = vmatprep.subr.bf16.mxu1 %v11449_v8  ;;  %v5299_v16 = vpop.xlane.xlu0 %5298 }
 0xafe   :  { %v3739_v63 = vsel %vm3723_vm15, %v6966_v25, 0.0  ;;  %v3756_v62 = vmul.f32 %v3740_v17, %v11450_v44  ;;  %6973 = vrcp.f32 %v5299_v16  ;;  %v11453_v25 = vld [vmem:[#allocation77_spill] sm:$0xff]  ;;  %vm5341_vm2 = vcmp.gt.f32.partialorder %v5299_v16, 0.0 }
 0xaff   :  { %v3755_v1 = vmul.f32 %v3739_v63, %v10198_v43  ;;  %v11455_v63 = vld [vmem:[#allocation67_spill] sm:$0xff] }
 0xb00   :  { %v6968_v11 = vpop.eup %6967  ;;  %3772 = vst [vmem:[#allocation13 + $0x28] sm:$0xff] %v3756_v62  ;;  %6319 = vmatpush3.bf16.msra.mxu0 %v11448_v36  ;;  %6349 = vmatpush3.bf16.msra.mxu1 %v11449_v8  ;;  %v11454_v8 = vld [vmem:[#allocation27_spill] sm:$0xff] }
 0xb01   :  { %3771 = vst [vmem:[#allocation13 + $0x20] sm:$0xff] %v3755_v1  ;;  %v4217_v18 = vsel %vm4201_vm0, %v6968_v11, 0.0  ;;  %6320 = vmatprep.subr.bf16.mxu0 %v11451_v61  ;;  %6350 = vmatprep.subr.bf16.mxu1 %v11452_v20  ;;  %v4157_v10 = vpop.xlane.xlu0 %4156  ;;  %v3785_v32 = vpack.c.bf16 %v3756_v62, %v3755_v1 }
 0xb02   :  { %v10495_v17 = vmul.f32 %v4217_v18, %v11453_v25  ;;  %v3684_v44 = vpop.xlane.xlu1 %3683  ;;  %6975 = vrcp.f32 %v4157_v10  ;;  %vm4200_vm10 = vcmp.gt.f32.partialorder %v4157_v10, 0.0 }
 0xb03   :  { %6977 = vrcp.f32 %v3684_v44  ;;  %6270 = vmatprep.mubr.bf16.mxu0 %v3785_v32  ;;  %v11458_v32 = vld [vmem:[#allocation81_spill] sm:$0xff]  ;;  %vm3725_vm7 = vcmp.gt.f32.partialorder %v3684_v44, 0.0 }
 0xb04   :  { %v6970_v43 = vpop.eup %6969  ;;  %4250 = vst [vmem:[#allocation13 + $0xa8] sm:$0xff] %v10495_v17  ;;  %6321 = vmatpush3.bf16.msra.mxu0 %v11451_v61  ;;  %6351 = vmatpush3.bf16.msra.mxu1 %v11452_v20  ;;  %v11456_v61 = vld [vmem:[#allocation79_spill] sm:$0xff]  ;;  %v11457_v20 = vld [vmem:[#allocation29_spill] sm:$0xff] }
 0xb05   :  { %v6972_v41 = vpop.eup %6971  ;;  %v4791_v36 = vsel %vm4775_vm6, %v6970_v43, 0.0  ;;  %6322 = vmatprep.subr.bf16.mxu0 %v11454_v8  ;;  %6352 = vmatprep.subr.bf16.mxu1 %v11455_v63  ;;  %v5297_v62 = vpop.xlane.xlu0 %5296 }
 0xb06   :  { %v4790_v1 = vsel %vm4774_vm9, %v6972_v41, 0.0  ;;  %v10503_v11 = vmul.f32 %v4791_v36, %v10208_v52  ;;  %6979 = vrcp.f32 %v5297_v62  ;;  %vm5340_vm8 = vcmp.gt.f32.partialorder %v5297_v62, 0.0 }
 0xb07   :  { %v10506_v18 = vmul.f32 %v4790_v1, %v10211_v31 }
 0xb08   :  { %v6974_v49 = vpop.eup %6973  ;;  %4824 = vst [vmem:[#allocation13 + $0x128] sm:$0xff] %v10503_v11  ;;  %6323 = vmatpush3.bf16.msra.mxu0 %v11454_v8  ;;  %6353 = vmatpush3.bf16.msra.mxu1 %v11455_v63  ;;  %v11459_v8 = vld [vmem:[#allocation21_spill] sm:$0xff]  ;;  %v11460_v63 = vld [vmem:[#allocation26_spill] sm:$0xff] }
 0xb09   :  { %4823 = vst [vmem:[#allocation13 + $0x120] sm:$0xff] %v10506_v18  ;;  %v5357_v47 = vsel %vm5341_vm2, %v6974_v49, 0.0  ;;  %6324 = vmatprep.subr.bf16.mxu0 %v11456_v61  ;;  %6354 = vmatprep.subr.bf16.mxu1 %v11457_v20  ;;  %v3686_v52 = vpop.xlane.xlu0 %3685  ;;  %v11474_v42 = vpack.c.bf16 %v10503_v11, %v10506_v18 }
 0xb0a   :  { %v10517_v25 = vmul.f32 %v5357_v47, %v11458_v32  ;;  %v4735_v43 = vpop.xlane.xlu1 %4734  ;;  %6981 = vrcp.f32 %v3686_v52  ;;  %vm3726_vm14 = vcmp.gt.f32.partialorder %v3686_v52, 0.0 }
 0xb0b   :  { %6983 = vrcp.f32 %v4735_v43  ;;  %vm4776_vm3 = vcmp.gt.f32.partialorder %v4735_v43, 0.0 }
 0xb0c   :  { %v6976_v16 = vpop.eup %6975  ;;  %5390 = vst [vmem:[#allocation13 + $0x1a8] sm:$0xff] %v10517_v25  ;;  %6325 = vmatpush3.bf16.msra.mxu0 %v11456_v61  ;;  %6355 = vmatpush3.bf16.msra.mxu1 %v11457_v20  ;;  %v11461_v20 = vld [vmem:[#allocation24_spill] sm:$0xff] }
 0xb0d   :  { %v6978_v41 = vpop.eup %6977  ;;  %v4216_v36 = vsel %vm4200_vm10, %v6976_v16, 0.0  ;;  %6326 = vmatprep.subr.bf16.mxu0 %v11459_v8  ;;  %6356 = vmatprep.subr.bf16.mxu1 %v11460_v63  ;;  %v4163_v1 = vpop.xlane.xlu0 %4162 }
 0xb0e   :  { %v3741_v49 = vsel %vm3725_vm7, %v6978_v41, 0.0  ;;  %v4232_v47 = vmul.f32 %v4216_v36, %v10221_v21  ;;  %v3690_v32 = vpop.xlane.xlu1 %3689  ;;  %6985 = vrcp.f32 %v4163_v1  ;;  %v11462_v21 = vld [vmem:[#allocation70_spill] sm:$0xff]  ;;  %vm4203_vm13 = vcmp.gt.f32.partialorder %v4163_v1, 0.0 }
 0xb0f   :  { %v3757_v57 = vmul.f32 %v3741_v49, %v10229_v60  ;;  %6987 = vrcp.f32 %v3690_v32  ;;  %vm3728_vm4 = vcmp.gt.f32.partialorder %v3690_v32, 0.0 }
 0xb10   :  { %v6980_v10 = vpop.eup %6979  ;;  %4249 = vst [vmem:[#allocation13 + $0xa0] sm:$0xff] %v4232_v47  ;;  %6327 = vmatpush3.bf16.msra.mxu0 %v11459_v8  ;;  %6357 = vmatpush3.bf16.msra.mxu1 %v11460_v63  ;;  %v4263_v44 = vpack.c.bf16 %v10495_v17, %v4232_v47  ;;  %v11463_v47 = vld [vmem:[#allocation48_spill] sm:$0xff] }
 0xb11   :  { %3773 = vst [vmem:[#allocation13 + $0x30] sm:$0xff] %v3757_v57  ;;  %v5356_v61 = vsel %vm5340_vm8, %v6980_v10, 0.0  ;;  %6358 = vmatprep.subr.bf16.mxu1 %v11461_v20  ;;  %v4737_v16 = vpop.xlane.xlu0 %4736 }
 0xb12   :  { %v10531_v41 = vmul.f32 %v5356_v61, %v11462_v21  ;;  %6989 = vrcp.f32 %v4737_v16  ;;  %6302 = vmatprep.mubr.bf16.mxu1 %v4263_v44  ;;  %v11464_v61 = vld [vmem:[#allocation23_spill] sm:$0xff]  ;;  %vm4777_vm12 = vcmp.gt.f32.partialorder %v4737_v16, 0.0 }
 0xb14   :  { %v6982_v60 = vpop.eup %6981  ;;  %5389 = vst [vmem:[#allocation13 + $0x1a0] sm:$0xff] %v10531_v41  ;;  %6359 = vmatpush3.bf16.msra.mxu1 %v11461_v20  ;;  %v11476_v23 = vpack.c.bf16 %v10517_v25, %v10531_v41 }
 0xb15   :  { %v6984_v17 = vpop.eup %6983  ;;  %v3742_v36 = vsel %vm3726_vm14, %v6982_v60, 0.0  ;;  %v5307_v8 = vpop.xlane.xlu1 %5306 }
 0xb16   :  { %v5303_v63 = vpop.xlane.xlu0 %5302  ;;  %v4792_v49 = vsel %vm4776_vm3, %v6984_v17, 0.0  ;;  %v3758_v10 = vmul.f32 %v3742_v36, %v11463_v47  ;;  %6991 = vrcp.f32 %v5307_v8  ;;  %vm5345_vm11 = vcmp.gt.f32.partialorder %v5307_v8, 0.0 }
 0xb17   :  { %v10539_v44 = vmul.f32 %v4792_v49, %v11464_v61  ;;  %6993 = vrcp.f32 %v5303_v63  ;;  %vm5343_vm5 = vcmp.gt.f32.partialorder %v5303_v63, 0.0 }
 0xb18   :  { %v6986_v21 = vpop.eup %6985  ;;  %3774 = vst [vmem:[#allocation13 + $0x38] sm:$0xff] %v3758_v10  ;;  %v3786_v52 = vpack.c.bf16 %v3758_v10, %v3757_v57 }
 0xb19   :  { %v6988_v20 = vpop.eup %6987  ;;  %4825 = vst [vmem:[#allocation13 + $0x130] sm:$0xff] %v10539_v44  ;;  %v4219_v43 = vsel %vm4203_vm13, %v6986_v21, 0.0  ;;  %v3688_v60 = vpop.xlane.xlu1 %3687 }
 0xb1a   :  { %v4161_v62 = vpop.xlane.xlu0 %4160  ;;  %v3744_v31 = vsel %vm3728_vm4, %v6988_v20, 0.0  ;;  %v4235_v17 = vmul.f32 %v4219_v43, %v10252_v48  ;;  %6995 = vrcp.f32 %v3688_v60  ;;  %6271 = vmatmul.mubr.bf16.gmra.mrb[84].mxu0 %v3786_v52  ;;  %vm3727_vm15 = vcmp.gt.f32.partialorder %v3688_v60, 0.0 }
 0xb1b   :  { %v3760_v36 = vmul.f32 %v3744_v31, %v10260_v45  ;;  %6997 = vrcp.f32 %v4161_v62  ;;  %vm4202_vm0 = vcmp.gt.f32.partialorder %v4161_v62, 0.0 }
 0xb1c   :  { %v6990_v49 = vpop.eup %6989  ;;  %4252 = vst [vmem:[#allocation13 + $0xb8] sm:$0xff] %v4235_v17 }
 0xb1d   :  { %3776 = vst [vmem:[#allocation13 + $0x48] sm:$0xff] %v3760_v36  ;;  %v4793_v57 = vsel %vm4777_vm12, %v6990_v49, 0.0  ;;  %v4739_v1 = vpop.xlane.xlu1 %4738 }
 0xb1e   :  { %v5301_v47 = vpop.xlane.xlu0 %5300  ;;  %v10545_v32 = vmul.f32 %v4793_v57, %v10267_v28  ;;  %6999 = vrcp.f32 %v4739_v1  ;;  %v11465_v28 = vld [vmem:[#allocation76_spill] sm:$0xff]  ;;  %vm4778_vm6 = vcmp.gt.f32.partialorder %v4739_v1, 0.0 }
 0xb1f   :  { %7001 = vrcp.f32 %v5301_v47  ;;  %vm5342_vm9 = vcmp.gt.f32.partialorder %v5301_v47, 0.0 }
 0xb20   :  { %v6992_v10 = vpop.eup %6991  ;;  %4826 = vst [vmem:[#allocation13 + $0x138] sm:$0xff] %v10545_v32  ;;  %v11477_v5 = vpack.c.bf16 %v10545_v32, %v10539_v44 }
 0xb21   :  { %v6994_v45 = vpop.eup %6993  ;;  %v5361_v31 = vsel %vm5345_vm11, %v6992_v10, 0.0  ;;  %v5305_v16 = vpop.xlane.xlu1 %5304 }
 0xb22   :  { %v4167_v61 = vpop.xlane.xlu0 %4166  ;;  %v10551_v21 = vmul.f32 %v5361_v31, %v10275_v9  ;;  %v5359_v52 = vsel %vm5343_vm5, %v6994_v45, 0.0  ;;  %7003 = vrcp.f32 %v5305_v16  ;;  %vm5344_vm2 = vcmp.gt.f32.partialorder %v5305_v16, 0.0 }
 0xb23   :  { %v10554_v20 = vmul.f32 %v5359_v52, %v11465_v28  ;;  %7005 = vrcp.f32 %v4167_v61  ;;  %vm4205_vm10 = vcmp.gt.f32.partialorder %v4167_v61, 0.0 }
 0xb24   :  { %v6996_v43 = vpop.eup %6995  ;;  %5394 = vst [vmem:[#allocation13 + $0x1c8] sm:$0xff] %v10551_v21 }
 0xb25   :  { %v6998_v8 = vpop.eup %6997  ;;  %5392 = vst [vmem:[#allocation13 + $0x1b8] sm:$0xff] %v10554_v20  ;;  %v3743_v49 = vsel %vm3727_vm15, %v6996_v43, 0.0  ;;  %v3694_v63 = vpop.xlane.xlu1 %3693 }
 0xb26   :  { %v4741_v57 = vpop.xlane.xlu0 %4740  ;;  %v3759_v9 = vmul.f32 %v3743_v49, %v10287_v33  ;;  %v4218_v10 = vsel %vm4202_vm0, %v6998_v8, 0.0  ;;  %7007 = vrcp.f32 %v3694_v63  ;;  %v11466_v49 = vld [vmem:[#allocation54_spill] sm:$0xff]  ;;  %vm3730_vm7 = vcmp.gt.f32.partialorder %v3694_v63, 0.0 }
 0xb27   :  { %v4234_v45 = vmul.f32 %v4218_v10, %v10282_v55  ;;  %7009 = vrcp.f32 %v4741_v57  ;;  %v11467_v10 = vld [vmem:[#allocation61_spill] sm:$0xff]  ;;  %vm4779_vm8 = vcmp.gt.f32.partialorder %v4741_v57, 0.0 }
 0xb28   :  { %v7000_v31 = vpop.eup %6999  ;;  %3775 = vst [vmem:[#allocation13 + $0x40] sm:$0xff] %v3759_v9  ;;  %v3787_v52 = vpack.c.bf16 %v3760_v36, %v3759_v9 }
 0xb29   :  { %v7002_v28 = vpop.eup %7001  ;;  %4251 = vst [vmem:[#allocation13 + $0xb0] sm:$0xff] %v4234_v45  ;;  %v4794_v60 = vsel %vm4778_vm6, %v7000_v31, 0.0  ;;  %v4745_v48 = vpop.xlane.xlu1 %4744  ;;  %v4264_v62 = vpack.c.bf16 %v4235_v17, %v4234_v45 }
 0xb2a   :  { %v4165_v43 = vpop.xlane.xlu0 %4164  ;;  %v10561_v13 = vmul.f32 %v4794_v60, %v10296_v54  ;;  %v5358_v33 = vsel %vm5342_vm9, %v7002_v28, 0.0  ;;  %7011 = vrcp.f32 %v4745_v48  ;;  %6274 = vmatprep.mubr.bf16.mxu0 %v3787_v52  ;;  %vm4781_vm14 = vcmp.gt.f32.partialorder %v4745_v48, 0.0 }
 0xb2b   :  { %v10564_v55 = vmul.f32 %v5358_v33, %v10294_v37  ;;  %7013 = vrcp.f32 %v4165_v43  ;;  %6303 = vmatmul.mubr.bf16.gmra.mrb[84].mxu1 %v4264_v62  ;;  %vm4204_vm3 = vcmp.gt.f32.partialorder %v4165_v43, 0.0 }
 0xb2c   :  { %v7004_v1 = vpop.eup %7003  ;;  %4827 = vst [vmem:[#allocation13 + $0x140] sm:$0xff] %v10561_v13 }
 0xb2d   :  { %v7006_v36 = vpop.eup %7005  ;;  %5391 = vst [vmem:[#allocation13 + $0x1b0] sm:$0xff] %v10564_v55  ;;  %v5360_v47 = vsel %vm5344_vm2, %v7004_v1, 0.0  ;;  %v5311_v17 = vpop.xlane.xlu1 %5310  ;;  %v5404_v8 = vpack.c.bf16 %v10554_v20, %v10564_v55 }
 0xb2e   :  { %v4171_v54 = vpop.xlane.xlu0 %4170  ;;  %v10571_v9 = vmul.f32 %v5360_v47, %v11466_v49  ;;  %v4221_v37 = vsel %vm4205_vm10, %v7006_v36, 0.0  ;;  %7015 = vrcp.f32 %v5311_v17  ;;  %vm5347_vm13 = vcmp.gt.f32.partialorder %v5311_v17, 0.0 }
 0xb2f   :  { %v4237_v45 = vmul.f32 %v4221_v37, %v11467_v10  ;;  %7017 = vrcp.f32 %v4171_v54  ;;  %vm4207_vm4 = vcmp.gt.f32.partialorder %v4171_v54, 0.0 }
 0xb30   :  { %v7008_v31 = vpop.eup %7007  ;;  %5393 = vst [vmem:[#allocation13 + $0x1c0] sm:$0xff] %v10571_v9  ;;  %v5405_v16 = vpack.c.bf16 %v10551_v21, %v10571_v9 }
 0xb31   :  { %v7010_v61 = vpop.eup %7009  ;;  %4254 = vst [vmem:[#allocation13 + $0xc8] sm:$0xff] %v4237_v45  ;;  %v3746_v52 = vsel %vm3730_vm7, %v7008_v31, 0.0  ;;  %v4743_v28 = vpop.xlane.xlu1 %4742 }
 0xb32   :  { %v3692_v60 = vpop.xlane.xlu0 %3691  ;;  %v10578_v62 = vmul.f32 %v3746_v52, %v10317_v27  ;;  %v4795_v33 = vsel %vm4779_vm8, %v7010_v61, 0.0  ;;  %7019 = vrcp.f32 %v4743_v28  ;;  %vm4780_vm12 = vcmp.gt.f32.partialorder %v4743_v28, 0.0 }
 0xb33   :  { %v10581_v1 = vmul.f32 %v4795_v33, %v10312_v4  ;;  %7021 = vrcp.f32 %v3692_v60  ;;  %vm3729_vm11 = vcmp.gt.f32.partialorder %v3692_v60, 0.0 }
 0xb34   :  { %v7012_v36 = vpop.eup %7011  ;;  %3778 = vst [vmem:[#allocation13 + $0x58] sm:$0xff] %v10578_v62 }
 0xb35   :  { %v7014_v63 = vpop.eup %7013  ;;  %4828 = vst [vmem:[#allocation13 + $0x148] sm:$0xff] %v10581_v1  ;;  %v4797_v47 = vsel %vm4781_vm14, %v7012_v36, 0.0  ;;  %v5309_v57 = vpop.xlane.xlu1 %5308  ;;  %v4839_v3 = vpack.c.bf16 %v10581_v1, %v10561_v13 }
 0xb36   :  { %v4169_v49 = vpop.xlane.xlu0 %4168  ;;  %v10586_v27 = vmul.f32 %v4797_v47, %v10325_v12  ;;  %v4220_v37 = vsel %vm4204_vm3, %v7014_v63, 0.0  ;;  %7023 = vrcp.f32 %v5309_v57  ;;  %vm5346_vm5 = vcmp.gt.f32.partialorder %v5309_v57, 0.0 }
 0xb37   :  { %v4236_v4 = vmul.f32 %v4220_v37, %v10323_v35  ;;  %7025 = vrcp.f32 %v4169_v49  ;;  %vm4206_vm15 = vcmp.gt.f32.partialorder %v4169_v49, 0.0 }
 0xb38   :  { %v7016_v10 = vpop.eup %7015  ;;  %4830 = vst [vmem:[#allocation13 + $0x158] sm:$0xff] %v10586_v27 }
 0xb39   :  { %v7018_v48 = vpop.eup %7017  ;;  %4253 = vst [vmem:[#allocation13 + $0xc0] sm:$0xff] %v4236_v4  ;;  %v5363_v31 = vsel %vm5347_vm13, %v7016_v10, 0.0  ;;  %v4175_v61 = vpop.xlane.xlu1 %4174  ;;  %v4265_v52 = vpack.c.bf16 %v4237_v45, %v4236_v4 }
 0xb3a   :  { %v3698_v43 = vpop.xlane.xlu0 %3697  ;;  %v10591_v33 = vmul.f32 %v5363_v31, %v10333_v6  ;;  %v4223_v12 = vsel %vm4207_vm4, %v7018_v48, 0.0  ;;  %7027 = vrcp.f32 %v4175_v61  ;;  %vm4209_vm0 = vcmp.gt.f32.partialorder %v4175_v61, 0.0 }
 0xb3b   :  { %v4239_v36 = vmul.f32 %v4223_v12, %v10331_v0  ;;  %7029 = vrcp.f32 %v3698_v43  ;;  %6306 = vmatprep.mubr.bf16.mxu1 %v4265_v52  ;;  %vm3732_vm6 = vcmp.gt.f32.partialorder %v3698_v43, 0.0 }
 0xb3c   :  { %v7020_v35 = vpop.eup %7019  ;;  %5396 = vst [vmem:[#allocation13 + $0x1d8] sm:$0xff] %v10591_v33 }
 0xb3d   :  { %v7022_v17 = vpop.eup %7021  ;;  %4256 = vst [vmem:[#allocation13 + $0xd8] sm:$0xff] %v4239_v36  ;;  %v4796_v63 = vsel %vm4780_vm12, %v7020_v35, 0.0  ;;  %v4749_v54 = vpop.xlane.xlu1 %4748 }
 0xb3e   :  { %v3696_v47 = vpop.xlane.xlu0 %3695  ;;  %v10596_v45 = vmul.f32 %v4796_v63, %v10344_v14  ;;  %v3745_v6 = vsel %vm3729_vm11, %v7022_v17, 0.0  ;;  %7031 = vrcp.f32 %v4749_v54  ;;  %vm4783_vm9 = vcmp.gt.f32.partialorder %v4749_v54, 0.0 }
 0xb3f   :  { %v3761_v37 = vmul.f32 %v3745_v6, %v10342_v29  ;;  %7033 = vrcp.f32 %v3696_v47  ;;  %vm3731_vm2 = vcmp.gt.f32.partialorder %v3696_v47, 0.0 }
 0xb40   :  { %v7024_v0 = vpop.eup %7023  ;;  %4829 = vst [vmem:[#allocation13 + $0x150] sm:$0xff] %v10596_v45 }
 0xb41   :  { %v7026_v4 = vpop.eup %7025  ;;  %3777 = vst [vmem:[#allocation13 + $0x50] sm:$0xff] %v3761_v37  ;;  %v5362_v28 = vsel %vm5346_vm5, %v7024_v0, 0.0  ;;  %v4173_v10 = vpop.xlane.xlu1 %4172  ;;  %v3788_v48 = vpack.c.bf16 %v10578_v62, %v3761_v37 }
 0xb42   :  { %v4747_v60 = vpop.xlane.xlu0 %4746  ;;  %v10602_v14 = vmul.f32 %v5362_v28, %v10352_v50  ;;  %v4222_v31 = vsel %vm4206_vm15, %v7026_v4, 0.0  ;;  %7035 = vrcp.f32 %v4173_v10  ;;  %vm4208_vm10 = vcmp.gt.f32.partialorder %v4173_v10, 0.0 }
 0xb43   :  { %v4238_v29 = vmul.f32 %v4222_v31, %v10350_v38  ;;  %7037 = vrcp.f32 %v4747_v60  ;;  %6275 = vmatmul.mubr.bf16.gmra.mrb[88].mxu0 %v3788_v48  ;;  %vm4782_vm7 = vcmp.gt.f32.partialorder %v4747_v60, 0.0 }
 0xb44   :  { %v7028_v52 = vpop.eup %7027  ;;  %5395 = vst [vmem:[#allocation13 + $0x1d0] sm:$0xff] %v10602_v14  ;;  %v5406_v15 = vpack.c.bf16 %v10591_v33, %v10602_v14 }
 0xb45   :  { %v7030_v57 = vpop.eup %7029  ;;  %4255 = vst [vmem:[#allocation13 + $0xd0] sm:$0xff] %v4238_v29  ;;  %v4225_v49 = vsel %vm4209_vm0, %v7028_v52, 0.0  ;;  %v5315_v12 = vpop.xlane.xlu1 %5314  ;;  %v4266_v62 = vpack.c.bf16 %v4239_v36, %v4238_v29 }
 0xb46   :  { %v3702_v35 = vpop.xlane.xlu0 %3701  ;;  %v4241_v50 = vmul.f32 %v4225_v49, %v10363_v40  ;;  %v3748_v17 = vsel %vm3732_vm6, %v7030_v57, 0.0  ;;  %7039 = vrcp.f32 %v5315_v12  ;;  %vm5349_vm8 = vcmp.gt.f32.partialorder %v5315_v12, 0.0 }
 0xb47   :  { %v3764_v63 = vmul.f32 %v3748_v17, %v10361_v2  ;;  %7041 = vrcp.f32 %v3702_v35  ;;  %6307 = vmatmul.mubr.bf16.gmra.mrb[88].mxu1 %v4266_v62  ;;  %vm3734_vm14 = vcmp.gt.f32.partialorder %v3702_v35, 0.0  ;;  %vm11478_vm6 = vcmask 130112  }
 0xb48   :  { %v7032_v38 = vpop.eup %7031  ;;  %4258 = vst [vmem:[#allocation13 + $0xe8] sm:$0xff] %v4241_v50 }
 0xb49   :  { %v7034_v6 = vpop.eup %7033  ;;  %3780 = vst [vmem:[#allocation13 + $0x68] sm:$0xff] %v3764_v63  ;;  %v4799_v61 = vsel %vm4783_vm9, %v7032_v38, 0.0  ;;  %v4753_v37 = vpop.xlane.xlu1 %4752 }
 0xb4a   :  { %v4179_v43 = vpop.xlane.xlu0 %4178  ;;  %v10609_v0 = vmul.f32 %v4799_v61, %v10368_v59  ;;  %v3747_v36 = vsel %vm3731_vm2, %v7034_v6, 0.0  ;;  %7043 = vrcp.f32 %v4753_v37  ;;  %vm4785_vm3 = vcmp.gt.f32.partialorder %v4753_v37, 0.0 }
 0xb4b   :  { %v3763_v40 = vmul.f32 %v3747_v36, %v10373_v22  ;;  %7045 = vrcp.f32 %v4179_v43  ;;  %vm4211_vm13 = vcmp.gt.f32.partialorder %v4179_v43, 0.0 }
 0xb4c   :  { %v7036_v2 = vpop.eup %7035  ;;  %4832 = vst [vmem:[#allocation13 + $0x168] sm:$0xff] %v10609_v0 }
 0xb4d   :  { %v7038_v4 = vpop.eup %7037  ;;  %3779 = vst [vmem:[#allocation13 + $0x60] sm:$0xff] %v3763_v40  ;;  %v4224_v54 = vsel %vm4208_vm10, %v7036_v2, 0.0  ;;  %v5319_v28 = vpop.xlane.xlu1 %5318  ;;  %v3789_v48 = vpack.c.bf16 %v3764_v63, %v3763_v40  ;;  %v11468_v40 = vld [vmem:[#allocation60_spill] sm:$0xff] }
 0xb4e   :  { %v5313_v47 = vpop.xlane.xlu0 %5312  ;;  %v4240_v31 = vmul.f32 %v4224_v54, %v10378_v39  ;;  %v4798_v59 = vsel %vm4782_vm7, %v7038_v4, 0.0  ;;  %7047 = vrcp.f32 %v5319_v28  ;;  %vm5351_vm4 = vcmp.gt.f32.partialorder %v5319_v28, 0.0  ;;  %v11469_v54 = vld [vmem:[#allocation20_spill] sm:$0xff] }
 0xb4f   :  { %v10615_v29 = vmul.f32 %v4798_v59, %v10380_v56  ;;  %7049 = vrcp.f32 %v5313_v47  ;;  %6278 = vmatprep.mubr.bf16.mxu0 %v3789_v48  ;;  %vm5348_vm12 = vcmp.gt.f32.partialorder %v5313_v47, 0.0 }
 0xb50   :  { %v7040_v22 = vpop.eup %7039  ;;  %4257 = vst [vmem:[#allocation13 + $0xe0] sm:$0xff] %v4240_v31  ;;  %v4267_v10 = vpack.c.bf16 %v4241_v50, %v4240_v31 }
 0xb51   :  { %v7042_v52 = vpop.eup %7041  ;;  %4831 = vst [vmem:[#allocation13 + $0x160] sm:$0xff] %v10615_v29  ;;  %v5365_v60 = vsel %vm5349_vm8, %v7040_v22, 0.0  ;;  %v3700_v57 = vpop.xlane.xlu1 %3699 }
 0xb52   :  { %v5424_v49 = vpop.permute.xlu0 %5423  ;;  %v10619_v39 = vmul.f32 %v5365_v60, %v10385_v24  ;;  %v3750_v62 = vsel %vm3734_vm14, %v7042_v52, 0.0  ;;  %7051 = vrcp.f32 %v3700_v57  ;;  %6310 = vmatprep.mubr.bf16.mxu1 %v4267_v10  ;;  %vm3733_vm11 = vcmp.gt.f32.partialorder %v3700_v57, 0.0  ;;  %v11471_v57 = vld [vmem:[#allocation33_spill] sm:$0xff] }
 0xb53   :  { %6360 = vmatprep.subr.bf16.mxu1 %v5424_v49  ;;  %v3766_v56 = vmul.f32 %v3750_v62, %v10390_v26 }
 0xb54   :  { %6361 = vmatpush3.bf16.msra.mxu1 %v5424_v49  ;;  %v7044_v17 = vpop.eup %7043  ;;  %5398 = vst [vmem:[#allocation13 + $0x1e8] sm:$0xff] %v10619_v39 }
 0xb55   :  { %v7046_v12 = vpop.eup %7045  ;;  %3782 = vst [vmem:[#allocation13 + $0x78] sm:$0xff] %v3766_v56  ;;  %v4801_v50 = vsel %vm4785_vm3, %v7044_v17, 0.0  ;;  %v4177_v35 = vpop.xlane.xlu1 %4176  ;;  %v11472_v17 = vld [vmem:[#allocation37_spill] sm:$0xff] }
 0xb56   :  { %v10624_v63 = vmul.f32 %v4801_v50, %v10395_v58  ;;  %v4227_v24 = vsel %vm4211_vm13, %v7046_v12, 0.0  ;;  %7053 = vrcp.f32 %v4177_v35  ;;  %vm4210_vm5 = vcmp.gt.f32.partialorder %v4177_v35, 0.0 }
 0xb57   :  { %v4243_v38 = vmul.f32 %v4227_v24, %v10397_v53 }
 0xb58   :  { %v7048_v6 = vpop.eup %7047  ;;  %4834 = vst [vmem:[#allocation13 + $0x178] sm:$0xff] %v10624_v63 }
 0xb59   :  { %v7050_v26 = vpop.eup %7049  ;;  %4260 = vst [vmem:[#allocation13 + $0xf8] sm:$0xff] %v4243_v38  ;;  %v5367_v61 = vsel %vm5351_vm4, %v7048_v6, 0.0  ;;  %v4751_v37 = vpop.xlane.xlu1 %4750 }
 0xb5a   :  { %v5383_v36 = vmul.f32 %v5367_v61, %v10401_v46  ;;  %v5364_v43 = vsel %vm5348_vm12, %v7050_v26, 0.0  ;;  %7055 = vrcp.f32 %v4751_v37  ;;  %v11470_v46 = vld [vmem:[#allocation32_spill] sm:$0xff]  ;;  %vm4784_vm15 = vcmp.gt.f32.partialorder %v4751_v37, 0.0 }
 0xb5b   :  { %v5380_v58 = vmul.f32 %v5364_v43, %v11468_v40 }
 0xb5c   :  { %v7052_v2 = vpop.eup %7051  ;;  %5400 = vst [vmem:[#allocation13 + $0x1f8] sm:$0xff] %v5383_v36 }
 0xb5d   :  { %5397 = vst [vmem:[#allocation13 + $0x1e0] sm:$0xff] %v5380_v58  ;;  %v3749_v53 = vsel %vm3733_vm11, %v7052_v2, 0.0  ;;  %v5317_v4 = vpop.xlane.xlu1 %5316 }
 0xb5e   :  { %v3765_v48 = vmul.f32 %v3749_v53, %v11469_v54  ;;  %7057 = vrcp.f32 %v5317_v4  ;;  %vm5350_vm0 = vcmp.gt.f32.partialorder %v5317_v4, 0.0 }
 0xb60   :  { %v7054_v28 = vpop.eup %7053  ;;  %3781 = vst [vmem:[#allocation13 + $0x70] sm:$0xff] %v3765_v48  ;;  %v3790_v47 = vpack.c.bf16 %v3766_v56, %v3765_v48 }
 0xb61   :  { %v4226_v31 = vsel %vm4210_vm5, %v7054_v28, 0.0  ;;  %v4858_v59 = vpop.permute.xlu1 %4857 }
 0xb62   :  { %v4242_v22 = vmul.f32 %v4226_v31, %v11470_v46  ;;  %6279 = vmatmul.mubr.bf16.gmra.mrb[92].mxu0 %v3790_v47  ;;  %6328 = vmatprep.subr.bf16.mxu0 %v4858_v59 }
 0xb63   :  { %6329 = vmatpush3.bf16.msra.mxu0 %v4858_v59  ;;  %6330 = vmatprep.mubr.bf16.mxu0 %v4835_v30  ;;  %v11475_v30 = vpack.c.bf16 %v10465_v51, %v10476_v34  ;;  %v4841_v51 = vpack.c.bf16 %v10609_v0, %v10615_v29  ;;  %v5407_v34 = vpack.c.bf16 %v10619_v39, %v5380_v58 }
 0xb64   :  { %v7056_v10 = vpop.eup %7055  ;;  %4259 = vst [vmem:[#allocation13 + $0xf0] sm:$0xff] %v4242_v22  ;;  %v4268_v52 = vpack.c.bf16 %v4243_v38, %v4242_v22 }
 0xb65   :  { %v4800_v60 = vsel %vm4784_vm15, %v7056_v10, 0.0 }
 0xb66   :  { %v4816_v49 = vmul.f32 %v4800_v60, %v11471_v57  ;;  %6311 = vmatmul.mubr.bf16.gmra.mrb[92].mxu1 %v4268_v52 }
 0xb67   :  { %6362 = vmatprep.mubr.bf16.mxu1 %v5401_v7  ;;  %v4840_v7 = vpack.c.bf16 %v10586_v27, %v10596_v45 }
 0xb68   :  { %v7058_v62 = vpop.eup %7057  ;;  %4833 = vst [vmem:[#allocation13 + $0x170] sm:$0xff] %v4816_v49  ;;  %v4842_v13 = vpack.c.bf16 %v10624_v63, %v4816_v49 }
 0xb69   :  { %v5366_v56 = vsel %vm5350_vm0, %v7058_v62, 0.0 }
 0xb6a   :  { %v5382_v12 = vmul.f32 %v5366_v56, %v11472_v17  ;;  %6331 = vmatmul.mubr.bf16.vlgmr.msra.gmra.mrb[96].mxu0 %v11473_v19 }
 0xb6b   :  { %6334 = vmatprep.mubr.bf16.mxu0 %v11474_v42 }
 0xb6c   :  { %5399 = vst [vmem:[#allocation13 + $0x1f0] sm:$0xff] %v5382_v12  ;;  %v5408_v11 = vpack.c.bf16 %v5383_v36, %v5382_v12 }
 0xb6e   :  { %6363 = vmatmul.mubr.bf16.vlgmr.msra.gmra.mrb[96].mxu1 %v11475_v30 }
 0xb6f   :  { %6366 = vmatprep.mubr.bf16.mxu1 %v11476_v23 }
 0xb72   :  { %6335 = vmatmul.mubr.bf16.gmra.mrb[100].mxu0 %v11477_v5 }
 0xb73   :  { %6338 = vmatprep.mubr.bf16.mxu0 %v4839_v3 }
 0xb76   :  { %6367 = vmatmul.mubr.bf16.gmra.mrb[100].mxu1 %v5404_v8 }
 0xb77   :  { %6370 = vmatprep.mubr.bf16.mxu1 %v5405_v16 }
 0xb7a   :  { %6339 = vmatmul.mubr.bf16.gmra.mrb[104].mxu0 %v4840_v7 }
 0xb7b   :  { %6342 = vmatprep.mubr.bf16.mxu0 %v4841_v51 }
 0xb7e   :  { %6371 = vmatmul.mubr.bf16.gmra.mrb[104].mxu1 %v5406_v15 }
 0xb7f   :  { %6374 = vmatprep.mubr.bf16.mxu1 %v5407_v34 }
 0xb82   :  { %6343 = vmatmul.mubr.bf16.gmra.mrb[108].mxu0 %v4842_v13 }
 0xb86   :  { %6375 = vmatmul.mubr.bf16.gmra.mrb[108].mxu1 %v5408_v11 }
 0xbca   :  { %v6268_v18 = vpop.f32.mrb[80].mxu0 }
 0xbcb   :  { %3890 = vst.msk [vmem:[%s11020_s8 + $0x10] sm:$0xff] %vm159_vm1, %v6268_v18  ;;  %v3825_v25 = vpop.f32.mrb[81].mxu0 }
 0xbcc   :  { %3888 = vst.msk [vmem:[%s11020_s8] sm:$0xff] %vm159_vm1, %v3825_v25  ;;  %v6269_v41 = vpop.f32.mrb[82].mxu0 }
 0xbcd   :  { %3891 = vst.msk [vmem:[%s11020_s8 + $0x18] sm:$0xff] %vm159_vm1, %v6269_v41  ;;  %v3828_v44 = vpop.f32.mrb[83].mxu0 }
 0xbce   :  { %3889 = vst.msk [vmem:[%s11020_s8 + $0x8] sm:$0xff] %vm159_vm1, %v3828_v44  ;;  %v6300_v32 = vpop.f32.mrb[80].mxu1 }
 0xbcf   :  { %v4335_v21 = vpop.f32.mrb[81].mxu1  ;;  %4418 = vrot.lane.b32.xlu1 %v6300_v32, %s7254_s24 }
 0xbd0   :  { %v6301_v20 = vpop.f32.mrb[82].mxu1 }
 0xbd1   :  { %v4338_v55 = vpop.f32.mrb[83].mxu1 }
 0xbd3   :  { %4414 = vrot.lane.b32.xlu1 %v4335_v21, %s7254_s24 }
 0xbd7   :  { %4420 = vrot.lane.b32.xlu1 %v6301_v20, %s7254_s24 }
 0xbdb   :  { %4416 = vrot.lane.b32.xlu1 %v4338_v55, %s7254_s24 }
 0xbed   :  { %v6272_v8 = vpop.f32.mrb[84].mxu0 }
 0xbee   :  { %3894 = vst.msk [vmem:[%s11020_s8 + $0x30] sm:$0xff] %vm159_vm1, %v6272_v8  ;;  %v3841_v9 = vpop.f32.mrb[85].mxu0 }
 0xbef   :  { %3892 = vst.msk [vmem:[%s11020_s8 + $0x20] sm:$0xff] %vm159_vm1, %v3841_v9  ;;  %v6273_v16 = vpop.f32.mrb[86].mxu0 }
 0xbf0   :  { %3895 = vst.msk [vmem:[%s11020_s8 + $0x38] sm:$0xff] %vm159_vm1, %v6273_v16  ;;  %v3844_v1 = vpop.f32.mrb[87].mxu0 }
 0xbf1   :  { %3893 = vst.msk [vmem:[%s11020_s8 + $0x28] sm:$0xff] %vm159_vm1, %v3844_v1 }
 0xbfe   :  { %v6304_v27 = vpop.f32.mrb[84].mxu1 }
 0xbff   :  { %4426 = vrot.lane.b32.xlu0 %v6304_v27, %s7254_s24  ;;  %v4351_v33 = vpop.f32.mrb[85].mxu1 }
 0xc00   :  { %4422 = vrot.lane.b32.xlu1 %v4351_v33, %s7254_s24  ;;  %v6305_v45 = vpop.f32.mrb[86].mxu1 }
 0xc01   :  { %v4354_v14 = vpop.f32.mrb[87].mxu1 }
 0xc04   :  { %4428 = vrot.lane.b32.xlu1 %v6305_v45, %s7254_s24 }
 0xc08   :  { %4424 = vrot.lane.b32.xlu1 %v4354_v14, %s7254_s24 }
 0xc16   :  { %v6276_v0 = vpop.f32.mrb[88].mxu0 }
 0xc17   :  { %3898 = vst.msk [vmem:[%s11020_s8 + $0x50] sm:$0xff] %vm159_vm1, %v6276_v0  ;;  %v3857_v29 = vpop.f32.mrb[89].mxu0 }
 0xc18   :  { %3896 = vst.msk [vmem:[%s11020_s8 + $0x40] sm:$0xff] %vm159_vm1, %v3857_v29  ;;  %v6277_v39 = vpop.f32.mrb[90].mxu0 }
 0xc19   :  { %3899 = vst.msk [vmem:[%s11020_s8 + $0x58] sm:$0xff] %vm159_vm1, %v6277_v39  ;;  %v3860_v50 = vpop.f32.mrb[91].mxu0 }
 0xc1a   :  { %3897 = vst.msk [vmem:[%s11020_s8 + $0x48] sm:$0xff] %vm159_vm1, %v3860_v50  ;;  %v6308_v35 = vpop.f32.mrb[88].mxu1 }
 0xc1b   :  { %4434 = vrot.lane.b32.xlu0 %v6308_v35, %s7254_s24  ;;  %v4367_v63 = vpop.f32.mrb[89].mxu1 }
 0xc1c   :  { %v6309_v24 = vpop.f32.mrb[90].mxu1 }
 0xc1d   :  { %4436 = vrot.lane.b32.xlu1 %v6309_v24, %s7254_s24  ;;  %v4370_v38 = vpop.f32.mrb[91].mxu1 }
 0xc1f   :  { %4430 = vrot.lane.b32.xlu0 %v4367_v63, %s7254_s24 }
 0xc21   :  { %4432 = vrot.lane.b32.xlu1 %v4370_v38, %s7254_s24 }
 0xc35   :  { %v6280_v6 = vpop.f32.mrb[92].mxu0 }
 0xc36   :  { %3902 = vst.msk [vmem:[%s11020_s8 + $0x70] sm:$0xff] %vm159_vm1, %v6280_v6  ;;  %v3873_v26 = vpop.f32.mrb[93].mxu0 }
 0xc37   :  { %3900 = vst.msk [vmem:[%s11020_s8 + $0x60] sm:$0xff] %vm159_vm1, %v3873_v26  ;;  %v6281_v61 = vpop.f32.mrb[94].mxu0 }
 0xc38   :  { %3903 = vst.msk [vmem:[%s11020_s8 + $0x78] sm:$0xff] %vm159_vm1, %v6281_v61  ;;  %v3876_v37 = vpop.f32.mrb[95].mxu0 }
 0xc39   :  { %3901 = vst.msk [vmem:[%s11020_s8 + $0x68] sm:$0xff] %vm159_vm1, %v3876_v37  ;;  %v6312_v36 = vpop.f32.mrb[92].mxu1  ;;  %vm11479_vm1 = vmmov %vm11478_vm6 }
 0xc3a   :  { %4442 = vrot.lane.b32.xlu0 %v6312_v36, %s7254_s24  ;;  %v4383_v43 = vpop.f32.mrb[93].mxu1  ;;  %vm11480_vm9 = vmmov %vm11479_vm1 }
 0xc3b   :  { %v6313_v40 = vpop.f32.mrb[94].mxu1  ;;  %vm11481_vm2 = vmmov %vm11479_vm1 }
 0xc3c   :  { %4444 = vrot.lane.b32.xlu1 %v6313_v40, %s7254_s24  ;;  %v4386_v58 = vpop.f32.mrb[95].mxu1  ;;  %vm11482_vm10 = vmmov %vm11479_vm1 }
 0xc3d   :  { %v6332_v2 = vpop.f32.mrb[96].mxu0  ;;  %vm11483_vm7 = vmmov %vm11479_vm1 }
 0xc3e   :  { %v4901_v53 = vpop.f32.mrb[97].mxu0  ;;  %4438 = vrot.lane.b32.xlu0 %v4383_v43, %s7254_s24  ;;  %vm11484_vm8 = vmmov %vm11479_vm1 }
 0xc3f   :  { %v6333_v4 = vpop.f32.mrb[98].mxu0 }
 0xc40   :  { %v4904_v54 = vpop.f32.mrb[99].mxu0  ;;  %4440 = vrot.lane.b32.xlu1 %v4386_v58, %s7254_s24 }
 0xc41   :  { %v4419_v48 = vpop.permute.xlu1 %4418  ;;  %v6364_v28 = vpop.f32.mrb[96].mxu1 }
 0xc42   :  { %4464 = vst.msk [vmem:[%s11020_s8 + $0x10] sm:$0xff] %vm11478_vm6, %v4419_v48  ;;  %4984 = vrot.lane.b32.xlu0 %v6332_v2, %s7266_s6  ;;  %v5467_v47 = vpop.f32.mrb[97].mxu1 }
 0xc43   :  { %v6365_v31 = vpop.f32.mrb[98].mxu1 }
 0xc44   :  { %4986 = vrot.lane.b32.xlu1 %v6333_v4, %s7266_s6  ;;  %v5470_v59 = vpop.f32.mrb[99].mxu1 }
 0xc45   :  { %v4415_v46 = vpop.permute.xlu1 %4414  ;;  %v6336_v22 = vpop.f32.mrb[100].mxu0 }
 0xc46   :  { %4462 = vst.msk [vmem:[%s11020_s8] sm:$0xff] %vm11479_vm1, %v4415_v46  ;;  %v4917_v10 = vpop.f32.mrb[101].mxu0  ;;  %5550 = vrot.lane.b32.xlu0 %v6364_v28, %s7267_s16 }
 0xc47   :  { %v6337_v52 = vpop.f32.mrb[102].mxu0 }
 0xc48   :  { %v4920_v60 = vpop.f32.mrb[103].mxu0  ;;  %5552 = vrot.lane.b32.xlu1 %v6365_v31, %s7267_s16 }
 0xc49   :  { %v4421_v57 = vpop.permute.xlu1 %4420  ;;  %v6368_v49 = vpop.f32.mrb[100].mxu1 }
 0xc4a   :  { %4465 = vst.msk [vmem:[%s11020_s8 + $0x18] sm:$0xff] %vm11480_vm9, %v4421_v57  ;;  %4980 = vrot.lane.b32.xlu0 %v4901_v53, %s7266_s6  ;;  %v5483_v62 = vpop.f32.mrb[101].mxu1 }
 0xc4b   :  { %v6369_v56 = vpop.f32.mrb[102].mxu1 }
 0xc4c   :  { %4982 = vrot.lane.b32.xlu1 %v4904_v54, %s7266_s6  ;;  %v5486_v17 = vpop.f32.mrb[103].mxu1 }
 0xc4d   :  { %v4417_v12 = vpop.permute.xlu1 %4416  ;;  %v6340_v19 = vpop.f32.mrb[104].mxu0 }
 0xc4e   :  { %4463 = vst.msk [vmem:[%s11020_s8 + $0x8] sm:$0xff] %vm11481_vm2, %v4417_v12  ;;  %v4933_v42 = vpop.f32.mrb[105].mxu0  ;;  %5546 = vrot.lane.b32.xlu0 %v5467_v47, %s7267_s16 }
 0xc4f   :  { %v6341_v30 = vpop.f32.mrb[106].mxu0 }
 0xc50   :  { %v4936_v23 = vpop.f32.mrb[107].mxu0  ;;  %5548 = vrot.lane.b32.xlu1 %v5470_v59, %s7267_s16 }
 0xc51   :  { %v6372_v3 = vpop.f32.mrb[104].mxu1 }
 0xc52   :  { %4992 = vrot.lane.b32.xlu0 %v6336_v22, %s7266_s6  ;;  %v5499_v5 = vpop.f32.mrb[105].mxu1 }
 0xc53   :  { %v6373_v7 = vpop.f32.mrb[106].mxu1 }
 0xc54   :  { %4994 = vrot.lane.b32.xlu1 %v6337_v52, %s7266_s6  ;;  %v5502_v51 = vpop.f32.mrb[107].mxu1 }
 0xc55   :  { %v6344_v15 = vpop.f32.mrb[108].mxu0 }
 0xc56   :  { %v4949_v34 = vpop.f32.mrb[109].mxu0  ;;  %5558 = vrot.lane.b32.xlu0 %v6368_v49, %s7267_s16 }
 0xc57   :  { %v6345_v13 = vpop.f32.mrb[110].mxu0 }
 0xc58   :  { %v4952_v11 = vpop.f32.mrb[111].mxu0  ;;  %5560 = vrot.lane.b32.xlu1 %v6369_v56, %s7267_s16 }
 0xc59   :  { %v6376_v18 = vpop.f32.mrb[108].mxu1 }
 0xc5a   :  { %4988 = vrot.lane.b32.xlu0 %v4917_v10, %s7266_s6  ;;  %v5515_v25 = vpop.f32.mrb[109].mxu1 }
 0xc5b   :  { %v6377_v41 = vpop.f32.mrb[110].mxu1 }
 0xc5c   :  { %4990 = vrot.lane.b32.xlu1 %v4920_v60, %s7266_s6  ;;  %v5518_v44 = vpop.f32.mrb[111].mxu1 }
 0xc5e   :  { %5554 = vrot.lane.b32.xlu0 %v5483_v62, %s7267_s16 }
 0xc60   :  { %5556 = vrot.lane.b32.xlu1 %v5486_v17, %s7267_s16 }
 0xc62   :  { %5000 = vrot.lane.b32.xlu0 %v6340_v19, %s7266_s6 }
 0xc64   :  { %5002 = vrot.lane.b32.xlu1 %v6341_v30, %s7266_s6 }
 0xc66   :  { %5566 = vrot.lane.b32.xlu0 %v6372_v3, %s7267_s16 }
 0xc68   :  { %5568 = vrot.lane.b32.xlu1 %v6373_v7, %s7267_s16 }
 0xc6a   :  { %4996 = vrot.lane.b32.xlu0 %v4933_v42, %s7266_s6 }
 0xc6c   :  { %4998 = vrot.lane.b32.xlu1 %v4936_v23, %s7266_s6 }
 0xc6e   :  { %5562 = vrot.lane.b32.xlu0 %v5499_v5, %s7267_s16 }
 0xc70   :  { %5564 = vrot.lane.b32.xlu1 %v5502_v51, %s7267_s16 }
 0xc71   :  { %v4427_v32 = vpop.permute.xlu0 %4426 }
 0xc72   :  { %4468 = vst.msk [vmem:[%s11020_s8 + $0x30] sm:$0xff] %vm11482_vm10, %v4427_v32  ;;  %v4423_v21 = vpop.permute.xlu1 %4422  ;;  %5008 = vrot.lane.b32.xlu0 %v6344_v15, %s7266_s6 }
 0xc73   :  { %4466 = vst.msk [vmem:[%s11020_s8 + $0x20] sm:$0xff] %vm11483_vm7, %v4423_v21 }
 0xc74   :  { %5010 = vrot.lane.b32.xlu1 %v6345_v13, %s7266_s6 }
 0xc76   :  { %v4429_v20 = vpop.permute.xlu1 %4428  ;;  %5004 = vrot.lane.b32.xlu0 %v4949_v34, %s7266_s6 }
 0xc77   :  { %4469 = vst.msk [vmem:[%s11020_s8 + $0x38] sm:$0xff] %vm11484_vm8, %v4429_v20 }
 0xc78   :  { %7209 = shalt.err (!%p7206_p2)
}
 0xc79   :  { %s7210_s14 = scalar_lea.hbm %s11021_s9, 8192 }
 0xc7a   :  { %p7211_p3 = scmp.ne.s32.totalorder %s11021_s9, %s7210_s14  ;;  %p7214_p4 = scmp.lt.u32.totalorder %s7210_s14, %s11021_s9 }
 0xc7c   :  { %p7216_p5 = pnand %p7214_p4, %p7211_p3 }
 0xc7e   :  { %7219 = shalt.err (!%p7216_p5)
}
 0xc7f   :  { %5623 = dma.vmem_to_hbm [thread:$0]  %s5618_s13, 8192, %s11021_s9, [#allocation5], %s7253_s23, %s7253_s23, %s7254_s24  }
 0xc80   :  { %5006 = vrot.lane.b32.xlu1 %v4952_v11, %s7266_s6  ;;  %s7220_s27 = scalar_lea.vmem %s10802_s17, 8192  ;;  %p7225_p7 = scmp.lt.s32.totalorder %s10802_s17, %s10802_s17 }
 0xc81   :  { %p7221_p6 = scmp.ne.s32.totalorder %s10802_s17, %s7220_s27  ;;  %p7226_p8 = scmp.lt.s32.totalorder %s7220_s27, %s7220_s27 }
 0xc83   :  { %p7227_p9 = por %p7226_p8, %p7225_p7 }
 0xc85   :  { %p7228_p10 = pnand %p7227_p9, %p7221_p6 }
 0xc87   :  { %7231 = shalt.err (!%p7228_p10)
}
 0xc88   :  { %s7232_s29 = scalar_lea.hbm %s11022_s10, 8192 }
 0xc89   :  { %p7233_p11 = scmp.ne.s32.totalorder %s11022_s10, %s7232_s29  ;;  %p7236_p12 = scmp.lt.u32.totalorder %s7232_s29, %s11022_s10 }
 0xc8b   :  { %p7238_p13 = pnand %p7236_p12, %p7233_p11 }
 0xc8d   :  { %7241 = shalt.err (!%p7238_p13)
}
 0xc8e   :  { %5635 = dma.vmem_to_hbm [thread:$0]  %s10802_s17, 8192, %s11022_s10, [#allocation14], %s7253_s23, %s7253_s23, %s7254_s24   ;;  %v4425_v55 = vpop.permute.xlu1 %4424  ;;  %vm11485_vm14 = vmmov %vm11479_vm1  ;;  %v4435_v8 = vpop.permute.xlu0 %4434  ;;  %vm11494_vm6 = vcmask 195712   ;;  %vm11496_vm9 = vcmask 261312  }
 0xc8f   :  { %5570 = vrot.lane.b32.xlu0 %v5515_v25, %s7267_s16  ;;  %4467 = vst.msk [vmem:[%s11020_s8 + $0x28] sm:$0xff] %vm11485_vm14, %v4425_v55  ;;  %5572 = vrot.lane.b32.xlu1 %v5518_v44, %s7267_s16  ;;  %vm11486_vm3 = vmmov %vm11479_vm1 }
 0xc90   :  { %4472 = vst.msk [vmem:[%s11020_s8 + $0x50] sm:$0xff] %vm11486_vm3, %v4435_v8  ;;  %vm11487_vm13 = vmmov %vm11479_vm1 }
 0xc91   :  { %vm11488_vm4 = vmmov %vm11479_vm1 }
 0xc92   :  { %v4437_v9 = vpop.permute.xlu1 %4436  ;;  %v4431_v16 = vpop.permute.xlu0 %4430  ;;  %vm11489_vm12 = vmmov %vm11479_vm1 }
 0xc93   :  { %5574 = vrot.lane.b32.xlu0 %v6376_v18, %s7267_s16  ;;  %5576 = vrot.lane.b32.xlu1 %v6377_v41, %s7267_s16  ;;  %4473 = vst.msk [vmem:[%s11020_s8 + $0x58] sm:$0xff] %vm11487_vm13, %v4437_v9  ;;  %vm11490_vm11 = vmmov %vm11479_vm1 }
 0xc94   :  { %4470 = vst.msk [vmem:[%s11020_s8 + $0x40] sm:$0xff] %vm11488_vm4, %v4431_v16  ;;  %vm11491_vm5 = vmmov %vm11479_vm1 }
 0xc95   :  { %vm11492_vm15 = vmmov %vm11479_vm1 }
 0xc96   :  { %v4433_v1 = vpop.permute.xlu1 %4432  ;;  %vm11493_vm0 = vmmov %vm11479_vm1 }
 0xc97   :  { %4471 = vst.msk [vmem:[%s11020_s8 + $0x48] sm:$0xff] %vm11489_vm12, %v4433_v1  ;;  %vm11495_vm1 = vmmov %vm11494_vm6 }
 0xc98   :  { %vm11497_vm2 = vmmov %vm11496_vm9 }
 0xc99   :  { %vm11498_vm10 = vmmov %vm11495_vm1 }
 0xc9a   :  { %vm11499_vm7 = vmmov %vm11495_vm1 }
 0xc9b   :  { %vm11500_vm8 = vmmov %vm11497_vm2 }
 0xc9c   :  { %vm11501_vm14 = vmmov %vm11497_vm2 }
 0xc9d   :  { %vm11502_vm3 = vmmov %vm11495_vm1 }
 0xc9e   :  { %vm11503_vm13 = vmmov %vm11495_vm1 }
 0xc9f   :  { %vm11504_vm4 = vmmov %vm11497_vm2 }
 0xca0   :  { %vm11505_vm12 = vmmov %vm11497_vm2 }
 0xcac   :  { %v4443_v27 = vpop.permute.xlu0 %4442 }
 0xcad   :  { %4476 = vst.msk [vmem:[%s11020_s8 + $0x70] sm:$0xff] %vm11490_vm11, %v4443_v27  ;;  %vm11506_vm11 = vmmov %vm11495_vm1 }
 0xcae   :  { %v4445_v33 = vpop.permute.xlu1 %4444 }
 0xcaf   :  { %4477 = vst.msk [vmem:[%s11020_s8 + $0x78] sm:$0xff] %vm11491_vm5, %v4445_v33  ;;  %vm11507_vm5 = vmmov %vm11495_vm1 }
 0xcb0   :  { %v4439_v45 = vpop.permute.xlu0 %4438 }
 0xcb1   :  { %4474 = vst.msk [vmem:[%s11020_s8 + $0x60] sm:$0xff] %vm11492_vm15, %v4439_v45  ;;  %vm11508_vm15 = vmmov %vm11497_vm2 }
 0xcb2   :  { %v4441_v14 = vpop.permute.xlu1 %4440 }
 0xcb3   :  { %4475 = vst.msk [vmem:[%s11020_s8 + $0x68] sm:$0xff] %vm11493_vm0, %v4441_v14  ;;  %vm11509_vm0 = vmmov %vm11497_vm2 }
 0xcb4   :  { %v4985_v0 = vpop.permute.xlu0 %4984 }
 0xcb5   :  { %5030 = vst.msk [vmem:[%s11020_s8 + $0x10] sm:$0xff] %vm11494_vm6, %v4985_v0  ;;  %vm11510_vm6 = vmmov %vm11495_vm1 }
 0xcb6   :  { %v4987_v29 = vpop.permute.xlu1 %4986 }
 0xcb7   :  { %5031 = vst.msk [vmem:[%s11020_s8 + $0x18] sm:$0xff] %vm11495_vm1, %v4987_v29 }
 0xcb8   :  { %v5551_v39 = vpop.permute.xlu0 %5550 }
 0xcb9   :  { %5596 = vst.msk [vmem:[%s11020_s8 + $0x10] sm:$0xff] %vm11496_vm9, %v5551_v39  ;;  %vm11511_vm9 = vmmov %vm11509_vm0 }
 0xcba   :  { %v5553_v50 = vpop.permute.xlu1 %5552 }
 0xcbb   :  { %5597 = vst.msk [vmem:[%s11020_s8 + $0x18] sm:$0xff] %vm11497_vm2, %v5553_v50  ;;  %vm11512_vm2 = vmmov %vm11509_vm0 }
 0xcbc   :  { %v4981_v35 = vpop.permute.xlu0 %4980 }
 0xcbd   :  { %5028 = vst.msk [vmem:[%s11020_s8] sm:$0xff] %vm11498_vm10, %v4981_v35  ;;  %vm11513_vm10 = vmmov %vm11495_vm1 }
 0xcbe   :  { %v4983_v63 = vpop.permute.xlu1 %4982 }
 0xcbf   :  { %5029 = vst.msk [vmem:[%s11020_s8 + $0x8] sm:$0xff] %vm11499_vm7, %v4983_v63  ;;  %vm11514_vm7 = vmmov %vm11495_vm1 }
 0xcc0   :  { %v5547_v24 = vpop.permute.xlu0 %5546 }
 0xcc1   :  { %5594 = vst.msk [vmem:[%s11020_s8] sm:$0xff] %vm11500_vm8, %v5547_v24  ;;  %vm11515_vm8 = vmmov %vm11509_vm0 }
 0xcc2   :  { %v5549_v38 = vpop.permute.xlu1 %5548 }
 0xcc3   :  { %5595 = vst.msk [vmem:[%s11020_s8 + $0x8] sm:$0xff] %vm11501_vm14, %v5549_v38  ;;  %vm11516_vm14 = vmmov %vm11509_vm0 }
 0xcc4   :  { %v4993_v6 = vpop.permute.xlu0 %4992 }
 0xcc5   :  { %5034 = vst.msk [vmem:[%s11020_s8 + $0x30] sm:$0xff] %vm11502_vm3, %v4993_v6  ;;  %vm11517_vm3 = vmmov %vm11495_vm1 }
 0xcc6   :  { %v4995_v26 = vpop.permute.xlu1 %4994 }
 0xcc7   :  { %5035 = vst.msk [vmem:[%s11020_s8 + $0x38] sm:$0xff] %vm11503_vm13, %v4995_v26  ;;  %vm11518_vm13 = vmmov %vm11495_vm1 }
 0xcc8   :  { %v5559_v61 = vpop.permute.xlu0 %5558 }
 0xcc9   :  { %5600 = vst.msk [vmem:[%s11020_s8 + $0x30] sm:$0xff] %vm11504_vm4, %v5559_v61  ;;  %vm11519_vm4 = vmmov %vm11495_vm1 }
 0xcca   :  { %v5561_v37 = vpop.permute.xlu1 %5560 }
 0xccb   :  { %5601 = vst.msk [vmem:[%s11020_s8 + $0x38] sm:$0xff] %vm11505_vm12, %v5561_v37  ;;  %vm11520_vm12 = vmmov %vm11495_vm1 }
 0xccc   :  { %v4989_v36 = vpop.permute.xlu0 %4988 }
 0xccd   :  { %5032 = vst.msk [vmem:[%s11020_s8 + $0x20] sm:$0xff] %vm11506_vm11, %v4989_v36  ;;  %vm11521_vm11 = vmmov %vm11509_vm0 }
 0xcce   :  { %v4991_v43 = vpop.permute.xlu1 %4990 }
 0xccf   :  { %5033 = vst.msk [vmem:[%s11020_s8 + $0x28] sm:$0xff] %vm11507_vm5, %v4991_v43  ;;  %vm11522_vm5 = vmmov %vm11509_vm0 }
 0xcd0   :  { %v5555_v40 = vpop.permute.xlu0 %5554 }
 0xcd1   :  { %5598 = vst.msk [vmem:[%s11020_s8 + $0x20] sm:$0xff] %vm11508_vm15, %v5555_v40  ;;  %vm11523_vm15 = vmmov %vm11509_vm0 }
 0xcd2   :  { %v5557_v58 = vpop.permute.xlu1 %5556 }
 0xcd3   :  { %5599 = vst.msk [vmem:[%s11020_s8 + $0x28] sm:$0xff] %vm11509_vm0, %v5557_v58 }
 0xcd4   :  { %v5001_v2 = vpop.permute.xlu0 %5000 }
 0xcd5   :  { %5038 = vst.msk [vmem:[%s11020_s8 + $0x50] sm:$0xff] %vm11510_vm6, %v5001_v2 }
 0xcd6   :  { %v5003_v53 = vpop.permute.xlu1 %5002 }
 0xcd7   :  { %5039 = vst.msk [vmem:[%s11020_s8 + $0x58] sm:$0xff] %vm11495_vm1, %v5003_v53 }
 0xcd8   :  { %v5567_v4 = vpop.permute.xlu0 %5566 }
 0xcd9   :  { %5604 = vst.msk [vmem:[%s11020_s8 + $0x50] sm:$0xff] %vm11511_vm9, %v5567_v4 }
 0xcda   :  { %v5569_v54 = vpop.permute.xlu1 %5568 }
 0xcdb   :  { %5605 = vst.msk [vmem:[%s11020_s8 + $0x58] sm:$0xff] %vm11512_vm2, %v5569_v54 }
 0xcdc   :  { %v4997_v48 = vpop.permute.xlu0 %4996 }
 0xcdd   :  { %5036 = vst.msk [vmem:[%s11020_s8 + $0x40] sm:$0xff] %vm11513_vm10, %v4997_v48 }
 0xcde   :  { %v4999_v28 = vpop.permute.xlu1 %4998 }
 0xcdf   :  { %5037 = vst.msk [vmem:[%s11020_s8 + $0x48] sm:$0xff] %vm11514_vm7, %v4999_v28 }
 0xce0   :  { %v5563_v47 = vpop.permute.xlu0 %5562 }
 0xce1   :  { %5602 = vst.msk [vmem:[%s11020_s8 + $0x40] sm:$0xff] %vm11515_vm8, %v5563_v47 }
 0xce2   :  { %v5565_v31 = vpop.permute.xlu1 %5564 }
 0xce3   :  { %5603 = vst.msk [vmem:[%s11020_s8 + $0x48] sm:$0xff] %vm11516_vm14, %v5565_v31 }
 0xce4   :  { %v5009_v59 = vpop.permute.xlu0 %5008 }
 0xce5   :  { %5042 = vst.msk [vmem:[%s11020_s8 + $0x70] sm:$0xff] %vm11517_vm3, %v5009_v59 }
 0xce6   :  { %v5011_v46 = vpop.permute.xlu1 %5010 }
 0xce7   :  { %5043 = vst.msk [vmem:[%s11020_s8 + $0x78] sm:$0xff] %vm11518_vm13, %v5011_v46 }
 0xce8   :  { %v5005_v22 = vpop.permute.xlu0 %5004 }
 0xce9   :  { %5040 = vst.msk [vmem:[%s11020_s8 + $0x60] sm:$0xff] %vm11519_vm4, %v5005_v22 }
 0xcf2   :  { %v5007_v10 = vpop.permute.xlu1 %5006 }
 0xcf3   :  { %5041 = vst.msk [vmem:[%s11020_s8 + $0x68] sm:$0xff] %vm11520_vm12, %v5007_v10 }
 0xd01   :  { %v5571_v52 = vpop.permute.xlu0 %5570  ;;  %v5573_v60 = vpop.permute.xlu1 %5572 }
 0xd02   :  { %5606 = vst.msk [vmem:[%s11020_s8 + $0x60] sm:$0xff] %vm11521_vm11, %v5571_v52 }
 0xd03   :  { %5607 = vst.msk [vmem:[%s11020_s8 + $0x68] sm:$0xff] %vm11522_vm5, %v5573_v60 }
 0xd05   :  { %v5575_v57 = vpop.permute.xlu0 %5574  ;;  %v5577_v49 = vpop.permute.xlu1 %5576 }
 0xd06   :  { %5608 = vst.msk [vmem:[%s11020_s8 + $0x70] sm:$0xff] %vm11523_vm15, %v5575_v57 }
 0xd07   :  { %5609 = vst.msk [vmem:[%s11020_s8 + $0x78] sm:$0xff] %vm11509_vm0, %v5577_v49 }
 0xd08   :  { %7248 = dma.done.wait [#allocation5], 8192  }
 0xd09   :  { %7249 = vsyncadd [#allocation5], 4294959104 }
 0xd0a   :  { %7250 = dma.done.wait [#allocation14], 8192  }
 0xd0b   :  { %7251 = vsyncadd [#allocation14], 4294959104 }
 0xd0c   :  { %5644 = vsyncpa [#allocation4], 1 }
 0xd0d   :  { %5645 = vsyncpa [#allocation7], 1 }
 0xd0e   :  { %5646 = vsyncpa [#allocation10], 1 }
 0xd0f   :  { %5647 = vsyncpa [#allocation5], 1 }
 0xd10   :  { %5648 = vsyncpa [#allocation14], 1 }

</bundles_post_ra>
